<compile_context>
chip_gen: v7x
topology: tpu7x:2x2x1
jax: 0.10.0
libtpu: 0.0.40
codegen_flags: <defaults>
</compile_context>

<pallas_src>
import jax
import jax.numpy as jnp
from jax.experimental import pallas as pl
from jax.experimental.pallas import tpu as pltpu


def _round_up(n, m):
    return ((n + m - 1) // m) * m


def _pick_tn(cout, tn):
    """Largest lane-dense (multiple-of-128) tile that divides Cout, or Cout."""
    if cout <= tn:
        return cout
    t = (tn // 128) * 128
    while t >= 128:
        if cout % t == 0:
            return t
        t -= 128
    return cout


def _choose_tiles(mq, cout, tm, tn):
    mq8 = _round_up(mq, 8)
    tm_q = min(_round_up(tm, 8), mq8)
    tn_e = _pick_tn(cout, tn)
    # Prefer >=2 grid steps along a "parallel" axis (v7x megacore: 2 TCs/chip).
    if (pl.cdiv(mq8, tm_q)) * (cout // tn_e) < 2:
        if tn_e % 256 == 0:
            tn_e //= 2
        elif tm_q >= 16:
            tm_q = _round_up(tm_q // 2, 8)
    return tm_q, tn_e


def _make_kernel(tm_q):
    def kernel(p_ref, w_ref, s_ref, b_ref, o_ref):
        # p_ref : (4*tm_q, K) bf16 -- 4 pool-parity slabs of tm_q im2col rows
        # w_ref : (K, tn)     bf16 -- contiguous conv-weight tile
        # s_ref, b_ref : (1, tn) f32 folded BatchNorm scale / bias
        # o_ref : (tm_q, tn)  pooled output (bf16 for stages 1-4, f32 last)
        z = jnp.dot(p_ref[...], w_ref[...], preferred_element_type=jnp.float32)
        y = jnp.maximum(z * s_ref[...] + b_ref[...], 0.0)   # BN + ReLU, once
        pooled = jnp.maximum(
            jnp.maximum(y[0 * tm_q:1 * tm_q], y[1 * tm_q:2 * tm_q]),
            jnp.maximum(y[2 * tm_q:3 * tm_q], y[3 * tm_q:4 * tm_q]))
        o_ref[...] = pooled.astype(o_ref.dtype)
    return kernel


def conv_bn_relu_pool(x, w, scale, bias, *, out_dtype, tm=256, tn=512):
    """One CustomCNN stage. x: (B,H,W,Cin) NHWC, w: (3,3,Cin,Cout) HWIO."""
    B, H, W, Cin = x.shape
    Cout = w.shape[-1]
    assert H % 2 == 0 and W % 2 == 0
    Ho, Wo = H // 2, W // 2
    Mq = B * Ho * Wo          # pooled output positions = GEMM output rows
    K = 9 * Cin               # 3x3 receptive field, channel-minor

    tm_q, tn_e = _choose_tiles(Mq, Cout, tm, tn)
    Mq_pad = _round_up(Mq, tm_q)
    nrt = Mq_pad // tm_q
    ncol = Cout // tn_e

    # im2col split by 2x2-pool parity (pure data rearrangement; all MACs happen
    # inside the Pallas kernel).  par[2*py+px][(b*Ho+i)*Wo+j, :] = receptive
    # field of conv output position (2i+py, 2j+px) of image b.
    xb = x.astype(jnp.bfloat16)
    xp = jnp.pad(xb, ((0, 0), (1, 1), (1, 1), (0, 0)))
    par = []
    for py in range(2):
        for px in range(2):
            taps = [xp[:, py + dy:py + dy + H:2, px + dx:px + dx + W:2, :]
                    for dy in range(3) for dx in range(3)]
            par.append(jnp.concatenate(taps, axis=-1).reshape(Mq, K))
    P = jnp.stack(par, axis=0)                       # (4, Mq, K)
    if Mq_pad != Mq:
        P = jnp.pad(P, ((0, 0), (0, Mq_pad - Mq), (0, 0)))
    # Block-interleave parities per row tile: within tile i the rows are
    # [parity0 slab | parity1 slab | parity2 slab | parity3 slab], tm_q each.
    P = (P.reshape(4, nrt, tm_q, K)
          .transpose(1, 0, 2, 3)
          .reshape(nrt * 4 * tm_q, K))

    # Pre-tiled weights: each (K, tn_e) tile is contiguous in HBM.
    wm = w.reshape(K, Cout).astype(jnp.bfloat16)     # (dy,dx,cin)-major rows
    w_tiles = wm.reshape(K, ncol, tn_e).transpose(1, 0, 2)   # (ncol, K, tn_e)
    s2 = scale.reshape(1, Cout).astype(jnp.float32)
    b2 = bias.reshape(1, Cout).astype(jnp.float32)

    grid = (nrt, ncol)
    out = pl.pallas_call(
        _make_kernel(tm_q),
        out_shape=jax.ShapeDtypeStruct((Mq_pad, Cout), out_dtype),
        grid_spec=pltpu.PrefetchScalarGridSpec(
            num_scalar_prefetch=0,
            grid=grid,
            in_specs=[
                pl.BlockSpec((4 * tm_q, K), lambda i, j: (i, 0)),      # im2col
                pl.BlockSpec((None, K, tn_e), lambda i, j: (j, 0, 0)),  # weight
                pl.BlockSpec((1, tn_e), lambda i, j: (0, j)),           # scale
                pl.BlockSpec((1, tn_e), lambda i, j: (0, j)),           # bias
            ],
            out_specs=pl.BlockSpec((tm_q, tn_e), lambda i, j: (i, j)),
        ),
        compiler_params=pltpu.CompilerParams(
            dimension_semantics=("parallel", "parallel"),
            vmem_limit_bytes=48 * 1024 * 1024,   # safe headroom on v7x 64 MiB
        ),
        cost_estimate=pl.CostEstimate(
            flops=int(2 * 4 * Mq_pad * K * Cout),
            transcendentals=0,
            bytes_accessed=int(4 * Mq_pad * K * 2 + K * Cout * 2 + 2 * Cout * 4
                               + Mq_pad * Cout * jnp.dtype(out_dtype).itemsize),
        ),
    )(P, w_tiles, s2, b2)

    return out[:Mq].reshape(B, Ho, Wo, Cout)


def custom_cnn_forward(x_nchw, params):
    x = jnp.transpose(x_nchw, (0, 2, 3, 1))   # NCHW -> NHWC (channels in lanes)
    last = len(params) - 1
    for idx, (w, scale, bias) in enumerate(params):
        out_dtype = jnp.float32 if idx == last else jnp.bfloat16
        x = conv_bn_relu_pool(x, w, scale, bias, out_dtype=out_dtype)
    return jnp.transpose(x, (0, 3, 1, 2))     # back to NCHW


def init_params(key):
    """Conv weights (HWIO) + inference-folded BatchNorm scale/bias per stage."""
    specs = [(3, 64), (64, 128), (128, 256), (256, 512), (512, 2048)]
    eps = 1e-5
    params = []
    for cin, cout in specs:
        key, kw, kb, kg, kbe, km, kv = jax.random.split(key, 7)
        bound = 1.0 / ((cin * 9) ** 0.5)
        w = jax.random.uniform(kw, (3, 3, cin, cout), jnp.float32, -bound, bound)
        conv_b = jax.random.uniform(kb, (cout,), jnp.float32, -bound, bound)
        gamma = jax.random.uniform(kg, (cout,), jnp.float32, 0.8, 1.2)
        beta = jax.random.uniform(kbe, (cout,), jnp.float32, -0.1, 0.1)
        mean = 0.1 * jax.random.normal(km, (cout,), jnp.float32)
        var = jax.random.uniform(kv, (cout,), jnp.float32, 0.5, 1.5)
        scale = gamma / jnp.sqrt(var + eps)
        bias = beta + (conv_b - mean) * scale
        params.append((w, scale, bias))
    return params


def reference_forward(x_nchw, params):
    """Pure-JAX reference (lax.conv + reduce_window); same bf16 conv operands."""
    x = jnp.transpose(x_nchw, (0, 2, 3, 1))
    for w, scale, bias in params:
        y = jax.lax.conv_general_dilated(
            x.astype(jnp.bfloat16), w.astype(jnp.bfloat16),
            window_strides=(1, 1), padding=((1, 1), (1, 1)),
            dimension_numbers=("NHWC", "HWIO", "NHWC"),
            preferred_element_type=jnp.float32)
        y = jnp.maximum(y * scale + bias, 0.0)
        x = jax.lax.reduce_window(y, -jnp.inf, jax.lax.max,
                                  (1, 2, 2, 1), (1, 2, 2, 1), "VALID")
    return jnp.transpose(x, (0, 3, 1, 2))


if __name__ == "__main__":
    key = jax.random.PRNGKey(0)
    kx, kp = jax.random.split(key)

    B, H, W = 2, 32, 32                    # 5 pools: 32 -> 1
    x = jax.random.normal(kx, (B, 3, H, W), jnp.float32)
    params = init_params(kp)

    fwd = jax.jit(custom_cnn_forward)
    out = jax.block_until_ready(fwd(x, params))

    ref = reference_forward(x, params)
    assert out.shape == (B, 2048, 1, 1), out.shape
    max_diff = float(jnp.max(jnp.abs(out - ref)))
    assert jnp.allclose(out, ref, atol=2e-3, rtol=2e-2), f"max diff {max_diff}"

    print("KERNEL_OK")
</pallas_src>

<mosaic_0001>
module attributes {stable_mosaic.version = 11 : i64} {
  func.func @kernel(%arg0: i32, %arg1: i32, %arg2: memref<1024x27xbf16, #tpu.memory_space<vmem>>, %arg3: memref<1x27x64xbf16, #tpu.memory_space<vmem>>, %arg4: memref<1x64xf32, #tpu.memory_space<vmem>>, %arg5: memref<1x64xf32, #tpu.memory_space<vmem>>, %arg6: memref<256x64xbf16, #tpu.memory_space<vmem>>) attributes {dimension_semantics = [#tpu.dimension_semantics<parallel>, #tpu.dimension_semantics<parallel>], iteration_bounds = array<i64: 2, 1>, scalar_prefetch = 0 : i64, scratch_operands = 0 : i64, tpu.core_type = #tpu.core_type<tc>, window_params = [{transform_indices = @transform_0, window_bounds = array<i64: 1024, 27>}, {transform_indices = @transform_1, window_bounds = array<i64: 1, 27, 64>}, {transform_indices = @transform_2, window_bounds = array<i64: 1, 64>}, {transform_indices = @transform_3, window_bounds = array<i64: 1, 64>}, {transform_indices = @transform_4, window_bounds = array<i64: 256, 64>}]} {
    %c0 = arith.constant 0 : index
    %c0_0 = arith.constant 0 : index
    %0 = vector.load %arg2[%c0, %c0_0] : memref<1024x27xbf16, #tpu.memory_space<vmem>>, vector<1024x27xbf16>
    %c0_1 = arith.constant 0 : index
    %c0_2 = arith.constant 0 : index
    %c0_3 = arith.constant 0 : index
    %1 = vector.load %arg3[%c0_1, %c0_2, %c0_3] : memref<1x27x64xbf16, #tpu.memory_space<vmem>>, vector<1x27x64xbf16>
    %2 = vector.shape_cast %1 : vector<1x27x64xbf16> to vector<27x64xbf16>
    %cst = arith.constant dense<0.000000e+00> : vector<1024x64xf32>
    %3 = tpu.matmul %0, %2, %cst {dimension_numbers = #tpu.dot_dimension_numbers<[1], [0], [0], [1], [0, 0, 1, 1], [], []>} : vector<1024x27xbf16>, vector<27x64xbf16>, vector<1024x64xf32> -> vector<1024x64xf32>
    %c0_4 = arith.constant 0 : index
    %c0_5 = arith.constant 0 : index
    %4 = vector.load %arg4[%c0_4, %c0_5] : memref<1x64xf32, #tpu.memory_space<vmem>>, vector<1x64xf32>
    %5 = vector.broadcast %4 : vector<1x64xf32> to vector<1024x64xf32>
    %6 = arith.mulf %3, %5 : vector<1024x64xf32>
    %c0_6 = arith.constant 0 : index
    %c0_7 = arith.constant 0 : index
    %7 = vector.load %arg5[%c0_6, %c0_7] : memref<1x64xf32, #tpu.memory_space<vmem>>, vector<1x64xf32>
    %8 = vector.broadcast %7 : vector<1x64xf32> to vector<1024x64xf32>
    %9 = arith.addf %6, %8 : vector<1024x64xf32>
    %cst_8 = arith.constant 0.000000e+00 : f32
    %10 = vector.broadcast %cst_8 : f32 to vector<1024x64xf32>
    %11 = arith.maximumf %9, %10 : vector<1024x64xf32>
    %12 = vector.extract_strided_slice %11 {offsets = [0, 0], sizes = [256, 64], strides = [1, 1]} : vector<1024x64xf32> to vector<256x64xf32>
    %13 = vector.extract_strided_slice %11 {offsets = [256, 0], sizes = [256, 64], strides = [1, 1]} : vector<1024x64xf32> to vector<256x64xf32>
    %14 = arith.maximumf %12, %13 : vector<256x64xf32>
    %15 = vector.extract_strided_slice %11 {offsets = [512, 0], sizes = [256, 64], strides = [1, 1]} : vector<1024x64xf32> to vector<256x64xf32>
    %16 = vector.extract_strided_slice %11 {offsets = [768, 0], sizes = [256, 64], strides = [1, 1]} : vector<1024x64xf32> to vector<256x64xf32>
    %17 = arith.maximumf %15, %16 : vector<256x64xf32>
    %18 = arith.maximumf %14, %17 : vector<256x64xf32>
    %19 = arith.truncf %18 : vector<256x64xf32> to vector<256x64xbf16>
    %c0_9 = arith.constant 0 : index
    %c0_10 = arith.constant 0 : index
    %20 = vector.load %arg6[%c0_9, %c0_10] : memref<256x64xbf16, #tpu.memory_space<vmem>>, vector<256x64xbf16>
    tpu.vector_store %arg6[%c0_9, %c0_10], %19 {strides = array<i32>} : memref<256x64xbf16, #tpu.memory_space<vmem>>, vector<256x64xbf16>,
    return
  }
  func.func @transform_0(%arg0: i32, %arg1: i32) -> (i32, i32) {
    %c0_i32 = arith.constant 0 : i32
    %c0_i32_0 = arith.constant 0 : i32
    return %arg0, %c0_i32 : i32, i32
  }
  func.func @transform_1(%arg0: i32, %arg1: i32) -> (i32, i32, i32) {
    %c0_i32 = arith.constant 0 : i32
    %c0_i32_0 = arith.constant 0 : i32
    %c0_i32_1 = arith.constant 0 : i32
    return %arg1, %c0_i32, %c0_i32_0 : i32, i32, i32
  }
  func.func @transform_2(%arg0: i32, %arg1: i32) -> (i32, i32) {
    %c0_i32 = arith.constant 0 : i32
    %c0_i32_0 = arith.constant 0 : i32
    return %c0_i32, %arg1 : i32, i32
  }
  func.func @transform_3(%arg0: i32, %arg1: i32) -> (i32, i32) {
    %c0_i32 = arith.constant 0 : i32
    %c0_i32_0 = arith.constant 0 : i32
    return %c0_i32, %arg1 : i32, i32
  }
  func.func @transform_4(%arg0: i32, %arg1: i32) -> (i32, i32) {
    %c0_i32 = arith.constant 0 : i32
    return %arg0, %arg1 : i32, i32
  }
}

module attributes {stable_mosaic.version = 11 : i64} {
  func.func @kernel(%arg0: i32, %arg1: i32, %arg2: memref<256x576xbf16, #tpu.memory_space<vmem>>, %arg3: memref<1x576x128xbf16, #tpu.memory_space<vmem>>, %arg4: memref<1x128xf32, #tpu.memory_space<vmem>>, %arg5: memref<1x128xf32, #tpu.memory_space<vmem>>, %arg6: memref<64x128xbf16, #tpu.memory_space<vmem>>) attributes {dimension_semantics = [#tpu.dimension_semantics<parallel>, #tpu.dimension_semantics<parallel>], iteration_bounds = array<i64: 2, 1>, scalar_prefetch = 0 : i64, scratch_operands = 0 : i64, tpu.core_type = #tpu.core_type<tc>, window_params = [{transform_indices = @transform_0, window_bounds = array<i64: 256, 576>}, {transform_indices = @transform_1, window_bounds = array<i64: 1, 576, 128>}, {transform_indices = @transform_2, window_bounds = array<i64: 1, 128>}, {transform_indices = @transform_3, window_bounds = array<i64: 1, 128>}, {transform_indices = @transform_4, window_bounds = array<i64: 64, 128>}]} {
    %c0 = arith.constant 0 : index
    %c0_0 = arith.constant 0 : index
    %0 = vector.load %arg2[%c0, %c0_0] : memref<256x576xbf16, #tpu.memory_space<vmem>>, vector<256x576xbf16>
    %c0_1 = arith.constant 0 : index
    %c0_2 = arith.constant 0 : index
    %c0_3 = arith.constant 0 : index
    %1 = vector.load %arg3[%c0_1, %c0_2, %c0_3] : memref<1x576x128xbf16, #tpu.memory_space<vmem>>, vector<1x576x128xbf16>
    %2 = vector.shape_cast %1 : vector<1x576x128xbf16> to vector<576x128xbf16>
    %cst = arith.constant dense<0.000000e+00> : vector<256x128xf32>
    %3 = tpu.matmul %0, %2, %cst {dimension_numbers = #tpu.dot_dimension_numbers<[1], [0], [0], [1], [0, 0, 1, 1], [], []>} : vector<256x576xbf16>, vector<576x128xbf16>, vector<256x128xf32> -> vector<256x128xf32>
    %c0_4 = arith.constant 0 : index
    %c0_5 = arith.constant 0 : index
    %4 = vector.load %arg4[%c0_4, %c0_5] : memref<1x128xf32, #tpu.memory_space<vmem>>, vector<1x128xf32>
    %5 = vector.broadcast %4 : vector<1x128xf32> to vector<256x128xf32>
    %6 = arith.mulf %3, %5 : vector<256x128xf32>
    %c0_6 = arith.constant 0 : index
    %c0_7 = arith.constant 0 : index
    %7 = vector.load %arg5[%c0_6, %c0_7] : memref<1x128xf32, #tpu.memory_space<vmem>>, vector<1x128xf32>
    %8 = vector.broadcast %7 : vector<1x128xf32> to vector<256x128xf32>
    %9 = arith.addf %6, %8 : vector<256x128xf32>
    %cst_8 = arith.constant 0.000000e+00 : f32
    %10 = vector.broadcast %cst_8 : f32 to vector<256x128xf32>
    %11 = arith.maximumf %9, %10 : vector<256x128xf32>
    %12 = vector.extract_strided_slice %11 {offsets = [0, 0], sizes = [64, 128], strides = [1, 1]} : vector<256x128xf32> to vector<64x128xf32>
    %13 = vector.extract_strided_slice %11 {offsets = [64, 0], sizes = [64, 128], strides = [1, 1]} : vector<256x128xf32> to vector<64x128xf32>
    %14 = arith.maximumf %12, %13 : vector<64x128xf32>
    %15 = vector.extract_strided_slice %11 {offsets = [128, 0], sizes = [64, 128], strides = [1, 1]} : vector<256x128xf32> to vector<64x128xf32>
    %16 = vector.extract_strided_slice %11 {offsets = [192, 0], sizes = [64, 128], strides = [1, 1]} : vector<256x128xf32> to vector<64x128xf32>
    %17 = arith.maximumf %15, %16 : vector<64x128xf32>
    %18 = arith.maximumf %14, %17 : vector<64x128xf32>
    %19 = arith.truncf %18 : vector<64x128xf32> to vector<64x128xbf16>
    %c0_9 = arith.constant 0 : index
    %c0_10 = arith.constant 0 : index
    %20 = vector.load %arg6[%c0_9, %c0_10] : memref<64x128xbf16, #tpu.memory_space<vmem>>, vector<64x128xbf16>
    tpu.vector_store %arg6[%c0_9, %c0_10], %19 {strides = array<i32>} : memref<64x128xbf16, #tpu.memory_space<vmem>>, vector<64x128xbf16>,
    return
  }
  func.func @transform_0(%arg0: i32, %arg1: i32) -> (i32, i32) {
    %c0_i32 = arith.constant 0 : i32
    %c0_i32_0 = arith.constant 0 : i32
    return %arg0, %c0_i32 : i32, i32
  }
  func.func @transform_1(%arg0: i32, %arg1: i32) -> (i32, i32, i32) {
    %c0_i32 = arith.constant 0 : i32
    %c0_i32_0 = arith.constant 0 : i32
    %c0_i32_1 = arith.constant 0 : i32
    return %arg1, %c0_i32, %c0_i32_0 : i32, i32, i32
  }
  func.func @transform_2(%arg0: i32, %arg1: i32) -> (i32, i32) {
    %c0_i32 = arith.constant 0 : i32
    %c0_i32_0 = arith.constant 0 : i32
    return %c0_i32, %arg1 : i32, i32
  }
  func.func @transform_3(%arg0: i32, %arg1: i32) -> (i32, i32) {
    %c0_i32 = arith.constant 0 : i32
    %c0_i32_0 = arith.constant 0 : i32
    return %c0_i32, %arg1 : i32, i32
  }
  func.func @transform_4(%arg0: i32, %arg1: i32) -> (i32, i32) {
    %c0_i32 = arith.constant 0 : i32
    return %arg0, %arg1 : i32, i32
  }
}

module attributes {stable_mosaic.version = 11 : i64} {
  func.func @kernel(%arg0: i32, %arg1: i32, %arg2: memref<128x1152xbf16, #tpu.memory_space<vmem>>, %arg3: memref<1x1152x128xbf16, #tpu.memory_space<vmem>>, %arg4: memref<1x128xf32, #tpu.memory_space<vmem>>, %arg5: memref<1x128xf32, #tpu.memory_space<vmem>>, %arg6: memref<32x128xbf16, #tpu.memory_space<vmem>>) attributes {dimension_semantics = [#tpu.dimension_semantics<parallel>, #tpu.dimension_semantics<parallel>], iteration_bounds = array<i64: 1, 2>, scalar_prefetch = 0 : i64, scratch_operands = 0 : i64, tpu.core_type = #tpu.core_type<tc>, window_params = [{transform_indices = @transform_0, window_bounds = array<i64: 128, 1152>}, {transform_indices = @transform_1, window_bounds = array<i64: 1, 1152, 128>}, {transform_indices = @transform_2, window_bounds = array<i64: 1, 128>}, {transform_indices = @transform_3, window_bounds = array<i64: 1, 128>}, {transform_indices = @transform_4, window_bounds = array<i64: 32, 128>}]} {
    %c0 = arith.constant 0 : index
    %c0_0 = arith.constant 0 : index
    %0 = vector.load %arg2[%c0, %c0_0] : memref<128x1152xbf16, #tpu.memory_space<vmem>>, vector<128x1152xbf16>
    %c0_1 = arith.constant 0 : index
    %c0_2 = arith.constant 0 : index
    %c0_3 = arith.constant 0 : index
    %1 = vector.load %arg3[%c0_1, %c0_2, %c0_3] : memref<1x1152x128xbf16, #tpu.memory_space<vmem>>, vector<1x1152x128xbf16>
    %2 = vector.shape_cast %1 : vector<1x1152x128xbf16> to vector<1152x128xbf16>
    %cst = arith.constant dense<0.000000e+00> : vector<128x128xf32>
    %3 = tpu.matmul %0, %2, %cst {dimension_numbers = #tpu.dot_dimension_numbers<[1], [0], [0], [1], [0, 0, 1, 1], [], []>} : vector<128x1152xbf16>, vector<1152x128xbf16>, vector<128x128xf32> -> vector<128x128xf32>
    %c0_4 = arith.constant 0 : index
    %c0_5 = arith.constant 0 : index
    %4 = vector.load %arg4[%c0_4, %c0_5] : memref<1x128xf32, #tpu.memory_space<vmem>>, vector<1x128xf32>
    %5 = vector.broadcast %4 : vector<1x128xf32> to vector<128x128xf32>
    %6 = arith.mulf %3, %5 : vector<128x128xf32>
    %c0_6 = arith.constant 0 : index
    %c0_7 = arith.constant 0 : index
    %7 = vector.load %arg5[%c0_6, %c0_7] : memref<1x128xf32, #tpu.memory_space<vmem>>, vector<1x128xf32>
    %8 = vector.broadcast %7 : vector<1x128xf32> to vector<128x128xf32>
    %9 = arith.addf %6, %8 : vector<128x128xf32>
    %cst_8 = arith.constant 0.000000e+00 : f32
    %10 = vector.broadcast %cst_8 : f32 to vector<128x128xf32>
    %11 = arith.maximumf %9, %10 : vector<128x128xf32>
    %12 = vector.extract_strided_slice %11 {offsets = [0, 0], sizes = [32, 128], strides = [1, 1]} : vector<128x128xf32> to vector<32x128xf32>
    %13 = vector.extract_strided_slice %11 {offsets = [32, 0], sizes = [32, 128], strides = [1, 1]} : vector<128x128xf32> to vector<32x128xf32>
    %14 = arith.maximumf %12, %13 : vector<32x128xf32>
    %15 = vector.extract_strided_slice %11 {offsets = [64, 0], sizes = [32, 128], strides = [1, 1]} : vector<128x128xf32> to vector<32x128xf32>
    %16 = vector.extract_strided_slice %11 {offsets = [96, 0], sizes = [32, 128], strides = [1, 1]} : vector<128x128xf32> to vector<32x128xf32>
    %17 = arith.maximumf %15, %16 : vector<32x128xf32>
    %18 = arith.maximumf %14, %17 : vector<32x128xf32>
    %19 = arith.truncf %18 : vector<32x128xf32> to vector<32x128xbf16>
    %c0_9 = arith.constant 0 : index
    %c0_10 = arith.constant 0 : index
    %20 = vector.load %arg6[%c0_9, %c0_10] : memref<32x128xbf16, #tpu.memory_space<vmem>>, vector<32x128xbf16>
    tpu.vector_store %arg6[%c0_9, %c0_10], %19 {strides = array<i32>} : memref<32x128xbf16, #tpu.memory_space<vmem>>, vector<32x128xbf16>,
    return
  }
  func.func @transform_0(%arg0: i32, %arg1: i32) -> (i32, i32) {
    %c0_i32 = arith.constant 0 : i32
    %c0_i32_0 = arith.constant 0 : i32
    return %arg0, %c0_i32 : i32, i32
  }
  func.func @transform_1(%arg0: i32, %arg1: i32) -> (i32, i32, i32) {
    %c0_i32 = arith.constant 0 : i32
    %c0_i32_0 = arith.constant 0 : i32
    %c0_i32_1 = arith.constant 0 : i32
    return %arg1, %c0_i32, %c0_i32_0 : i32, i32, i32
  }
  func.func @transform_2(%arg0: i32, %arg1: i32) -> (i32, i32) {
    %c0_i32 = arith.constant 0 : i32
    %c0_i32_0 = arith.constant 0 : i32
    return %c0_i32, %arg1 : i32, i32
  }
  func.func @transform_3(%arg0: i32, %arg1: i32) -> (i32, i32) {
    %c0_i32 = arith.constant 0 : i32
    %c0_i32_0 = arith.constant 0 : i32
    return %c0_i32, %arg1 : i32, i32
  }
  func.func @transform_4(%arg0: i32, %arg1: i32) -> (i32, i32) {
    %c0_i32 = arith.constant 0 : i32
    return %arg0, %arg1 : i32, i32
  }
}

module attributes {stable_mosaic.version = 11 : i64} {
  func.func @kernel(%arg0: i32, %arg1: i32, %arg2: memref<32x2304xbf16, #tpu.memory_space<vmem>>, %arg3: memref<1x2304x256xbf16, #tpu.memory_space<vmem>>, %arg4: memref<1x256xf32, #tpu.memory_space<vmem>>, %arg5: memref<1x256xf32, #tpu.memory_space<vmem>>, %arg6: memref<8x256xbf16, #tpu.memory_space<vmem>>) attributes {dimension_semantics = [#tpu.dimension_semantics<parallel>, #tpu.dimension_semantics<parallel>], iteration_bounds = array<i64: 1, 2>, scalar_prefetch = 0 : i64, scratch_operands = 0 : i64, tpu.core_type = #tpu.core_type<tc>, window_params = [{transform_indices = @transform_0, window_bounds = array<i64: 32, 2304>}, {transform_indices = @transform_1, window_bounds = array<i64: 1, 2304, 256>}, {transform_indices = @transform_2, window_bounds = array<i64: 1, 256>}, {transform_indices = @transform_3, window_bounds = array<i64: 1, 256>}, {transform_indices = @transform_4, window_bounds = array<i64: 8, 256>}]} {
    %c0 = arith.constant 0 : index
    %c0_0 = arith.constant 0 : index
    %0 = vector.load %arg2[%c0, %c0_0] : memref<32x2304xbf16, #tpu.memory_space<vmem>>, vector<32x2304xbf16>
    %c0_1 = arith.constant 0 : index
    %c0_2 = arith.constant 0 : index
    %c0_3 = arith.constant 0 : index
    %1 = vector.load %arg3[%c0_1, %c0_2, %c0_3] : memref<1x2304x256xbf16, #tpu.memory_space<vmem>>, vector<1x2304x256xbf16>
    %2 = vector.shape_cast %1 : vector<1x2304x256xbf16> to vector<2304x256xbf16>
    %cst = arith.constant dense<0.000000e+00> : vector<32x256xf32>
    %3 = tpu.matmul %0, %2, %cst {dimension_numbers = #tpu.dot_dimension_numbers<[1], [0], [0], [1], [0, 0, 1, 1], [], []>} : vector<32x2304xbf16>, vector<2304x256xbf16>, vector<32x256xf32> -> vector<32x256xf32>
    %c0_4 = arith.constant 0 : index
    %c0_5 = arith.constant 0 : index
    %4 = vector.load %arg4[%c0_4, %c0_5] : memref<1x256xf32, #tpu.memory_space<vmem>>, vector<1x256xf32>
    %5 = vector.broadcast %4 : vector<1x256xf32> to vector<32x256xf32>
    %6 = arith.mulf %3, %5 : vector<32x256xf32>
    %c0_6 = arith.constant 0 : index
    %c0_7 = arith.constant 0 : index
    %7 = vector.load %arg5[%c0_6, %c0_7] : memref<1x256xf32, #tpu.memory_space<vmem>>, vector<1x256xf32>
    %8 = vector.broadcast %7 : vector<1x256xf32> to vector<32x256xf32>
    %9 = arith.addf %6, %8 : vector<32x256xf32>
    %cst_8 = arith.constant 0.000000e+00 : f32
    %10 = vector.broadcast %cst_8 : f32 to vector<32x256xf32>
    %11 = arith.maximumf %9, %10 : vector<32x256xf32>
    %12 = vector.extract_strided_slice %11 {offsets = [0, 0], sizes = [8, 256], strides = [1, 1]} : vector<32x256xf32> to vector<8x256xf32>
    %13 = vector.extract_strided_slice %11 {offsets = [8, 0], sizes = [8, 256], strides = [1, 1]} : vector<32x256xf32> to vector<8x256xf32>
    %14 = arith.maximumf %12, %13 : vector<8x256xf32>
    %15 = vector.extract_strided_slice %11 {offsets = [16, 0], sizes = [8, 256], strides = [1, 1]} : vector<32x256xf32> to vector<8x256xf32>
    %16 = vector.extract_strided_slice %11 {offsets = [24, 0], sizes = [8, 256], strides = [1, 1]} : vector<32x256xf32> to vector<8x256xf32>
    %17 = arith.maximumf %15, %16 : vector<8x256xf32>
    %18 = arith.maximumf %14, %17 : vector<8x256xf32>
    %19 = arith.truncf %18 : vector<8x256xf32> to vector<8x256xbf16>
    %c0_9 = arith.constant 0 : index
    %c0_10 = arith.constant 0 : index
    %20 = vector.load %arg6[%c0_9, %c0_10] : memref<8x256xbf16, #tpu.memory_space<vmem>>, vector<8x256xbf16>
    tpu.vector_store %arg6[%c0_9, %c0_10], %19 {strides = array<i32>} : memref<8x256xbf16, #tpu.memory_space<vmem>>, vector<8x256xbf16>,
    return
  }
  func.func @transform_0(%arg0: i32, %arg1: i32) -> (i32, i32) {
    %c0_i32 = arith.constant 0 : i32
    %c0_i32_0 = arith.constant 0 : i32
    return %arg0, %c0_i32 : i32, i32
  }
  func.func @transform_1(%arg0: i32, %arg1: i32) -> (i32, i32, i32) {
    %c0_i32 = arith.constant 0 : i32
    %c0_i32_0 = arith.constant 0 : i32
    %c0_i32_1 = arith.constant 0 : i32
    return %arg1, %c0_i32, %c0_i32_0 : i32, i32, i32
  }
  func.func @transform_2(%arg0: i32, %arg1: i32) -> (i32, i32) {
    %c0_i32 = arith.constant 0 : i32
    %c0_i32_0 = arith.constant 0 : i32
    return %c0_i32, %arg1 : i32, i32
  }
  func.func @transform_3(%arg0: i32, %arg1: i32) -> (i32, i32) {
    %c0_i32 = arith.constant 0 : i32
    %c0_i32_0 = arith.constant 0 : i32
    return %c0_i32, %arg1 : i32, i32
  }
  func.func @transform_4(%arg0: i32, %arg1: i32) -> (i32, i32) {
    %c0_i32 = arith.constant 0 : i32
    return %arg0, %arg1 : i32, i32
  }
}

module attributes {stable_mosaic.version = 11 : i64} {
  func.func @kernel(%arg0: i32, %arg1: i32, %arg2: memref<32x4608xbf16, #tpu.memory_space<vmem>>, %arg3: memref<1x4608x512xbf16, #tpu.memory_space<vmem>>, %arg4: memref<1x512xf32, #tpu.memory_space<vmem>>, %arg5: memref<1x512xf32, #tpu.memory_space<vmem>>, %arg6: memref<8x512xf32, #tpu.memory_space<vmem>>) attributes {dimension_semantics = [#tpu.dimension_semantics<parallel>, #tpu.dimension_semantics<parallel>], iteration_bounds = array<i64: 1, 4>, scalar_prefetch = 0 : i64, scratch_operands = 0 : i64, tpu.core_type = #tpu.core_type<tc>, window_params = [{transform_indices = @transform_0, window_bounds = array<i64: 32, 4608>}, {transform_indices = @transform_1, window_bounds = array<i64: 1, 4608, 512>}, {transform_indices = @transform_2, window_bounds = array<i64: 1, 512>}, {transform_indices = @transform_3, window_bounds = array<i64: 1, 512>}, {transform_indices = @transform_4, window_bounds = array<i64: 8, 512>}]} {
    %c0 = arith.constant 0 : index
    %c0_0 = arith.constant 0 : index
    %0 = vector.load %arg2[%c0, %c0_0] : memref<32x4608xbf16, #tpu.memory_space<vmem>>, vector<32x4608xbf16>
    %c0_1 = arith.constant 0 : index
    %c0_2 = arith.constant 0 : index
    %c0_3 = arith.constant 0 : index
    %1 = vector.load %arg3[%c0_1, %c0_2, %c0_3] : memref<1x4608x512xbf16, #tpu.memory_space<vmem>>, vector<1x4608x512xbf16>
    %2 = vector.shape_cast %1 : vector<1x4608x512xbf16> to vector<4608x512xbf16>
    %cst = arith.constant dense<0.000000e+00> : vector<32x512xf32>
    %3 = tpu.matmul %0, %2, %cst {dimension_numbers = #tpu.dot_dimension_numbers<[1], [0], [0], [1], [0, 0, 1, 1], [], []>} : vector<32x4608xbf16>, vector<4608x512xbf16>, vector<32x512xf32> -> vector<32x512xf32>
    %c0_4 = arith.constant 0 : index
    %c0_5 = arith.constant 0 : index
    %4 = vector.load %arg4[%c0_4, %c0_5] : memref<1x512xf32, #tpu.memory_space<vmem>>, vector<1x512xf32>
    %5 = vector.broadcast %4 : vector<1x512xf32> to vector<32x512xf32>
    %6 = arith.mulf %3, %5 : vector<32x512xf32>
    %c0_6 = arith.constant 0 : index
    %c0_7 = arith.constant 0 : index
    %7 = vector.load %arg5[%c0_6, %c0_7] : memref<1x512xf32, #tpu.memory_space<vmem>>, vector<1x512xf32>
    %8 = vector.broadcast %7 : vector<1x512xf32> to vector<32x512xf32>
    %9 = arith.addf %6, %8 : vector<32x512xf32>
    %cst_8 = arith.constant 0.000000e+00 : f32
    %10 = vector.broadcast %cst_8 : f32 to vector<32x512xf32>
    %11 = arith.maximumf %9, %10 : vector<32x512xf32>
    %12 = vector.extract_strided_slice %11 {offsets = [0, 0], sizes = [8, 512], strides = [1, 1]} : vector<32x512xf32> to vector<8x512xf32>
    %13 = vector.extract_strided_slice %11 {offsets = [8, 0], sizes = [8, 512], strides = [1, 1]} : vector<32x512xf32> to vector<8x512xf32>
    %14 = arith.maximumf %12, %13 : vector<8x512xf32>
    %15 = vector.extract_strided_slice %11 {offsets = [16, 0], sizes = [8, 512], strides = [1, 1]} : vector<32x512xf32> to vector<8x512xf32>
    %16 = vector.extract_strided_slice %11 {offsets = [24, 0], sizes = [8, 512], strides = [1, 1]} : vector<32x512xf32> to vector<8x512xf32>
    %17 = arith.maximumf %15, %16 : vector<8x512xf32>
    %18 = arith.maximumf %14, %17 : vector<8x512xf32>
    %c0_9 = arith.constant 0 : index
    %c0_10 = arith.constant 0 : index
    %19 = vector.load %arg6[%c0_9, %c0_10] : memref<8x512xf32, #tpu.memory_space<vmem>>, vector<8x512xf32>
    tpu.vector_store %arg6[%c0_9, %c0_10], %18 {strides = array<i32>} : memref<8x512xf32, #tpu.memory_space<vmem>>, vector<8x512xf32>,
    return
  }
  func.func @transform_0(%arg0: i32, %arg1: i32) -> (i32, i32) {
    %c0_i32 = arith.constant 0 : i32
    %c0_i32_0 = arith.constant 0 : i32
    return %arg0, %c0_i32 : i32, i32
  }
  func.func @transform_1(%arg0: i32, %arg1: i32) -> (i32, i32, i32) {
    %c0_i32 = arith.constant 0 : i32
    %c0_i32_0 = arith.constant 0 : i32
    %c0_i32_1 = arith.constant 0 : i32
    return %arg1, %c0_i32, %c0_i32_0 : i32, i32, i32
  }
  func.func @transform_2(%arg0: i32, %arg1: i32) -> (i32, i32) {
    %c0_i32 = arith.constant 0 : i32
    %c0_i32_0 = arith.constant 0 : i32
    return %c0_i32, %arg1 : i32, i32
  }
  func.func @transform_3(%arg0: i32, %arg1: i32) -> (i32, i32) {
    %c0_i32 = arith.constant 0 : i32
    %c0_i32_0 = arith.constant 0 : i32
    return %c0_i32, %arg1 : i32, i32
  }
  func.func @transform_4(%arg0: i32, %arg1: i32) -> (i32, i32) {
    %c0_i32 = arith.constant 0 : i32
    return %arg0, %arg1 : i32, i32
  }
}

</mosaic_0001>

<bundles_post_ra>
// kernel: custom_cnn_forward.5
= control target key start
LH: loop header
LB: loop body
LE: loop exit
PB: predicated region body
PF: predicated region fallthrough
CT: control target
= control target key end

     0   :  { %s2802_s15 = smov 0   ;;  %s2804_s16 = smov 0   ;;  %s3694_s0 = inlined_call_operand.vmem [shape: bf16[2048,27], index: 0, kind: input, shape index: {}]   ;;  %s3695_s1 = inlined_call_operand.vmem [shape: bf16[1,27,64], index: 1, kind: input, shape index: {}]   ;;  %s3696_s2 = inlined_call_operand.vmem [shape: f32[1,64], index: 2, kind: input, shape index: {}]   ;;  %s3697_s3 = inlined_call_operand.vmem [shape: f32[1,64], index: 3, kind: input, shape index: {}]   ;;  %s3698_s4 = inlined_call_operand.vmem [shape: bf16[512,64], index: 4, kind: output, shape index: {}]  }
   0x1   :  { %s2806_s17 = smov 0  }
   0x2 LB: > { %s26_s18 = sadd.s32 1, %s2770_s16  ;;  %p2254_p0 = scmp.ge.s32.totalorder %s2774_s17, 1  ;;  %s2774_s17 = sphi %s2806_s17, %s14_s17   ;;  %s2770_s16 = sphi %s2804_s16, %s3836_s16   ;;  %s2766_s15 = sphi %s2802_s15, %s3835_s15  }
   0x3   : > { %p28_p1 = scmp.ge.s32.totalorder %s26_s18, 2  ;;  %p203_p2 = scmp.lt.s32.totalorder %s2774_s17, 3 }
   0x5   : > { %s3838_s18 = smov (%p28_p1, %s26_s18), 0  ;;  %p204_p3 = pnand %p2254_p0, %p203_p2 }
   0x7   : > { %207 = sbr.rel (%p204_p3) target bundleno = 403 (0x193), region = 36 }
   0xe   : > { %v2684_v0 = vld [vmem:[%s3695_s1] sm:$0xff]   ;;  %vm926_vm0 = vcmask 1044480   ;;  %v2685_v1 = vld [vmem:[%s3695_s1 + $0x8] sm:$0x3f]   ;;  %vm927_vm1 = vcmask 1045504   ;;  %s2255_s23 = sshll.u32 %s2766_s15, 7 }
   0xf   : > { %2523 = vmatprep.subr.bf16.mxu0 %v2684_v0  ;;  %2655 = vmatprep.subr.bf16.mxu1 %v2684_v0  ;;  %v2776_v2 = vmov 65535   ;;  %p244_p4 = scmp.lt.s32.totalorder %s2255_s23, 255  ;;  %vm733_vm2 = vcmask 220160   ;;  %s2257_s6 = sshll.u32 %s2766_s15, 5  ;;  %vm2100_vm3 = vcmask 519168  }
  0x10   : > { %2524 = vmatpush3.bf16.msra.mxu0 %v2684_v0  ;;  %2657 = vmatpush3.bf16.msra.mxu1 %v2684_v0  ;;  %v928_v3 = vsel %vm926_vm0, 4294967295, %v2776_v2  ;;  %p3283_p5 = scmp.lt.s32.totalorder %s2257_s6, 63 }
  0x11   : > { %v929_v4 = vsel %vm927_vm1, %v928_v3, 0  ;;  %s3840_s23 = smov (!%p244_p4, %s2255_s23), 255 }
  0x12   : > { %v931_v5 = vand.u32 %v2685_v1, %v929_v4  ;;  %s2256_s24 = sshll.u32 %s3840_s23, 2  ;;  %s3842_s6 = smov (!%p3283_p5, %s2257_s6), 63 }
  0x13   : > { %s2832_s27 = scalar_lea.vmem %s3694_s0, %s2256_s24  ;;  %s2258_s8 = sshll.u32 %s3842_s6, 2 }
  0x14   : > { %2525 = vmatprep.subr.bf16.mxu0 %v931_v5  ;;  %2656 = vmatprep.subr.bf16.mxu1 %v931_v5  ;;  %v2686_v6 = vld [vmem:[%s2832_s27] sm:$0xff]   ;;  %v2688_v8 = vld [vmem:[%s2832_s27 + $0x8] sm:$0xff]   ;;  %v2690_v10 = vld [vmem:[%s2832_s27 + $0x10] sm:$0xff]   ;;  %s3339_s11 = scalar_lea.vmem %s3698_s4, %s2258_s8 }
  0x15   : > { %2526 = vmatpush3.bf16.msra.mxu0 %v931_v5  ;;  %2658 = vmatpush3.bf16.msra.mxu1 %v931_v5  ;;  %v2687_v7 = vld [vmem:[%s2832_s27 + $0x100] sm:$0xff]   ;;  %v2689_v9 = vld [vmem:[%s2832_s27 + $0x108] sm:$0xff]   ;;  %v2691_v11 = vld [vmem:[%s2832_s27 + $0x110] sm:$0xff]  }
  0x16   : > { %2527 = vmatprep.mubr.msk.bf16.mxu0 %vm733_vm2, %v2686_v6  ;;  %2591 = vmatprep.mubr.msk.bf16.mxu1 %vm733_vm2, %v2687_v7  ;;  %v2692_v12 = vld [vmem:[%s2832_s27 + $0x18] sm:$0xff]   ;;  %v2694_v14 = vld [vmem:[%s2832_s27 + $0x20] sm:$0xff]   ;;  %v2696_v16 = vld [vmem:[%s2832_s27 + $0x28] sm:$0xff]  }
  0x17   : > { %v2693_v13 = vld [vmem:[%s2832_s27 + $0x118] sm:$0xff]   ;;  %v2695_v15 = vld [vmem:[%s2832_s27 + $0x120] sm:$0xff]   ;;  %v2697_v17 = vld [vmem:[%s2832_s27 + $0x128] sm:$0xff]  }
  0x18   : > { %2528 = vmatmul.mubr.msk.bf16.vlgmr.msra.gmra.mrb[0].mxu0 %vm733_vm2, %v2688_v8  ;;  %2592 = vmatmul.mubr.msk.bf16.vlgmr.msra.gmra.mrb[0].mxu1 %vm733_vm2, %v2689_v9  ;;  %v2698_v18 = vld [vmem:[%s2832_s27 + $0x30] sm:$0xff]   ;;  %v2700_v20 = vld [vmem:[%s2832_s27 + $0x38] sm:$0xff]   ;;  %v2702_v22 = vld [vmem:[%s2832_s27 + $0x40] sm:$0xff]  }
  0x19   : > { %2531 = vmatprep.mubr.msk.bf16.mxu0 %vm733_vm2, %v2690_v10  ;;  %2595 = vmatprep.mubr.msk.bf16.mxu1 %vm733_vm2, %v2691_v11  ;;  %v2699_v19 = vld [vmem:[%s2832_s27 + $0x130] sm:$0xff]   ;;  %v2701_v21 = vld [vmem:[%s2832_s27 + $0x138] sm:$0xff]   ;;  %v2703_v23 = vld [vmem:[%s2832_s27 + $0x140] sm:$0xff]  }
  0x1a   : > { %v2704_v24 = vld [vmem:[%s2832_s27 + $0x48] sm:$0xff]   ;;  %v2706_v26 = vld [vmem:[%s2832_s27 + $0x50] sm:$0xff]   ;;  %v2708_v28 = vld [vmem:[%s2832_s27 + $0x58] sm:$0xff]  }
  0x1b   : > { %v2705_v25 = vld [vmem:[%s2832_s27 + $0x148] sm:$0xff]   ;;  %v2707_v27 = vld [vmem:[%s2832_s27 + $0x150] sm:$0xff]   ;;  %v2709_v29 = vld [vmem:[%s2832_s27 + $0x158] sm:$0xff]  }
  0x1c   : > { %v2710_v30 = vld [vmem:[%s2832_s27 + $0x60] sm:$0xff]   ;;  %v2712_v32 = vld [vmem:[%s2832_s27 + $0x68] sm:$0xff]   ;;  %v2714_v34 = vld [vmem:[%s2832_s27 + $0x70] sm:$0xff]  }
  0x1d   : > { %v2711_v31 = vld [vmem:[%s2832_s27 + $0x160] sm:$0xff]   ;;  %v2713_v33 = vld [vmem:[%s2832_s27 + $0x168] sm:$0xff]   ;;  %v2715_v35 = vld [vmem:[%s2832_s27 + $0x170] sm:$0xff]  }
  0x1e   : > { %v2716_v36 = vld [vmem:[%s2832_s27 + $0x78] sm:$0xff]   ;;  %v2718_v38 = vld [vmem:[%s2832_s27 + $0x80] sm:$0xff]   ;;  %v2720_v40 = vld [vmem:[%s2832_s27 + $0x88] sm:$0xff]  }
  0x1f   : > { %v2717_v37 = vld [vmem:[%s2832_s27 + $0x178] sm:$0xff]   ;;  %v2719_v39 = vld [vmem:[%s2832_s27 + $0x180] sm:$0xff]   ;;  %v2721_v41 = vld [vmem:[%s2832_s27 + $0x188] sm:$0xff]  }
  0x20   : > { %2532 = vmatmul.mubr.msk.bf16.gmra.mrb[4].mxu0 %vm733_vm2, %v2692_v12  ;;  %2596 = vmatmul.mubr.msk.bf16.gmra.mrb[4].mxu1 %vm733_vm2, %v2693_v13  ;;  %v2722_v42 = vld [vmem:[%s2832_s27 + $0x90] sm:$0xff]   ;;  %v2724_v44 = vld [vmem:[%s2832_s27 + $0x98] sm:$0xff]   ;;  %v2726_v46 = vld [vmem:[%s2832_s27 + $0xa0] sm:$0xff]  }
  0x21   : > { %2535 = vmatprep.mubr.msk.bf16.mxu0 %vm733_vm2, %v2694_v14  ;;  %2599 = vmatprep.mubr.msk.bf16.mxu1 %vm733_vm2, %v2695_v15  ;;  %v2723_v43 = vld [vmem:[%s2832_s27 + $0x190] sm:$0xff]   ;;  %v2725_v45 = vld [vmem:[%s2832_s27 + $0x198] sm:$0xff]   ;;  %v2727_v47 = vld [vmem:[%s2832_s27 + $0x1a0] sm:$0xff]  }
  0x22   : > { %v2728_v48 = vld [vmem:[%s2832_s27 + $0xa8] sm:$0xff]   ;;  %v2730_v50 = vld [vmem:[%s2832_s27 + $0xb0] sm:$0xff]   ;;  %v2732_v52 = vld [vmem:[%s2832_s27 + $0xb8] sm:$0xff]  }
  0x23   : > { %v2729_v49 = vld [vmem:[%s2832_s27 + $0x1a8] sm:$0xff]   ;;  %v2731_v51 = vld [vmem:[%s2832_s27 + $0x1b0] sm:$0xff]   ;;  %v2733_v53 = vld [vmem:[%s2832_s27 + $0x1b8] sm:$0xff]  }
  0x24   : > { %v2734_v54 = vld [vmem:[%s2832_s27 + $0xc0] sm:$0xff]   ;;  %v2736_v56 = vld [vmem:[%s2832_s27 + $0xc8] sm:$0xff]   ;;  %v2738_v58 = vld [vmem:[%s2832_s27 + $0xd0] sm:$0xff]  }
  0x25   : > { %v2735_v55 = vld [vmem:[%s2832_s27 + $0x1c0] sm:$0xff]   ;;  %v2737_v57 = vld [vmem:[%s2832_s27 + $0x1c8] sm:$0xff]   ;;  %v2739_v59 = vld [vmem:[%s2832_s27 + $0x1d0] sm:$0xff]  }
  0x26   : > { %v2740_v60 = vld [vmem:[%s2832_s27 + $0xd8] sm:$0xff]   ;;  %v2742_v62 = vld [vmem:[%s2832_s27 + $0xe0] sm:$0xff]   ;;  %v2744_v0 = vld [vmem:[%s2832_s27 + $0xe8] sm:$0xff]  }
  0x27   : > { %v2741_v61 = vld [vmem:[%s2832_s27 + $0x1d8] sm:$0xff]   ;;  %v2743_v63 = vld [vmem:[%s2832_s27 + $0x1e0] sm:$0xff]   ;;  %v2745_v1 = vld [vmem:[%s2832_s27 + $0x1e8] sm:$0xff]  }
  0x28   : > { %2536 = vmatmul.mubr.msk.bf16.gmra.mrb[8].mxu0 %vm733_vm2, %v2696_v16  ;;  %2600 = vmatmul.mubr.msk.bf16.gmra.mrb[8].mxu1 %vm733_vm2, %v2697_v17  ;;  %v2746_v2 = vld [vmem:[%s2832_s27 + $0xf0] sm:$0xff]   ;;  %v2748_v4 = vld [vmem:[%s2832_s27 + $0xf8] sm:$0xff]  }
  0x29   : > { %2539 = vmatprep.mubr.msk.bf16.mxu0 %vm733_vm2, %v2698_v18  ;;  %2603 = vmatprep.mubr.msk.bf16.mxu1 %vm733_vm2, %v2699_v19  ;;  %v2747_v3 = vld [vmem:[%s2832_s27 + $0x1f0] sm:$0xff]   ;;  %v2749_v5 = vld [vmem:[%s2832_s27 + $0x1f8] sm:$0xff]  }
  0x30   : > { %2540 = vmatmul.mubr.msk.bf16.gmra.mrb[12].mxu0 %vm733_vm2, %v2700_v20  ;;  %2604 = vmatmul.mubr.msk.bf16.gmra.mrb[12].mxu1 %vm733_vm2, %v2701_v21 }
  0x31   : > { %2543 = vmatprep.mubr.msk.bf16.mxu0 %vm733_vm2, %v2702_v22  ;;  %2607 = vmatprep.mubr.msk.bf16.mxu1 %vm733_vm2, %v2703_v23  ;;  %v2965_v22 = vld [vmem:[%s3696_s2] ss:$0 sm:$0xff] }
  0x38   : > { %2544 = vmatmul.mubr.msk.bf16.gmra.mrb[16].mxu0 %vm733_vm2, %v2704_v24  ;;  %2608 = vmatmul.mubr.msk.bf16.gmra.mrb[16].mxu1 %vm733_vm2, %v2705_v25 }
  0x39   : > { %2547 = vmatprep.mubr.msk.bf16.mxu0 %vm733_vm2, %v2706_v26  ;;  %2611 = vmatprep.mubr.msk.bf16.mxu1 %vm733_vm2, %v2707_v27 }
  0x40   : > { %2548 = vmatmul.mubr.msk.bf16.gmra.mrb[20].mxu0 %vm733_vm2, %v2708_v28  ;;  %2612 = vmatmul.mubr.msk.bf16.gmra.mrb[20].mxu1 %vm733_vm2, %v2709_v29  ;;  %v2973_v29 = vld [vmem:[%s3697_s3] ss:$0 sm:$0xff] }
  0x41   : > { %2551 = vmatprep.mubr.msk.bf16.mxu0 %vm733_vm2, %v2710_v30  ;;  %2615 = vmatprep.mubr.msk.bf16.mxu1 %vm733_vm2, %v2711_v31 }
  0x48   : > { %2552 = vmatmul.mubr.msk.bf16.gmra.mrb[24].mxu0 %vm733_vm2, %v2712_v32  ;;  %2616 = vmatmul.mubr.msk.bf16.gmra.mrb[24].mxu1 %vm733_vm2, %v2713_v33 }
  0x49   : > { %2555 = vmatprep.mubr.msk.bf16.mxu0 %vm733_vm2, %v2714_v34  ;;  %2619 = vmatprep.mubr.msk.bf16.mxu1 %vm733_vm2, %v2715_v35 }
  0x50   : > { %2556 = vmatmul.mubr.msk.bf16.gmra.mrb[28].mxu0 %vm733_vm2, %v2716_v36  ;;  %2620 = vmatmul.mubr.msk.bf16.gmra.mrb[28].mxu1 %vm733_vm2, %v2717_v37 }
  0x51   : > { %2559 = vmatprep.mubr.msk.bf16.mxu0 %vm733_vm2, %v2718_v38  ;;  %2623 = vmatprep.mubr.msk.bf16.mxu1 %vm733_vm2, %v2719_v39 }
  0x58   : > { %2560 = vmatmul.mubr.msk.bf16.gmra.mrb[32].mxu0 %vm733_vm2, %v2720_v40  ;;  %2624 = vmatmul.mubr.msk.bf16.gmra.mrb[32].mxu1 %vm733_vm2, %v2721_v41 }
  0x59   : > { %2563 = vmatprep.mubr.msk.bf16.mxu0 %vm733_vm2, %v2722_v42  ;;  %2627 = vmatprep.mubr.msk.bf16.mxu1 %vm733_vm2, %v2723_v43 }
  0x60   : > { %2564 = vmatmul.mubr.msk.bf16.gmra.mrb[36].mxu0 %vm733_vm2, %v2724_v44  ;;  %2628 = vmatmul.mubr.msk.bf16.gmra.mrb[36].mxu1 %vm733_vm2, %v2725_v45 }
  0x61   : > { %2567 = vmatprep.mubr.msk.bf16.mxu0 %vm733_vm2, %v2726_v46  ;;  %2631 = vmatprep.mubr.msk.bf16.mxu1 %vm733_vm2, %v2727_v47 }
  0x68   : > { %2568 = vmatmul.mubr.msk.bf16.gmra.mrb[40].mxu0 %vm733_vm2, %v2728_v48  ;;  %2632 = vmatmul.mubr.msk.bf16.gmra.mrb[40].mxu1 %vm733_vm2, %v2729_v49 }
  0x69   : > { %2571 = vmatprep.mubr.msk.bf16.mxu0 %vm733_vm2, %v2730_v50  ;;  %2635 = vmatprep.mubr.msk.bf16.mxu1 %vm733_vm2, %v2731_v51 }
  0x70   : > { %2572 = vmatmul.mubr.msk.bf16.gmra.mrb[44].mxu0 %vm733_vm2, %v2732_v52  ;;  %2636 = vmatmul.mubr.msk.bf16.gmra.mrb[44].mxu1 %vm733_vm2, %v2733_v53 }
  0x71   : > { %2575 = vmatprep.mubr.msk.bf16.mxu0 %vm733_vm2, %v2734_v54  ;;  %2639 = vmatprep.mubr.msk.bf16.mxu1 %vm733_vm2, %v2735_v55 }
  0x78   : > { %2576 = vmatmul.mubr.msk.bf16.gmra.mrb[48].mxu0 %vm733_vm2, %v2736_v56  ;;  %2640 = vmatmul.mubr.msk.bf16.gmra.mrb[48].mxu1 %vm733_vm2, %v2737_v57 }
  0x79   : > { %2579 = vmatprep.mubr.msk.bf16.mxu0 %vm733_vm2, %v2738_v58  ;;  %2643 = vmatprep.mubr.msk.bf16.mxu1 %vm733_vm2, %v2739_v59 }
  0x80   : > { %2580 = vmatmul.mubr.msk.bf16.gmra.mrb[52].mxu0 %vm733_vm2, %v2740_v60  ;;  %2644 = vmatmul.mubr.msk.bf16.gmra.mrb[52].mxu1 %vm733_vm2, %v2741_v61 }
  0x81   : > { %2583 = vmatprep.mubr.msk.bf16.mxu0 %vm733_vm2, %v2742_v62  ;;  %2647 = vmatprep.mubr.msk.bf16.mxu1 %vm733_vm2, %v2743_v63 }
  0x88   : > { %2584 = vmatmul.mubr.msk.bf16.gmra.mrb[56].mxu0 %vm733_vm2, %v2744_v0  ;;  %2648 = vmatmul.mubr.msk.bf16.gmra.mrb[56].mxu1 %vm733_vm2, %v2745_v1 }
  0x89   : > { %2587 = vmatprep.mubr.msk.bf16.mxu0 %vm733_vm2, %v2746_v2  ;;  %2651 = vmatprep.mubr.msk.bf16.mxu1 %vm733_vm2, %v2747_v3 }
  0x90   : > { %2588 = vmatmul.mubr.msk.bf16.gmra.mrb[60].mxu0 %vm733_vm2, %v2748_v4  ;;  %2652 = vmatmul.mubr.msk.bf16.gmra.mrb[60].mxu1 %vm733_vm2, %v2749_v5 }
  0xeb   : > { %v2529_v6 = vpop.f32.mrb[0].mxu0  ;;  %v2593_v7 = vpop.f32.mrb[0].mxu1 }
  0xec   : > { %v967_v8 = vpop.f32.mrb[1].mxu0  ;;  %v1223_v9 = vpop.f32.mrb[1].mxu1  ;;  %v1487_v24 = vmul.f32 %v2529_v6, %v2965_v22  ;;  %v1551_v25 = vmul.f32 %v2593_v7, %v2965_v22 }
  0xed   : > { %v2530_v10 = vpop.f32.mrb[2].mxu0  ;;  %v2594_v11 = vpop.f32.mrb[2].mxu1  ;;  %v1485_v26 = vmul.f32 %v2965_v22, %v967_v8  ;;  %v1549_v30 = vmul.f32 %v2965_v22, %v1223_v9 }
  0xee   : > { %v970_v12 = vpop.f32.mrb[3].mxu0  ;;  %v1226_v13 = vpop.f32.mrb[3].mxu1  ;;  %v1488_v31 = vmul.f32 %v2530_v10, %v2965_v22  ;;  %v1552_v34 = vmul.f32 %v2594_v11, %v2965_v22  ;;  %v2981_v40 = vadd.f32 %v2973_v29, %v1487_v24  ;;  %v2984_v41 = vadd.f32 %v2973_v29, %v1551_v25 }
  0xef   : > { %v1486_v35 = vmul.f32 %v2965_v22, %v970_v12  ;;  %v1550_v38 = vmul.f32 %v2965_v22, %v1226_v13  ;;  %v2987_v42 = vadd.f32 %v2973_v29, %v1485_v26  ;;  %v2991_v44 = vadd.f32 %v2973_v29, %v1549_v30 }
  0xf0   : > { %v2994_v45 = vadd.f32 %v2973_v29, %v1488_v31  ;;  %v2999_v48 = vadd.f32 %v2973_v29, %v1552_v34 }
  0xf1   : > { %v3002_v49 = vadd.f32 %v2973_v29, %v1486_v35  ;;  %v3007_v52 = vadd.f32 %v2973_v29, %v1550_v38 }
  0xf3   : > { %v2533_v14 = vpop.f32.mrb[4].mxu0  ;;  %v2597_v15 = vpop.f32.mrb[4].mxu1 }
  0xf4   : > { %v983_v16 = vpop.f32.mrb[5].mxu0  ;;  %v1239_v17 = vpop.f32.mrb[5].mxu1  ;;  %v1491_v43 = vmul.f32 %v2533_v14, %v2965_v22  ;;  %v1555_v46 = vmul.f32 %v2597_v15, %v2965_v22 }
  0xf5   : > { %v2534_v18 = vpop.f32.mrb[6].mxu0  ;;  %v2598_v19 = vpop.f32.mrb[6].mxu1  ;;  %v1489_v47 = vmul.f32 %v2965_v22, %v983_v16  ;;  %v1553_v50 = vmul.f32 %v2965_v22, %v1239_v17 }
  0xf6   : > { %v986_v20 = vpop.f32.mrb[7].mxu0  ;;  %v1242_v21 = vpop.f32.mrb[7].mxu1  ;;  %v1492_v51 = vmul.f32 %v2534_v18, %v2965_v22  ;;  %v1556_v53 = vmul.f32 %v2598_v19, %v2965_v22  ;;  %v3016_v60 = vadd.f32 %v2973_v29, %v1491_v43  ;;  %v3021_v1 = vadd.f32 %v2973_v29, %v1555_v46 }
  0xf7   : > { %v1490_v54 = vmul.f32 %v2965_v22, %v986_v20  ;;  %v1554_v55 = vmul.f32 %v2965_v22, %v1242_v21  ;;  %v3024_v2 = vadd.f32 %v2973_v29, %v1489_v47  ;;  %v3029_v7 = vadd.f32 %v2973_v29, %v1553_v50 }
  0xf8   : > { %v3032_v8 = vadd.f32 %v2973_v29, %v1492_v51  ;;  %v3036_v12 = vadd.f32 %v2973_v29, %v1556_v53 }
  0xf9   : > { %v3039_v13 = vadd.f32 %v2973_v29, %v1490_v54  ;;  %v3042_v14 = vadd.f32 %v2973_v29, %v1554_v55 }
  0xfb   : > { %v2537_v23 = vpop.f32.mrb[8].mxu0  ;;  %v2601_v27 = vpop.f32.mrb[8].mxu1 }
  0xfc   : > { %v999_v28 = vpop.f32.mrb[9].mxu0  ;;  %v1255_v32 = vpop.f32.mrb[9].mxu1  ;;  %v1495_v17 = vmul.f32 %v2537_v23, %v2965_v22  ;;  %v1559_v18 = vmul.f32 %v2601_v27, %v2965_v22 }
  0xfd   : > { %v2538_v33 = vpop.f32.mrb[10].mxu0  ;;  %v2602_v36 = vpop.f32.mrb[10].mxu1  ;;  %v1493_v19 = vmul.f32 %v2965_v22, %v999_v28  ;;  %v1557_v24 = vmul.f32 %v2965_v22, %v1255_v32 }
  0xfe   : > { %v1002_v37 = vpop.f32.mrb[11].mxu0  ;;  %v1258_v39 = vpop.f32.mrb[11].mxu1  ;;  %v1496_v25 = vmul.f32 %v2538_v33, %v2965_v22  ;;  %v1560_v31 = vmul.f32 %v2602_v36, %v2965_v22  ;;  %v3061_v32 = vadd.f32 %v2973_v29, %v1495_v17  ;;  %v3064_v33 = vadd.f32 %v2973_v29, %v1559_v18 }
  0xff   : > { %v1494_v23 = vmul.f32 %v2965_v22, %v1002_v37  ;;  %v1558_v35 = vmul.f32 %v2965_v22, %v1258_v39  ;;  %v3067_v43 = vadd.f32 %v2973_v29, %v1493_v19  ;;  %v3071_v47 = vadd.f32 %v2973_v29, %v1557_v24 }
 0x100   : > { %v3074_v50 = vadd.f32 %v2973_v29, %v1496_v25  ;;  %v3079_v55 = vadd.f32 %v2973_v29, %v1560_v31 }
 0x101   : > { %v3082_v17 = vadd.f32 %v2973_v29, %v1494_v23  ;;  %v3087_v25 = vadd.f32 %v2973_v29, %v1558_v35 }
 0x103   : > { %v2541_v56 = vpop.f32.mrb[12].mxu0  ;;  %v2605_v61 = vpop.f32.mrb[12].mxu1 }
 0x104   : > { %v1015_v62 = vpop.f32.mrb[13].mxu0  ;;  %v1271_v3 = vpop.f32.mrb[13].mxu1  ;;  %v1499_v36 = vmul.f32 %v2541_v56, %v2965_v22  ;;  %v1563_v39 = vmul.f32 %v2605_v61, %v2965_v22 }
 0x105   : > { %v2542_v4 = vpop.f32.mrb[14].mxu0  ;;  %v2606_v9 = vpop.f32.mrb[14].mxu1  ;;  %v1497_v51 = vmul.f32 %v2965_v22, %v1015_v62  ;;  %v1561_v56 = vmul.f32 %v2965_v22, %v1271_v3 }
 0x106   : > { %v1018_v10 = vpop.f32.mrb[15].mxu0  ;;  %v1274_v15 = vpop.f32.mrb[15].mxu1  ;;  %v1500_v18 = vmul.f32 %v2542_v4, %v2965_v22  ;;  %v1564_v61 = vmul.f32 %v2606_v9, %v2965_v22  ;;  %v3096_v4 = vadd.f32 %v2973_v29, %v1499_v36  ;;  %v3101_v9 = vadd.f32 %v2973_v29, %v1563_v39 }
 0x107   : > { %v1498_v62 = vmul.f32 %v2965_v22, %v1018_v10  ;;  %v1562_v34 = vmul.f32 %v2965_v22, %v1274_v15  ;;  %v3104_v10 = vadd.f32 %v2973_v29, %v1497_v51  ;;  %v3109_v23 = vadd.f32 %v2973_v29, %v1561_v56 }
 0x108   : > { %v3112_v36 = vadd.f32 %v2973_v29, %v1500_v18  ;;  %v3116_v35 = vadd.f32 %v2973_v29, %v1564_v61 }
 0x109   : > { %v3119_v39 = vadd.f32 %v2973_v29, %v1498_v62  ;;  %v3122_v51 = vadd.f32 %v2973_v29, %v1562_v34 }
 0x10b   : > { %v2545_v38 = vpop.f32.mrb[16].mxu0  ;;  %v2609_v37 = vpop.f32.mrb[16].mxu1 }
 0x10c   : > { %v1031_v46 = vpop.f32.mrb[17].mxu0  ;;  %v1287_v53 = vpop.f32.mrb[17].mxu1  ;;  %v1503_v56 = vmul.f32 %v2545_v38, %v2965_v22  ;;  %v1567_v3 = vmul.f32 %v2609_v37, %v2965_v22 }
 0x10d   : > { %v2546_v54 = vpop.f32.mrb[18].mxu0  ;;  %v2610_v19 = vpop.f32.mrb[18].mxu1  ;;  %v1501_v18 = vmul.f32 %v2965_v22, %v1031_v46  ;;  %v1565_v62 = vmul.f32 %v2965_v22, %v1287_v53 }
 0x10e   : > { %v1034_v24 = vpop.f32.mrb[19].mxu0  ;;  %v1290_v31 = vpop.f32.mrb[19].mxu1  ;;  %v1504_v34 = vmul.f32 %v2546_v54, %v2965_v22  ;;  %v1568_v37 = vmul.f32 %v2610_v19, %v2965_v22  ;;  %v3141_v5 = vadd.f32 %v2973_v29, %v1503_v56  ;;  %v3144_v38 = vadd.f32 %v2973_v29, %v1567_v3 }
 0x10f   : > { %v1502_v46 = vmul.f32 %v2965_v22, %v1034_v24  ;;  %v1566_v54 = vmul.f32 %v2965_v22, %v1290_v31  ;;  %v3147_v19 = vadd.f32 %v2973_v29, %v1501_v18  ;;  %v3151_v61 = vadd.f32 %v2973_v29, %v1565_v62 }
 0x110   : > { %v3154_v26 = vadd.f32 %v2973_v29, %v1504_v34  ;;  %v3159_v56 = vadd.f32 %v2973_v29, %v1568_v37 }
 0x111   : > { %v3162_v3 = vadd.f32 %v2973_v29, %v1502_v46  ;;  %v3167_v62 = vadd.f32 %v2973_v29, %v1566_v54 }
 0x112   : > { %3722 = vst [vmem:[#allocation2_spill] sm:$0xff] %v3154_v26  ;;  %3723 = vst [vmem:[#allocation3_spill] sm:$0xff] %v3159_v56 }
 0x113   : > { %v2549_v15 = vpop.f32.mrb[20].mxu0  ;;  %v2613_v30 = vpop.f32.mrb[20].mxu1  ;;  %3724 = vst [vmem:[#allocation4_spill] sm:$0xff] %v3162_v3  ;;  %3725 = vst [vmem:[#allocation5_spill] sm:$0xff] %v3167_v62 }
 0x114   : > { %v1047_v27 = vpop.f32.mrb[21].mxu0  ;;  %v1303_v21 = vpop.f32.mrb[21].mxu1  ;;  %v1507_v24 = vmul.f32 %v2549_v15, %v2965_v22  ;;  %v1571_v31 = vmul.f32 %v2613_v30, %v2965_v22 }
 0x115   : > { %v2550_v20 = vpop.f32.mrb[22].mxu0  ;;  %v2614_v16 = vpop.f32.mrb[22].mxu1  ;;  %v1505_v53 = vmul.f32 %v2965_v22, %v1047_v27  ;;  %v1569_v18 = vmul.f32 %v2965_v22, %v1303_v21 }
 0x116   : > { %v1050_v11 = vpop.f32.mrb[23].mxu0  ;;  %v1306_v6 = vpop.f32.mrb[23].mxu1  ;;  %v1508_v15 = vmul.f32 %v2550_v20, %v2965_v22  ;;  %v1572_v34 = vmul.f32 %v2614_v16, %v2965_v22  ;;  %v3176_v21 = vadd.f32 %v2973_v29, %v1507_v24 }
 0x117   : > { %v1506_v28 = vmul.f32 %v2965_v22, %v1050_v11  ;;  %v1570_v30 = vmul.f32 %v2965_v22, %v1306_v6  ;;  %v3181_v11 = vadd.f32 %v2973_v29, %v1571_v31  ;;  %v3184_v6 = vadd.f32 %v2973_v29, %v1505_v53 }
 0x118   : > { %v3189_v24 = vadd.f32 %v2973_v29, %v1569_v18  ;;  %v3192_v58 = vadd.f32 %v2973_v29, %v1508_v15  ;;  %v3196_v57 = vadd.f32 %v2973_v29, %v1572_v34 }
 0x119   : > { %3726 = vst [vmem:[#allocation6_spill] sm:$0xff] %v3184_v6  ;;  %v3199_v53 = vadd.f32 %v2973_v29, %v1506_v28  ;;  %v3202_v0 = vadd.f32 %v2973_v29, %v1570_v30 }
 0x11a   : > { %3727 = vst [vmem:[#allocation7_spill] sm:$0xff] %v3189_v24  ;;  %3728 = vst [vmem:[#allocation8_spill] sm:$0xff] %v3192_v58 }
 0x11b   : > { %v2553_v27 = vpop.f32.mrb[24].mxu0  ;;  %v2617_v20 = vpop.f32.mrb[24].mxu1  ;;  %3729 = vst [vmem:[#allocation9_spill] sm:$0xff] %v3196_v57  ;;  %3730 = vst [vmem:[#allocation10_spill] sm:$0xff] %v3199_v53 }
 0x11c   : > { %v1063_v63 = vpop.f32.mrb[25].mxu0  ;;  %v1319_v37 = vpop.f32.mrb[25].mxu1  ;;  %3731 = vst [vmem:[#allocation11_spill] sm:$0xff] %v3202_v0  ;;  %v1511_v3 = vmul.f32 %v2553_v27, %v2965_v22  ;;  %v1575_v15 = vmul.f32 %v2617_v20, %v2965_v22 }
 0x11d   : > { %v2554_v59 = vpop.f32.mrb[26].mxu0  ;;  %v2618_v54 = vpop.f32.mrb[26].mxu1  ;;  %v1509_v56 = vmul.f32 %v2965_v22, %v1063_v63  ;;  %v1573_v62 = vmul.f32 %v2965_v22, %v1319_v37 }
 0x11e   : > { %v1066_v16 = vpop.f32.mrb[27].mxu0  ;;  %v1322_v46 = vpop.f32.mrb[27].mxu1  ;;  %v1512_v28 = vmul.f32 %v2554_v59, %v2965_v22  ;;  %v1576_v18 = vmul.f32 %v2618_v54, %v2965_v22  ;;  %v3221_v37 = vadd.f32 %v2973_v29, %v1511_v3  ;;  %v3224_v59 = vadd.f32 %v2973_v29, %v1575_v15 }
 0x11f   : > { %v1510_v27 = vmul.f32 %v2965_v22, %v1066_v16  ;;  %v1574_v34 = vmul.f32 %v2965_v22, %v1322_v46  ;;  %v3227_v26 = vadd.f32 %v2973_v29, %v1509_v56  ;;  %v3231_v63 = vadd.f32 %v2973_v29, %v1573_v62 }
 0x120   : > { %3732 = vst [vmem:[#allocation12_spill] sm:$0xff] %v3221_v37  ;;  %v3234_v31 = vadd.f32 %v2973_v29, %v1512_v28  ;;  %v3239_v56 = vadd.f32 %v2973_v29, %v1576_v18 }
 0x121   : > { %3733 = vst [vmem:[#allocation13_spill] sm:$0xff] %v3227_v26  ;;  %3734 = vst [vmem:[#allocation14_spill] sm:$0xff] %v3231_v63  ;;  %v3247_v57 = vadd.f32 %v2973_v29, %v1574_v34 }
 0x122   : > { %3735 = vst [vmem:[#allocation15_spill] sm:$0xff] %v3234_v31  ;;  %3736 = vst [vmem:[#allocation16_spill] sm:$0xff] %v3239_v56 }
 0x123   : > { %v2557_v6 = vpop.f32.mrb[28].mxu0  ;;  %v2621_v16 = vpop.f32.mrb[28].mxu1  ;;  %3738 = vst [vmem:[#allocation18_spill] sm:$0xff] %v3247_v57 }
 0x124   : > { %v1515_v54 = vmul.f32 %v2557_v6, %v2965_v22  ;;  %v1079_v20 = vpop.f32.mrb[29].mxu0  ;;  %v1579_v46 = vmul.f32 %v2621_v16, %v2965_v22  ;;  %v1335_v30 = vpop.f32.mrb[29].mxu1  ;;  %v3242_v6 = vadd.f32 %v2973_v29, %v1510_v27 }
 0x125   : > { %v1513_v3 = vmul.f32 %v2965_v22, %v1079_v20  ;;  %v2558_v15 = vpop.f32.mrb[30].mxu0  ;;  %v1577_v0 = vmul.f32 %v2965_v22, %v1335_v30  ;;  %v2622_v53 = vpop.f32.mrb[30].mxu1 }
 0x126   : > { %3737 = vst [vmem:[#allocation17_spill] sm:$0xff] %v3242_v6  ;;  %v1516_v62 = vmul.f32 %v2558_v15, %v2965_v22  ;;  %v1082_v28 = vpop.f32.mrb[31].mxu0  ;;  %v3250_v20 = vadd.f32 %v2973_v29, %v1515_v54  ;;  %v3253_v16 = vadd.f32 %v2973_v29, %v1579_v46  ;;  %v1580_v18 = vmul.f32 %v2622_v53, %v2965_v22  ;;  %v1338_v58 = vpop.f32.mrb[31].mxu1 }
 0x127   : > { %v3258_v30 = vadd.f32 %v2973_v29, %v1513_v3  ;;  %v3261_v15 = vadd.f32 %v2973_v29, %v1577_v0  ;;  %v1514_v34 = vmul.f32 %v2965_v22, %v1082_v28  ;;  %v1578_v53 = vmul.f32 %v2965_v22, %v1338_v58 }
 0x128   : > { %3739 = vst [vmem:[#allocation19_spill] sm:$0xff] %v3250_v20  ;;  %3740 = vst [vmem:[#allocation20_spill] sm:$0xff] %v3253_v16  ;;  %v3268_v24 = vadd.f32 %v2973_v29, %v1516_v62  ;;  %v3275_v37 = vadd.f32 %v2973_v29, %v1580_v18 }
 0x129   : > { %3741 = vst [vmem:[#allocation21_spill] sm:$0xff] %v3258_v30  ;;  %3742 = vst [vmem:[#allocation22_spill] sm:$0xff] %v3261_v15  ;;  %v3290_v18 = vadd.f32 %v2973_v29, %v1514_v34  ;;  %v3295_v3 = vadd.f32 %v2973_v29, %v1578_v53 }
 0x12a   : > { %3743 = vst [vmem:[#allocation23_spill] sm:$0xff] %v3268_v24  ;;  %3744 = vst [vmem:[#allocation24_spill] sm:$0xff] %v3275_v37 }
 0x12b   : > { %v2561_v26 = vpop.f32.mrb[32].mxu0  ;;  %3746 = vst [vmem:[#allocation25_spill] sm:$0xff] %v3290_v18  ;;  %v2625_v46 = vpop.f32.mrb[32].mxu1  ;;  %3747 = vst [vmem:[#allocation26_spill] sm:$0xff] %v3295_v3 }
 0x12c   : > { %v1519_v28 = vmul.f32 %v2561_v26, %v2965_v22  ;;  %v1095_v54 = vpop.f32.mrb[33].mxu0  ;;  %v1583_v27 = vmul.f32 %v2625_v46, %v2965_v22  ;;  %v1351_v30 = vpop.f32.mrb[33].mxu1 }
 0x12d   : > { %v1517_v58 = vmul.f32 %v2965_v22, %v1095_v54  ;;  %v2562_v0 = vpop.f32.mrb[34].mxu0  ;;  %v1581_v26 = vmul.f32 %v2965_v22, %v1351_v30  ;;  %v2626_v16 = vpop.f32.mrb[34].mxu1 }
 0x12e   : > { %v1654_v18 = vadd.f32 %v2973_v29, %v1519_v28  ;;  %v1520_v15 = vmul.f32 %v2562_v0, %v2965_v22  ;;  %v1098_v62 = vpop.f32.mrb[35].mxu0  ;;  %v1718_v46 = vadd.f32 %v2973_v29, %v1583_v27  ;;  %v1584_v53 = vmul.f32 %v2626_v16, %v2965_v22  ;;  %v1354_v34 = vpop.f32.mrb[35].mxu1 }
 0x12f   : > { %v1652_v54 = vadd.f32 %v2973_v29, %v1517_v58  ;;  %v1518_v28 = vmul.f32 %v2965_v22, %v1098_v62  ;;  %v1716_v30 = vadd.f32 %v2973_v29, %v1581_v26  ;;  %v1582_v37 = vmul.f32 %v2965_v22, %v1354_v34 }
 0x130   : > { %v1782_v3 = vmax.f32 %v1654_v18, 0.0  ;;  %v1655_v0 = vadd.f32 %v2973_v29, %v1520_v15  ;;  %v1846_v24 = vmax.f32 %v1718_v46, 0.0  ;;  %v1719_v57 = vadd.f32 %v2973_v29, %v1584_v53 }
 0x131   : > { %v1780_v20 = vmax.f32 %v1652_v54, 0.0  ;;  %v1653_v27 = vadd.f32 %v2973_v29, %v1518_v28  ;;  %v3748_v58 = vmax.f32 %v2981_v40, 0.0  ;;  %v1844_v16 = vmax.f32 %v1716_v30, 0.0 }
 0x132   : > { %v1783_v56 = vmax.f32 %v1655_v0, 0.0  ;;  %v1717_v62 = vadd.f32 %v2973_v29, %v1582_v37  ;;  %v3749_v18 = vmax.f32 %v2984_v41, 0.0  ;;  %v3750_v15 = vmax.f32 %v2987_v42, 0.0 }
 0x133   : > { %v1878_v6 = vmax.f32 %v3748_v58, %v1782_v3  ;;  %v1847_v46 = vmax.f32 %v1719_v57, 0.0  ;;  %v1781_v54 = vmax.f32 %v1653_v27, 0.0  ;;  %v2565_v31 = vpop.f32.mrb[36].mxu0  ;;  %v3751_v53 = vmax.f32 %v2991_v44, 0.0  ;;  %v2629_v37 = vpop.f32.mrb[36].mxu1 }
 0x134   : > { %v1910_v26 = vmax.f32 %v3749_v18, %v1846_v24  ;;  %v1876_v34 = vmax.f32 %v3750_v15, %v1780_v20  ;;  %v3752_v40 = vmax.f32 %v2994_v45, 0.0  ;;  %v1845_v30 = vmax.f32 %v1717_v62, 0.0  ;;  %v1111_v58 = vpop.f32.mrb[37].mxu0  ;;  %v1367_v27 = vpop.f32.mrb[37].mxu1 }
 0x135   : > { %v1908_v28 = vmax.f32 %v3751_v53, %v1844_v16  ;;  %v1523_v0 = vmul.f32 %v2565_v31, %v2965_v22  ;;  %v3753_v41 = vmax.f32 %v2999_v48, 0.0  ;;  %v3754_v42 = vmax.f32 %v3002_v49, 0.0  ;;  %v2566_v44 = vpop.f32.mrb[38].mxu0  ;;  %v2630_v49 = vpop.f32.mrb[38].mxu1 }
 0x136   : > { %v1879_v3 = vmax.f32 %v3752_v40, %v1783_v56  ;;  %v1942_v63 = vmax.f32 %v1878_v6, %v1910_v26  ;;  %v1587_v20 = vmul.f32 %v2629_v37, %v2965_v22  ;;  %v3755_v31 = vmax.f32 %v3007_v52, 0.0  ;;  %v1114_v16 = vpop.f32.mrb[39].mxu0 }
 0x137   : > { %v1911_v24 = vmax.f32 %v3753_v41, %v1847_v46  ;;  %v1877_v57 = vmax.f32 %v3754_v42, %v1781_v54  ;;  %v1940_v45 = vmax.f32 %v1876_v34, %v1908_v28  ;;  %v1658_v48 = vadd.f32 %v2973_v29, %v1523_v0  ;;  %v1370_v46 = vpop.f32.mrb[39].mxu1 }
 0x138   : > { %v1909_v56 = vmax.f32 %v3755_v31, %v1845_v30  ;;  %v1521_v6 = vmul.f32 %v2965_v22, %v1111_v58  ;;  %v2427_v62 = vpack.c.bf16 %v1942_v63, %v1942_v63  ;;  %v1722_v26 = vadd.f32 %v2973_v29, %v1587_v20 }
 0x139   : > { %v1943_v18 = vmax.f32 %v1879_v3, %v1911_v24  ;;  %v1585_v15 = vmul.f32 %v2965_v22, %v1367_v27  ;;  %v2425_v54 = vpack.c.bf16 %v1940_v45, %v1940_v45  ;;  %v1786_v53 = vmax.f32 %v1658_v48, 0.0 }
 0x13a   : > { %v1941_v34 = vmax.f32 %v1877_v57, %v1909_v56  ;;  %v1656_v52 = vadd.f32 %v2973_v29, %v1521_v6  ;;  %2103 = vst.msk [vmem:[%s3339_s11 + $0x8] sm:$0xf] %vm2100_vm3, %v2427_v62  ;;  %v1850_v40 = vmax.f32 %v1722_v26, 0.0  ;;  %v1524_v63 = vmul.f32 %v2566_v44, %v2965_v22 }
 0x13b   : > { %v2428_v28 = vpack.c.bf16 %v1943_v18, %v1943_v18  ;;  %v1720_v30 = vadd.f32 %v2973_v29, %v1585_v15  ;;  %2101 = vst.msk [vmem:[%s3339_s11] sm:$0xf] %vm2100_vm3, %v2425_v54  ;;  %v3756_v0 = vmax.f32 %v3016_v60, 0.0  ;;  %v1588_v41 = vmul.f32 %v2630_v49, %v2965_v22  ;;  %v2569_v44 = vpop.f32.mrb[40].mxu0  ;;  %v2633_v6 = vpop.f32.mrb[40].mxu1 }
 0x13c   : > { %v2426_v3 = vpack.c.bf16 %v1941_v34, %v1941_v34  ;;  %v1784_v58 = vmax.f32 %v1656_v52, 0.0  ;;  %v3757_v24 = vmax.f32 %v3021_v1, 0.0  ;;  %v1659_v20 = vadd.f32 %v2973_v29, %v1524_v63  ;;  %v1127_v1 = vpop.f32.mrb[41].mxu0  ;;  %v1383_v15 = vpop.f32.mrb[41].mxu1 }
 0x13d   : > { %v1882_v37 = vmax.f32 %v3756_v0, %v1786_v53  ;;  %2104 = vst.msk [vmem:[%s3339_s11 + $0xc] sm:$0xf] %vm2100_vm3, %v2428_v28  ;;  %v1848_v57 = vmax.f32 %v1720_v30, 0.0  ;;  %v1522_v27 = vmul.f32 %v2965_v22, %v1114_v16  ;;  %v3758_v45 = vmax.f32 %v3024_v2, 0.0  ;;  %v2570_v54 = vpop.f32.mrb[42].mxu0  ;;  %v2634_v52 = vpop.f32.mrb[42].mxu1 }
 0x13e   : > { %v1914_v42 = vmax.f32 %v3757_v24, %v1850_v40  ;;  %2102 = vst.msk [vmem:[%s3339_s11 + $0x4] sm:$0xf] %vm2100_vm3, %v2426_v3  ;;  %v1723_v31 = vadd.f32 %v2973_v29, %v1588_v41  ;;  %v1586_v56 = vmul.f32 %v2965_v22, %v1370_v46  ;;  %v1527_v48 = vmul.f32 %v2569_v44, %v2965_v22  ;;  %v1130_v28 = vpop.f32.mrb[43].mxu0  ;;  %v1386_v0 = vpop.f32.mrb[43].mxu1 }
 0x13f   : > { %v1880_v60 = vmax.f32 %v3758_v45, %v1784_v58  ;;  %v3759_v62 = vmax.f32 %v3029_v7, 0.0  ;;  %v1787_v26 = vmax.f32 %v1659_v20, 0.0  ;;  %v1657_v16 = vadd.f32 %v2973_v29, %v1522_v27 }
 0x140   : > { %v1946_v49 = vmax.f32 %v1882_v37, %v1914_v42  ;;  %v1851_v2 = vmax.f32 %v1723_v31, 0.0  ;;  %v1721_v34 = vadd.f32 %v2973_v29, %v1586_v56  ;;  %v1662_v53 = vadd.f32 %v2973_v29, %v1527_v48 }
 0x141   : > { %v1912_v18 = vmax.f32 %v3759_v62, %v1848_v57  ;;  %v1591_v46 = vmul.f32 %v2633_v6, %v2965_v22  ;;  %v3760_v7 = vmax.f32 %v3032_v8, 0.0  ;;  %v1785_v3 = vmax.f32 %v1657_v16, 0.0 }
 0x142   : > { %v2431_v40 = vpack.c.bf16 %v1946_v49, %v1946_v49  ;;  %v3761_v37 = vmax.f32 %v3036_v12, 0.0  ;;  %v1849_v41 = vmax.f32 %v1721_v34, 0.0  ;;  %v1790_v24 = vmax.f32 %v1662_v53, 0.0 }
 0x143   : > { %v1944_v30 = vmax.f32 %v1880_v60, %v1912_v18  ;;  %v1883_v63 = vmax.f32 %v3760_v7, %v1787_v26  ;;  %v1726_v42 = vadd.f32 %v2973_v29, %v1591_v46  ;;  %v3762_v20 = vmax.f32 %v3039_v13, 0.0  ;;  %v2573_v62 = vpop.f32.mrb[44].mxu0 }
 0x144   : > { %v1915_v58 = vmax.f32 %v3761_v37, %v1851_v2  ;;  %2107 = vst.msk [vmem:[%s3339_s11 + $0x18] sm:$0xf] %vm2100_vm3, %v2431_v40  ;;  %v1525_v44 = vmul.f32 %v2965_v22, %v1127_v1  ;;  %v1589_v8 = vmul.f32 %v2965_v22, %v1383_v15  ;;  %v3763_v60 = vmax.f32 %v3042_v14, 0.0  ;;  %v2637_v15 = vpop.f32.mrb[44].mxu1  ;;  %v1143_v2 = vpop.f32.mrb[45].mxu0 }
 0x145   : > { %v2429_v57 = vpack.c.bf16 %v1944_v30, %v1944_v30  ;;  %v1881_v27 = vmax.f32 %v3762_v20, %v1785_v3  ;;  %v3764_v12 = vmax.f32 %v3061_v32, 0.0  ;;  %v1854_v48 = vmax.f32 %v1726_v42, 0.0  ;;  %v2574_v30 = vpop.f32.mrb[46].mxu0 }
 0x146   : > { %v1947_v45 = vmax.f32 %v1883_v63, %v1915_v58  ;;  %v1913_v31 = vmax.f32 %v3763_v60, %v1849_v41  ;;  %v1660_v6 = vadd.f32 %v2973_v29, %v1525_v44  ;;  %v1724_v49 = vadd.f32 %v2973_v29, %v1589_v8  ;;  %v1146_v3 = vpop.f32.mrb[47].mxu0 }
 0x147   : > { %v1886_v56 = vmax.f32 %v3764_v12, %v1790_v24  ;;  %2105 = vst.msk [vmem:[%s3339_s11 + $0x10] sm:$0xf] %vm2100_vm3, %v2429_v57  ;;  %v1528_v13 = vmul.f32 %v2570_v54, %v2965_v22  ;;  %v1592_v1 = vmul.f32 %v2634_v52, %v2965_v22  ;;  %v3765_v14 = vmax.f32 %v3064_v33, 0.0  ;;  %v1399_v54 = vpop.f32.mrb[45].mxu1 }
 0x148   : > { %v2432_v18 = vpack.c.bf16 %v1947_v45, %v1947_v45  ;;  %v1945_v26 = vmax.f32 %v1881_v27, %v1913_v31  ;;  %v1526_v32 = vmul.f32 %v2965_v22, %v1130_v28  ;;  %v1788_v34 = vmax.f32 %v1660_v6, 0.0  ;;  %v2638_v28 = vpop.f32.mrb[46].mxu1 }
 0x149   : > { %v1918_v16 = vmax.f32 %v3765_v14, %v1854_v48  ;;  %v1852_v53 = vmax.f32 %v1724_v49, 0.0  ;;  %v1663_v46 = vadd.f32 %v2973_v29, %v1528_v13  ;;  %v1727_v40 = vadd.f32 %v2973_v29, %v1592_v1  ;;  %v1402_v20 = vpop.f32.mrb[47].mxu1 }
 0x14a   : > { %2108 = vst.msk [vmem:[%s3339_s11 + $0x1c] sm:$0xf] %vm2100_vm3, %v2432_v18  ;;  %v2430_v52 = vpack.c.bf16 %v1945_v26, %v1945_v26  ;;  %v1661_v33 = vadd.f32 %v2973_v29, %v1526_v32  ;;  %v1590_v63 = vmul.f32 %v2965_v22, %v1386_v0  ;;  %v3766_v37 = vmax.f32 %v3067_v43, 0.0 }
 0x14b   : > { %v1950_v7 = vmax.f32 %v1886_v56, %v1918_v16  ;;  %v3767_v41 = vmax.f32 %v3071_v47, 0.0  ;;  %v1791_v42 = vmax.f32 %v1663_v46, 0.0  ;;  %v1855_v57 = vmax.f32 %v1727_v40, 0.0  ;;  %v2577_v18 = vpop.f32.mrb[48].mxu0 }
 0x14c   : > { %v1884_v58 = vmax.f32 %v3766_v37, %v1788_v34  ;;  %2106 = vst.msk [vmem:[%s3339_s11 + $0x14] sm:$0xf] %vm2100_vm3, %v2430_v52  ;;  %v1789_v44 = vmax.f32 %v1661_v33, 0.0  ;;  %v1725_v8 = vadd.f32 %v2973_v29, %v1590_v63  ;;  %v1531_v0 = vmul.f32 %v2573_v62, %v2965_v22  ;;  %v1159_v34 = vpop.f32.mrb[49].mxu0 }
 0x14d   : > { %v1916_v24 = vmax.f32 %v3767_v41, %v1852_v53  ;;  %v2435_v27 = vpack.c.bf16 %v1950_v7, %v1950_v7  ;;  %v3768_v60 = vmax.f32 %v3074_v50, 0.0  ;;  %v3769_v43 = vmax.f32 %v3079_v55, 0.0  ;;  %v2578_v52 = vpop.f32.mrb[50].mxu0 }
 0x14e   : > { %v1595_v47 = vmul.f32 %v2637_v15, %v2965_v22  ;;  %v3770_v56 = vmax.f32 %v3082_v17, 0.0  ;;  %v1853_v6 = vmax.f32 %v1725_v8, 0.0  ;;  %v1666_v49 = vadd.f32 %v2973_v29, %v1531_v0  ;;  %v2641_v15 = vpop.f32.mrb[48].mxu1 }
 0x14f   : > { %v1948_v45 = vmax.f32 %v1884_v58, %v1916_v24  ;;  %v1887_v31 = vmax.f32 %v3768_v60, %v1791_v42  ;;  %v1919_v12 = vmax.f32 %v3769_v43, %v1855_v57  ;;  %2111 = vst.msk [vmem:[%s3339_s11 + $0x28] sm:$0xf] %vm2100_vm3, %v2435_v27  ;;  %v1529_v13 = vmul.f32 %v2965_v22, %v1143_v2  ;;  %v1162_v58 = vpop.f32.mrb[51].mxu0 }
 0x150   : > { %v1885_v48 = vmax.f32 %v3770_v56, %v1789_v44  ;;  %v1730_v50 = vadd.f32 %v2973_v29, %v1595_v47  ;;  %v1593_v55 = vmul.f32 %v2965_v22, %v1399_v54  ;;  %v3771_v26 = vmax.f32 %v3087_v25, 0.0  ;;  %v1415_v54 = vpop.f32.mrb[49].mxu1 }
 0x151   : > { %v2433_v1 = vpack.c.bf16 %v1948_v45, %v1948_v45  ;;  %v1951_v62 = vmax.f32 %v1887_v31, %v1919_v12  ;;  %v1794_v16 = vmax.f32 %v1666_v49, 0.0  ;;  %v1664_v17 = vadd.f32 %v2973_v29, %v1529_v13  ;;  %v2642_v37 = vpop.f32.mrb[50].mxu1 }
 0x152   : > { %v1917_v14 = vmax.f32 %v3771_v26, %v1853_v6  ;;  %v1532_v32 = vmul.f32 %v2574_v30, %v2965_v22  ;;  %v1858_v53 = vmax.f32 %v1730_v50, 0.0  ;;  %v1728_v46 = vadd.f32 %v2973_v29, %v1593_v55  ;;  %v1418_v27 = vpop.f32.mrb[51].mxu1 }
 0x153   : > { %2109 = vst.msk [vmem:[%s3339_s11 + $0x20] sm:$0xf] %vm2100_vm3, %v2433_v1  ;;  %v2436_v2 = vpack.c.bf16 %v1951_v62, %v1951_v62  ;;  %v1596_v40 = vmul.f32 %v2638_v28, %v2965_v22  ;;  %v3772_v7 = vmax.f32 %v3096_v4, 0.0  ;;  %v1792_v63 = vmax.f32 %v1664_v17, 0.0  ;;  %v2581_v1 = vpop.f32.mrb[52].mxu0  ;;  %v2645_v26 = vpop.f32.mrb[52].mxu1 }
 0x154   : > { %v1949_v25 = vmax.f32 %v1885_v48, %v1917_v14  ;;  %v1667_v30 = vadd.f32 %v2973_v29, %v1532_v32  ;;  %v3773_v41 = vmax.f32 %v3101_v9, 0.0  ;;  %v1856_v42 = vmax.f32 %v1728_v46, 0.0  ;;  %v1175_v14 = vpop.f32.mrb[53].mxu0 }
 0x155   : > { %v1890_v33 = vmax.f32 %v3772_v7, %v1794_v16  ;;  %2112 = vst.msk [vmem:[%s3339_s11 + $0x2c] sm:$0xf] %vm2100_vm3, %v2436_v2  ;;  %v1731_v28 = vadd.f32 %v2973_v29, %v1596_v40  ;;  %v1530_v57 = vmul.f32 %v2965_v22, %v1146_v3  ;;  %v3774_v4 = vmax.f32 %v3104_v10, 0.0  ;;  %v3467_v2 = vpop.f32.mrb[54].mxu0 }
 0x156   : > { %v1922_v24 = vmax.f32 %v3773_v41, %v1858_v53  ;;  %v2434_v44 = vpack.c.bf16 %v1949_v25, %v1949_v25  ;;  %v1795_v0 = vmax.f32 %v1667_v30, 0.0  ;;  %v1594_v45 = vmul.f32 %v2965_v22, %v1402_v20 }
 0x157   : > { %v1888_v8 = vmax.f32 %v3774_v4, %v1792_v63  ;;  %v3775_v31 = vmax.f32 %v3109_v23, 0.0  ;;  %v1859_v12 = vmax.f32 %v1731_v28, 0.0  ;;  %v1665_v9 = vadd.f32 %v2973_v29, %v1530_v57 }
 0x158   : > { %v1954_v60 = vmax.f32 %v1890_v33, %v1922_v24  ;;  %2110 = vst.msk [vmem:[%s3339_s11 + $0x24] sm:$0xf] %vm2100_vm3, %v2434_v44  ;;  %v3776_v47 = vmax.f32 %v3112_v36, 0.0  ;;  %v1729_v56 = vadd.f32 %v2973_v29, %v1594_v45  ;;  %v1535_v10 = vmul.f32 %v2577_v18, %v2965_v22  ;;  %v3472_v33 = vpop.f32.mrb[55].mxu0 }
 0x159   : > { %v1920_v43 = vmax.f32 %v3775_v31, %v1856_v42  ;;  %v1599_v48 = vmul.f32 %v2641_v15, %v2965_v22  ;;  %v3777_v23 = vmax.f32 %v3116_v35, 0.0  ;;  %v1793_v13 = vmax.f32 %v1665_v9, 0.0  ;;  %v1431_v15 = vpop.f32.mrb[53].mxu1 }
 0x15a   : > { %v1891_v3 = vmax.f32 %v3776_v47, %v1795_v0  ;;  %v2439_v20 = vpack.c.bf16 %v1954_v60, %v1954_v60  ;;  %v1857_v62 = vmax.f32 %v1729_v56, 0.0  ;;  %v1670_v50 = vadd.f32 %v2973_v29, %v1535_v10  ;;  %v2646_v7 = vpop.f32.mrb[54].mxu1 }
 0x15b   : > { %v1952_v6 = vmax.f32 %v1888_v8, %v1920_v43  ;;  %v1923_v49 = vmax.f32 %v3777_v23, %v1859_v12  ;;  %v1734_v36 = vadd.f32 %v2973_v29, %v1599_v48  ;;  %v1533_v55 = vmul.f32 %v2965_v22, %v1159_v34  ;;  %v3479_v41 = vpop.f32.mrb[55].mxu1 }
 0x15c   : > { %2115 = vst.msk [vmem:[%s3339_s11 + $0x38] sm:$0xf] %vm2100_vm3, %v2439_v20  ;;  %v3778_v17 = vmax.f32 %v3119_v39, 0.0  ;;  %v1597_v32 = vmul.f32 %v2965_v22, %v1415_v54  ;;  %v3779_v53 = vmax.f32 %v3122_v51, 0.0  ;;  %v1798_v34 = vmax.f32 %v1670_v50, 0.0  ;;  %v2649_v48 = vpop.f32.mrb[56].mxu1 }
 0x15d   : > { %v2437_v18 = vpack.c.bf16 %v1952_v6, %v1952_v6  ;;  %v1955_v16 = vmax.f32 %v1891_v3, %v1923_v49  ;;  %v1862_v40 = vmax.f32 %v1734_v36, 0.0  ;;  %v1668_v25 = vadd.f32 %v2973_v29, %v1533_v55  ;;  %v2585_v3 = vpop.f32.mrb[56].mxu0  ;;  %v3784_v20 = vld [vmem:[#allocation2_spill] sm:$0xff]  ;;  %v3786_v49 = vld [vmem:[#allocation3_spill] sm:$0xff]  ;;  %v3507_v36 = vpop.f32.mrb[57].mxu1 }
 0x15e   : > { %v1889_v35 = vmax.f32 %v3778_v17, %v1793_v13  ;;  %v1921_v46 = vmax.f32 %v3779_v53, %v1857_v62  ;;  %v1732_v63 = vadd.f32 %v2973_v29, %v1597_v32  ;;  %v1536_v54 = vmul.f32 %v2578_v52, %v2965_v22  ;;  %v3521_v17 = vpop.f32.mrb[58].mxu1 }
 0x15f   : > { %2113 = vst.msk [vmem:[%s3339_s11 + $0x30] sm:$0xf] %vm2100_vm3, %v2437_v18  ;;  %v2440_v39 = vpack.c.bf16 %v1955_v16, %v1955_v16  ;;  %v1600_v30 = vmul.f32 %v2642_v37, %v2965_v22  ;;  %v3780_v24 = vmax.f32 %v3141_v5, 0.0  ;;  %v3781_v28 = vmax.f32 %v3144_v38, 0.0  ;;  %v3518_v18 = vld [vmem:[%s3696_s2] ss:$0 sm:$0xff] }
 0x160   : > { %v1953_v51 = vmax.f32 %v1889_v35, %v1921_v46  ;;  %v1796_v44 = vmax.f32 %v1668_v25, 0.0  ;;  %v1860_v4 = vmax.f32 %v1732_v63, 0.0  ;;  %v1671_v8 = vadd.f32 %v2973_v29, %v1536_v54  ;;  %v3788_v46 = vld [vmem:[#allocation4_spill] sm:$0xff] }
 0x161   : > { %v1894_v42 = vmax.f32 %v3780_v24, %v1798_v34  ;;  %v1926_v57 = vmax.f32 %v3781_v28, %v1862_v40  ;;  %2116 = vst.msk [vmem:[%s3339_s11 + $0x3c] sm:$0xf] %vm2100_vm3, %v2440_v39  ;;  %v1735_v52 = vadd.f32 %v2973_v29, %v1600_v30  ;;  %v1534_v37 = vmul.f32 %v2965_v22, %v1162_v58  ;;  %v3790_v39 = vld [vmem:[#allocation5_spill] sm:$0xff] }
 0x162   : > { %v2438_v0 = vpack.c.bf16 %v1953_v51, %v1953_v51  ;;  %v3782_v60 = vmax.f32 %v3147_v19, 0.0  ;;  %v1598_v31 = vmul.f32 %v2965_v22, %v1418_v27  ;;  %v3783_v38 = vmax.f32 %v3151_v61, 0.0  ;;  %v3501_v27 = vpop.f32.mrb[57].mxu0 }
 0x163   : > { %v1958_v45 = vmax.f32 %v1894_v42, %v1926_v57  ;;  %v1799_v12 = vmax.f32 %v1671_v8, 0.0  ;;  %v1863_v9 = vmax.f32 %v1735_v52, 0.0  ;;  %v1669_v47 = vadd.f32 %v2973_v29, %v1534_v37  ;;  %v3509_v55 = vpop.f32.mrb[58].mxu0 }
 0x164   : > { %v1892_v5 = vmax.f32 %v3782_v60, %v1796_v44  ;;  %v1924_v43 = vmax.f32 %v3783_v38, %v1860_v4  ;;  %2114 = vst.msk [vmem:[%s3339_s11 + $0x34] sm:$0xf] %vm2100_vm3, %v2438_v0  ;;  %v1733_v58 = vadd.f32 %v2973_v29, %v1598_v31  ;;  %v1539_v10 = vmul.f32 %v2581_v1, %v2965_v22  ;;  %v3523_v35 = vpop.f32.mrb[59].mxu0  ;;  %v3794_v38 = vld [vmem:[#allocation6_spill] sm:$0xff] }
 0x165   : > { %v2443_v56 = vpack.c.bf16 %v1958_v45, %v1958_v45  ;;  %v1603_v19 = vmul.f32 %v2645_v26, %v2965_v22  ;;  %v3785_v6 = vmax.f32 %v3784_v20, 0.0  ;;  %v3787_v13 = vmax.f32 %v3786_v49, 0.0 }
 0x166   : > { %v1956_v61 = vmax.f32 %v1892_v5, %v1924_v43  ;;  %v1797_v50 = vmax.f32 %v1669_v47, 0.0  ;;  %v1861_v1 = vmax.f32 %v1733_v58, 0.0  ;;  %v1674_v22 = vadd.f32 %v2973_v29, %v1539_v10 }
 0x167   : > { %v1895_v23 = vmax.f32 %v3785_v6, %v1799_v12  ;;  %v1927_v62 = vmax.f32 %v3787_v13, %v1863_v9  ;;  %2119 = vst.msk [vmem:[%s3339_s11 + $0x48] sm:$0xf] %vm2100_vm3, %v2443_v56  ;;  %v1738_v26 = vadd.f32 %v2973_v29, %v1603_v19  ;;  %v1537_v16 = vmul.f32 %v3518_v18, %v1175_v14  ;;  %v3528_v29 = vpop.f32.mrb[59].mxu1  ;;  %v3535_v14 = vld [vmem:[%s3697_s3] ss:$0 sm:$0xff]  ;;  %v3796_v56 = vld [vmem:[#allocation7_spill] sm:$0xff] }
 0x168   : > { %v2441_v32 = vpack.c.bf16 %v1956_v61, %v1956_v61  ;;  %v3789_v34 = vmax.f32 %v3788_v46, 0.0  ;;  %v1601_v25 = vmul.f32 %v3518_v18, %v1431_v15  ;;  %v3791_v63 = vmax.f32 %v3790_v39, 0.0  ;;  %v2653_v9 = vpop.f32.mrb[60].mxu1 }
 0x169   : > { %v1959_v53 = vmax.f32 %v1895_v23, %v1927_v62  ;;  %v1802_v30 = vmax.f32 %v1674_v22, 0.0  ;;  %v1866_v51 = vmax.f32 %v1738_v26, 0.0  ;;  %v1672_v24 = vadd.f32 %v3535_v14, %v1537_v16  ;;  %v3565_v20 = vpop.f32.mrb[61].mxu1  ;;  %v3798_v22 = vld [vmem:[#allocation8_spill] sm:$0xff] }
 0x16a   : > { %v1893_v40 = vmax.f32 %v3789_v34, %v1797_v50  ;;  %v1925_v54 = vmax.f32 %v3791_v63, %v1861_v1  ;;  %2117 = vst.msk [vmem:[%s3339_s11 + $0x40] sm:$0xf] %vm2100_vm3, %v2441_v32  ;;  %v1736_v15 = vadd.f32 %v3535_v14, %v1601_v25  ;;  %v1540_v28 = vmul.f32 %v3518_v18, %v3467_v2  ;;  %v3574_v62 = vpop.f32.mrb[62].mxu1  ;;  %v3800_v32 = vld [vmem:[#allocation9_spill] sm:$0xff] }
 0x16b   : > { %v2444_v42 = vpack.c.bf16 %v1959_v53, %v1959_v53  ;;  %v1604_v57 = vmul.f32 %v3518_v18, %v2646_v7  ;;  %v3792_v4 = vmax.f32 %v3176_v21, 0.0  ;;  %v3793_v52 = vmax.f32 %v3181_v11, 0.0  ;;  %v3554_v7 = vpop.f32.mrb[60].mxu0 }
 0x16c   : > { %v1957_v44 = vmax.f32 %v1893_v40, %v1925_v54  ;;  %v1800_v0 = vmax.f32 %v1672_v24, 0.0  ;;  %v1864_v45 = vmax.f32 %v1736_v15, 0.0  ;;  %v1675_v60 = vadd.f32 %v3535_v14, %v1540_v28  ;;  %v3560_v47 = vpop.f32.mrb[61].mxu0  ;;  %v3582_v40 = vpop.f32.mrb[63].mxu1  ;;  %v3804_v15 = vld [vmem:[#allocation11_spill] sm:$0xff] }
 0x16d   : > { %v1898_v8 = vmax.f32 %v3792_v4, %v1802_v30  ;;  %v1930_v37 = vmax.f32 %v3793_v52, %v1866_v51  ;;  %2120 = vst.msk [vmem:[%s3339_s11 + $0x4c] sm:$0xf] %vm2100_vm3, %v2444_v42  ;;  %v1739_v5 = vadd.f32 %v3535_v14, %v1604_v57  ;;  %v1538_v2 = vmul.f32 %v3518_v18, %v3472_v33  ;;  %v3567_v6 = vpop.f32.mrb[62].mxu0  ;;  %v3802_v30 = vld [vmem:[#allocation10_spill] sm:$0xff] }
 0x16e   : > { %v2442_v31 = vpack.c.bf16 %v1957_v44, %v1957_v44  ;;  %v3795_v43 = vmax.f32 %v3794_v38, 0.0  ;;  %v1602_v12 = vmul.f32 %v3518_v18, %v3479_v41  ;;  %v3797_v58 = vmax.f32 %v3796_v56, 0.0  ;;  %v3576_v50 = vpop.f32.mrb[63].mxu0  ;;  %v3809_v56 = vld [vmem:[#allocation13_spill] sm:$0xff] }
 0x16f   : > { %v1962_v21 = vmax.f32 %v1898_v8, %v1930_v37  ;;  %v1803_v19 = vmax.f32 %v1675_v60, 0.0  ;;  %v1867_v61 = vmax.f32 %v1739_v5, 0.0  ;;  %v1673_v33 = vadd.f32 %v3535_v14, %v1538_v2 }
 0x170   : > { %v1896_v11 = vmax.f32 %v3795_v43, %v1800_v0  ;;  %v1928_v10 = vmax.f32 %v3797_v58, %v1864_v45  ;;  %2118 = vst.msk [vmem:[%s3339_s11 + $0x44] sm:$0xf] %vm2100_vm3, %v2442_v31  ;;  %v1737_v41 = vadd.f32 %v3535_v14, %v1602_v12  ;;  %v1543_v49 = vmul.f32 %v3518_v18, %v2585_v3 }
 0x171   : > { %v2447_v23 = vpack.c.bf16 %v1962_v21, %v1962_v21  ;;  %v1607_v13 = vmul.f32 %v3518_v18, %v2649_v48  ;;  %v3799_v26 = vmax.f32 %v3798_v22, 0.0  ;;  %v3801_v53 = vmax.f32 %v3800_v32, 0.0 }
 0x172   : > { %v1960_v1 = vmax.f32 %v1896_v11, %v1928_v10  ;;  %v1801_v34 = vmax.f32 %v1673_v33, 0.0  ;;  %v1865_v3 = vmax.f32 %v1737_v41, 0.0  ;;  %v1678_v48 = vadd.f32 %v3535_v14, %v1543_v49 }
 0x173   : > { %v1899_v16 = vmax.f32 %v3799_v26, %v1803_v19  ;;  %v1931_v46 = vmax.f32 %v3801_v53, %v1867_v61  ;;  %2123 = vst.msk [vmem:[%s3339_s11 + $0x58] sm:$0xf] %vm2100_vm3, %v2447_v23  ;;  %v1742_v25 = vadd.f32 %v3535_v14, %v1607_v13  ;;  %v1541_v39 = vmul.f32 %v3518_v18, %v3501_v27  ;;  %v3811_v19 = vld [vmem:[#allocation14_spill] sm:$0xff]  ;;  %v3815_v53 = vld [vmem:[#allocation16_spill] sm:$0xff] }
 0x174   : > { %v2445_v63 = vpack.c.bf16 %v1960_v1, %v1960_v1  ;;  %v3803_v51 = vmax.f32 %v3802_v30, 0.0  ;;  %v1605_v42 = vmul.f32 %v3518_v18, %v3507_v36  ;;  %v3805_v28 = vmax.f32 %v3804_v15, 0.0  ;;  %v3806_v36 = vld [vmem:[#allocation12_spill] sm:$0xff] }
 0x175   : > { %v1963_v54 = vmax.f32 %v1899_v16, %v1931_v46  ;;  %v1806_v44 = vmax.f32 %v1678_v48, 0.0  ;;  %v1870_v4 = vmax.f32 %v1742_v25, 0.0  ;;  %v1676_v8 = vadd.f32 %v3535_v14, %v1541_v39  ;;  %v3813_v16 = vld [vmem:[#allocation15_spill] sm:$0xff] }
 0x176   : > { %v1897_v24 = vmax.f32 %v3803_v51, %v1801_v34  ;;  %v1929_v57 = vmax.f32 %v3805_v28, %v1865_v3  ;;  %2121 = vst.msk [vmem:[%s3339_s11 + $0x50] sm:$0xf] %vm2100_vm3, %v2445_v63  ;;  %v1740_v27 = vadd.f32 %v3535_v14, %v1605_v42  ;;  %v1544_v37 = vmul.f32 %v3518_v18, %v3509_v55  ;;  %v3819_v42 = vld [vmem:[#allocation18_spill] sm:$0xff] }
 0x177   : > { %v2448_v52 = vpack.c.bf16 %v1963_v54, %v1963_v54  ;;  %v1608_v0 = vmul.f32 %v3518_v18, %v3521_v17  ;;  %v3807_v60 = vmax.f32 %v3806_v36, 0.0  ;;  %v3808_v2 = vmax.f32 %v3224_v59, 0.0  ;;  %v3817_v54 = vld [vmem:[#allocation17_spill] sm:$0xff]  ;;  %v3823_v36 = vld [vmem:[#allocation20_spill] sm:$0xff] }
 0x178   : > { %v1961_v45 = vmax.f32 %v1897_v24, %v1929_v57  ;;  %v1804_v21 = vmax.f32 %v1676_v8, 0.0  ;;  %v1868_v38 = vmax.f32 %v1740_v27, 0.0  ;;  %v1679_v43 = vadd.f32 %v3535_v14, %v1544_v37 }
 0x179   : > { %v1902_v5 = vmax.f32 %v3807_v60, %v1806_v44  ;;  %v1934_v31 = vmax.f32 %v3808_v2, %v1870_v4  ;;  %2124 = vst.msk [vmem:[%s3339_s11 + $0x5c] sm:$0xf] %vm2100_vm3, %v2448_v52  ;;  %v1743_v11 = vadd.f32 %v3535_v14, %v1608_v0  ;;  %v1542_v55 = vmul.f32 %v3518_v18, %v3523_v35 }
 0x17a   : > { %v2446_v17 = vpack.c.bf16 %v1961_v45, %v1961_v45  ;;  %v3810_v58 = vmax.f32 %v3809_v56, 0.0  ;;  %v1606_v59 = vmul.f32 %v3518_v18, %v3528_v29  ;;  %v3812_v61 = vmax.f32 %v3811_v19, 0.0  ;;  %v3827_v56 = vld [vmem:[#allocation22_spill] sm:$0xff] }
 0x17b   : > { %v1966_v12 = vmax.f32 %v1902_v5, %v1934_v31  ;;  %v1807_v23 = vmax.f32 %v1679_v43, 0.0  ;;  %v1871_v41 = vmax.f32 %v1743_v11, 0.0  ;;  %v1677_v49 = vadd.f32 %v3535_v14, %v1542_v55  ;;  %v3825_v11 = vld [vmem:[#allocation21_spill] sm:$0xff] }
 0x17c   : > { %v1900_v10 = vmax.f32 %v3810_v58, %v1804_v21  ;;  %v1932_v33 = vmax.f32 %v3812_v61, %v1868_v38  ;;  %2122 = vst.msk [vmem:[%s3339_s11 + $0x54] sm:$0xf] %vm2100_vm3, %v2446_v17  ;;  %v1741_v35 = vadd.f32 %v3535_v14, %v1606_v59  ;;  %v1547_v1 = vmul.f32 %v3518_v18, %v3554_v7 }
 0x17d   : > { %v2451_v13 = vpack.c.bf16 %v1966_v12, %v1966_v12  ;;  %v1611_v22 = vmul.f32 %v3518_v18, %v2653_v9  ;;  %v3814_v29 = vmax.f32 %v3813_v16, 0.0  ;;  %v3816_v46 = vmax.f32 %v3815_v53, 0.0  ;;  %v3834_v16 = vld [vmem:[#allocation26_spill] sm:$0xff] }
 0x17e   : > { %v1964_v26 = vmax.f32 %v1900_v10, %v1932_v33  ;;  %v1805_v3 = vmax.f32 %v1677_v49, 0.0  ;;  %v1869_v48 = vmax.f32 %v1741_v35, 0.0  ;;  %v1682_v25 = vadd.f32 %v3535_v14, %v1547_v1  ;;  %v3829_v33 = vld [vmem:[#allocation25_spill] sm:$0xff] }
 0x17f   : > { %v1903_v32 = vmax.f32 %v3814_v29, %v1807_v23  ;;  %v1935_v34 = vmax.f32 %v3816_v46, %v1871_v41  ;;  %2127 = vst.msk [vmem:[%s3339_s11 + $0x68] sm:$0xf] %vm2100_vm3, %v2451_v13  ;;  %v1746_v39 = vadd.f32 %v3535_v14, %v1611_v22  ;;  %v1545_v7 = vmul.f32 %v3518_v18, %v3560_v47  ;;  %v3830_v13 = vld [vmem:[#allocation23_spill] sm:$0xff] }
 0x180   : > { %v2449_v9 = vpack.c.bf16 %v1964_v26, %v1964_v26  ;;  %v3818_v30 = vmax.f32 %v3817_v54, 0.0  ;;  %v1609_v24 = vmul.f32 %v3518_v18, %v3565_v20  ;;  %v3820_v15 = vmax.f32 %v3819_v42, 0.0  ;;  %v3821_v20 = vld [vmem:[#allocation19_spill] sm:$0xff] }
 0x181   : > { %v1967_v63 = vmax.f32 %v1903_v32, %v1935_v34  ;;  %v1810_v57 = vmax.f32 %v1682_v25, 0.0  ;;  %v1874_v44 = vmax.f32 %v1746_v39, 0.0  ;;  %v1680_v4 = vadd.f32 %v3535_v14, %v1545_v7 }
 0x182   : > { %v1901_v51 = vmax.f32 %v3818_v30, %v1805_v3  ;;  %v1933_v28 = vmax.f32 %v3820_v15, %v1869_v48  ;;  %2125 = vst.msk [vmem:[%s3339_s11 + $0x60] sm:$0xf] %vm2100_vm3, %v2449_v9  ;;  %v1744_v47 = vadd.f32 %v3535_v14, %v1609_v24  ;;  %v1548_v52 = vmul.f32 %v3518_v18, %v3567_v6 }
 0x183   : > { %v2452_v8 = vpack.c.bf16 %v1967_v63, %v1967_v63  ;;  %v1612_v27 = vmul.f32 %v3518_v18, %v3574_v62  ;;  %v3822_v0 = vmax.f32 %v3821_v20, 0.0  ;;  %v3824_v60 = vmax.f32 %v3823_v36, 0.0 }
 0x184   : > { %v1965_v37 = vmax.f32 %v1901_v51, %v1933_v28  ;;  %v1808_v2 = vmax.f32 %v1680_v4, 0.0  ;;  %v1872_v31 = vmax.f32 %v1744_v47, 0.0  ;;  %v1683_v21 = vadd.f32 %v3535_v14, %v1548_v52 }
 0x185   : > { %v1906_v45 = vmax.f32 %v3822_v0, %v1810_v57  ;;  %v1938_v5 = vmax.f32 %v3824_v60, %v1874_v44  ;;  %2128 = vst.msk [vmem:[%s3339_s11 + $0x6c] sm:$0xf] %vm2100_vm3, %v2452_v8  ;;  %v1747_v38 = vadd.f32 %v3535_v14, %v1612_v27  ;;  %v1546_v6 = vmul.f32 %v3518_v18, %v3576_v50 }
 0x186   : > { %v2450_v62 = vpack.c.bf16 %v1965_v37, %v1965_v37  ;;  %v3826_v55 = vmax.f32 %v3825_v11, 0.0  ;;  %v1610_v12 = vmul.f32 %v3518_v18, %v3582_v40  ;;  %v3828_v58 = vmax.f32 %v3827_v56, 0.0  ;;  %v3832_v40 = vld [vmem:[#allocation24_spill] sm:$0xff] }
 0x187   : > { %v1970_v43 = vmax.f32 %v1906_v45, %v1938_v5  ;;  %v1811_v59 = vmax.f32 %v1683_v21, 0.0  ;;  %v1875_v19 = vmax.f32 %v1747_v38, 0.0  ;;  %v1681_v61 = vadd.f32 %v3535_v14, %v1546_v6 }
 0x188   : > { %v1904_v17 = vmax.f32 %v3826_v55, %v1808_v2  ;;  %v1936_v10 = vmax.f32 %v3828_v58, %v1872_v31  ;;  %v1777_v23 = vmax.f32 %v3829_v33, 0.0  ;;  %2126 = vst.msk [vmem:[%s3339_s11 + $0x64] sm:$0xf] %vm2100_vm3, %v2450_v62  ;;  %v1745_v41 = vadd.f32 %v3535_v14, %v1610_v12 }
 0x189   : > { %v2455_v50 = vpack.c.bf16 %v1970_v43, %v1970_v43  ;;  %v3831_v35 = vmax.f32 %v3830_v13, 0.0  ;;  %v3833_v1 = vmax.f32 %v3832_v40, 0.0  ;;  %v1809_v26 = vmax.f32 %v1681_v61, 0.0 }
 0x18a   : > { %v1968_v49 = vmax.f32 %v1904_v17, %v1936_v10  ;;  %v1841_v29 = vmax.f32 %v3834_v16, 0.0  ;;  %v1873_v32 = vmax.f32 %v1745_v41, 0.0 }
 0x18b   : > { %v1907_v18 = vmax.f32 %v3831_v35, %v1811_v59  ;;  %v1939_v22 = vmax.f32 %v3833_v1, %v1875_v19  ;;  %2131 = vst.msk [vmem:[%s3339_s11 + $0x78] sm:$0xf] %vm2100_vm3, %v2455_v50  ;;  %v1905_v34 = vmax.f32 %v1777_v23, %v1809_v26 }
 0x18c   : > { %v2453_v53 = vpack.c.bf16 %v1968_v49, %v1968_v49  ;;  %v1937_v3 = vmax.f32 %v1841_v29, %v1873_v32 }
 0x18d   : > { %v1971_v46 = vmax.f32 %v1907_v18, %v1939_v22 }
 0x18e   : > { %2129 = vst.msk [vmem:[%s3339_s11 + $0x70] sm:$0xf] %vm2100_vm3, %v2453_v53  ;;  %v1969_v48 = vmax.f32 %v1905_v34, %v1937_v3 }
 0x18f   : > { %v2456_v14 = vpack.c.bf16 %v1971_v46, %v1971_v46 }
 0x190   : > { %v2454_v25 = vpack.c.bf16 %v1969_v48, %v1969_v48 }
 0x191   : > { %2132 = vst.msk [vmem:[%s3339_s11 + $0x7c] sm:$0xf] %vm2100_vm3, %v2456_v14 }
 0x192   : > { %2130 = vst.msk [vmem:[%s3339_s11 + $0x74] sm:$0xf] %vm2100_vm3, %v2454_v25 }
 0x193 PF: > { %s14_s17 = sadd.s32 1, %s2774_s17   ;;  %s3835_s15 = smov %s2770_s16 }
 0x194   : > { %p11_p6 = scmp.ge.s32.totalorder %s14_s17, 4   ;;  %s3836_s16 = smov %s3838_s18 }
 0x196   :  { %13 = sbr.rel (!%p11_p6) target bundleno = 2 (0x2), region = 75 }

// kernel: custom_cnn_forward.6
= control target key start
LH: loop header
LB: loop body
LE: loop exit
PB: predicated region body
PF: predicated region fallthrough
CT: control target
= control target key end

     0   :  { %s2586_s15 = smov 0   ;;  %s2588_s16 = smov 0   ;;  %s3060_s0 = inlined_call_operand.vmem [shape: bf16[512,576], index: 0, kind: input, shape index: {}]   ;;  %s3061_s1 = inlined_call_operand.vmem [shape: bf16[1,576,128], index: 1, kind: input, shape index: {}]   ;;  %s3062_s2 = inlined_call_operand.vmem [shape: f32[1,128], index: 2, kind: input, shape index: {}]   ;;  %s3063_s3 = inlined_call_operand.vmem [shape: f32[1,128], index: 3, kind: input, shape index: {}]   ;;  %s3064_s4 = inlined_call_operand.vmem [shape: bf16[128,128], index: 4, kind: output, shape index: {}]  }
   0x1   :  { %s2590_s17 = smov 0  }
   0x2 LB: > { %s26_s18 = sadd.s32 1, %s2555_s16  ;;  %p1884_p0 = scmp.ge.s32.totalorder %s2559_s17, 1  ;;  %s2559_s17 = sphi %s2590_s17, %s14_s17   ;;  %s2555_s16 = sphi %s2588_s16, %s3067_s16   ;;  %s2551_s15 = sphi %s2586_s15, %s3066_s15  }
   0x3   : > { %p28_p1 = scmp.ge.s32.totalorder %s26_s18, 2  ;;  %p204_p2 = scmp.lt.s32.totalorder %s2559_s17, 3 }
   0x5   : > { %s3069_s18 = smov (%p28_p1, %s26_s18), 0  ;;  %p205_p3 = pnand %p1884_p0, %p204_p2 }
   0x6   : > { %v2389_v0 = vld [vmem:[%s3061_s1 + $0x40] sm:$0xff] (!%p205_p3)   ;;  %s1885_s21 = sshll.u32 (!%p205_p3), %s2551_s15, 5  ;;  %v2391_v2 = vld [vmem:[%s3061_s1 + $0x48] sm:$0xff] (!%p205_p3)   ;;  %v2393_v4 = vld [vmem:[%s3061_s1 + $0x50] sm:$0xff] (!%p205_p3)   ;;  %vm1057_vm0 = vcmask (!%p205_p3), 523264   ;;  %s1887_s9 = sshll.u32 (!%p205_p3), %s2551_s15, 3 }
   0x7   : > { %208 = sbr.rel (%p205_p3) target bundleno = 426 (0x1aa), region = 36  ;;  %v2390_v1 = vld [vmem:[%s3061_s1] sm:$0xff] (!%p205_p3)   ;;  %2064 = vmatprep.subr.bf16.mxu0 (!%p205_p3), %v2389_v0  ;;  %2348 = vmatprep.subr.bf16.mxu1 (!%p205_p3), %v2389_v0  ;;  %p246_p4 = scmp.lt.s32.totalorder (!%p205_p3), %s1885_s21, 63  ;;  %v2392_v3 = vld [vmem:[%s3061_s1 + $0x8] sm:$0xff] (!%p205_p3)   ;;  %v2394_v5 = vld [vmem:[%s3061_s1 + $0x10] sm:$0xff] (!%p205_p3)  }
   0x8   : > { %2065 = vmatpush3.bf16.msra.mxu0 (!%p205_p3), %v2390_v1  ;;  %2356 = vmatpush3.bf16.msra.mxu1 (!%p205_p3), %v2390_v1  ;;  %v2395_v6 = vld [vmem:[%s3061_s1 + $0x58] sm:$0xff] (!%p205_p3)   ;;  %v2397_v8 = vld [vmem:[%s3061_s1 + $0x60] sm:$0xff] (!%p205_p3)   ;;  %v2399_v10 = vld [vmem:[%s3061_s1 + $0x68] sm:$0xff] (!%p205_p3)   ;;  %p2994_p5 = scmp.lt.s32.totalorder (!%p205_p3), %s1887_s9, 15 }
   0x9   : > { %2066 = vmatprep.subr.bf16.mxu0 (!%p205_p3), %v2391_v2  ;;  %2349 = vmatprep.subr.bf16.mxu1 (!%p205_p3), %v2391_v2  ;;  %v2396_v7 = vld [vmem:[%s3061_s1 + $0x18] sm:$0xff] (!%p205_p3)   ;;  %v2398_v9 = vld [vmem:[%s3061_s1 + $0x20] sm:$0xff] (!%p205_p3)   ;;  %v2400_v13 = vld [vmem:[%s3061_s1 + $0x28] sm:$0xff] (!%p205_p3)  }
   0xa   : > { %v2401_v14 = vld [vmem:[%s3061_s1 + $0x70] sm:$0xff] (!%p205_p3)   ;;  %v2403_v16 = vld [vmem:[%s3061_s1 + $0x78] sm:$0xff] (!%p205_p3)   ;;  %v2411_v18 = vld [vmem:[%s3061_s1 + $0xc0] sm:$0xff] (!%p205_p3)  }
   0xb   : > { %v2402_v15 = vld [vmem:[%s3061_s1 + $0x30] sm:$0xff] (!%p205_p3)   ;;  %v2404_v17 = vld [vmem:[%s3061_s1 + $0x38] sm:$0xff] (!%p205_p3)   ;;  %v2414_v19 = vld [vmem:[%s3061_s1 + $0x100] sm:$0xff] (!%p205_p3)  }
   0xc   : > { %2067 = vmatpush3.bf16.msra.mxu0 (!%p205_p3), %v2392_v3  ;;  %2357 = vmatpush3.bf16.msra.mxu1 (!%p205_p3), %v2392_v3  ;;  %v2412_v22 = vld [vmem:[%s3061_s1 + $0x80] sm:$0xff] (!%p205_p3)   ;;  %v2413_v23 = vld [vmem:[%s3061_s1 + $0xc8] sm:$0xff] (!%p205_p3)   ;;  %v2422_v28 = vld [vmem:[%s3061_s1 + $0xd0] sm:$0xff] (!%p205_p3)  }
   0xd   : > { %2068 = vmatprep.subr.bf16.mxu0 (!%p205_p3), %v2393_v4  ;;  %2350 = vmatprep.subr.bf16.mxu1 (!%p205_p3), %v2393_v4  ;;  %v2415_v26 = vld [vmem:[%s3061_s1 + $0x88] sm:$0xff] (!%p205_p3)   ;;  %v2423_v30 = vld [vmem:[%s3061_s1 + $0x90] sm:$0xff] (!%p205_p3)   ;;  %v2424_v31 = vld [vmem:[%s3061_s1 + $0xd8] sm:$0xff] (!%p205_p3)  }
   0xe   : > { %s3071_s21 = smov (!%p246_p4, %s1885_s21), 63  ;;  %v2425_v34 = vld [vmem:[%s3061_s1 + $0x98] sm:$0xff]   ;;  %v2445_v35 = vld [vmem:[%s3061_s1 + $0x108] sm:$0xff]   ;;  %v2432_v37 = vld [vmem:[%s3061_s1 + $0xe0] sm:$0xff]   ;;  %s3073_s9 = smov (!%p2994_p5, %s1887_s9), 15 }
   0xf   : > { %s2364_s8 = smul.u32 20, %s3071_s21  ;;  %v2433_v39 = vld [vmem:[%s3061_s1 + $0xa0] sm:$0xff]   ;;  %v2434_v40 = vld [vmem:[%s3061_s1 + $0xe8] sm:$0xff]   ;;  %v2442_v46 = vld [vmem:[%s3061_s1 + $0xf0] sm:$0xff]   ;;  %s1888_s15 = sshll.u32 %s3073_s9, 2 }
  0x10   : > { %2069 = vmatpush3.bf16.msra.mxu0 %v2394_v5  ;;  %2358 = vmatpush3.bf16.msra.mxu1 %v2394_v5  ;;  %v2435_v43 = vld [vmem:[%s3061_s1 + $0xa8] sm:$0xff]   ;;  %v2465_v47 = vld [vmem:[%s3061_s1 + $0x110] sm:$0xff]   ;;  %v2444_v49 = vld [vmem:[%s3061_s1 + $0xf8] sm:$0xff]   ;;  %s3030_s13 = scalar_lea.vmem %s3064_s4, %s1888_s15 }
  0x11   : > { %2070 = vmatprep.subr.bf16.mxu0 %v2395_v6  ;;  %2351 = vmatprep.subr.bf16.mxu1 %v2395_v6  ;;  %s2637_s19 = scalar_lea.vmem %s3060_s0, %s2364_s8  ;;  %v2443_v48 = vld [vmem:[%s3061_s1 + $0xb0] sm:$0xff]   ;;  %v2446_v52 = vld [vmem:[%s3061_s1 + $0xb8] sm:$0xff]  }
  0x12   : > { %v2407_v11 = vld [vmem:[%s2637_s19 + $0x4] ss:$20 sps:$4 sm:$0xff]   ;;  %v2405_v20 = vld [vmem:[%s2637_s19] ss:$20 sps:$4 sm:$0xff]   ;;  %v2420_v27 = vld [vmem:[%s2637_s19 + $0x28] ss:$20 sps:$4 sm:$0xff]  }
  0x13   : > { %v2410_v12 = vld [vmem:[%s2637_s19 + $0x1e4] ss:$20 sps:$4 sm:$0xff]   ;;  %1138 = vmatprep.mubr.bf16.mxu0 %v2407_v11  ;;  %v2408_v21 = vld [vmem:[%s2637_s19 + $0x1e0] ss:$20 sps:$4 sm:$0xff]   ;;  %v2421_v29 = vld [vmem:[%s2637_s19 + $0x208] ss:$20 sps:$4 sm:$0xff]  }
  0x14   : > { %2071 = vmatpush3.bf16.msra.mxu0 %v2396_v7  ;;  %2359 = vmatpush3.bf16.msra.mxu1 %v2396_v7  ;;  %v2416_v24 = vld [vmem:[%s2637_s19 + $0x2c] ss:$20 sps:$4 sm:$0xff]   ;;  %v2426_v32 = vld [vmem:[%s2637_s19 + $0x54] ss:$20 sps:$4 sm:$0xff]   ;;  %v2430_v36 = vld [vmem:[%s2637_s19 + $0x50] ss:$20 sps:$4 sm:$0xff]  }
  0x15   : > { %2072 = vmatprep.subr.bf16.mxu0 %v2397_v8  ;;  %2352 = vmatprep.subr.bf16.mxu1 %v2397_v8  ;;  %v2418_v25 = vld [vmem:[%s2637_s19 + $0x20c] ss:$20 sps:$4 sm:$0xff]   ;;  %v2428_v33 = vld [vmem:[%s2637_s19 + $0x234] ss:$20 sps:$4 sm:$0xff]   ;;  %v2431_v38 = vld [vmem:[%s2637_s19 + $0x230] ss:$20 sps:$4 sm:$0xff]  }
  0x16   : > { %1234 = vmatprep.mubr.bf16.mxu1 %v2410_v12  ;;  %v2436_v41 = vld [vmem:[%s2637_s19 + $0x7c] ss:$20 sps:$4 sm:$0xff]   ;;  %v2440_v44 = vld [vmem:[%s2637_s19 + $0x78] ss:$20 sps:$4 sm:$0xff]   ;;  %v2452_v54 = vld [vmem:[%s2637_s19 + $0xa0] ss:$20 sps:$4 sm:$0xff]  }
  0x17   : > { %v2438_v42 = vld [vmem:[%s2637_s19 + $0x25c] ss:$20 sps:$4 sm:$0xff]   ;;  %v2441_v45 = vld [vmem:[%s2637_s19 + $0x258] ss:$20 sps:$4 sm:$0xff]   ;;  %v2455_v57 = vld [vmem:[%s2637_s19 + $0x34] ss:$20 sps:$4 sm:$0xff]  }
  0x18   : > { %2073 = vmatpush3.bf16.msra.mxu0 %v2398_v9  ;;  %2360 = vmatpush3.bf16.msra.mxu1 %v2398_v9  ;;  %v2447_v50 = vld [vmem:[%s2637_s19 + $0xa4] ss:$20 sps:$4 sm:$0xff]   ;;  %v2451_v51 = vld [vmem:[%s2637_s19 + $0xc] ss:$20 sps:$4 sm:$0xff]   ;;  %v2449_v53 = vld [vmem:[%s2637_s19 + $0x8] ss:$20 sps:$4 sm:$0xff]  }
  0x19   : > { %2074 = vmatprep.subr.bf16.mxu0 %v2399_v10  ;;  %2353 = vmatprep.subr.bf16.mxu1 %v2399_v10  ;;  %v2453_v55 = vld [vmem:[%s2637_s19 + $0xcc] ss:$20 sps:$4 sm:$0xff]   ;;  %v2484_v56 = vld [vmem:[%s3061_s1 + $0x118] sm:$0xff]   ;;  %v2458_v59 = vld [vmem:[%s2637_s19 + $0x30] ss:$20 sps:$4 sm:$0xff]  }
  0x1a   : > { %v2457_v58 = vld [vmem:[%s2637_s19 + $0xc8] ss:$20 sps:$4 sm:$0xff]   ;;  %v2463_v62 = vld [vmem:[%s2637_s19 + $0xf0] ss:$20 sps:$4 sm:$0xff]   ;;  %v2464_v63 = vld [vmem:[%s2637_s19 + $0x58] ss:$20 sps:$4 sm:$0xff]  }
  0x1b   : > { %v2459_v60 = vld [vmem:[%s2637_s19 + $0xf4] ss:$20 sps:$4 sm:$0xff]   ;;  %v2461_v61 = vld [vmem:[%s2637_s19 + $0x5c] ss:$20 sps:$4 sm:$0xff]   ;;  %v2468_v1 = vld [vmem:[%s2637_s19 + $0x84] ss:$20 sps:$4 sm:$0xff]  }
  0x1c   : > { %2075 = vmatpush3.bf16.msra.mxu0 %v2400_v13  ;;  %2361 = vmatpush3.bf16.msra.mxu1 %v2400_v13  ;;  %v2466_v0 = vld [vmem:[%s2637_s19 + $0x11c] ss:$20 sps:$4 sm:$0xff]   ;;  %v2470_v2 = vld [vmem:[%s2637_s19 + $0x118] ss:$20 sps:$4 sm:$0xff]   ;;  %v2471_v3 = vld [vmem:[%s2637_s19 + $0x80] ss:$20 sps:$4 sm:$0xff]  }
  0x1d   : > { %2076 = vmatprep.subr.bf16.mxu0 %v2401_v14  ;;  %2354 = vmatprep.subr.bf16.mxu1 %v2401_v14  ;;  %v2472_v4 = vld [vmem:[%s2637_s19 + $0x144] ss:$20 sps:$4 sm:$0xff]   ;;  %v2474_v5 = vld [vmem:[%s2637_s19 + $0xac] ss:$20 sps:$4 sm:$0xff]   ;;  %v2477_v7 = vld [vmem:[%s2637_s19 + $0xa8] ss:$20 sps:$4 sm:$0xff]  }
  0x1e   : > { %v2476_v6 = vld [vmem:[%s2637_s19 + $0x140] ss:$20 sps:$4 sm:$0xff]   ;;  %v2482_v10 = vld [vmem:[%s2637_s19 + $0x168] ss:$20 sps:$4 sm:$0xff]   ;;  %v2483_v11 = vld [vmem:[%s2637_s19 + $0xd0] ss:$20 sps:$4 sm:$0xff]  }
  0x1f   : > { %v2478_v8 = vld [vmem:[%s2637_s19 + $0x16c] ss:$20 sps:$4 sm:$0xff]   ;;  %v2480_v9 = vld [vmem:[%s2637_s19 + $0xd4] ss:$20 sps:$4 sm:$0xff]   ;;  %v2487_v13 = vld [vmem:[%s2637_s19 + $0xfc] ss:$20 sps:$4 sm:$0xff]  }
  0x20   : > { %2077 = vmatpush3.bf16.msra.mxu0 %v2402_v15  ;;  %2362 = vmatpush3.bf16.msra.mxu1 %v2402_v15  ;;  %v2485_v12 = vld [vmem:[%s2637_s19 + $0x194] ss:$20 sps:$4 sm:$0xff]   ;;  %v2489_v14 = vld [vmem:[%s2637_s19 + $0x190] ss:$20 sps:$4 sm:$0xff]   ;;  %v2490_v15 = vld [vmem:[%s2637_s19 + $0xf8] ss:$20 sps:$4 sm:$0xff]  }
  0x21   : > { %2078 = vmatprep.subr.bf16.mxu0 %v2403_v16  ;;  %2355 = vmatprep.subr.bf16.mxu1 %v2403_v16  ;;  %v2491_v16 = vld [vmem:[%s2637_s19 + $0x1bc] ss:$20 sps:$4 sm:$0xff]  }
  0x24   : > { %2079 = vmatpush3.bf16.msra.mxu0 %v2404_v17  ;;  %2363 = vmatpush3.bf16.msra.mxu1 %v2404_v17  ;;  %v2493_v17 = vld [vmem:[%s2637_s19 + $0x124] ss:$20 sps:$4 sm:$0xff]  }
  0x25   : > { %2176 = vmatprep.subr.bf16.mxu1 %v2411_v18  ;;  %2308 = vmatprep.subr.bf16.mxu0 %v2414_v19  ;;  %v2495_v18 = vld [vmem:[%s2637_s19 + $0x1b8] ss:$20 sps:$4 sm:$0xff]  }
  0x27   : > { %1139 = vmatmul.mubr.bf16.vlgmr.msra.gmra.mrb[0].mxu0 %v2405_v20  ;;  %1235 = vmatmul.mubr.bf16.vlgmr.msra.gmra.mrb[0].mxu1 %v2408_v21  ;;  %v2497_v20 = vld [vmem:[%s2637_s19 + $0x14c] ss:$20 sps:$4 sm:$0xff]   ;;  %v2499_v21 = vld [vmem:[%s2637_s19 + $0x10] ss:$20 sps:$4 sm:$0xff]  }
  0x28   : > { %2177 = vmatpush3.bf16.msra.mxu1 %v2412_v22  ;;  %2309 = vmatpush3.bf16.msra.mxu0 %v2414_v19  ;;  %v2496_v19 = vld [vmem:[%s2637_s19 + $0x120] ss:$20 sps:$4 sm:$0xff]   ;;  %v2500_v22 = vld [vmem:[%s2637_s19 + $0x148] ss:$20 sps:$4 sm:$0xff]  }
  0x29   : > { %2178 = vmatprep.subr.bf16.mxu1 %v2413_v23  ;;  %1146 = vmatprep.mubr.bf16.mxu0 %v2416_v24  ;;  %v2501_v23 = vld [vmem:[%s2637_s19 + $0x38] ss:$20 sps:$4 sm:$0xff]   ;;  %v2502_v24 = vld [vmem:[%s2637_s19 + $0x174] ss:$20 sps:$4 sm:$0xff]  }
  0x2a   : > { %1242 = vmatprep.mubr.bf16.mxu1 %v2418_v25  ;;  %2310 = vmatprep.subr.bf16.mxu0 %v2445_v35  ;;  %v2504_v25 = vld [vmem:[%s2637_s19 + $0x60] ss:$20 sps:$4 sm:$0xff]  }
  0x2c   : > { %2179 = vmatpush3.bf16.msra.mxu1 %v2415_v26  ;;  %2311 = vmatpush3.bf16.msra.mxu0 %v2445_v35  ;;  %v2505_v26 = vld [vmem:[%s2637_s19 + $0x170] ss:$20 sps:$4 sm:$0xff]   ;;  %v2516_v35 = vld [vmem:[%s2637_s19 + $0x128] ss:$20 sps:$4 sm:$0xff]  }
  0x2d   : > { %2180 = vmatprep.subr.bf16.mxu1 %v2422_v28  ;;  %2312 = vmatprep.subr.bf16.mxu0 %v2465_v47  ;;  %v2507_v28 = vld [vmem:[%s2637_s19 + $0x19c] ss:$20 sps:$4 sm:$0xff]  }
  0x2f   : > { %1147 = vmatmul.mubr.bf16.gmra.mrb[4].mxu0 %v2420_v27  ;;  %1243 = vmatmul.mubr.bf16.gmra.mrb[4].mxu1 %v2421_v29  ;;  %v2506_v27 = vld [vmem:[%s2637_s19 + $0x88] ss:$20 sps:$4 sm:$0xff]   ;;  %v2509_v29 = vld [vmem:[%s2637_s19 + $0xb0] ss:$20 sps:$4 sm:$0xff]  }
  0x30   : > { %2181 = vmatpush3.bf16.msra.mxu1 %v2423_v30  ;;  %1154 = vmatprep.mubr.bf16.mxu0 %v2426_v32  ;;  %v2510_v30 = vld [vmem:[%s2637_s19 + $0x198] ss:$20 sps:$4 sm:$0xff]  }
  0x31   : > { %2182 = vmatprep.subr.bf16.mxu1 %v2424_v31  ;;  %1250 = vmatprep.mubr.bf16.mxu1 %v2428_v33  ;;  %v2511_v31 = vld [vmem:[%s2637_s19 + $0xd8] ss:$20 sps:$4 sm:$0xff]   ;;  %v2514_v33 = vld [vmem:[%s2637_s19 + $0x100] ss:$20 sps:$4 sm:$0xff]  }
  0x32   : > { %2313 = vmatpush3.bf16.msra.mxu0 %v2465_v47  ;;  %v2512_v32 = vld [vmem:[%s2637_s19 + $0x1c4] ss:$20 sps:$4 sm:$0xff]  }
  0x33   : > { %2314 = vmatprep.subr.bf16.mxu0 %v2484_v56  ;;  %v2531_v47 = vld [vmem:[%s2637_s19 + $0x218] ss:$20 sps:$4 sm:$0xff]  }
  0x34   : > { %2183 = vmatpush3.bf16.msra.mxu1 %v2425_v34  ;;  %v2515_v34 = vld [vmem:[%s2637_s19 + $0x1c0] ss:$20 sps:$4 sm:$0xff]  }
  0x35   : > { %2184 = vmatprep.subr.bf16.mxu1 %v2432_v37  ;;  %v2519_v37 = vld [vmem:[%s2637_s19 + $0x150] ss:$20 sps:$4 sm:$0xff]  }
  0x36   : > { %2315 = vmatpush3.bf16.msra.mxu0 %v2484_v56 }
  0x37   : > { %1155 = vmatmul.mubr.bf16.gmra.mrb[8].mxu0 %v2430_v36  ;;  %1251 = vmatmul.mubr.bf16.gmra.mrb[8].mxu1 %v2431_v38  ;;  %v2517_v36 = vld [vmem:[%s2637_s19 + $0x1ec] ss:$20 sps:$4 sm:$0xff]   ;;  %v2520_v38 = vld [vmem:[%s2637_s19 + $0x1e8] ss:$20 sps:$4 sm:$0xff]  }
  0x38   : > { %2185 = vmatpush3.bf16.msra.mxu1 %v2433_v39  ;;  %1162 = vmatprep.mubr.bf16.mxu0 %v2436_v41  ;;  %v2521_v39 = vld [vmem:[%s2637_s19 + $0x178] ss:$20 sps:$4 sm:$0xff]   ;;  %v2524_v41 = vld [vmem:[%s2637_s19 + $0x1a0] ss:$20 sps:$4 sm:$0xff]  }
  0x39   : > { %2186 = vmatprep.subr.bf16.mxu1 %v2434_v40  ;;  %1258 = vmatprep.mubr.bf16.mxu1 %v2438_v42  ;;  %v2522_v40 = vld [vmem:[%s2637_s19 + $0x214] ss:$20 sps:$4 sm:$0xff]   ;;  %v2525_v42 = vld [vmem:[%s2637_s19 + $0x210] ss:$20 sps:$4 sm:$0xff]  }
  0x3c   : > { %2187 = vmatpush3.bf16.msra.mxu1 %v2435_v43  ;;  %v2526_v43 = vld [vmem:[%s2637_s19 + $0x1c8] ss:$20 sps:$4 sm:$0xff]  }
  0x3d   : > { %2188 = vmatprep.subr.bf16.mxu1 %v2442_v46  ;;  %v2530_v46 = vld [vmem:[%s2637_s19 + $0x238] ss:$20 sps:$4 sm:$0xff]  }
  0x3f   : > { %1163 = vmatmul.mubr.bf16.gmra.mrb[12].mxu0 %v2440_v44  ;;  %1259 = vmatmul.mubr.bf16.gmra.mrb[12].mxu1 %v2441_v45  ;;  %v2527_v44 = vld [vmem:[%s2637_s19 + $0x23c] ss:$20 sps:$4 sm:$0xff]  }
  0x40   : > { %2189 = vmatpush3.bf16.msra.mxu1 %v2443_v48  ;;  %1170 = vmatprep.mubr.bf16.mxu0 %v2447_v50  ;;  %v2529_v45 = vld [vmem:[%s2637_s19 + $0x1f0] ss:$20 sps:$4 sm:$0xff]   ;;  %v2535_v50 = vld [vmem:[%s2637_s19 + $0x260] ss:$20 sps:$4 sm:$0xff]  }
  0x41   : > { %2190 = vmatprep.subr.bf16.mxu1 %v2444_v49  ;;  %1299 = vmatprep.mubr.bf16.mxu1 %v2451_v51  ;;  %v2532_v48 = vld [vmem:[%s2637_s19 + $0x264] ss:$20 sps:$4 sm:$0xff]   ;;  %v2534_v49 = vld [vmem:[%s2637_s19 + $0x240] ss:$20 sps:$4 sm:$0xff]   ;;  %v2536_v51 = vld [vmem:[%s2637_s19 + $0x268] ss:$20 sps:$4 sm:$0xff]  }
  0x44   : > { %2191 = vmatpush3.bf16.msra.mxu1 %v2446_v52 }
  0x47   : > { %1171 = vmatmul.mubr.bf16.gmra.mrb[16].mxu0 %v2452_v54  ;;  %1300 = vmatmul.mubr.bf16.vlgmr.msra.gmra.mrb[16].mxu1 %v2449_v53 }
  0x48   : > { %1178 = vmatprep.mubr.bf16.mxu0 %v2453_v55  ;;  %1307 = vmatprep.mubr.bf16.mxu1 %v2455_v57 }
  0x4f   : > { %1179 = vmatmul.mubr.bf16.gmra.mrb[20].mxu0 %v2457_v58  ;;  %1308 = vmatmul.mubr.bf16.gmra.mrb[20].mxu1 %v2458_v59 }
  0x50   : > { %1186 = vmatprep.mubr.bf16.mxu0 %v2459_v60  ;;  %1315 = vmatprep.mubr.bf16.mxu1 %v2461_v61 }
  0x57   : > { %1187 = vmatmul.mubr.bf16.gmra.mrb[24].mxu0 %v2463_v62  ;;  %1316 = vmatmul.mubr.bf16.gmra.mrb[24].mxu1 %v2464_v63 }
  0x58   : > { %1194 = vmatprep.mubr.bf16.mxu0 %v2466_v0  ;;  %1323 = vmatprep.mubr.bf16.mxu1 %v2468_v1 }
  0x5f   : > { %1195 = vmatmul.mubr.bf16.gmra.mrb[28].mxu0 %v2470_v2  ;;  %1324 = vmatmul.mubr.bf16.gmra.mrb[28].mxu1 %v2471_v3 }
  0x60   : > { %1202 = vmatprep.mubr.bf16.mxu0 %v2472_v4  ;;  %1331 = vmatprep.mubr.bf16.mxu1 %v2474_v5 }
  0x67   : > { %1203 = vmatmul.mubr.bf16.gmra.mrb[32].mxu0 %v2476_v6  ;;  %1332 = vmatmul.mubr.bf16.gmra.mrb[32].mxu1 %v2477_v7 }
  0x68   : > { %1210 = vmatprep.mubr.bf16.mxu0 %v2478_v8  ;;  %1339 = vmatprep.mubr.bf16.mxu1 %v2480_v9 }
  0x6f   : > { %1211 = vmatmul.mubr.bf16.gmra.mrb[36].mxu0 %v2482_v10  ;;  %1340 = vmatmul.mubr.bf16.gmra.mrb[36].mxu1 %v2483_v11 }
  0x70   : > { %1218 = vmatprep.mubr.bf16.mxu0 %v2485_v12  ;;  %1347 = vmatprep.mubr.bf16.mxu1 %v2487_v13 }
  0x77   : > { %1219 = vmatmul.mubr.bf16.gmra.mrb[40].mxu0 %v2489_v14  ;;  %1348 = vmatmul.mubr.bf16.gmra.mrb[40].mxu1 %v2490_v15 }
  0x78   : > { %1226 = vmatprep.mubr.bf16.mxu0 %v2491_v16  ;;  %1355 = vmatprep.mubr.bf16.mxu1 %v2493_v17 }
  0x7f   : > { %1227 = vmatmul.mubr.bf16.gmra.mrb[44].mxu0 %v2495_v18  ;;  %1356 = vmatmul.mubr.bf16.gmra.mrb[44].mxu1 %v2496_v19 }
  0x80   : > { %1363 = vmatprep.mubr.bf16.mxu1 %v2497_v20  ;;  %2316 = vmatprep.mubr.msk.bf16.mxu0 %vm1057_vm0, %v2499_v21 }
  0x87   : > { %1364 = vmatmul.mubr.bf16.gmra.mrb[48].mxu1 %v2500_v22  ;;  %2317 = vmatmul.mubr.msk.bf16.vlgmr.msra.gmra.mrb[48].mxu0 %vm1057_vm0, %v2501_v23 }
  0x88   : > { %1371 = vmatprep.mubr.bf16.mxu1 %v2502_v24  ;;  %2320 = vmatprep.mubr.msk.bf16.mxu0 %vm1057_vm0, %v2504_v25 }
  0x8f   : > { %1372 = vmatmul.mubr.bf16.gmra.mrb[52].mxu1 %v2505_v26  ;;  %2321 = vmatmul.mubr.msk.bf16.gmra.mrb[52].mxu0 %vm1057_vm0, %v2506_v27 }
  0x90   : > { %1379 = vmatprep.mubr.bf16.mxu1 %v2507_v28  ;;  %2324 = vmatprep.mubr.msk.bf16.mxu0 %vm1057_vm0, %v2509_v29 }
  0x97   : > { %1380 = vmatmul.mubr.bf16.gmra.mrb[56].mxu1 %v2510_v30  ;;  %2325 = vmatmul.mubr.msk.bf16.gmra.mrb[56].mxu0 %vm1057_vm0, %v2511_v31 }
  0x98   : > { %1387 = vmatprep.mubr.bf16.mxu1 %v2512_v32  ;;  %2328 = vmatprep.mubr.msk.bf16.mxu0 %vm1057_vm0, %v2514_v33 }
  0x9f   : > { %1388 = vmatmul.mubr.bf16.gmra.mrb[60].mxu1 %v2515_v34  ;;  %2329 = vmatmul.mubr.msk.bf16.gmra.mrb[60].mxu0 %vm1057_vm0, %v2516_v35 }
  0xa0   : > { %1395 = vmatprep.mubr.bf16.mxu1 %v2517_v36  ;;  %2332 = vmatprep.mubr.msk.bf16.mxu0 %vm1057_vm0, %v2519_v37 }
  0xa7   : > { %1396 = vmatmul.mubr.bf16.gmra.mrb[64].mxu1 %v2520_v38  ;;  %2333 = vmatmul.mubr.msk.bf16.gmra.mrb[64].mxu0 %vm1057_vm0, %v2521_v39 }
  0xa8   : > { %1403 = vmatprep.mubr.bf16.mxu1 %v2522_v40  ;;  %2336 = vmatprep.mubr.msk.bf16.mxu0 %vm1057_vm0, %v2524_v41 }
  0xaf   : > { %1404 = vmatmul.mubr.bf16.gmra.mrb[68].mxu1 %v2525_v42  ;;  %2337 = vmatmul.mubr.msk.bf16.gmra.mrb[68].mxu0 %vm1057_vm0, %v2526_v43 }
  0xb0   : > { %1411 = vmatprep.mubr.bf16.mxu1 %v2527_v44  ;;  %2340 = vmatprep.mubr.msk.bf16.mxu0 %vm1057_vm0, %v2529_v45 }
  0xb7   : > { %1412 = vmatmul.mubr.bf16.gmra.mrb[72].mxu1 %v2530_v46  ;;  %2341 = vmatmul.mubr.msk.bf16.gmra.mrb[72].mxu0 %vm1057_vm0, %v2531_v47 }
  0xb8   : > { %1419 = vmatprep.mubr.bf16.mxu1 %v2532_v48  ;;  %2344 = vmatprep.mubr.msk.bf16.mxu0 %vm1057_vm0, %v2534_v49 }
  0xbf   : > { %1420 = vmatmul.mubr.bf16.gmra.mrb[76].mxu1 %v2535_v50  ;;  %2345 = vmatmul.mubr.msk.bf16.gmra.mrb[76].mxu0 %vm1057_vm0, %v2536_v51 }
  0xfa   : > { %v2152_v52 = vpop.f32.mrb[0].mxu1  ;;  %v2080_v53 = vpop.f32.mrb[0].mxu0 }
  0xfb   : > { %v2153_v54 = vpop.f32.mrb[1].mxu1  ;;  %v2081_v55 = vpop.f32.mrb[1].mxu0 }
  0xfc   : > { %v2816_v56 = vadd.f32 %v2153_v54, %v2152_v52  ;;  %v2155_v57 = vpop.f32.mrb[2].mxu1  ;;  %v2082_v58 = vadd.f32 %v2081_v55, %v2080_v53  ;;  %v2083_v59 = vpop.f32.mrb[2].mxu0 }
  0xfd   : > { %v2156_v60 = vpop.f32.mrb[3].mxu1  ;;  %v2084_v61 = vpop.f32.mrb[3].mxu0 }
  0xfe   : > { %v2818_v62 = vadd.f32 %v2156_v60, %v2155_v57  ;;  %v2085_v63 = vadd.f32 %v2084_v61, %v2083_v59 }
 0x102   : > { %v2158_v0 = vpop.f32.mrb[4].mxu1  ;;  %v2086_v1 = vpop.f32.mrb[4].mxu0 }
 0x103   : > { %v2159_v2 = vpop.f32.mrb[5].mxu1  ;;  %v2087_v3 = vpop.f32.mrb[5].mxu0 }
 0x104   : > { %v2820_v4 = vadd.f32 %v2159_v2, %v2158_v0  ;;  %v2161_v5 = vpop.f32.mrb[6].mxu1  ;;  %v2088_v6 = vadd.f32 %v2087_v3, %v2086_v1  ;;  %v2089_v7 = vpop.f32.mrb[6].mxu0 }
 0x105   : > { %v2162_v8 = vpop.f32.mrb[7].mxu1  ;;  %v2090_v9 = vpop.f32.mrb[7].mxu0 }
 0x106   : > { %v2822_v10 = vadd.f32 %v2162_v8, %v2161_v5  ;;  %v2091_v11 = vadd.f32 %v2090_v9, %v2089_v7 }
 0x10a   : > { %v2164_v12 = vpop.f32.mrb[8].mxu1  ;;  %v2092_v13 = vpop.f32.mrb[8].mxu0 }
 0x10b   : > { %v2165_v14 = vpop.f32.mrb[9].mxu1  ;;  %v2093_v15 = vpop.f32.mrb[9].mxu0 }
 0x10c   : > { %v2824_v16 = vadd.f32 %v2165_v14, %v2164_v12  ;;  %v2167_v17 = vpop.f32.mrb[10].mxu1  ;;  %v2094_v18 = vadd.f32 %v2093_v15, %v2092_v13  ;;  %v2095_v19 = vpop.f32.mrb[10].mxu0 }
 0x10d   : > { %v2168_v20 = vpop.f32.mrb[11].mxu1  ;;  %v2096_v21 = vpop.f32.mrb[11].mxu0 }
 0x10e   : > { %v2826_v22 = vadd.f32 %v2168_v20, %v2167_v17  ;;  %v2097_v23 = vadd.f32 %v2096_v21, %v2095_v19 }
 0x112   : > { %v2170_v24 = vpop.f32.mrb[12].mxu1  ;;  %v2098_v25 = vpop.f32.mrb[12].mxu0 }
 0x113   : > { %v2171_v26 = vpop.f32.mrb[13].mxu1  ;;  %v2099_v27 = vpop.f32.mrb[13].mxu0 }
 0x114   : > { %v2828_v28 = vadd.f32 %v2171_v26, %v2170_v24  ;;  %v2173_v29 = vpop.f32.mrb[14].mxu1  ;;  %v2100_v30 = vadd.f32 %v2099_v27, %v2098_v25  ;;  %v2101_v31 = vpop.f32.mrb[14].mxu0 }
 0x115   : > { %v2174_v32 = vpop.f32.mrb[15].mxu1  ;;  %v2102_v33 = vpop.f32.mrb[15].mxu0 }
 0x116   : > { %v2830_v34 = vadd.f32 %v2174_v32, %v2173_v29  ;;  %v2103_v35 = vadd.f32 %v2102_v33, %v2101_v31 }
 0x11a   : > { %v2192_v36 = vpop.f32.mrb[16].mxu1  ;;  %v2104_v37 = vpop.f32.mrb[16].mxu0 }
 0x11b   : > { %v2193_v38 = vpop.f32.mrb[17].mxu1  ;;  %v2105_v39 = vpop.f32.mrb[17].mxu0 }
 0x11c   : > { %v2194_v40 = vadd.f32 %v2193_v38, %v2192_v36  ;;  %v2195_v41 = vpop.f32.mrb[18].mxu1  ;;  %v2106_v42 = vadd.f32 %v2105_v39, %v2104_v37  ;;  %v2107_v43 = vpop.f32.mrb[18].mxu0 }
 0x11d   : > { %v2196_v44 = vpop.f32.mrb[19].mxu1  ;;  %v2108_v45 = vpop.f32.mrb[19].mxu0 }
 0x11e   : > { %v2197_v46 = vadd.f32 %v2196_v44, %v2195_v41  ;;  %v2109_v47 = vadd.f32 %v2108_v45, %v2107_v43  ;;  %v2832_v48 = vadd.f32 %v2194_v40, %v2082_v58 }
 0x120   : > { %v2834_v49 = vadd.f32 %v2197_v46, %v2085_v63 }
 0x122   : > { %v2198_v50 = vpop.f32.mrb[20].mxu1  ;;  %v2110_v51 = vpop.f32.mrb[20].mxu0 }
 0x123   : > { %v2199_v52 = vpop.f32.mrb[21].mxu1  ;;  %v2111_v53 = vpop.f32.mrb[21].mxu0 }
 0x124   : > { %v2200_v54 = vadd.f32 %v2199_v52, %v2198_v50  ;;  %v2201_v55 = vpop.f32.mrb[22].mxu1  ;;  %v2112_v57 = vadd.f32 %v2111_v53, %v2110_v51  ;;  %v2113_v59 = vpop.f32.mrb[22].mxu0 }
 0x125   : > { %v2202_v60 = vpop.f32.mrb[23].mxu1  ;;  %v2114_v61 = vpop.f32.mrb[23].mxu0 }
 0x126   : > { %v2203_v0 = vadd.f32 %v2202_v60, %v2201_v55  ;;  %v2115_v1 = vadd.f32 %v2114_v61, %v2113_v59  ;;  %v2836_v2 = vadd.f32 %v2200_v54, %v2088_v6 }
 0x128   : > { %v2838_v3 = vadd.f32 %v2203_v0, %v2091_v11 }
 0x12a   : > { %v2204_v58 = vpop.f32.mrb[24].mxu1  ;;  %v2116_v5 = vpop.f32.mrb[24].mxu0 }
 0x12b   : > { %v2205_v63 = vpop.f32.mrb[25].mxu1  ;;  %v2117_v7 = vpop.f32.mrb[25].mxu0 }
 0x12c   : > { %v2206_v8 = vadd.f32 %v2205_v63, %v2204_v58  ;;  %v2207_v9 = vpop.f32.mrb[26].mxu1  ;;  %v2118_v12 = vadd.f32 %v2117_v7, %v2116_v5  ;;  %v2119_v13 = vpop.f32.mrb[26].mxu0 }
 0x12d   : > { %v2208_v14 = vpop.f32.mrb[27].mxu1  ;;  %v2120_v15 = vpop.f32.mrb[27].mxu0 }
 0x12e   : > { %v2209_v17 = vadd.f32 %v2208_v14, %v2207_v9  ;;  %v2121_v19 = vadd.f32 %v2120_v15, %v2119_v13  ;;  %v2840_v20 = vadd.f32 %v2206_v8, %v2094_v18 }
 0x130   : > { %v2842_v21 = vadd.f32 %v2209_v17, %v2097_v23 }
 0x132   : > { %v2210_v6 = vpop.f32.mrb[28].mxu1  ;;  %v2122_v24 = vpop.f32.mrb[28].mxu0 }
 0x133   : > { %v2211_v11 = vpop.f32.mrb[29].mxu1  ;;  %v2123_v25 = vpop.f32.mrb[29].mxu0 }
 0x134   : > { %v2212_v26 = vadd.f32 %v2211_v11, %v2210_v6  ;;  %v2213_v27 = vpop.f32.mrb[30].mxu1  ;;  %v2124_v29 = vadd.f32 %v2123_v25, %v2122_v24  ;;  %v2125_v31 = vpop.f32.mrb[30].mxu0 }
 0x135   : > { %v2214_v32 = vpop.f32.mrb[31].mxu1  ;;  %v2126_v33 = vpop.f32.mrb[31].mxu0 }
 0x136   : > { %v2215_v36 = vadd.f32 %v2214_v32, %v2213_v27  ;;  %v2127_v37 = vadd.f32 %v2126_v33, %v2125_v31  ;;  %v2844_v38 = vadd.f32 %v2212_v26, %v2100_v30 }
 0x138   : > { %v2846_v39 = vadd.f32 %v2215_v36, %v2103_v35 }
 0x13a   : > { %v2216_v18 = vpop.f32.mrb[32].mxu1  ;;  %v2128_v40 = vpop.f32.mrb[32].mxu0 }
 0x13b   : > { %v2217_v23 = vpop.f32.mrb[33].mxu1  ;;  %v2129_v41 = vpop.f32.mrb[33].mxu0 }
 0x13c   : > { %v2218_v43 = vadd.f32 %v2217_v23, %v2216_v18  ;;  %v2219_v44 = vpop.f32.mrb[34].mxu1  ;;  %v2848_v45 = vadd.f32 %v2129_v41, %v2128_v40  ;;  %v2131_v46 = vpop.f32.mrb[34].mxu0 }
 0x13d   : > { %v2220_v50 = vpop.f32.mrb[35].mxu1  ;;  %v2132_v51 = vpop.f32.mrb[35].mxu0 }
 0x13e   : > { %v2221_v52 = vadd.f32 %v2220_v50, %v2219_v44  ;;  %v2133_v53 = vadd.f32 %v2132_v51, %v2131_v46  ;;  %v2850_v54 = vadd.f32 %v2218_v43, %v2106_v42 }
 0x140   : > { %v2852_v55 = vadd.f32 %v2221_v52, %v2109_v47 }
 0x142   : > { %v2222_v30 = vpop.f32.mrb[36].mxu1  ;;  %v2134_v35 = vpop.f32.mrb[36].mxu0 }
 0x143   : > { %v2223_v59 = vpop.f32.mrb[37].mxu1  ;;  %v2135_v60 = vpop.f32.mrb[37].mxu0 }
 0x144   : > { %v2224_v61 = vadd.f32 %v2223_v59, %v2222_v30  ;;  %v2225_v0 = vpop.f32.mrb[38].mxu1  ;;  %v2854_v58 = vadd.f32 %v2135_v60, %v2134_v35  ;;  %v2137_v5 = vpop.f32.mrb[38].mxu0 }
 0x145   : > { %v2226_v63 = vpop.f32.mrb[39].mxu1  ;;  %v2138_v7 = vpop.f32.mrb[39].mxu0 }
 0x146   : > { %v2227_v8 = vadd.f32 %v2226_v63, %v2225_v0  ;;  %v2856_v9 = vadd.f32 %v2138_v7, %v2137_v5  ;;  %v2858_v13 = vadd.f32 %v2224_v61, %v2112_v57 }
 0x148   : > { %v2860_v42 = vadd.f32 %v2227_v8, %v2115_v1 }
 0x14a   : > { %v2228_v47 = vpop.f32.mrb[40].mxu1  ;;  %v2140_v14 = vpop.f32.mrb[40].mxu0 }
 0x14b   : > { %v2229_v15 = vpop.f32.mrb[41].mxu1  ;;  %v2141_v17 = vpop.f32.mrb[41].mxu0 }
 0x14c   : > { %v2230_v6 = vadd.f32 %v2229_v15, %v2228_v47  ;;  %v2231_v24 = vpop.f32.mrb[42].mxu1  ;;  %v2862_v11 = vadd.f32 %v2141_v17, %v2140_v14  ;;  %v2143_v25 = vpop.f32.mrb[42].mxu0 }
 0x14d   : > { %v2232_v26 = vpop.f32.mrb[43].mxu1  ;;  %v2144_v27 = vpop.f32.mrb[43].mxu0 }
 0x14e   : > { %v2233_v31 = vadd.f32 %v2232_v26, %v2231_v24  ;;  %v2864_v32 = vadd.f32 %v2144_v27, %v2143_v25  ;;  %v2866_v33 = vadd.f32 %v2230_v6, %v2118_v12 }
 0x150   : > { %v2868_v57 = vadd.f32 %v2233_v31, %v2121_v19 }
 0x152   : > { %v2234_v1 = vpop.f32.mrb[44].mxu1  ;;  %v2146_v36 = vpop.f32.mrb[44].mxu0 }
 0x153   : > { %v2235_v18 = vpop.f32.mrb[45].mxu1  ;;  %v2147_v40 = vpop.f32.mrb[45].mxu0 }
 0x154   : > { %v2236_v23 = vadd.f32 %v2235_v18, %v2234_v1  ;;  %v2237_v41 = vpop.f32.mrb[46].mxu1  ;;  %v2870_v43 = vadd.f32 %v2147_v40, %v2146_v36  ;;  %v2149_v44 = vpop.f32.mrb[46].mxu0 }
 0x155   : > { %v2238_v46 = vpop.f32.mrb[47].mxu1  ;;  %v2150_v50 = vpop.f32.mrb[47].mxu0 }
 0x156   : > { %v2239_v51 = vadd.f32 %v2238_v46, %v2237_v41  ;;  %v2872_v52 = vadd.f32 %v2150_v50, %v2149_v44  ;;  %v2874_v30 = vadd.f32 %v2236_v23, %v2124_v29 }
 0x158   : > { %v2876_v12 = vadd.f32 %v2239_v51, %v2127_v37 }
 0x15a   : > { %v2240_v19 = vpop.f32.mrb[48].mxu1  ;;  %v2318_v35 = vpop.f32.mrb[48].mxu0 }
 0x15b   : > { %v1471_v59 = vadd.f32 %v2318_v35, %v2836_v2  ;;  %v2241_v60 = vpop.f32.mrb[49].mxu1  ;;  %v1462_v61 = vpop.f32.mrb[49].mxu0 }
 0x15c   : > { %v2242_v0 = vadd.f32 %v2241_v60, %v2240_v19  ;;  %v1463_v5 = vadd.f32 %v1462_v61, %v2832_v48  ;;  %v2243_v63 = vpop.f32.mrb[50].mxu1  ;;  %v2319_v7 = vpop.f32.mrb[50].mxu0 }
 0x15d   : > { %v1474_v8 = vadd.f32 %v2319_v7, %v2838_v3  ;;  %v2244_v47 = vpop.f32.mrb[51].mxu1  ;;  %v1465_v14 = vpop.f32.mrb[51].mxu0  ;;  %v2891_v3 = vld [vmem:[%s3062_s2] ss:$0 sm:$0xff] }
 0x15e   : > { %v2245_v15 = vadd.f32 %v2244_v47, %v2243_v63  ;;  %v1466_v29 = vadd.f32 %v1465_v14, %v2834_v49  ;;  %v2883_v37 = vadd.f32 %v2242_v0, %v2848_v45  ;;  %v1598_v40 = vmul.f32 %v2891_v3, %v1471_v59 }
 0x15f   : > { %v1596_v23 = vmul.f32 %v2891_v3, %v1463_v5  ;;  %v1599_v41 = vmul.f32 %v2891_v3, %v1474_v8 }
 0x160   : > { %v2885_v17 = vadd.f32 %v2245_v15, %v2133_v53 }
 0x162   : > { %v2246_v2 = vpop.f32.mrb[52].mxu1  ;;  %v2322_v6 = vpop.f32.mrb[52].mxu0 }
 0x163   : > { %v1487_v24 = vadd.f32 %v2322_v6, %v2844_v38  ;;  %v2247_v25 = vpop.f32.mrb[53].mxu1  ;;  %v1478_v48 = vpop.f32.mrb[53].mxu0 }
 0x164   : > { %v2248_v26 = vadd.f32 %v2247_v25, %v2246_v2  ;;  %v1479_v27 = vadd.f32 %v1478_v48, %v2840_v20  ;;  %v2249_v49 = vpop.f32.mrb[54].mxu1  ;;  %v2323_v31 = vpop.f32.mrb[54].mxu0  ;;  %v2904_v20 = vld [vmem:[%s3063_s3] ss:$0 sm:$0xff] }
 0x165   : > { %v1490_v45 = vadd.f32 %v2323_v31, %v2846_v39  ;;  %v2250_v53 = vpop.f32.mrb[55].mxu1  ;;  %v1481_v1 = vpop.f32.mrb[55].mxu0  ;;  %v1597_v39 = vmul.f32 %v2891_v3, %v1466_v29  ;;  %v1635_v50 = vadd.f32 %v2904_v20, %v1596_v23  ;;  %v1638_v59 = vadd.f32 %v2904_v20, %v1599_v41 }
 0x166   : > { %v2251_v36 = vadd.f32 %v2250_v53, %v2249_v49  ;;  %v1482_v18 = vadd.f32 %v1481_v1, %v2842_v21  ;;  %v2897_v38 = vadd.f32 %v2248_v26, %v2854_v58  ;;  %v1637_v58 = vadd.f32 %v2904_v20, %v1598_v40 }
 0x167   : > { %v1636_v60 = vadd.f32 %v2904_v20, %v1597_v39  ;;  %v1602_v63 = vmul.f32 %v2891_v3, %v1487_v24  ;;  %v1600_v7 = vmul.f32 %v2891_v3, %v1479_v27  ;;  %v1667_v25 = vmax.f32 %v1635_v50, 0.0 }
 0x168   : > { %v2909_v44 = vadd.f32 %v2251_v36, %v2856_v9  ;;  %v1670_v26 = vmax.f32 %v1638_v59, 0.0 }
 0x169   : > { %v1668_v31 = vmax.f32 %v1636_v60, 0.0  ;;  %v1641_v1 = vadd.f32 %v2904_v20, %v1602_v63  ;;  %v1639_v36 = vadd.f32 %v2904_v20, %v1600_v7 }
 0x16a   : > { %v2252_v21 = vpop.f32.mrb[56].mxu1  ;;  %v2326_v46 = vpop.f32.mrb[56].mxu0 }
 0x16b   : > { %v1503_v51 = vadd.f32 %v2326_v46, %v2858_v13  ;;  %v2253_v19 = vpop.f32.mrb[57].mxu1  ;;  %v1494_v35 = vpop.f32.mrb[57].mxu0 }
 0x16c   : > { %v2254_v61 = vadd.f32 %v2253_v19, %v2252_v21  ;;  %v1495_v0 = vadd.f32 %v1494_v35, %v2850_v54  ;;  %v2255_v5 = vpop.f32.mrb[58].mxu1  ;;  %v2327_v9 = vpop.f32.mrb[58].mxu0  ;;  %v1669_v54 = vmax.f32 %v1637_v58, 0.0  ;;  %v1601_v21 = vmul.f32 %v2891_v3, %v1482_v18 }
 0x16d   : > { %v1606_v8 = vmul.f32 %v2891_v3, %v1503_v51  ;;  %v1506_v47 = vadd.f32 %v2327_v9, %v2860_v42  ;;  %v2256_v13 = vpop.f32.mrb[59].mxu1  ;;  %v1497_v14 = vpop.f32.mrb[59].mxu0 }
 0x16e   : > { %v1604_v15 = vmul.f32 %v2891_v3, %v1495_v0  ;;  %v2257_v29 = vadd.f32 %v2256_v13, %v2255_v5  ;;  %v1498_v2 = vadd.f32 %v1497_v14, %v2852_v55  ;;  %v2924_v6 = vadd.f32 %v2254_v61, %v2862_v11 }
 0x16f   : > { %v1645_v24 = vadd.f32 %v2904_v20, %v1606_v8  ;;  %v1607_v48 = vmul.f32 %v2891_v3, %v1506_v47  ;;  %v1603_v55 = vmul.f32 %v2891_v3, %v1490_v45 }
 0x170   : > { %v1643_v27 = vadd.f32 %v2904_v20, %v1604_v15  ;;  %v1605_v42 = vmul.f32 %v2891_v3, %v1498_v2  ;;  %v2931_v49 = vadd.f32 %v2257_v29, %v2864_v32 }
 0x171   : > { %v1677_v53 = vmax.f32 %v1645_v24, 0.0  ;;  %v1646_v11 = vadd.f32 %v2904_v20, %v1607_v48  ;;  %v1642_v0 = vadd.f32 %v2904_v20, %v1603_v55 }
 0x172   : > { %v1675_v40 = vmax.f32 %v1643_v27, 0.0  ;;  %v1644_v23 = vadd.f32 %v2904_v20, %v1605_v42  ;;  %v2258_v41 = vpop.f32.mrb[60].mxu1  ;;  %v2330_v39 = vpop.f32.mrb[60].mxu0 }
 0x173   : > { %v2939_v46 = vmax.f32 %v1669_v54, %v1677_v53  ;;  %v1678_v32 = vmax.f32 %v1646_v11, 0.0  ;;  %v1519_v58 = vadd.f32 %v2330_v39, %v2874_v30  ;;  %v2259_v45 = vpop.f32.mrb[61].mxu1  ;;  %v1510_v50 = vpop.f32.mrb[61].mxu0 }
 0x174   : > { %v2942_v51 = vmax.f32 %v1667_v25, %v1675_v40  ;;  %v1676_v19 = vmax.f32 %v1644_v23, 0.0  ;;  %v2260_v35 = vadd.f32 %v2259_v45, %v2258_v41  ;;  %v1511_v59 = vadd.f32 %v1510_v50, %v2866_v33  ;;  %v2261_v60 = vpop.f32.mrb[62].mxu1  ;;  %v2331_v61 = vpop.f32.mrb[62].mxu0 }
 0x175   : > { %v2946_v5 = vmax.f32 %v1670_v26, %v1678_v32  ;;  %v1610_v18 = vmul.f32 %v2891_v3, %v1519_v58  ;;  %v1522_v9 = vadd.f32 %v2331_v61, %v2876_v12  ;;  %v2262_v63 = vpop.f32.mrb[63].mxu1  ;;  %v1513_v30 = vpop.f32.mrb[63].mxu0  ;;  %v1640_v33 = vadd.f32 %v2904_v20, %v1601_v21 }
 0x176   : > { %v2950_v7 = vmax.f32 %v1668_v31, %v1676_v19  ;;  %v1608_v8 = vmul.f32 %v2891_v3, %v1511_v59  ;;  %v2263_v47 = vadd.f32 %v2262_v63, %v2261_v60  ;;  %v1514_v13 = vadd.f32 %v1513_v30, %v2868_v57 }
 0x177   : > { %v1649_v14 = vadd.f32 %v2904_v20, %v1610_v18  ;;  %v1611_v15 = vmul.f32 %v2891_v3, %v1522_v9  ;;  %v1390_v29 = vadd.f32 %v2260_v35, %v2870_v43  ;;  %v1673_v25 = vmax.f32 %v1641_v1, 0.0 }
 0x178   : > { %v1647_v2 = vadd.f32 %v2904_v20, %v1608_v8  ;;  %v1609_v12 = vmul.f32 %v2891_v3, %v1514_v13  ;;  %v1393_v54 = vadd.f32 %v2263_v47, %v2872_v52  ;;  %v1671_v26 = vmax.f32 %v1639_v36, 0.0 }
 0x179   : > { %v1681_v24 = vmax.f32 %v1649_v14, 0.0  ;;  %v1650_v48 = vadd.f32 %v2904_v20, %v1611_v15  ;;  %v1674_v57 = vmax.f32 %v1642_v0, 0.0  ;;  %v1672_v53 = vmax.f32 %v1640_v33, 0.0 }
 0x17a   : > { %v1679_v27 = vmax.f32 %v1647_v2, 0.0  ;;  %v1648_v42 = vadd.f32 %v2904_v20, %v1609_v12  ;;  %v2264_v31 = vpop.f32.mrb[64].mxu1  ;;  %v2334_v55 = vpop.f32.mrb[64].mxu0 }
 0x17b   : > { %v2963_v11 = vmax.f32 %v1673_v25, %v1681_v24  ;;  %v1682_v43 = vmax.f32 %v1650_v48, 0.0  ;;  %v1535_v40 = vadd.f32 %v2334_v55, %v2897_v38  ;;  %v2265_v23 = vpop.f32.mrb[65].mxu1  ;;  %v1526_v41 = vpop.f32.mrb[65].mxu0 }
 0x17c   : > { %v2966_v52 = vmax.f32 %v1671_v26, %v1679_v27  ;;  %v1680_v1 = vmax.f32 %v1648_v42, 0.0  ;;  %v2266_v39 = vadd.f32 %v2265_v23, %v2264_v31  ;;  %v1527_v36 = vadd.f32 %v1526_v41, %v2883_v37  ;;  %v2267_v21 = vpop.f32.mrb[66].mxu1  ;;  %v2335_v32 = vpop.f32.mrb[66].mxu0 }
 0x17d   : > { %v2969_v58 = vmax.f32 %v1674_v57, %v1682_v43  ;;  %v1538_v45 = vadd.f32 %v2335_v32, %v2909_v44  ;;  %v2268_v50 = vpop.f32.mrb[67].mxu1  ;;  %v1529_v19 = vpop.f32.mrb[67].mxu0  ;;  %v1614_v15 = vmul.f32 %v2891_v3, %v1535_v40 }
 0x17e   : > { %v2972_v35 = vmax.f32 %v1672_v53, %v1680_v1  ;;  %v2269_v59 = vadd.f32 %v2268_v50, %v2267_v21  ;;  %v1530_v38 = vadd.f32 %v1529_v19, %v2885_v17  ;;  %v1398_v60 = vadd.f32 %v2266_v39, %v2816_v56 }
 0x17f   : > { %v1612_v2 = vmul.f32 %v2891_v3, %v1527_v36  ;;  %v1615_v12 = vmul.f32 %v2891_v3, %v1538_v45 }
 0x180   : > { %v1401_v61 = vadd.f32 %v2269_v59, %v2818_v62 }
 0x181   : > { %v1654_v31 = vadd.f32 %v2904_v20, %v1615_v12 }
 0x182   : > { %v2270_v0 = vpop.f32.mrb[68].mxu1  ;;  %v2338_v18 = vpop.f32.mrb[68].mxu0 }
 0x183   : > { %v1551_v37 = vadd.f32 %v2338_v18, %v1390_v29  ;;  %v2271_v9 = vpop.f32.mrb[69].mxu1  ;;  %v1542_v63 = vpop.f32.mrb[69].mxu0 }
 0x184   : > { %v2272_v30 = vadd.f32 %v2271_v9, %v2270_v0  ;;  %v1543_v44 = vadd.f32 %v1542_v63, %v2924_v6  ;;  %v2273_v8 = vpop.f32.mrb[70].mxu1  ;;  %v2339_v47 = vpop.f32.mrb[70].mxu0  ;;  %v1686_v0 = vmax.f32 %v1654_v31, 0.0 }
 0x185   : > { %v2978_v13 = vadd.f32 %v2339_v47, %v1393_v54  ;;  %v2274_v33 = vpop.f32.mrb[71].mxu1  ;;  %v1545_v14 = vpop.f32.mrb[71].mxu0  ;;  %v1613_v54 = vmul.f32 %v2891_v3, %v1530_v38 }
 0x186   : > { %v2275_v17 = vadd.f32 %v2274_v33, %v2273_v8  ;;  %v1546_v56 = vadd.f32 %v1545_v14, %v2931_v49  ;;  %v1406_v62 = vadd.f32 %v2272_v30, %v2820_v4  ;;  %v1653_v49 = vadd.f32 %v2904_v20, %v1614_v15 }
 0x187   : > { %v1652_v36 = vadd.f32 %v2904_v20, %v1613_v54  ;;  %v1616_v38 = vmul.f32 %v2891_v3, %v1543_v44 }
 0x188   : > { %v1409_v29 = vadd.f32 %v2275_v17, %v2822_v10  ;;  %v1651_v10 = vadd.f32 %v2904_v20, %v1612_v2  ;;  %v1685_v59 = vmax.f32 %v1653_v49, 0.0 }
 0x189   : > { %v1684_v8 = vmax.f32 %v1652_v36, 0.0 }
 0x18a   : > { %v2276_v6 = vpop.f32.mrb[72].mxu1  ;;  %v2342_v25 = vpop.f32.mrb[72].mxu0 }
 0x18b   : > { %v1567_v24 = vadd.f32 %v2342_v25, %v1406_v62  ;;  %v2277_v48 = vpop.f32.mrb[73].mxu1  ;;  %v1558_v26 = vpop.f32.mrb[73].mxu0  ;;  %v1617_v25 = vmul.f32 %v2891_v3, %v1546_v56 }
 0x18c   : > { %v2278_v4 = vadd.f32 %v2277_v48, %v2276_v6  ;;  %v1559_v57 = vadd.f32 %v1558_v26, %v1398_v60  ;;  %v2279_v27 = vpop.f32.mrb[74].mxu1  ;;  %v2343_v42 = vpop.f32.mrb[74].mxu0  ;;  %v1655_v6 = vadd.f32 %v2904_v20, %v1616_v38 }
 0x18d   : > { %v1622_v55 = vmul.f32 %v2891_v3, %v1567_v24  ;;  %v1570_v53 = vadd.f32 %v2343_v42, %v1409_v29  ;;  %v2280_v43 = vpop.f32.mrb[75].mxu1  ;;  %v1561_v40 = vpop.f32.mrb[75].mxu0 }
 0x18e   : > { %v1620_v23 = vmul.f32 %v2891_v3, %v1559_v57  ;;  %v2281_v41 = vadd.f32 %v2280_v43, %v2279_v27  ;;  %v1562_v1 = vadd.f32 %v1561_v40, %v1401_v61  ;;  %v1414_v39 = vadd.f32 %v2278_v4, %v2824_v16 }
 0x18f   : > { %v1661_v21 = vadd.f32 %v2904_v20, %v1622_v55  ;;  %v1623_v32 = vmul.f32 %v2891_v3, %v1570_v53  ;;  %v1683_v61 = vmax.f32 %v1651_v10, 0.0  ;;  %v1656_v55 = vadd.f32 %v2904_v20, %v1617_v25 }
 0x190   : > { %v1659_v45 = vadd.f32 %v2904_v20, %v1620_v23  ;;  %v1621_v50 = vmul.f32 %v2891_v3, %v1562_v1  ;;  %v1417_v19 = vadd.f32 %v2281_v41, %v2826_v22  ;;  %v1618_v22 = vmul.f32 %v2891_v3, %v1551_v37 }
 0x191   : > { %v1693_v60 = vmax.f32 %v1661_v21, 0.0  ;;  %v1662_v16 = vadd.f32 %v2904_v20, %v1623_v32  ;;  %v1688_v32 = vmax.f32 %v1656_v55, 0.0 }
 0x192   : > { %v1691_v18 = vmax.f32 %v1659_v45, 0.0  ;;  %v1660_v9 = vadd.f32 %v2904_v20, %v1621_v50  ;;  %v2282_v63 = vpop.f32.mrb[76].mxu1  ;;  %v2346_v30 = vpop.f32.mrb[76].mxu0  ;;  %v1657_v27 = vadd.f32 %v2904_v20, %v1618_v22 }
 0x193   : > { %v1709_v47 = vmax.f32 %v1685_v59, %v1693_v60  ;;  %v1694_v44 = vmax.f32 %v1662_v16, 0.0  ;;  %v2283_v33 = vpop.f32.mrb[77].mxu1  ;;  %v1574_v14 = vpop.f32.mrb[77].mxu0 }
 0x194   : > { %v1707_v17 = vmax.f32 %v1683_v61, %v1691_v18  ;;  %v1692_v62 = vmax.f32 %v1660_v9, 0.0  ;;  %v2284_v15 = vadd.f32 %v2283_v33, %v2282_v63  ;;  %v1575_v29 = vadd.f32 %v1574_v14, %v1414_v39  ;;  %v2285_v2 = vpop.f32.mrb[78].mxu1  ;;  %v2347_v12 = vpop.f32.mrb[78].mxu0 }
 0x195   : > { %v1717_v54 = vmax.f32 %v2939_v46, %v1709_v47  ;;  %v1710_v24 = vmax.f32 %v1686_v0, %v1694_v44  ;;  %v2286_v48 = vpop.f32.mrb[79].mxu1  ;;  %v1577_v37 = vpop.f32.mrb[79].mxu0  ;;  %v1619_v46 = vmul.f32 %v2891_v3, %v2978_v13  ;;  %v1687_v13 = vmax.f32 %v1655_v6, 0.0 }
 0x196   : > { %v1715_v26 = vmax.f32 %v2942_v51, %v1707_v17  ;;  %v1708_v49 = vmax.f32 %v1684_v8, %v1692_v62  ;;  %v1422_v4 = vadd.f32 %v2284_v15, %v2828_v28  ;;  %v1624_v57 = vmul.f32 %v2891_v3, %v1575_v29 }
 0x197   : > { %v1718_v42 = vmax.f32 %v2946_v5, %v1710_v24  ;;  %v2287_v10 = vadd.f32 %v2286_v48, %v2285_v2  ;;  %v1578_v31 = vadd.f32 %v1577_v37, %v1417_v19  ;;  %v1658_v21 = vadd.f32 %v2904_v20, %v1619_v46 }
 0x198   : > { %v1716_v28 = vmax.f32 %v2950_v7, %v1708_v49  ;;  %v1583_v51 = vadd.f32 %v2346_v30, %v1422_v4  ;;  %v1663_v56 = vadd.f32 %v2904_v20, %v1624_v57  ;;  %v1689_v50 = vmax.f32 %v1657_v27, 0.0 }
 0x199   : > { %v2049_v5 = vpack.c.bf16 %v1718_v42, %v1717_v54  ;;  %v1425_v53 = vadd.f32 %v2287_v10, %v2830_v34  ;;  %v1625_v43 = vmul.f32 %v2891_v3, %v1578_v31  ;;  %v1690_v61 = vmax.f32 %v1658_v21, 0.0 }
 0x19a   : > { %v2044_v40 = vpack.c.bf16 %v1716_v28, %v1715_v26  ;;  %v1626_v23 = vmul.f32 %v2891_v3, %v1583_v51  ;;  %v1695_v41 = vmax.f32 %v1663_v56, 0.0 }
 0x19b   : > { %2061 = vst [vmem:[%s3030_s13 + $0x8] sm:$0xff] %v2049_v5   ;;  %v1586_v1 = vadd.f32 %v2347_v12, %v1425_v53  ;;  %v1664_v39 = vadd.f32 %v2904_v20, %v1625_v43 }
 0x19c   : > { %2045 = vst [vmem:[%s3030_s13] sm:$0xff] %v2044_v40   ;;  %v1665_v7 = vadd.f32 %v2904_v20, %v1626_v23  ;;  %v1711_v36 = vmax.f32 %v1687_v13, %v1695_v41 }
 0x19d   : > { %v1627_v34 = vmul.f32 %v2891_v3, %v1586_v1  ;;  %v1696_v45 = vmax.f32 %v1664_v39, 0.0 }
 0x19e   : > { %v1697_v19 = vmax.f32 %v1665_v7, 0.0  ;;  %v1719_v59 = vmax.f32 %v2966_v52, %v1711_v36 }
 0x19f   : > { %v1666_v38 = vadd.f32 %v2904_v20, %v1627_v34  ;;  %v1712_v60 = vmax.f32 %v1688_v32, %v1696_v45 }
 0x1a0   : > { %v1713_v16 = vmax.f32 %v1689_v50, %v1697_v19 }
 0x1a1   : > { %v1698_v0 = vmax.f32 %v1666_v38, 0.0  ;;  %v1720_v18 = vmax.f32 %v2972_v35, %v1712_v60 }
 0x1a2   : > { %v1721_v9 = vmax.f32 %v2963_v11, %v1713_v16 }
 0x1a3   : > { %v1714_v63 = vmax.f32 %v1690_v61, %v1698_v0  ;;  %v2054_v30 = vpack.c.bf16 %v1720_v18, %v1719_v59 }
 0x1a5   : > { %v1722_v3 = vmax.f32 %v2969_v58, %v1714_v63  ;;  %2062 = vst [vmem:[%s3030_s13 + $0x10] sm:$0xff] %v2054_v30  }
 0x1a7   : > { %v2059_v8 = vpack.c.bf16 %v1722_v3, %v1721_v9 }
 0x1a9   : > { %2063 = vst [vmem:[%s3030_s13 + $0x18] sm:$0xff] %v2059_v8  }
 0x1aa PF: > { %s14_s17 = sadd.s32 1, %s2559_s17   ;;  %s3066_s15 = smov %s2555_s16 }
 0x1ab   : > { %p11_p6 = scmp.ge.s32.totalorder %s14_s17, 4   ;;  %s3067_s16 = smov %s3069_s18 }
 0x1ad   :  { %13 = sbr.rel (!%p11_p6) target bundleno = 2 (0x2), region = 75 }

// kernel: custom_cnn_forward.7
= control target key start
LH: loop header
LB: loop body
LE: loop exit
PB: predicated region body
PF: predicated region fallthrough
CT: control target
= control target key end

     0   :  { %s2800_s15 = smov 0   ;;  %s2802_s16 = smov 0   ;;  %s3291_s0 = inlined_call_operand.vmem [shape: bf16[128,1152], index: 0, kind: input, shape index: {}]   ;;  %s3292_s1 = inlined_call_operand.vmem [shape: bf16[2,1152,128], index: 1, kind: input, shape index: {}]   ;;  %s3293_s2 = inlined_call_operand.vmem [shape: f32[1,256], index: 2, kind: input, shape index: {}]   ;;  %s3294_s3 = inlined_call_operand.vmem [shape: f32[1,256], index: 3, kind: input, shape index: {}]   ;;  %s3295_s4 = inlined_call_operand.vmem [shape: bf16[32,256], index: 4, kind: output, shape index: {}]  }
   0x1   :  { %s2804_s17 = smov 0   ;;  %s2806_s18 = smov 0  }
   0x2   :  { %s2808_s19 = smov 0  }
   0x3 LB: > { %s2021_s20 = sadd.s32 4294967295, %s2773_s19   ;;  %s23_s21 = sadd.s32 1, %s2769_s18  ;;  %s2773_s19 = sphi %s2808_s19, %s14_s19   ;;  %s2769_s18 = sphi %s2806_s18, %s3300_s18   ;;  %s2765_s17 = sphi %s2804_s17, %s3299_s17   ;;  %s2761_s16 = sphi %s2802_s16, %s3298_s16   ;;  %s2757_s15 = sphi %s2800_s15, %s3297_s15  }
   0x4   : > { %p24_p0 = scmp.ge.s32.totalorder %s23_s21, 2  ;;  %s139_s22 = sadd.s32 1, %s2761_s16 }
   0x5   : > { %p149_p1 = scmp.ne.s32.totalorder %s2761_s16, %s2757_s15  ;;  %p150_p2 = scmp.eq.s32.totalorder %s2021_s20, 1 }
   0x6   : > { %s3302_s21 = smov (%p24_p0, %s23_s21), 0  ;;  %p2026_p4 = scmp.ge.s32.totalorder %s2773_s19, 1 }
   0x7   : > { %p2832_p3 = por %p150_p2, %p149_p1  ;;  %s135_s24 = ssub.s32 %s2769_s18, %s3302_s21 }
   0x8   : > { %p204_p5 = scmp.lt.s32.totalorder %s2773_s19, 3  ;;  %p137_p6 = scmp.eq.s32.totalorder %s135_s24, 0 }
   0xa   : > { %p205_p7 = pnand %p2026_p4, %p204_p5 }
   0xb   : > { %s2841_s25 = scalar_select %p137_p6, %s2761_s16, %s139_s22  }
   0xc   : > { %208 = sbr.rel (%p205_p7) target bundleno = 434 (0x1b2), region = 36  ;;  %p248_p8 = scmp.lt.s32.totalorder (!%p205_p7), %s2765_s17, 1  ;;  %v2593_v0 = vld [vmem:[%s3291_s0 + $0x4] ss:$36 sps:$4 sm:$0xff] (!%p205_p7)   ;;  %v2596_v1 = vld [vmem:[%s3291_s0 + $0xc] ss:$36 sps:$4 sm:$0xff] (!%p205_p7)  }
   0xd   : > { %1317 = vmatprep.mubr.bf16.mxu0 (!%p205_p7), %v2593_v0  ;;  %1414 = vmatprep.mubr.bf16.mxu1 (!%p205_p7), %v2596_v1  ;;  %v2591_v32 = vld [vmem:[%s3291_s0] ss:$36 sps:$4 sm:$0xff] (!%p205_p7)   ;;  %v2594_v34 = vld [vmem:[%s3291_s0 + $0x8] ss:$36 sps:$4 sm:$0xff] (!%p205_p7)   ;;  %v2603_v38 = vld [vmem:[%s3291_s0 + $0x54] ss:$36 sps:$4 sm:$0xff] (!%p205_p7)  }
   0xe   : > { %v2601_v36 = vld [vmem:[%s3291_s0 + $0x4c] ss:$36 sps:$4 sm:$0xff] (!%p205_p7)   ;;  %v2611_v48 = vld [vmem:[%s3291_s0 + $0x94] ss:$36 sps:$4 sm:$0xff] (!%p205_p7)   ;;  %v2613_v49 = vld [vmem:[%s3291_s0 + $0x9c] ss:$36 sps:$4 sm:$0xff] (!%p205_p7)  }
   0xf   : > { %v2605_v43 = vld [vmem:[%s3291_s0 + $0x48] ss:$36 sps:$4 sm:$0xff] (!%p205_p7)   ;;  %v2606_v47 = vld [vmem:[%s3291_s0 + $0x50] ss:$36 sps:$4 sm:$0xff] (!%p205_p7)   ;;  %v2616_v55 = vld [vmem:[%s3291_s0 + $0x98] ss:$36 sps:$4 sm:$0xff] (!%p205_p7)  }
  0x10   : > { %v2615_v54 = vld [vmem:[%s3291_s0 + $0x90] ss:$36 sps:$4 sm:$0xff] (!%p205_p7)   ;;  %v2621_v56 = vld [vmem:[%s3291_s0 + $0xdc] ss:$36 sps:$4 sm:$0xff] (!%p205_p7)   ;;  %v2623_v57 = vld [vmem:[%s3291_s0 + $0xe4] ss:$36 sps:$4 sm:$0xff] (!%p205_p7)  }
  0x11   : > { %v2625_v62 = vld [vmem:[%s3291_s0 + $0xd8] ss:$36 sps:$4 sm:$0xff] (!%p205_p7)   ;;  %v2626_v63 = vld [vmem:[%s3291_s0 + $0xe0] ss:$36 sps:$4 sm:$0xff] (!%p205_p7)   ;;  %v2633_v1 = vld [vmem:[%s3291_s0 + $0x12c] ss:$36 sps:$4 sm:$0xff] (!%p205_p7)  }
  0x12   : > { %v2631_v0 = vld [vmem:[%s3291_s0 + $0x124] ss:$36 sps:$4 sm:$0xff] (!%p205_p7)  }
  0x13   : > { %s2848_s28 = scalar_select %p248_p8, %s2765_s17, 1 }
  0x14   : > { %s2180_s9 = sshll.u32 (%p2832_p3), %s2765_s17, 2 }
  0x15   : > { %s2518_s5 = smul.u32 576, %s2848_s28  ;;  %s255_s29 = scalar_lea.vmem %s3293_s2, %s2848_s28 }
  0x16   : > { %s258_s6 = scalar_lea.vmem %s3294_s3, %s2848_s28  ;;  %s238_s28 = sand.u32 1, %s2757_s15  }
  0x17   : > { %s2857_s8 = scalar_lea.vmem %s3292_s1, %s2518_s5  ;;  %s2027_s7 = sshll.u32 %s238_s28, 4 }
  0x18   : > { %v2559_v2 = vld [vmem:[%s2857_s8 + $0x40] sm:$0xff]   ;;  %v2563_v6 = vld [vmem:[%s2857_s8 + $0x48] sm:$0xff]   ;;  %v2567_v10 = vld [vmem:[%s2857_s8 + $0x50] sm:$0xff]   ;;  %s240_s15 = scalar_lea.vmem [#allocation2], %s2027_s7  ;;  %s1875_s12 = scalar_lea.vmem (%p2832_p3), %s3295_s4, %s2180_s9 }
  0x19   : > { %v2560_v3 = vld [vmem:[%s2857_s8 + $0xc0] sm:$0xff]   ;;  %2198 = vmatprep.subr.bf16.mxu0 %v2559_v2  ;;  %v2564_v7 = vld [vmem:[%s2857_s8 + $0xc8] sm:$0xff]   ;;  %v2568_v11 = vld [vmem:[%s2857_s8 + $0xd0] sm:$0xff]  }
  0x1a   : > { %v2561_v4 = vld [vmem:[%s2857_s8] sm:$0xff]   ;;  %2262 = vmatprep.subr.bf16.mxu1 %v2560_v3  ;;  %v2565_v8 = vld [vmem:[%s2857_s8 + $0x8] sm:$0xff]   ;;  %v2569_v12 = vld [vmem:[%s2857_s8 + $0x10] sm:$0xff]  }
  0x1b   : > { %v2562_v5 = vld [vmem:[%s2857_s8 + $0x80] sm:$0xff]   ;;  %2199 = vmatpush3.bf16.msra.mxu0 %v2561_v4  ;;  %v2566_v9 = vld [vmem:[%s2857_s8 + $0x88] sm:$0xff]   ;;  %v2570_v13 = vld [vmem:[%s2857_s8 + $0x90] sm:$0xff]  }
  0x1c   : > { %2263 = vmatpush3.bf16.msra.mxu1 %v2562_v5  ;;  %2200 = vmatprep.subr.bf16.mxu0 %v2563_v6  ;;  %v2571_v14 = vld [vmem:[%s2857_s8 + $0x58] sm:$0xff]   ;;  %v2575_v18 = vld [vmem:[%s2857_s8 + $0x60] sm:$0xff]   ;;  %v2579_v22 = vld [vmem:[%s2857_s8 + $0x68] sm:$0xff]  }
  0x1d   : > { %2264 = vmatprep.subr.bf16.mxu1 %v2564_v7  ;;  %v2572_v15 = vld [vmem:[%s2857_s8 + $0xd8] sm:$0xff]   ;;  %v2576_v19 = vld [vmem:[%s2857_s8 + $0xe0] sm:$0xff]   ;;  %v2580_v23 = vld [vmem:[%s2857_s8 + $0xe8] sm:$0xff]  }
  0x1e   : > { %v2573_v16 = vld [vmem:[%s2857_s8 + $0x18] sm:$0xff]   ;;  %v2577_v20 = vld [vmem:[%s2857_s8 + $0x20] sm:$0xff]   ;;  %v2581_v24 = vld [vmem:[%s2857_s8 + $0x28] sm:$0xff]  }
  0x1f   : > { %2201 = vmatpush3.bf16.msra.mxu0 %v2565_v8  ;;  %v2574_v17 = vld [vmem:[%s2857_s8 + $0x98] sm:$0xff]   ;;  %v2578_v21 = vld [vmem:[%s2857_s8 + $0xa0] sm:$0xff]   ;;  %v2582_v25 = vld [vmem:[%s2857_s8 + $0xa8] sm:$0xff]  }
  0x20   : > { %2265 = vmatpush3.bf16.msra.mxu1 %v2566_v9  ;;  %2202 = vmatprep.subr.bf16.mxu0 %v2567_v10  ;;  %v2583_v26 = vld [vmem:[%s2857_s8 + $0x70] sm:$0xff]   ;;  %v2587_v30 = vld [vmem:[%s2857_s8 + $0x78] sm:$0xff]   ;;  %v2597_v37 = vld [vmem:[%s2857_s8 + $0x140] sm:$0xff]  }
  0x21   : > { %2266 = vmatprep.subr.bf16.mxu1 %v2568_v11  ;;  %v2584_v27 = vld [vmem:[%s2857_s8 + $0xf0] sm:$0xff]   ;;  %v2588_v31 = vld [vmem:[%s2857_s8 + $0xf8] sm:$0xff]   ;;  %v2598_v39 = vld [vmem:[%s2857_s8 + $0x1c0] sm:$0xff]  }
  0x22   : > { %v2585_v28 = vld [vmem:[%s2857_s8 + $0x30] sm:$0xff]   ;;  %v2589_v33 = vld [vmem:[%s2857_s8 + $0x38] sm:$0xff]   ;;  %v2599_v40 = vld [vmem:[%s2857_s8 + $0x100] sm:$0xff]  }
  0x23   : > { %2203 = vmatpush3.bf16.msra.mxu0 %v2569_v12  ;;  %v2586_v29 = vld [vmem:[%s2857_s8 + $0xb0] sm:$0xff]   ;;  %v2590_v35 = vld [vmem:[%s2857_s8 + $0xb8] sm:$0xff]   ;;  %v2600_v41 = vld [vmem:[%s2857_s8 + $0x180] sm:$0xff]  }
  0x24   : > { %2267 = vmatpush3.bf16.msra.mxu1 %v2570_v13  ;;  %2204 = vmatprep.subr.bf16.mxu0 %v2571_v14  ;;  %v2607_v42 = vld [vmem:[%s2857_s8 + $0x148] sm:$0xff]   ;;  %v2617_v50 = vld [vmem:[%s2857_s8 + $0x150] sm:$0xff]   ;;  %v2627_v58 = vld [vmem:[%s2857_s8 + $0x158] sm:$0xff]  }
  0x25   : > { %2268 = vmatprep.subr.bf16.mxu1 %v2572_v15  ;;  %v2608_v44 = vld [vmem:[%s2857_s8 + $0x1c8] sm:$0xff]   ;;  %v2618_v51 = vld [vmem:[%s2857_s8 + $0x1d0] sm:$0xff]   ;;  %v2628_v59 = vld [vmem:[%s2857_s8 + $0x1d8] sm:$0xff]  }
  0x26   : > { %v2609_v45 = vld [vmem:[%s2857_s8 + $0x108] sm:$0xff]   ;;  %v2619_v52 = vld [vmem:[%s2857_s8 + $0x110] sm:$0xff]   ;;  %v2629_v60 = vld [vmem:[%s2857_s8 + $0x118] sm:$0xff]  }
  0x27   : > { %2205 = vmatpush3.bf16.msra.mxu0 %v2573_v16  ;;  %v2610_v46 = vld [vmem:[%s2857_s8 + $0x188] sm:$0xff]   ;;  %v2620_v53 = vld [vmem:[%s2857_s8 + $0x190] sm:$0xff]   ;;  %v2630_v61 = vld [vmem:[%s2857_s8 + $0x198] sm:$0xff]  }
  0x28   : > { %2269 = vmatpush3.bf16.msra.mxu1 %v2574_v17  ;;  %2206 = vmatprep.subr.bf16.mxu0 %v2575_v18  ;;  %v2637_v2 = vld [vmem:[%s2857_s8 + $0x160] sm:$0xff]   ;;  %v2647_v7 = vld [vmem:[%s2857_s8 + $0x168] sm:$0xff]   ;;  %v2643_v13 = vld [vmem:[%s3291_s0 + $0x174] ss:$36 sps:$4 sm:$0xff]  }
  0x29   : > { %2270 = vmatprep.subr.bf16.mxu1 %v2576_v19  ;;  %v2638_v3 = vld [vmem:[%s2857_s8 + $0x1e0] sm:$0xff]   ;;  %v2636_v8 = vld [vmem:[%s3291_s0 + $0x128] ss:$36 sps:$4 sm:$0xff]   ;;  %v2657_v14 = vld [vmem:[%s2857_s8 + $0x170] sm:$0xff]  }
  0x2a   : > { %v2639_v4 = vld [vmem:[%s2857_s8 + $0x120] sm:$0xff]   ;;  %v2641_v9 = vld [vmem:[%s3291_s0 + $0x16c] ss:$36 sps:$4 sm:$0xff]  }
  0x2b   : > { %2207 = vmatpush3.bf16.msra.mxu0 %v2577_v20  ;;  %v2640_v5 = vld [vmem:[%s2857_s8 + $0x1a0] sm:$0xff]   ;;  %v2648_v10 = vld [vmem:[%s2857_s8 + $0x1e8] sm:$0xff]   ;;  %v2658_v16 = vld [vmem:[%s2857_s8 + $0x1f0] sm:$0xff]  }
  0x2c   : > { %2271 = vmatpush3.bf16.msra.mxu1 %v2578_v21  ;;  %2208 = vmatprep.subr.bf16.mxu0 %v2579_v22  ;;  %v2635_v6 = vld [vmem:[%s3291_s0 + $0x120] ss:$36 sps:$4 sm:$0xff]   ;;  %v2649_v11 = vld [vmem:[%s2857_s8 + $0x128] sm:$0xff]   ;;  %v2646_v17 = vld [vmem:[%s3291_s0 + $0x170] ss:$36 sps:$4 sm:$0xff]  }
  0x2d   : > { %2272 = vmatprep.subr.bf16.mxu1 %v2580_v23  ;;  %v2650_v12 = vld [vmem:[%s2857_s8 + $0x1a8] sm:$0xff]   ;;  %v2659_v18 = vld [vmem:[%s2857_s8 + $0x130] sm:$0xff]   ;;  %v2653_v21 = vld [vmem:[%s3291_s0 + $0x1bc] ss:$36 sps:$4 sm:$0xff]  }
  0x2e   : > { %v2645_v15 = vld [vmem:[%s3291_s0 + $0x168] ss:$36 sps:$4 sm:$0xff]   ;;  %v2660_v19 = vld [vmem:[%s2857_s8 + $0x1b0] sm:$0xff]   ;;  %v2667_v22 = vld [vmem:[%s2857_s8 + $0x178] sm:$0xff]  }
  0x2f   : > { %2209 = vmatpush3.bf16.msra.mxu0 %v2581_v24  ;;  %v2651_v20 = vld [vmem:[%s3291_s0 + $0x1b4] ss:$36 sps:$4 sm:$0xff]  }
  0x30   : > { %2273 = vmatpush3.bf16.msra.mxu1 %v2582_v25  ;;  %2210 = vmatprep.subr.bf16.mxu0 %v2583_v26  ;;  %v2668_v23 = vld [vmem:[%s2857_s8 + $0x1f8] sm:$0xff]   ;;  %v2655_v26 = vld [vmem:[%s3291_s0 + $0x1b0] ss:$36 sps:$4 sm:$0xff]  }
  0x31   : > { %2274 = vmatprep.subr.bf16.mxu1 %v2584_v27  ;;  %v2669_v24 = vld [vmem:[%s2857_s8 + $0x138] sm:$0xff]  }
  0x32   : > { %v2670_v25 = vld [vmem:[%s2857_s8 + $0x1b8] sm:$0xff]  }
  0x33   : > { %2211 = vmatpush3.bf16.msra.mxu0 %v2585_v28  ;;  %v2656_v27 = vld [vmem:[%s3291_s0 + $0x1b8] ss:$36 sps:$4 sm:$0xff]  }
  0x34   : > { %2275 = vmatpush3.bf16.msra.mxu1 %v2586_v29  ;;  %2212 = vmatprep.subr.bf16.mxu0 %v2587_v30  ;;  %v2661_v28 = vld [vmem:[%s3291_s0 + $0x1fc] ss:$36 sps:$4 sm:$0xff]   ;;  %v2663_v29 = vld [vmem:[%s3291_s0 + $0x204] ss:$36 sps:$4 sm:$0xff]  }
  0x35   : > { %2276 = vmatprep.subr.bf16.mxu1 %v2588_v31  ;;  %v2677_v30 = vld [vmem:[%s2857_s8 + $0x200] sm:$0xff]   ;;  %v2665_v31 = vld [vmem:[%s3291_s0 + $0x1f8] ss:$36 sps:$4 sm:$0xff]  }
  0x37   : > { %2213 = vmatpush3.bf16.msra.mxu0 %v2589_v33  ;;  %v2673_v33 = vld [vmem:[%s3291_s0 + $0x14] ss:$36 sps:$4 sm:$0xff]  }
  0x38   : > { %2277 = vmatpush3.bf16.msra.mxu1 %v2590_v35  ;;  %2326 = vmatprep.subr.bf16.mxu0 %v2597_v37  ;;  %v2671_v35 = vld [vmem:[%s3291_s0 + $0x10] ss:$36 sps:$4 sm:$0xff]   ;;  %v2678_v37 = vld [vmem:[%s3291_s0 + $0x5c] ss:$36 sps:$4 sm:$0xff]  }
  0x39   : > { %2390 = vmatprep.subr.bf16.mxu1 %v2598_v39  ;;  %v2684_v39 = vld [vmem:[%s2857_s8 + $0x208] sm:$0xff]  }
  0x3a   : > { %1318 = vmatmul.mubr.bf16.vlgmr.msra.gmra.mrb[0].mxu0 %v2591_v32  ;;  %v2666_v32 = vld [vmem:[%s3291_s0 + $0x200] ss:$36 sps:$4 sm:$0xff]  }
  0x3b   : > { %1415 = vmatmul.mubr.bf16.vlgmr.msra.gmra.mrb[0].mxu1 %v2594_v34  ;;  %2327 = vmatpush3.bf16.msra.mxu0 %v2599_v40  ;;  %v2676_v34 = vld [vmem:[%s3291_s0 + $0x1c] ss:$36 sps:$4 sm:$0xff]   ;;  %v2691_v40 = vld [vmem:[%s2857_s8 + $0x210] sm:$0xff]  }
  0x3c   : > { %2391 = vmatpush3.bf16.msra.mxu1 %v2600_v41  ;;  %1325 = vmatprep.mubr.bf16.mxu0 %v2601_v36  ;;  %v2674_v36 = vld [vmem:[%s3291_s0 + $0x18] ss:$36 sps:$4 sm:$0xff]  }
  0x3d   : > { %1422 = vmatprep.mubr.bf16.mxu1 %v2603_v38  ;;  %2328 = vmatprep.subr.bf16.mxu0 %v2607_v42  ;;  %v2680_v38 = vld [vmem:[%s3291_s0 + $0x64] ss:$36 sps:$4 sm:$0xff]   ;;  %v2682_v41 = vld [vmem:[%s3291_s0 + $0x58] ss:$36 sps:$4 sm:$0xff]  }
  0x3e   : > { %2392 = vmatprep.subr.bf16.mxu1 %v2608_v44  ;;  %v2683_v42 = vld [vmem:[%s3291_s0 + $0x60] ss:$36 sps:$4 sm:$0xff]   ;;  %v2687_v44 = vld [vmem:[%s3291_s0 + $0xac] ss:$36 sps:$4 sm:$0xff]  }
  0x3f   : > { %2329 = vmatpush3.bf16.msra.mxu0 %v2609_v45  ;;  %v2698_v45 = vld [vmem:[%s2857_s8 + $0x218] sm:$0xff]  }
  0x40   : > { %2393 = vmatpush3.bf16.msra.mxu1 %v2610_v46  ;;  %2330 = vmatprep.subr.bf16.mxu0 %v2617_v50  ;;  %v2689_v46 = vld [vmem:[%s3291_s0 + $0xa0] ss:$36 sps:$4 sm:$0xff]   ;;  %v2694_v50 = vld [vmem:[%s3291_s0 + $0xf4] ss:$36 sps:$4 sm:$0xff]  }
  0x41   : > { %2394 = vmatprep.subr.bf16.mxu1 %v2618_v51  ;;  %v2712_v51 = vld [vmem:[%s2857_s8 + $0x228] sm:$0xff]  }
  0x42   : > { %1326 = vmatmul.mubr.bf16.gmra.mrb[4].mxu0 %v2605_v43  ;;  %v2685_v43 = vld [vmem:[%s3291_s0 + $0xa4] ss:$36 sps:$4 sm:$0xff]  }
  0x43   : > { %1423 = vmatmul.mubr.bf16.gmra.mrb[4].mxu1 %v2606_v47  ;;  %1333 = vmatprep.mubr.bf16.mxu0 %v2611_v48  ;;  %v2705_v47 = vld [vmem:[%s2857_s8 + $0x220] sm:$0xff]   ;;  %v2690_v48 = vld [vmem:[%s3291_s0 + $0xa8] ss:$36 sps:$4 sm:$0xff]  }
  0x44   : > { %1430 = vmatprep.mubr.bf16.mxu1 %v2613_v49  ;;  %2331 = vmatpush3.bf16.msra.mxu0 %v2619_v52  ;;  %v2692_v49 = vld [vmem:[%s3291_s0 + $0xec] ss:$36 sps:$4 sm:$0xff]  }
  0x45   : > { %2395 = vmatpush3.bf16.msra.mxu1 %v2620_v53  ;;  %2332 = vmatprep.subr.bf16.mxu0 %v2627_v58  ;;  %v2719_v52 = vld [vmem:[%s2857_s8 + $0x230] sm:$0xff]   ;;  %v2696_v53 = vld [vmem:[%s3291_s0 + $0xe8] ss:$36 sps:$4 sm:$0xff]  }
  0x46   : > { %2396 = vmatprep.subr.bf16.mxu1 %v2628_v59  ;;  %v2703_v58 = vld [vmem:[%s3291_s0 + $0x130] ss:$36 sps:$4 sm:$0xff]   ;;  %v2704_v59 = vld [vmem:[%s3291_s0 + $0x138] ss:$36 sps:$4 sm:$0xff]  }
  0x48   : > { %2333 = vmatpush3.bf16.msra.mxu0 %v2629_v60  ;;  %v2706_v60 = vld [vmem:[%s3291_s0 + $0x17c] ss:$36 sps:$4 sm:$0xff]  }
  0x49   : > { %2397 = vmatpush3.bf16.msra.mxu1 %v2630_v61  ;;  %2334 = vmatprep.subr.bf16.mxu0 %v2637_v2  ;;  %v2708_v61 = vld [vmem:[%s3291_s0 + $0x184] ss:$36 sps:$4 sm:$0xff]  }
  0x4a   : > { %1334 = vmatmul.mubr.bf16.gmra.mrb[8].mxu0 %v2615_v54  ;;  %2398 = vmatprep.subr.bf16.mxu1 %v2638_v3  ;;  %v2697_v54 = vld [vmem:[%s3291_s0 + $0xf0] ss:$36 sps:$4 sm:$0xff]   ;;  %v2717_v2 = vld [vmem:[%s3291_s0 + $0x1c0] ss:$36 sps:$4 sm:$0xff]   ;;  %v2718_v3 = vld [vmem:[%s3291_s0 + $0x1c8] ss:$36 sps:$4 sm:$0xff]  }
  0x4b   : > { %1431 = vmatmul.mubr.bf16.gmra.mrb[8].mxu1 %v2616_v55  ;;  %1341 = vmatprep.mubr.bf16.mxu0 %v2621_v56  ;;  %v2699_v55 = vld [vmem:[%s3291_s0 + $0x134] ss:$36 sps:$4 sm:$0xff]   ;;  %v2701_v56 = vld [vmem:[%s3291_s0 + $0x13c] ss:$36 sps:$4 sm:$0xff]  }
  0x4c   : > { %1438 = vmatprep.mubr.bf16.mxu1 %v2623_v57  ;;  %2335 = vmatpush3.bf16.msra.mxu0 %v2639_v4  ;;  %v2726_v57 = vld [vmem:[%s2857_s8 + $0x238] sm:$0xff]   ;;  %v2720_v4 = vld [vmem:[%s3291_s0 + $0x20c] ss:$36 sps:$4 sm:$0xff]  }
  0x4d   : > { %2399 = vmatpush3.bf16.msra.mxu1 %v2640_v5  ;;  %2336 = vmatprep.subr.bf16.mxu0 %v2647_v7  ;;  %v2722_v5 = vld [vmem:[%s3291_s0 + $0x214] ss:$36 sps:$4 sm:$0xff]  }
  0x4e   : > { %2400 = vmatprep.subr.bf16.mxu1 %v2648_v10  ;;  %v2725_v7 = vld [vmem:[%s3291_s0 + $0x210] ss:$36 sps:$4 sm:$0xff]   ;;  %v2729_v10 = vld [vmem:[%s3291_s0 + $0x68] ss:$36 sps:$4 sm:$0xff]  }
  0x50   : > { %2337 = vmatpush3.bf16.msra.mxu0 %v2649_v11  ;;  %v2730_v11 = vld [vmem:[%s3291_s0 + $0x188] ss:$36 sps:$4 sm:$0xff]  }
  0x51   : > { %2401 = vmatpush3.bf16.msra.mxu1 %v2650_v12  ;;  %2338 = vmatprep.subr.bf16.mxu0 %v2657_v14  ;;  %v2731_v12 = vld [vmem:[%s3291_s0 + $0xb0] ss:$36 sps:$4 sm:$0xff]   ;;  %v2733_v14 = vld [vmem:[%s3291_s0 + $0xf8] ss:$36 sps:$4 sm:$0xff]  }
  0x52   : > { %1342 = vmatmul.mubr.bf16.gmra.mrb[12].mxu0 %v2625_v62  ;;  %2402 = vmatprep.subr.bf16.mxu1 %v2658_v16  ;;  %v2710_v62 = vld [vmem:[%s3291_s0 + $0x178] ss:$36 sps:$4 sm:$0xff]  }
  0x53   : > { %1439 = vmatmul.mubr.bf16.gmra.mrb[12].mxu1 %v2626_v63  ;;  %1349 = vmatprep.mubr.bf16.mxu0 %v2631_v0  ;;  %v2711_v63 = vld [vmem:[%s3291_s0 + $0x180] ss:$36 sps:$4 sm:$0xff]  }
  0x54   : > { %1446 = vmatprep.mubr.bf16.mxu1 %v2633_v1  ;;  %2339 = vmatpush3.bf16.msra.mxu0 %v2659_v18  ;;  %v2713_v0 = vld [vmem:[%s3291_s0 + $0x1c4] ss:$36 sps:$4 sm:$0xff]   ;;  %v2715_v1 = vld [vmem:[%s3291_s0 + $0x1cc] ss:$36 sps:$4 sm:$0xff]  }
  0x55   : > { %2403 = vmatpush3.bf16.msra.mxu1 %v2660_v19  ;;  %2340 = vmatprep.subr.bf16.mxu0 %v2667_v22 }
  0x56   : > { %2404 = vmatprep.subr.bf16.mxu1 %v2668_v23 }
  0x58   : > { %2341 = vmatpush3.bf16.msra.mxu0 %v2669_v24 }
  0x59   : > { %2405 = vmatpush3.bf16.msra.mxu1 %v2670_v25  ;;  %2470 = vmatprep.subr.bf16.mxu0 %v2677_v30 }
  0x5a   : > { %1350 = vmatmul.mubr.bf16.gmra.mrb[16].mxu0 %v2635_v6  ;;  %2502 = vmatprep.subr.bf16.mxu1 %v2677_v30  ;;  %v2724_v6 = vld [vmem:[%s3291_s0 + $0x208] ss:$36 sps:$4 sm:$0xff]  }
  0x5b   : > { %1447 = vmatmul.mubr.bf16.gmra.mrb[16].mxu1 %v2636_v8  ;;  %1357 = vmatprep.mubr.bf16.mxu0 %v2641_v9  ;;  %v2727_v8 = vld [vmem:[%s3291_s0 + $0x20] ss:$36 sps:$4 sm:$0xff]  }
  0x5c   : > { %1454 = vmatprep.mubr.bf16.mxu1 %v2643_v13  ;;  %v2728_v9 = vld [vmem:[%s3291_s0 + $0x140] ss:$36 sps:$4 sm:$0xff]   ;;  %v2732_v13 = vld [vmem:[%s3291_s0 + $0x1d0] ss:$36 sps:$4 sm:$0xff]  }
  0x62   : > { %1358 = vmatmul.mubr.bf16.gmra.mrb[20].mxu0 %v2645_v15  ;;  %v2734_v15 = vld [vmem:[%s3291_s0 + $0x218] ss:$36 sps:$4 sm:$0xff]  }
  0x63   : > { %1455 = vmatmul.mubr.bf16.gmra.mrb[20].mxu1 %v2646_v17  ;;  %1365 = vmatprep.mubr.bf16.mxu0 %v2651_v20 }
  0x64   : > { %1462 = vmatprep.mubr.bf16.mxu1 %v2653_v21 }
  0x6a   : > { %1366 = vmatmul.mubr.bf16.gmra.mrb[24].mxu0 %v2655_v26 }
  0x6b   : > { %1463 = vmatmul.mubr.bf16.gmra.mrb[24].mxu1 %v2656_v27  ;;  %1373 = vmatprep.mubr.bf16.mxu0 %v2661_v28 }
  0x6c   : > { %1470 = vmatprep.mubr.bf16.mxu1 %v2663_v29 }
  0x72   : > { %1374 = vmatmul.mubr.bf16.gmra.mrb[28].mxu0 %v2665_v31 }
  0x73   : > { %1471 = vmatmul.mubr.bf16.gmra.mrb[28].mxu1 %v2666_v32  ;;  %1511 = vmatprep.mubr.bf16.mxu0 %v2673_v33 }
  0x74   : > { %1608 = vmatprep.mubr.bf16.mxu1 %v2676_v34 }
  0x7a   : > { %1512 = vmatmul.mubr.bf16.vlgmr.msra.gmra.mrb[32].mxu0 %v2671_v35 }
  0x7b   : > { %1609 = vmatmul.mubr.bf16.vlgmr.msra.gmra.mrb[32].mxu1 %v2674_v36  ;;  %2471 = vmatpush3.bf16.msra.mxu0 %v2677_v30 }
  0x7c   : > { %2510 = vmatpush3.bf16.msra.mxu1 %v2677_v30  ;;  %1519 = vmatprep.mubr.bf16.mxu0 %v2678_v37 }
  0x7d   : > { %1616 = vmatprep.mubr.bf16.mxu1 %v2680_v38  ;;  %2472 = vmatprep.subr.bf16.mxu0 %v2684_v39 }
  0x7e   : > { %2503 = vmatprep.subr.bf16.mxu1 %v2684_v39 }
  0x7f   : > { %2473 = vmatpush3.bf16.msra.mxu0 %v2684_v39 }
  0x80   : > { %2511 = vmatpush3.bf16.msra.mxu1 %v2684_v39  ;;  %2474 = vmatprep.subr.bf16.mxu0 %v2691_v40 }
  0x81   : > { %2504 = vmatprep.subr.bf16.mxu1 %v2691_v40 }
  0x82   : > { %1520 = vmatmul.mubr.bf16.gmra.mrb[36].mxu0 %v2682_v41 }
  0x83   : > { %1617 = vmatmul.mubr.bf16.gmra.mrb[36].mxu1 %v2683_v42  ;;  %1527 = vmatprep.mubr.bf16.mxu0 %v2685_v43 }
  0x84   : > { %1624 = vmatprep.mubr.bf16.mxu1 %v2687_v44  ;;  %2475 = vmatpush3.bf16.msra.mxu0 %v2691_v40 }
  0x85   : > { %2512 = vmatpush3.bf16.msra.mxu1 %v2691_v40  ;;  %2476 = vmatprep.subr.bf16.mxu0 %v2698_v45 }
  0x86   : > { %2505 = vmatprep.subr.bf16.mxu1 %v2698_v45 }
  0x88   : > { %2477 = vmatpush3.bf16.msra.mxu0 %v2698_v45 }
  0x89   : > { %2513 = vmatpush3.bf16.msra.mxu1 %v2698_v45  ;;  %2478 = vmatprep.subr.bf16.mxu0 %v2705_v47 }
  0x8a   : > { %1528 = vmatmul.mubr.bf16.gmra.mrb[40].mxu0 %v2689_v46  ;;  %2506 = vmatprep.subr.bf16.mxu1 %v2705_v47 }
  0x8b   : > { %1625 = vmatmul.mubr.bf16.gmra.mrb[40].mxu1 %v2690_v48  ;;  %1535 = vmatprep.mubr.bf16.mxu0 %v2692_v49 }
  0x8c   : > { %1632 = vmatprep.mubr.bf16.mxu1 %v2694_v50  ;;  %2479 = vmatpush3.bf16.msra.mxu0 %v2705_v47 }
  0x8d   : > { %2514 = vmatpush3.bf16.msra.mxu1 %v2705_v47  ;;  %2480 = vmatprep.subr.bf16.mxu0 %v2712_v51 }
  0x8e   : > { %2507 = vmatprep.subr.bf16.mxu1 %v2712_v51 }
  0x90   : > { %2481 = vmatpush3.bf16.msra.mxu0 %v2712_v51 }
  0x91   : > { %2515 = vmatpush3.bf16.msra.mxu1 %v2712_v51  ;;  %2482 = vmatprep.subr.bf16.mxu0 %v2719_v52 }
  0x92   : > { %1536 = vmatmul.mubr.bf16.gmra.mrb[44].mxu0 %v2696_v53  ;;  %2508 = vmatprep.subr.bf16.mxu1 %v2719_v52 }
  0x93   : > { %1633 = vmatmul.mubr.bf16.gmra.mrb[44].mxu1 %v2697_v54  ;;  %1543 = vmatprep.mubr.bf16.mxu0 %v2699_v55 }
  0x94   : > { %1640 = vmatprep.mubr.bf16.mxu1 %v2701_v56  ;;  %2483 = vmatpush3.bf16.msra.mxu0 %v2719_v52 }
  0x95   : > { %2516 = vmatpush3.bf16.msra.mxu1 %v2719_v52  ;;  %2484 = vmatprep.subr.bf16.mxu0 %v2726_v57 }
  0x96   : > { %2509 = vmatprep.subr.bf16.mxu1 %v2726_v57 }
  0x98   : > { %2485 = vmatpush3.bf16.msra.mxu0 %v2726_v57 }
  0x99   : > { %2517 = vmatpush3.bf16.msra.mxu1 %v2726_v57 }
  0x9a   : > { %1544 = vmatmul.mubr.bf16.gmra.mrb[48].mxu0 %v2703_v58 }
  0x9b   : > { %1641 = vmatmul.mubr.bf16.gmra.mrb[48].mxu1 %v2704_v59  ;;  %1551 = vmatprep.mubr.bf16.mxu0 %v2706_v60 }
  0x9c   : > { %1648 = vmatprep.mubr.bf16.mxu1 %v2708_v61 }
  0xa2   : > { %1552 = vmatmul.mubr.bf16.gmra.mrb[52].mxu0 %v2710_v62 }
  0xa3   : > { %1649 = vmatmul.mubr.bf16.gmra.mrb[52].mxu1 %v2711_v63  ;;  %1559 = vmatprep.mubr.bf16.mxu0 %v2713_v0 }
  0xa4   : > { %1656 = vmatprep.mubr.bf16.mxu1 %v2715_v1 }
  0xaa   : > { %1560 = vmatmul.mubr.bf16.gmra.mrb[56].mxu0 %v2717_v2 }
  0xab   : > { %1657 = vmatmul.mubr.bf16.gmra.mrb[56].mxu1 %v2718_v3  ;;  %1567 = vmatprep.mubr.bf16.mxu0 %v2720_v4 }
  0xac   : > { %1664 = vmatprep.mubr.bf16.mxu1 %v2722_v5 }
  0xb2   : > { %1568 = vmatmul.mubr.bf16.gmra.mrb[60].mxu0 %v2724_v6 }
  0xb3   : > { %1665 = vmatmul.mubr.bf16.gmra.mrb[60].mxu1 %v2725_v7  ;;  %2486 = vmatprep.mubr.bf16.mxu0 %v2727_v8 }
  0xb4   : > { %2494 = vmatprep.mubr.bf16.mxu1 %v2728_v9 }
  0xba   : > { %2487 = vmatmul.mubr.bf16.vlgmr.msra.gmra.mrb[64].mxu0 %v2729_v10 }
  0xbb   : > { %2495 = vmatmul.mubr.bf16.vlgmr.msra.gmra.mrb[64].mxu1 %v2730_v11  ;;  %2490 = vmatprep.mubr.bf16.mxu0 %v2731_v12 }
  0xbc   : > { %2498 = vmatprep.mubr.bf16.mxu1 %v2732_v13 }
  0xc2   : > { %2491 = vmatmul.mubr.bf16.gmra.mrb[68].mxu0 %v2733_v14 }
  0xc3   : > { %2499 = vmatmul.mubr.bf16.gmra.mrb[68].mxu1 %v2734_v15 }
 0x10d   : > { %v2214_v16 = vpop.f32.mrb[0].mxu0 }
 0x10e   : > { %v2278_v17 = vpop.f32.mrb[0].mxu1  ;;  %v2215_v18 = vpop.f32.mrb[1].mxu0 }
 0x10f   : > { %v2216_v19 = vadd.f32 %v2215_v18, %v2214_v16  ;;  %v2279_v20 = vpop.f32.mrb[1].mxu1  ;;  %v2217_v21 = vpop.f32.mrb[2].mxu0 }
 0x110   : > { %v2280_v22 = vadd.f32 %v2279_v20, %v2278_v17  ;;  %v2281_v23 = vpop.f32.mrb[2].mxu1  ;;  %v2218_v24 = vpop.f32.mrb[3].mxu0 }
 0x111   : > { %v2219_v25 = vadd.f32 %v2218_v24, %v2217_v21  ;;  %v2282_v26 = vpop.f32.mrb[3].mxu1 }
 0x112   : > { %v3141_v27 = vadd.f32 %v2280_v22, %v2216_v19  ;;  %v2283_v28 = vadd.f32 %v2282_v26, %v2281_v23 }
 0x114   : > { %v3143_v29 = vadd.f32 %v2283_v28, %v2219_v25 }
 0x115   : > { %v2220_v30 = vpop.f32.mrb[4].mxu0 }
 0x116   : > { %v2284_v31 = vpop.f32.mrb[4].mxu1  ;;  %v2221_v32 = vpop.f32.mrb[5].mxu0 }
 0x117   : > { %v2222_v33 = vadd.f32 %v2221_v32, %v2220_v30  ;;  %v2285_v34 = vpop.f32.mrb[5].mxu1  ;;  %v2223_v35 = vpop.f32.mrb[6].mxu0 }
 0x118   : > { %v2286_v36 = vadd.f32 %v2285_v34, %v2284_v31  ;;  %v2287_v37 = vpop.f32.mrb[6].mxu1  ;;  %v2224_v38 = vpop.f32.mrb[7].mxu0 }
 0x119   : > { %v2225_v39 = vadd.f32 %v2224_v38, %v2223_v35  ;;  %v2288_v40 = vpop.f32.mrb[7].mxu1 }
 0x11a   : > { %v3145_v41 = vadd.f32 %v2286_v36, %v2222_v33  ;;  %v2289_v42 = vadd.f32 %v2288_v40, %v2287_v37 }
 0x11c   : > { %v3147_v43 = vadd.f32 %v2289_v42, %v2225_v39 }
 0x11d   : > { %v2226_v44 = vpop.f32.mrb[8].mxu0 }
 0x11e   : > { %v2290_v45 = vpop.f32.mrb[8].mxu1  ;;  %v2227_v46 = vpop.f32.mrb[9].mxu0 }
 0x11f   : > { %v2228_v47 = vadd.f32 %v2227_v46, %v2226_v44  ;;  %v2291_v48 = vpop.f32.mrb[9].mxu1  ;;  %v2229_v49 = vpop.f32.mrb[10].mxu0 }
 0x120   : > { %v2292_v50 = vadd.f32 %v2291_v48, %v2290_v45  ;;  %v2293_v51 = vpop.f32.mrb[10].mxu1  ;;  %v2230_v52 = vpop.f32.mrb[11].mxu0 }
 0x121   : > { %v2231_v53 = vadd.f32 %v2230_v52, %v2229_v49  ;;  %v2294_v54 = vpop.f32.mrb[11].mxu1 }
 0x122   : > { %v3149_v55 = vadd.f32 %v2292_v50, %v2228_v47  ;;  %v2295_v56 = vadd.f32 %v2294_v54, %v2293_v51 }
 0x124   : > { %v3151_v57 = vadd.f32 %v2295_v56, %v2231_v53 }
 0x125   : > { %v2232_v58 = vpop.f32.mrb[12].mxu0 }
 0x126   : > { %v2296_v59 = vpop.f32.mrb[12].mxu1  ;;  %v2233_v60 = vpop.f32.mrb[13].mxu0 }
 0x127   : > { %v2234_v61 = vadd.f32 %v2233_v60, %v2232_v58  ;;  %v2297_v62 = vpop.f32.mrb[13].mxu1  ;;  %v2235_v63 = vpop.f32.mrb[14].mxu0 }
 0x128   : > { %v2298_v0 = vadd.f32 %v2297_v62, %v2296_v59  ;;  %v2299_v1 = vpop.f32.mrb[14].mxu1  ;;  %v2236_v2 = vpop.f32.mrb[15].mxu0 }
 0x129   : > { %v2237_v3 = vadd.f32 %v2236_v2, %v2235_v63  ;;  %v2300_v4 = vpop.f32.mrb[15].mxu1 }
 0x12a   : > { %v3153_v5 = vadd.f32 %v2298_v0, %v2234_v61  ;;  %v2301_v6 = vadd.f32 %v2300_v4, %v2299_v1 }
 0x12c   : > { %v3155_v7 = vadd.f32 %v2301_v6, %v2237_v3 }
 0x12d   : > { %v2238_v8 = vpop.f32.mrb[16].mxu0 }
 0x12e   : > { %v2302_v9 = vpop.f32.mrb[16].mxu1  ;;  %v2239_v10 = vpop.f32.mrb[17].mxu0 }
 0x12f   : > { %v2240_v11 = vadd.f32 %v2239_v10, %v2238_v8  ;;  %v2303_v12 = vpop.f32.mrb[17].mxu1  ;;  %v2241_v13 = vpop.f32.mrb[18].mxu0 }
 0x130   : > { %v2304_v14 = vadd.f32 %v2303_v12, %v2302_v9  ;;  %v2305_v15 = vpop.f32.mrb[18].mxu1  ;;  %v2242_v16 = vpop.f32.mrb[19].mxu0 }
 0x131   : > { %v2243_v17 = vadd.f32 %v2242_v16, %v2241_v13  ;;  %v2306_v18 = vpop.f32.mrb[19].mxu1 }
 0x132   : > { %v3157_v19 = vadd.f32 %v2304_v14, %v2240_v11  ;;  %v2307_v20 = vadd.f32 %v2306_v18, %v2305_v15 }
 0x134   : > { %v3159_v21 = vadd.f32 %v2307_v20, %v2243_v17 }
 0x135   : > { %v2244_v22 = vpop.f32.mrb[20].mxu0 }
 0x136   : > { %v2308_v23 = vpop.f32.mrb[20].mxu1  ;;  %v2245_v24 = vpop.f32.mrb[21].mxu0 }
 0x137   : > { %v2246_v25 = vadd.f32 %v2245_v24, %v2244_v22  ;;  %v2309_v26 = vpop.f32.mrb[21].mxu1  ;;  %v2247_v28 = vpop.f32.mrb[22].mxu0 }
 0x138   : > { %v2310_v30 = vadd.f32 %v2309_v26, %v2308_v23  ;;  %v2311_v31 = vpop.f32.mrb[22].mxu1  ;;  %v2248_v32 = vpop.f32.mrb[23].mxu0 }
 0x139   : > { %v2249_v33 = vadd.f32 %v2248_v32, %v2247_v28  ;;  %v2312_v34 = vpop.f32.mrb[23].mxu1 }
 0x13a   : > { %v3161_v35 = vadd.f32 %v2310_v30, %v2246_v25  ;;  %v2313_v36 = vadd.f32 %v2312_v34, %v2311_v31 }
 0x13c   : > { %v3163_v37 = vadd.f32 %v2313_v36, %v2249_v33 }
 0x13d   : > { %v2250_v38 = vpop.f32.mrb[24].mxu0 }
 0x13e   : > { %v2314_v39 = vpop.f32.mrb[24].mxu1  ;;  %v2251_v40 = vpop.f32.mrb[25].mxu0 }
 0x13f   : > { %v2252_v42 = vadd.f32 %v2251_v40, %v2250_v38  ;;  %v2315_v44 = vpop.f32.mrb[25].mxu1  ;;  %v2253_v45 = vpop.f32.mrb[26].mxu0 }
 0x140   : > { %v2316_v46 = vadd.f32 %v2315_v44, %v2314_v39  ;;  %v2317_v47 = vpop.f32.mrb[26].mxu1  ;;  %v2254_v48 = vpop.f32.mrb[27].mxu0 }
 0x141   : > { %v2255_v49 = vadd.f32 %v2254_v48, %v2253_v45  ;;  %v2318_v50 = vpop.f32.mrb[27].mxu1 }
 0x142   : > { %v3165_v51 = vadd.f32 %v2316_v46, %v2252_v42  ;;  %v2319_v52 = vadd.f32 %v2318_v50, %v2317_v47 }
 0x144   : > { %v3167_v53 = vadd.f32 %v2319_v52, %v2255_v49 }
 0x145   : > { %v2256_v54 = vpop.f32.mrb[28].mxu0 }
 0x146   : > { %v2320_v56 = vpop.f32.mrb[28].mxu1  ;;  %v2257_v58 = vpop.f32.mrb[29].mxu0 }
 0x147   : > { %v2258_v59 = vadd.f32 %v2257_v58, %v2256_v54  ;;  %v2321_v60 = vpop.f32.mrb[29].mxu1  ;;  %v2259_v61 = vpop.f32.mrb[30].mxu0 }
 0x148   : > { %v2322_v62 = vadd.f32 %v2321_v60, %v2320_v56  ;;  %v2323_v63 = vpop.f32.mrb[30].mxu1  ;;  %v2260_v0 = vpop.f32.mrb[31].mxu0 }
 0x149   : > { %v2261_v1 = vadd.f32 %v2260_v0, %v2259_v61  ;;  %v2324_v2 = vpop.f32.mrb[31].mxu1 }
 0x14a   : > { %v3169_v3 = vadd.f32 %v2322_v62, %v2258_v59  ;;  %v2325_v4 = vadd.f32 %v2324_v2, %v2323_v63 }
 0x14c   : > { %v3171_v6 = vadd.f32 %v2325_v4, %v2261_v1 }
 0x14d   : > { %v2342_v8 = vpop.f32.mrb[32].mxu0 }
 0x14e   : > { %v2406_v9 = vpop.f32.mrb[32].mxu1  ;;  %v2343_v10 = vpop.f32.mrb[33].mxu0 }
 0x14f   : > { %v2344_v11 = vadd.f32 %v2343_v10, %v2342_v8  ;;  %v2407_v12 = vpop.f32.mrb[33].mxu1  ;;  %v2345_v13 = vpop.f32.mrb[34].mxu0 }
 0x150   : > { %v2408_v14 = vadd.f32 %v2407_v12, %v2406_v9  ;;  %v2409_v15 = vpop.f32.mrb[34].mxu1  ;;  %v2346_v16 = vpop.f32.mrb[35].mxu0 }
 0x151   : > { %v1514_v17 = vadd.f32 %v2344_v11, %v3141_v27  ;;  %v2347_v18 = vadd.f32 %v2346_v16, %v2345_v13  ;;  %v2410_v20 = vpop.f32.mrb[35].mxu1 }
 0x152   : > { %v2411_v22 = vadd.f32 %v2410_v20, %v2409_v15 }
 0x153   : > { %v1517_v23 = vadd.f32 %v2347_v18, %v3143_v29  ;;  %v3175_v24 = vadd.f32 %v2408_v14, %v1514_v17 }
 0x155   : > { %v2348_v25 = vpop.f32.mrb[36].mxu0  ;;  %v3177_v26 = vadd.f32 %v2411_v22, %v1517_v23 }
 0x156   : > { %v2412_v28 = vpop.f32.mrb[36].mxu1  ;;  %v2349_v30 = vpop.f32.mrb[37].mxu0 }
 0x157   : > { %v2350_v31 = vadd.f32 %v2349_v30, %v2348_v25  ;;  %v2413_v32 = vpop.f32.mrb[37].mxu1  ;;  %v2351_v33 = vpop.f32.mrb[38].mxu0 }
 0x158   : > { %v2414_v34 = vadd.f32 %v2413_v32, %v2412_v28  ;;  %v2415_v36 = vpop.f32.mrb[38].mxu1  ;;  %v2352_v38 = vpop.f32.mrb[39].mxu0 }
 0x159   : > { %v1522_v27 = vadd.f32 %v2350_v31, %v3145_v41  ;;  %v2353_v39 = vadd.f32 %v2352_v38, %v2351_v33  ;;  %v2416_v40 = vpop.f32.mrb[39].mxu1 }
 0x15a   : > { %v2417_v42 = vadd.f32 %v2416_v40, %v2415_v36 }
 0x15b   : > { %v1525_v29 = vadd.f32 %v2353_v39, %v3147_v43  ;;  %v3181_v44 = vadd.f32 %v2414_v34, %v1522_v27 }
 0x15d   : > { %v2354_v45 = vpop.f32.mrb[40].mxu0  ;;  %v3183_v46 = vadd.f32 %v2417_v42, %v1525_v29 }
 0x15e   : > { %v2418_v47 = vpop.f32.mrb[40].mxu1  ;;  %v2355_v48 = vpop.f32.mrb[41].mxu0 }
 0x15f   : > { %v2356_v49 = vadd.f32 %v2355_v48, %v2354_v45  ;;  %v2419_v50 = vpop.f32.mrb[41].mxu1  ;;  %v2357_v52 = vpop.f32.mrb[42].mxu0 }
 0x160   : > { %v2420_v54 = vadd.f32 %v2419_v50, %v2418_v47  ;;  %v2421_v56 = vpop.f32.mrb[42].mxu1  ;;  %v2358_v58 = vpop.f32.mrb[43].mxu0 }
 0x161   : > { %v1530_v41 = vadd.f32 %v2356_v49, %v3149_v55  ;;  %v2359_v59 = vadd.f32 %v2358_v58, %v2357_v52  ;;  %v2422_v60 = vpop.f32.mrb[43].mxu1 }
 0x162   : > { %v2423_v61 = vadd.f32 %v2422_v60, %v2421_v56 }
 0x163   : > { %v1533_v43 = vadd.f32 %v2359_v59, %v3151_v57  ;;  %v3187_v62 = vadd.f32 %v2420_v54, %v1530_v41 }
 0x165   : > { %v2360_v63 = vpop.f32.mrb[44].mxu0  ;;  %v3189_v0 = vadd.f32 %v2423_v61, %v1533_v43 }
 0x166   : > { %v2424_v1 = vpop.f32.mrb[44].mxu1  ;;  %v2361_v2 = vpop.f32.mrb[45].mxu0 }
 0x167   : > { %v2362_v4 = vadd.f32 %v2361_v2, %v2360_v63  ;;  %v2425_v8 = vpop.f32.mrb[45].mxu1  ;;  %v2363_v9 = vpop.f32.mrb[46].mxu0 }
 0x168   : > { %v2426_v10 = vadd.f32 %v2425_v8, %v2424_v1  ;;  %v2427_v11 = vpop.f32.mrb[46].mxu1  ;;  %v2364_v12 = vpop.f32.mrb[47].mxu0 }
 0x169   : > { %v1538_v55 = vadd.f32 %v2362_v4, %v3153_v5  ;;  %v2365_v13 = vadd.f32 %v2364_v12, %v2363_v9  ;;  %v2428_v14 = vpop.f32.mrb[47].mxu1 }
 0x16a   : > { %v2429_v15 = vadd.f32 %v2428_v14, %v2427_v11 }
 0x16b   : > { %v1541_v57 = vadd.f32 %v2365_v13, %v3155_v7  ;;  %v3193_v16 = vadd.f32 %v2426_v10, %v1538_v55 }
 0x16d   : > { %v2366_v17 = vpop.f32.mrb[48].mxu0  ;;  %v3195_v18 = vadd.f32 %v2429_v15, %v1541_v57 }
 0x16e   : > { %v2430_v20 = vpop.f32.mrb[48].mxu1  ;;  %v2367_v22 = vpop.f32.mrb[49].mxu0 }
 0x16f   : > { %v2368_v23 = vadd.f32 %v2367_v22, %v2366_v17  ;;  %v2431_v25 = vpop.f32.mrb[49].mxu1  ;;  %v2369_v28 = vpop.f32.mrb[50].mxu0 }
 0x170   : > { %v2432_v30 = vadd.f32 %v2431_v25, %v2430_v20  ;;  %v2433_v31 = vpop.f32.mrb[50].mxu1  ;;  %v2370_v32 = vpop.f32.mrb[51].mxu0 }
 0x171   : > { %v1546_v5 = vadd.f32 %v2368_v23, %v3157_v19  ;;  %v2371_v33 = vadd.f32 %v2370_v32, %v2369_v28  ;;  %v2434_v34 = vpop.f32.mrb[51].mxu1 }
 0x172   : > { %v2435_v36 = vadd.f32 %v2434_v34, %v2433_v31 }
 0x173   : > { %v1549_v7 = vadd.f32 %v2371_v33, %v3159_v21  ;;  %v3199_v38 = vadd.f32 %v2432_v30, %v1546_v5  ;;  %v3221_v33 = vld [vmem:[%s255_s29] ss:$0 sm:$0xff] }
 0x175   : > { %v2372_v27 = vpop.f32.mrb[52].mxu0  ;;  %v3201_v39 = vadd.f32 %v2435_v36, %v1549_v7 }
 0x176   : > { %v2436_v40 = vpop.f32.mrb[52].mxu1  ;;  %v2373_v42 = vpop.f32.mrb[53].mxu0 }
 0x177   : > { %v2374_v29 = vadd.f32 %v2373_v42, %v2372_v27  ;;  %v2437_v45 = vpop.f32.mrb[53].mxu1  ;;  %v2375_v47 = vpop.f32.mrb[54].mxu0  ;;  %v3224_v27 = vld [vmem:[%s258_s6] ss:$0 sm:$0xff] }
 0x178   : > { %v2438_v48 = vadd.f32 %v2437_v45, %v2436_v40  ;;  %v2439_v49 = vpop.f32.mrb[54].mxu1  ;;  %v2376_v50 = vpop.f32.mrb[55].mxu0 }
 0x179   : > { %v1554_v19 = vadd.f32 %v2374_v29, %v3161_v35  ;;  %v2377_v52 = vadd.f32 %v2376_v50, %v2375_v47  ;;  %v2440_v54 = vpop.f32.mrb[55].mxu1 }
 0x17a   : > { %v2441_v56 = vadd.f32 %v2440_v54, %v2439_v49 }
 0x17b   : > { %v1557_v21 = vadd.f32 %v2377_v52, %v3163_v37  ;;  %v1651_v58 = vadd.f32 %v2438_v48, %v1554_v19 }
 0x17d   : > { %v2378_v41 = vpop.f32.mrb[56].mxu0  ;;  %v1654_v59 = vadd.f32 %v2441_v56, %v1557_v21 }
 0x17e   : > { %v2442_v60 = vpop.f32.mrb[56].mxu1  ;;  %v2379_v61 = vpop.f32.mrb[57].mxu0 }
 0x17f   : > { %v2380_v43 = vadd.f32 %v2379_v61, %v2378_v41  ;;  %v2443_v63 = vpop.f32.mrb[57].mxu1  ;;  %v2381_v1 = vpop.f32.mrb[58].mxu0 }
 0x180   : > { %v2444_v2 = vadd.f32 %v2443_v63, %v2442_v60  ;;  %v2445_v4 = vpop.f32.mrb[58].mxu1  ;;  %v2382_v8 = vpop.f32.mrb[59].mxu0 }
 0x181   : > { %v1562_v9 = vadd.f32 %v2380_v43, %v3165_v51  ;;  %v2383_v10 = vadd.f32 %v2382_v8, %v2381_v1  ;;  %v2446_v35 = vpop.f32.mrb[59].mxu1 }
 0x182   : > { %v2447_v11 = vadd.f32 %v2446_v35, %v2445_v4 }
 0x183   : > { %v1565_v12 = vadd.f32 %v2383_v10, %v3167_v53  ;;  %v3207_v37 = vadd.f32 %v2444_v2, %v1562_v9 }
 0x185   : > { %v2384_v55 = vpop.f32.mrb[60].mxu0  ;;  %v3209_v13 = vadd.f32 %v2447_v11, %v1565_v12 }
 0x186   : > { %v2448_v14 = vpop.f32.mrb[60].mxu1  ;;  %v2385_v15 = vpop.f32.mrb[61].mxu0 }
 0x187   : > { %v2386_v57 = vadd.f32 %v2385_v15, %v2384_v55  ;;  %v2449_v17 = vpop.f32.mrb[61].mxu1  ;;  %v2387_v20 = vpop.f32.mrb[62].mxu0 }
 0x188   : > { %v2450_v22 = vadd.f32 %v2449_v17, %v2448_v14  ;;  %v2451_v23 = vpop.f32.mrb[62].mxu1  ;;  %v2388_v51 = vpop.f32.mrb[63].mxu0 }
 0x189   : > { %v1570_v25 = vadd.f32 %v2386_v57, %v3169_v3  ;;  %v2389_v28 = vadd.f32 %v2388_v51, %v2387_v20  ;;  %v2452_v30 = vpop.f32.mrb[63].mxu1 }
 0x18a   : > { %v2453_v53 = vadd.f32 %v2452_v30, %v2451_v23 }
 0x18b   : > { %v1573_v31 = vadd.f32 %v2389_v28, %v3171_v6  ;;  %v1667_v32 = vadd.f32 %v2450_v22, %v1570_v25 }
 0x18d   : > { %v2488_v5 = vpop.f32.mrb[64].mxu0  ;;  %v1670_v34 = vadd.f32 %v2453_v53, %v1573_v31 }
 0x18e   : > { %v1716_v3 = vadd.f32 %v2488_v5, %v3181_v44  ;;  %v2496_v36 = vpop.f32.mrb[64].mxu1  ;;  %v1707_v7 = vpop.f32.mrb[65].mxu0 }
 0x18f   : > { %v1748_v40 = vadd.f32 %v2496_v36, %v1651_v58  ;;  %v1708_v42 = vadd.f32 %v1707_v7, %v3175_v24  ;;  %v1739_v29 = vpop.f32.mrb[65].mxu1  ;;  %v2489_v6 = vpop.f32.mrb[66].mxu0 }
 0x190   : > { %v1779_v45 = vmul.f32 %v3221_v33, %v1716_v3  ;;  %v1740_v47 = vadd.f32 %v1739_v29, %v3199_v38  ;;  %v1719_v48 = vadd.f32 %v2489_v6, %v3183_v46  ;;  %v2497_v49 = vpop.f32.mrb[66].mxu1  ;;  %v1710_v50 = vpop.f32.mrb[67].mxu0 }
 0x191   : > { %v1787_v19 = vmul.f32 %v3221_v33, %v1748_v40  ;;  %v1777_v44 = vmul.f32 %v3221_v33, %v1708_v42  ;;  %v1751_v52 = vadd.f32 %v2497_v49, %v1654_v59  ;;  %v1711_v54 = vadd.f32 %v1710_v50, %v3177_v26  ;;  %v1742_v56 = vpop.f32.mrb[67].mxu1 }
 0x192   : > { %v1802_v24 = vadd.f32 %v3224_v27, %v1779_v45  ;;  %v1785_v21 = vmul.f32 %v3221_v33, %v1740_v47  ;;  %v1780_v58 = vmul.f32 %v3221_v33, %v1719_v48  ;;  %v1743_v38 = vadd.f32 %v1742_v56, %v3201_v39 }
 0x193   : > { %v1810_v46 = vadd.f32 %v3224_v27, %v1787_v19  ;;  %v1800_v41 = vadd.f32 %v3224_v27, %v1777_v44  ;;  %v1788_v60 = vmul.f32 %v3221_v33, %v1751_v52  ;;  %v1778_v61 = vmul.f32 %v3221_v33, %v1711_v54 }
 0x194   : > { %v1808_v59 = vadd.f32 %v3224_v27, %v1785_v21  ;;  %v1803_v26 = vadd.f32 %v3224_v27, %v1780_v58  ;;  %v1786_v43 = vmul.f32 %v3221_v33, %v1743_v38  ;;  %v1818_v63 = vmax.f32 %v1802_v24, 0.0 }
 0x195   : > { %v1826_v1 = vmax.f32 %v1810_v46, 0.0  ;;  %v1811_v2 = vadd.f32 %v3224_v27, %v1788_v60  ;;  %v1801_v39 = vadd.f32 %v3224_v27, %v1778_v61  ;;  %v2492_v4 = vpop.f32.mrb[68].mxu0  ;;  %v1816_v8 = vmax.f32 %v1800_v41, 0.0 }
 0x196   : > { %v1824_v9 = vmax.f32 %v1808_v59, 0.0  ;;  %v1819_v10 = vmax.f32 %v1803_v26, 0.0  ;;  %v1732_v35 = vadd.f32 %v2492_v4, %v3193_v16  ;;  %v2500_v11 = vpop.f32.mrb[68].mxu1  ;;  %v1723_v12 = vpop.f32.mrb[69].mxu0  ;;  %v1809_v14 = vadd.f32 %v3224_v27, %v1786_v43 }
 0x197   : > { %v1827_v55 = vmax.f32 %v1811_v2, 0.0  ;;  %v1764_v15 = vadd.f32 %v2500_v11, %v1667_v32  ;;  %v1724_v57 = vadd.f32 %v1723_v12, %v3187_v62  ;;  %v1755_v17 = vpop.f32.mrb[69].mxu1  ;;  %v2493_v20 = vpop.f32.mrb[70].mxu0  ;;  %v1817_v22 = vmax.f32 %v1801_v39, 0.0 }
 0x198   : > { %v1783_v23 = vmul.f32 %v3221_v33, %v1732_v35  ;;  %v1756_v51 = vadd.f32 %v1755_v17, %v3207_v37  ;;  %v1735_v25 = vadd.f32 %v2493_v20, %v3195_v18  ;;  %v2501_v28 = vpop.f32.mrb[70].mxu1  ;;  %v1726_v30 = vpop.f32.mrb[71].mxu0  ;;  %v1825_v21 = vmax.f32 %v1809_v14, 0.0 }
 0x199   : > { %v1791_v16 = vmul.f32 %v3221_v33, %v1764_v15  ;;  %v1781_v53 = vmul.f32 %v3221_v33, %v1724_v57  ;;  %v1767_v31 = vadd.f32 %v2501_v28, %v1670_v34  ;;  %v1727_v32 = vadd.f32 %v1726_v30, %v3189_v0  ;;  %v1758_v5 = vpop.f32.mrb[71].mxu1 }
 0x19a   : > { %v1806_v62 = vadd.f32 %v3224_v27, %v1783_v23  ;;  %v1789_v3 = vmul.f32 %v3221_v33, %v1756_v51  ;;  %v1784_v36 = vmul.f32 %v3221_v33, %v1735_v25  ;;  %v1759_v37 = vadd.f32 %v1758_v5, %v3209_v13 }
 0x19b   : > { %v1814_v18 = vadd.f32 %v3224_v27, %v1791_v16  ;;  %v1804_v7 = vadd.f32 %v3224_v27, %v1781_v53  ;;  %v1792_v40 = vmul.f32 %v3221_v33, %v1767_v31  ;;  %v1782_v34 = vmul.f32 %v3221_v33, %v1727_v32 }
 0x19c   : > { %v1822_v42 = vmax.f32 %v1806_v62, 0.0  ;;  %v1812_v0 = vadd.f32 %v3224_v27, %v1789_v3  ;;  %v1807_v29 = vadd.f32 %v3224_v27, %v1784_v36  ;;  %v1790_v6 = vmul.f32 %v3221_v33, %v1759_v37 }
 0x19d   : > { %v1830_v45 = vmax.f32 %v1814_v18, 0.0  ;;  %v1820_v47 = vmax.f32 %v1804_v7, 0.0  ;;  %v1815_v13 = vadd.f32 %v3224_v27, %v1792_v40  ;;  %v1805_v48 = vadd.f32 %v3224_v27, %v1782_v34 }
 0x19e   : > { %v1834_v49 = vmax.f32 %v1818_v63, %v1822_v42  ;;  %v1828_v50 = vmax.f32 %v1812_v0, 0.0  ;;  %v1823_v19 = vmax.f32 %v1807_v29, 0.0  ;;  %v1813_v44 = vadd.f32 %v3224_v27, %v1790_v6 }
 0x19f   : > { %v1838_v52 = vmax.f32 %v1826_v1, %v1830_v45  ;;  %v1832_v54 = vmax.f32 %v1816_v8, %v1820_v47  ;;  %v1831_v56 = vmax.f32 %v1815_v13, 0.0  ;;  %v1821_v24 = vmax.f32 %v1805_v48, 0.0 }
 0x1a0   : > { %v1836_v58 = vmax.f32 %v1824_v9, %v1828_v50  ;;  %v1835_v38 = vmax.f32 %v1819_v10, %v1823_v19  ;;  %v1829_v33 = vmax.f32 %v1813_v44, 0.0 }
 0x1a1   : > { %v1842_v46 = vmax.f32 %v1834_v49, %v1838_v52  ;;  %v1839_v41 = vmax.f32 %v1827_v55, %v1831_v56  ;;  %v1833_v60 = vmax.f32 %v1817_v22, %v1821_v24 }
 0x1a2   : > { %v1840_v61 = vmax.f32 %v1832_v54, %v1836_v58  ;;  %v1837_v59 = vmax.f32 %v1825_v21, %v1829_v33  ;;  %1870 = sbr.rel (!%p2832_p3) target bundleno = 434 (0x1b2), region = 40 }
 0x1a3   : > { %v1843_v26 = vmax.f32 %v1835_v38, %v1839_v41 }
 0x1a4   : > { %v1841_v43 = vmax.f32 %v1833_v60, %v1837_v59 }
 0x1a5   : > { %v2195_v63 = vpack.c.bf16 %v1843_v26, %v1842_v46 }
 0x1a6   : > { %v2190_v2 = vpack.c.bf16 %v1841_v43, %v1840_v61 }
 0x1a7   : > { %2197 = vst [vmem:[%s240_s15 + $0x8] sm:$0xff] %v2195_v63  }
 0x1a8   : > { %2191 = vst [vmem:[%s240_s15] sm:$0xff] %v2190_v2  }
 0x1ae   : > { %v1895_v39 = vld [vmem:[%s240_s15 + $0x8] sm:$0xf]  ;;  %v1897_v4 = vld [vmem:[%s240_s15 + $0xc] sm:$0xf] }
 0x1af   : > { %v1891_v27 = vld [vmem:[%s240_s15] sm:$0xf]  ;;  %v1893_v1 = vld [vmem:[%s240_s15 + $0x4] sm:$0xf]  ;;  %1896 = vst [vmem:[%s1875_s12 + $0x10] sm:$0xf] %v1895_v39 }
 0x1b0   : > { %1892 = vst [vmem:[%s1875_s12] sm:$0xf] %v1891_v27  ;;  %1894 = vst [vmem:[%s1875_s12 + $0x8] sm:$0xf] %v1893_v1 }
 0x1b1   : > { %1898 = vst [vmem:[%s1875_s12 + $0x18] sm:$0xf] %v1897_v4 }
 0x1b2 PF: > { %s14_s19 = sadd.s32 1, %s2773_s19   ;;  %s3297_s15 = smov %s2761_s16 }
 0x1b3   : > { %p11_p9 = scmp.ge.s32.totalorder %s14_s19, 4   ;;  %s3298_s16 = smov %s2841_s25 }
 0x1b4   : > { %s3299_s17 = smov %s2769_s18  ;;  %s3300_s18 = smov %s3302_s21 }
 0x1b5   :  { %13 = sbr.rel (!%p11_p9) target bundleno = 3 (0x3), region = 116 }

// kernel: custom_cnn_forward.8
= control target key start
LH: loop header
LB: loop body
LE: loop exit
PB: predicated region body
PF: predicated region fallthrough
CT: control target
= control target key end

     0   :  { %s3877_s15 = smov 0   ;;  %s3879_s16 = smov 0   ;;  %s4324_s0 = inlined_call_operand.vmem [shape: bf16[32,2304], index: 0, kind: input, shape index: {}]   ;;  %s4325_s1 = inlined_call_operand.vmem [shape: bf16[2,2304,256], index: 1, kind: input, shape index: {}]   ;;  %s4326_s2 = inlined_call_operand.vmem [shape: f32[1,512], index: 2, kind: input, shape index: {}]   ;;  %s4327_s3 = inlined_call_operand.vmem [shape: f32[1,512], index: 3, kind: input, shape index: {}]   ;;  %s4328_s4 = inlined_call_operand.vmem [shape: bf16[8,512], index: 4, kind: output, shape index: {}]  }
   0x1   :  { %s3881_s17 = smov 0  }
   0x2 LB: > { %s23_s18 = sadd.s32 1, %s3846_s16  ;;  %p2887_p0 = scmp.ge.s32.totalorder %s3850_s17, 1  ;;  %s3850_s17 = sphi %s3881_s17, %s14_s17   ;;  %s3846_s16 = sphi %s3879_s16, %s4330_s16   ;;  %s3842_s15 = sphi %s3877_s15, %s4329_s15  }
   0x3   : > { %p24_p1 = scmp.ge.s32.totalorder %s23_s18, 2  ;;  %p208_p2 = scmp.lt.s32.totalorder %s3850_s17, 3 }
   0x5   : > { %s4332_s18 = smov (%p24_p1, %s23_s18), 0  ;;  %p209_p3 = pnand %p2887_p0, %p208_p2 }
   0x6   : > { %p259_p4 = scmp.lt.s32.totalorder (!%p209_p3), %s3842_s15, 1  ;;  %v3440_v0 = vld [vmem:[%s4324_s0 + $0x4] ss:$72 sps:$4 sm:$0xff] (!%p209_p3)  }
   0x7   : > { %212 = sbr.rel (%p209_p3) target bundleno = 571 (0x23b), region = 36  ;;  %v3446_v1 = vld [vmem:[%s4324_s0 + $0x24] ss:$72 sps:$4 sm:$0xff] (!%p209_p3)   ;;  %2260 = vmatprep.mubr.bf16.mxu1 (!%p209_p3), %v3440_v0 }
   0x8   : > { %2472 = vmatprep.mubr.bf16.mxu0 (!%p209_p3), %v3446_v1 }
   0xe   : > { %s260_s21 = scalar_select %p259_p4, %s3842_s15, 1 }
  0x10   : > { %s3317_s24 = smul.u32 2304, %s260_s21 }
  0x12   : > { %s3908_s27 = scalar_lea.vmem %s4325_s1, %s3317_s24 }
  0x13   : > { %v3342_v2 = vld [vmem:[%s3908_s27 + $0x4] ss:$8 sps:$4 sm:$0xff]   ;;  %v3346_v4 = vld [vmem:[%s3908_s27] ss:$8 sps:$4 sm:$0xff]   ;;  %v3348_v6 = vld [vmem:[%s3908_s27 + $0x14] ss:$8 sps:$4 sm:$0xff]  }
  0x14   : > { %v3344_v3 = vld [vmem:[%s3908_s27 + $0x404] ss:$8 sps:$4 sm:$0xff]   ;;  %2228 = vmatprep.subr.bf16.mxu1 %v3342_v2  ;;  %v3347_v5 = vld [vmem:[%s3908_s27 + $0x400] ss:$8 sps:$4 sm:$0xff]   ;;  %v3350_v7 = vld [vmem:[%s3908_s27 + $0x414] ss:$8 sps:$4 sm:$0xff]  }
  0x15   : > { %2440 = vmatprep.subr.bf16.mxu0 %v3344_v3  ;;  %2229 = vmatpush1.bf16.msra.mxu1 %v3346_v4  ;;  %v3352_v8 = vld [vmem:[%s3908_s27 + $0x10] ss:$8 sps:$4 sm:$0xff]   ;;  %v3354_v10 = vld [vmem:[%s3908_s27 + $0x24] ss:$8 sps:$4 sm:$0xff]   ;;  %v3358_v12 = vld [vmem:[%s3908_s27 + $0x20] ss:$8 sps:$4 sm:$0xff]  }
  0x16   : > { %2441 = vmatpush1.bf16.msra.mxu0 %v3347_v5  ;;  %2230 = vmatprep.subr.bf16.mxu1 %v3348_v6  ;;  %v3353_v9 = vld [vmem:[%s3908_s27 + $0x410] ss:$8 sps:$4 sm:$0xff]   ;;  %v3356_v11 = vld [vmem:[%s3908_s27 + $0x424] ss:$8 sps:$4 sm:$0xff]   ;;  %v3359_v13 = vld [vmem:[%s3908_s27 + $0x420] ss:$8 sps:$4 sm:$0xff]  }
  0x17   : > { %2442 = vmatprep.subr.bf16.mxu0 %v3350_v7  ;;  %v3360_v14 = vld [vmem:[%s3908_s27 + $0x34] ss:$8 sps:$4 sm:$0xff]   ;;  %v3364_v16 = vld [vmem:[%s3908_s27 + $0x30] ss:$8 sps:$4 sm:$0xff]   ;;  %v3366_v18 = vld [vmem:[%s3908_s27 + $0x44] ss:$8 sps:$4 sm:$0xff]  }
  0x18   : > { %v3362_v15 = vld [vmem:[%s3908_s27 + $0x434] ss:$8 sps:$4 sm:$0xff]   ;;  %v3365_v17 = vld [vmem:[%s3908_s27 + $0x430] ss:$8 sps:$4 sm:$0xff]   ;;  %v3368_v19 = vld [vmem:[%s3908_s27 + $0x444] ss:$8 sps:$4 sm:$0xff]  }
  0x19   : > { %2231 = vmatpush1.bf16.msra.mxu1 %v3352_v8  ;;  %v3370_v20 = vld [vmem:[%s3908_s27 + $0x40] ss:$8 sps:$4 sm:$0xff]   ;;  %v3372_v22 = vld [vmem:[%s3908_s27 + $0x54] ss:$8 sps:$4 sm:$0xff]   ;;  %v3376_v24 = vld [vmem:[%s3908_s27 + $0x50] ss:$8 sps:$4 sm:$0xff]  }
  0x1a   : > { %2443 = vmatpush1.bf16.msra.mxu0 %v3353_v9  ;;  %2232 = vmatprep.subr.bf16.mxu1 %v3354_v10  ;;  %v3371_v21 = vld [vmem:[%s3908_s27 + $0x440] ss:$8 sps:$4 sm:$0xff]   ;;  %v3374_v23 = vld [vmem:[%s3908_s27 + $0x454] ss:$8 sps:$4 sm:$0xff]   ;;  %v3377_v25 = vld [vmem:[%s3908_s27 + $0x450] ss:$8 sps:$4 sm:$0xff]  }
  0x1b   : > { %2444 = vmatprep.subr.bf16.mxu0 %v3356_v11  ;;  %v3378_v26 = vld [vmem:[%s3908_s27 + $0x64] ss:$8 sps:$4 sm:$0xff]   ;;  %v3382_v28 = vld [vmem:[%s3908_s27 + $0x60] ss:$8 sps:$4 sm:$0xff]   ;;  %v3384_v30 = vld [vmem:[%s3908_s27 + $0x74] ss:$8 sps:$4 sm:$0xff]  }
  0x1c   : > { %v3380_v27 = vld [vmem:[%s3908_s27 + $0x464] ss:$8 sps:$4 sm:$0xff]   ;;  %v3383_v29 = vld [vmem:[%s3908_s27 + $0x460] ss:$8 sps:$4 sm:$0xff]   ;;  %v3386_v31 = vld [vmem:[%s3908_s27 + $0x474] ss:$8 sps:$4 sm:$0xff]  }
  0x1d   : > { %2233 = vmatpush1.bf16.msra.mxu1 %v3358_v12  ;;  %v3388_v32 = vld [vmem:[%s3908_s27 + $0x70] ss:$8 sps:$4 sm:$0xff]   ;;  %v3390_v34 = vld [vmem:[%s3908_s27 + $0x84] ss:$8 sps:$4 sm:$0xff]   ;;  %v3394_v36 = vld [vmem:[%s3908_s27 + $0x80] ss:$8 sps:$4 sm:$0xff]  }
  0x1e   : > { %2445 = vmatpush1.bf16.msra.mxu0 %v3359_v13  ;;  %2234 = vmatprep.subr.bf16.mxu1 %v3360_v14  ;;  %v3389_v33 = vld [vmem:[%s3908_s27 + $0x470] ss:$8 sps:$4 sm:$0xff]   ;;  %v3392_v35 = vld [vmem:[%s3908_s27 + $0x484] ss:$8 sps:$4 sm:$0xff]   ;;  %v3395_v37 = vld [vmem:[%s3908_s27 + $0x480] ss:$8 sps:$4 sm:$0xff]  }
  0x1f   : > { %2446 = vmatprep.subr.bf16.mxu0 %v3362_v15  ;;  %v3396_v38 = vld [vmem:[%s3908_s27 + $0x94] ss:$8 sps:$4 sm:$0xff]   ;;  %v3400_v40 = vld [vmem:[%s3908_s27 + $0x90] ss:$8 sps:$4 sm:$0xff]   ;;  %v3402_v42 = vld [vmem:[%s3908_s27 + $0xa4] ss:$8 sps:$4 sm:$0xff]  }
  0x20   : > { %v3398_v39 = vld [vmem:[%s3908_s27 + $0x494] ss:$8 sps:$4 sm:$0xff]   ;;  %v3401_v41 = vld [vmem:[%s3908_s27 + $0x490] ss:$8 sps:$4 sm:$0xff]   ;;  %v3404_v43 = vld [vmem:[%s3908_s27 + $0x4a4] ss:$8 sps:$4 sm:$0xff]  }
  0x21   : > { %2235 = vmatpush1.bf16.msra.mxu1 %v3364_v16  ;;  %v3406_v44 = vld [vmem:[%s3908_s27 + $0xa0] ss:$8 sps:$4 sm:$0xff]   ;;  %v3408_v46 = vld [vmem:[%s3908_s27 + $0xb4] ss:$8 sps:$4 sm:$0xff]   ;;  %v3412_v48 = vld [vmem:[%s3908_s27 + $0xb0] ss:$8 sps:$4 sm:$0xff]  }
  0x22   : > { %2447 = vmatpush1.bf16.msra.mxu0 %v3365_v17  ;;  %2236 = vmatprep.subr.bf16.mxu1 %v3366_v18  ;;  %v3407_v45 = vld [vmem:[%s3908_s27 + $0x4a0] ss:$8 sps:$4 sm:$0xff]   ;;  %v3410_v47 = vld [vmem:[%s3908_s27 + $0x4b4] ss:$8 sps:$4 sm:$0xff]   ;;  %v3413_v49 = vld [vmem:[%s3908_s27 + $0x4b0] ss:$8 sps:$4 sm:$0xff]  }
  0x23   : > { %2448 = vmatprep.subr.bf16.mxu0 %v3368_v19  ;;  %v3414_v50 = vld [vmem:[%s3908_s27 + $0xc4] ss:$8 sps:$4 sm:$0xff]   ;;  %v3418_v52 = vld [vmem:[%s3908_s27 + $0xc0] ss:$8 sps:$4 sm:$0xff]   ;;  %v3420_v54 = vld [vmem:[%s3908_s27 + $0xd4] ss:$8 sps:$4 sm:$0xff]  }
  0x24   : > { %v3416_v51 = vld [vmem:[%s3908_s27 + $0x4c4] ss:$8 sps:$4 sm:$0xff]   ;;  %v3419_v53 = vld [vmem:[%s3908_s27 + $0x4c0] ss:$8 sps:$4 sm:$0xff]   ;;  %v3422_v55 = vld [vmem:[%s3908_s27 + $0x4d4] ss:$8 sps:$4 sm:$0xff]  }
  0x25   : > { %2237 = vmatpush1.bf16.msra.mxu1 %v3370_v20  ;;  %v3424_v56 = vld [vmem:[%s3908_s27 + $0xd0] ss:$8 sps:$4 sm:$0xff]   ;;  %v3426_v58 = vld [vmem:[%s3908_s27 + $0xe4] ss:$8 sps:$4 sm:$0xff]   ;;  %v3430_v60 = vld [vmem:[%s3908_s27 + $0xe0] ss:$8 sps:$4 sm:$0xff]  }
  0x26   : > { %2449 = vmatpush1.bf16.msra.mxu0 %v3371_v21  ;;  %2238 = vmatprep.subr.bf16.mxu1 %v3372_v22  ;;  %v3425_v57 = vld [vmem:[%s3908_s27 + $0x4d0] ss:$8 sps:$4 sm:$0xff]   ;;  %v3428_v59 = vld [vmem:[%s3908_s27 + $0x4e4] ss:$8 sps:$4 sm:$0xff]   ;;  %v3431_v61 = vld [vmem:[%s3908_s27 + $0x4e0] ss:$8 sps:$4 sm:$0xff]  }
  0x27   : > { %2450 = vmatprep.subr.bf16.mxu0 %v3374_v23  ;;  %v3432_v62 = vld [vmem:[%s3908_s27 + $0xf4] ss:$8 sps:$4 sm:$0xff]   ;;  %v3436_v0 = vld [vmem:[%s3908_s27 + $0xf0] ss:$8 sps:$4 sm:$0xff]   ;;  %v3443_v2 = vld [vmem:[%s3908_s27 + $0x104] ss:$8 sps:$4 sm:$0xff]  }
  0x28   : > { %v3434_v63 = vld [vmem:[%s3908_s27 + $0x4f4] ss:$8 sps:$4 sm:$0xff]   ;;  %v3437_v1 = vld [vmem:[%s3908_s27 + $0x4f0] ss:$8 sps:$4 sm:$0xff]   ;;  %v3449_v3 = vld [vmem:[%s3908_s27 + $0x504] ss:$8 sps:$4 sm:$0xff]  }
  0x29   : > { %2239 = vmatpush1.bf16.msra.mxu1 %v3376_v24  ;;  %v3438_v4 = vld [vmem:[%s4324_s0] ss:$72 sps:$4 sm:$0xff]   ;;  %v3452_v8 = vld [vmem:[%s3908_s27 + $0x114] ss:$8 sps:$4 sm:$0xff]   ;;  %v3450_v12 = vld [vmem:[%s3908_s27 + $0x110] ss:$8 sps:$4 sm:$0xff]  }
  0x2a   : > { %2451 = vmatpush1.bf16.msra.mxu0 %v3377_v25  ;;  %2240 = vmatprep.subr.bf16.mxu1 %v3378_v26  ;;  %v3444_v5 = vld [vmem:[%s4324_s0 + $0x20] ss:$72 sps:$4 sm:$0xff]   ;;  %v3455_v9 = vld [vmem:[%s3908_s27 + $0x514] ss:$8 sps:$4 sm:$0xff]   ;;  %v3453_v13 = vld [vmem:[%s3908_s27 + $0x510] ss:$8 sps:$4 sm:$0xff]  }
  0x2b   : > { %2452 = vmatprep.subr.bf16.mxu0 %v3380_v27  ;;  %v3441_v6 = vld [vmem:[%s3908_s27 + $0x100] ss:$8 sps:$4 sm:$0xff]   ;;  %v3528_v10 = vld [vmem:[%s4324_s0 + $0x94] ss:$72 sps:$4 sm:$0xff]   ;;  %v3458_v14 = vld [vmem:[%s3908_s27 + $0x124] ss:$8 sps:$4 sm:$0xff]  }
  0x2c   : > { %v3447_v7 = vld [vmem:[%s3908_s27 + $0x500] ss:$8 sps:$4 sm:$0xff]   ;;  %v3533_v11 = vld [vmem:[%s4324_s0 + $0xb4] ss:$72 sps:$4 sm:$0xff]   ;;  %v3461_v15 = vld [vmem:[%s3908_s27 + $0x524] ss:$8 sps:$4 sm:$0xff]  }
  0x2d   : > { %2241 = vmatpush1.bf16.msra.mxu1 %v3382_v28  ;;  %v3538_v16 = vld [vmem:[%s4324_s0 + $0x90] ss:$72 sps:$4 sm:$0xff]   ;;  %v3456_v18 = vld [vmem:[%s3908_s27 + $0x120] ss:$8 sps:$4 sm:$0xff]   ;;  %v3464_v20 = vld [vmem:[%s3908_s27 + $0x134] ss:$8 sps:$4 sm:$0xff]  }
  0x2e   : > { %2453 = vmatpush1.bf16.msra.mxu0 %v3383_v29  ;;  %2242 = vmatprep.subr.bf16.mxu1 %v3384_v30  ;;  %v3539_v17 = vld [vmem:[%s4324_s0 + $0xb0] ss:$72 sps:$4 sm:$0xff]   ;;  %v3459_v19 = vld [vmem:[%s3908_s27 + $0x520] ss:$8 sps:$4 sm:$0xff]   ;;  %v3467_v21 = vld [vmem:[%s3908_s27 + $0x534] ss:$8 sps:$4 sm:$0xff]  }
  0x2f   : > { %2454 = vmatprep.subr.bf16.mxu0 %v3386_v31  ;;  %v3462_v22 = vld [vmem:[%s3908_s27 + $0x130] ss:$8 sps:$4 sm:$0xff]   ;;  %v3470_v24 = vld [vmem:[%s3908_s27 + $0x144] ss:$8 sps:$4 sm:$0xff]   ;;  %v3468_v26 = vld [vmem:[%s3908_s27 + $0x140] ss:$8 sps:$4 sm:$0xff]  }
  0x30   : > { %v3465_v23 = vld [vmem:[%s3908_s27 + $0x530] ss:$8 sps:$4 sm:$0xff]   ;;  %v3473_v25 = vld [vmem:[%s3908_s27 + $0x544] ss:$8 sps:$4 sm:$0xff]   ;;  %v3471_v27 = vld [vmem:[%s3908_s27 + $0x540] ss:$8 sps:$4 sm:$0xff]  }
  0x31   : > { %2243 = vmatpush1.bf16.msra.mxu1 %v3388_v32  ;;  %v3476_v28 = vld [vmem:[%s3908_s27 + $0x154] ss:$8 sps:$4 sm:$0xff]   ;;  %v3474_v30 = vld [vmem:[%s3908_s27 + $0x150] ss:$8 sps:$4 sm:$0xff]   ;;  %v3482_v32 = vld [vmem:[%s3908_s27 + $0x164] ss:$8 sps:$4 sm:$0xff]  }
  0x32   : > { %2455 = vmatpush1.bf16.msra.mxu0 %v3389_v33  ;;  %2244 = vmatprep.subr.bf16.mxu1 %v3390_v34  ;;  %v3479_v29 = vld [vmem:[%s3908_s27 + $0x554] ss:$8 sps:$4 sm:$0xff]   ;;  %v3477_v31 = vld [vmem:[%s3908_s27 + $0x550] ss:$8 sps:$4 sm:$0xff]   ;;  %v3485_v33 = vld [vmem:[%s3908_s27 + $0x564] ss:$8 sps:$4 sm:$0xff]  }
  0x33   : > { %2456 = vmatprep.subr.bf16.mxu0 %v3392_v35  ;;  %v3548_v34 = vld [vmem:[%s4324_s0 + $0xc] ss:$72 sps:$4 sm:$0xff]   ;;  %v3480_v35 = vld [vmem:[%s3908_s27 + $0x160] ss:$8 sps:$4 sm:$0xff]  }
  0x35   : > { %2245 = vmatpush1.bf16.msra.mxu1 %v3394_v36  ;;  %v3483_v36 = vld [vmem:[%s3908_s27 + $0x560] ss:$8 sps:$4 sm:$0xff]  }
  0x36   : > { %2457 = vmatpush1.bf16.msra.mxu0 %v3395_v37  ;;  %2246 = vmatprep.subr.bf16.mxu1 %v3396_v38  ;;  %v3554_v37 = vld [vmem:[%s4324_s0 + $0x2c] ss:$72 sps:$4 sm:$0xff]  }
  0x37   : > { %2458 = vmatprep.subr.bf16.mxu0 %v3398_v39  ;;  %v3488_v38 = vld [vmem:[%s3908_s27 + $0x174] ss:$8 sps:$4 sm:$0xff]  }
  0x38   : > { %v3491_v39 = vld [vmem:[%s3908_s27 + $0x574] ss:$8 sps:$4 sm:$0xff]  }
  0x39   : > { %2247 = vmatpush1.bf16.msra.mxu1 %v3400_v40  ;;  %v3486_v40 = vld [vmem:[%s3908_s27 + $0x170] ss:$8 sps:$4 sm:$0xff]  }
  0x3a   : > { %2459 = vmatpush1.bf16.msra.mxu0 %v3401_v41  ;;  %2248 = vmatprep.subr.bf16.mxu1 %v3402_v42  ;;  %v3489_v41 = vld [vmem:[%s3908_s27 + $0x570] ss:$8 sps:$4 sm:$0xff]   ;;  %v3494_v42 = vld [vmem:[%s3908_s27 + $0x184] ss:$8 sps:$4 sm:$0xff]  }
  0x3b   : > { %2460 = vmatprep.subr.bf16.mxu0 %v3404_v43  ;;  %v3497_v43 = vld [vmem:[%s3908_s27 + $0x584] ss:$8 sps:$4 sm:$0xff]  }
  0x3d   : > { %2249 = vmatpush1.bf16.msra.mxu1 %v3406_v44  ;;  %v3492_v44 = vld [vmem:[%s3908_s27 + $0x180] ss:$8 sps:$4 sm:$0xff]  }
  0x3e   : > { %2461 = vmatpush1.bf16.msra.mxu0 %v3407_v45  ;;  %2250 = vmatprep.subr.bf16.mxu1 %v3408_v46  ;;  %v3495_v45 = vld [vmem:[%s3908_s27 + $0x580] ss:$8 sps:$4 sm:$0xff]   ;;  %v3500_v46 = vld [vmem:[%s3908_s27 + $0x194] ss:$8 sps:$4 sm:$0xff]  }
  0x3f   : > { %2462 = vmatprep.subr.bf16.mxu0 %v3410_v47  ;;  %v3503_v47 = vld [vmem:[%s3908_s27 + $0x594] ss:$8 sps:$4 sm:$0xff]  }
  0x41   : > { %2251 = vmatpush1.bf16.msra.mxu1 %v3412_v48  ;;  %v3498_v48 = vld [vmem:[%s3908_s27 + $0x190] ss:$8 sps:$4 sm:$0xff]  }
  0x42   : > { %2463 = vmatpush1.bf16.msra.mxu0 %v3413_v49  ;;  %2252 = vmatprep.subr.bf16.mxu1 %v3414_v50  ;;  %v3501_v49 = vld [vmem:[%s3908_s27 + $0x590] ss:$8 sps:$4 sm:$0xff]   ;;  %v3506_v50 = vld [vmem:[%s3908_s27 + $0x1a4] ss:$8 sps:$4 sm:$0xff]  }
  0x43   : > { %2464 = vmatprep.subr.bf16.mxu0 %v3416_v51  ;;  %v3509_v51 = vld [vmem:[%s3908_s27 + $0x5a4] ss:$8 sps:$4 sm:$0xff]  }
  0x45   : > { %2253 = vmatpush1.bf16.msra.mxu1 %v3418_v52  ;;  %v3504_v52 = vld [vmem:[%s3908_s27 + $0x1a0] ss:$8 sps:$4 sm:$0xff]  }
  0x46   : > { %2465 = vmatpush1.bf16.msra.mxu0 %v3419_v53  ;;  %2254 = vmatprep.subr.bf16.mxu1 %v3420_v54  ;;  %v3507_v53 = vld [vmem:[%s3908_s27 + $0x5a0] ss:$8 sps:$4 sm:$0xff]   ;;  %v3512_v54 = vld [vmem:[%s3908_s27 + $0x1b4] ss:$8 sps:$4 sm:$0xff]  }
  0x47   : > { %2466 = vmatprep.subr.bf16.mxu0 %v3422_v55  ;;  %v3515_v55 = vld [vmem:[%s3908_s27 + $0x5b4] ss:$8 sps:$4 sm:$0xff]  }
  0x49   : > { %2255 = vmatpush1.bf16.msra.mxu1 %v3424_v56  ;;  %v3510_v56 = vld [vmem:[%s3908_s27 + $0x1b0] ss:$8 sps:$4 sm:$0xff]  }
  0x4a   : > { %2467 = vmatpush1.bf16.msra.mxu0 %v3425_v57  ;;  %2256 = vmatprep.subr.bf16.mxu1 %v3426_v58  ;;  %v3513_v57 = vld [vmem:[%s3908_s27 + $0x5b0] ss:$8 sps:$4 sm:$0xff]   ;;  %v3518_v58 = vld [vmem:[%s3908_s27 + $0x1c4] ss:$8 sps:$4 sm:$0xff]  }
  0x4b   : > { %2468 = vmatprep.subr.bf16.mxu0 %v3428_v59  ;;  %v3521_v59 = vld [vmem:[%s3908_s27 + $0x5c4] ss:$8 sps:$4 sm:$0xff]  }
  0x4d   : > { %2257 = vmatpush1.bf16.msra.mxu1 %v3430_v60  ;;  %v3516_v60 = vld [vmem:[%s3908_s27 + $0x1c0] ss:$8 sps:$4 sm:$0xff]  }
  0x4e   : > { %2469 = vmatpush1.bf16.msra.mxu0 %v3431_v61  ;;  %2258 = vmatprep.subr.bf16.mxu1 %v3432_v62  ;;  %v3519_v61 = vld [vmem:[%s3908_s27 + $0x5c0] ss:$8 sps:$4 sm:$0xff]   ;;  %v3524_v62 = vld [vmem:[%s3908_s27 + $0x1d4] ss:$8 sps:$4 sm:$0xff]  }
  0x4f   : > { %2470 = vmatprep.subr.bf16.mxu0 %v3434_v63  ;;  %v3527_v63 = vld [vmem:[%s3908_s27 + $0x5d4] ss:$8 sps:$4 sm:$0xff]  }
  0x51   : > { %2259 = vmatpush1.bf16.msra.mxu1 %v3436_v0  ;;  %v3522_v0 = vld [vmem:[%s3908_s27 + $0x1d0] ss:$8 sps:$4 sm:$0xff]  }
  0x52   : > { %2471 = vmatpush1.bf16.msra.mxu0 %v3437_v1  ;;  %2281 = vmatprep.subr.bf16.mxu1 %v3443_v2  ;;  %v3525_v1 = vld [vmem:[%s3908_s27 + $0x5d0] ss:$8 sps:$4 sm:$0xff]   ;;  %v3532_v2 = vld [vmem:[%s3908_s27 + $0x1e4] ss:$8 sps:$4 sm:$0xff]  }
  0x53   : > { %2493 = vmatprep.subr.bf16.mxu0 %v3449_v3  ;;  %v3537_v3 = vld [vmem:[%s3908_s27 + $0x5e4] ss:$8 sps:$4 sm:$0xff]  }
  0x54   : > { %2261 = vmatmul.mubr.bf16.vlgmr.msra.gmra.mrb[0].mxu1 %v3438_v4  ;;  %v3530_v4 = vld [vmem:[%s3908_s27 + $0x1e0] ss:$8 sps:$4 sm:$0xff]  }
  0x55   : > { %2473 = vmatmul.mubr.bf16.vlgmr.msra.gmra.mrb[0].mxu0 %v3444_v5  ;;  %2282 = vmatpush1.bf16.msra.mxu1 %v3441_v6  ;;  %v3535_v5 = vld [vmem:[%s3908_s27 + $0x5e0] ss:$8 sps:$4 sm:$0xff]   ;;  %v3542_v6 = vld [vmem:[%s3908_s27 + $0x1f4] ss:$8 sps:$4 sm:$0xff]  }
  0x56   : > { %2494 = vmatpush1.bf16.msra.mxu0 %v3447_v7  ;;  %2283 = vmatprep.subr.bf16.mxu1 %v3452_v8  ;;  %v3545_v7 = vld [vmem:[%s3908_s27 + $0x5f4] ss:$8 sps:$4 sm:$0xff]   ;;  %v3540_v8 = vld [vmem:[%s3908_s27 + $0x1f0] ss:$8 sps:$4 sm:$0xff]  }
  0x57   : > { %2495 = vmatprep.subr.bf16.mxu0 %v3455_v9  ;;  %2270 = vmatprep.mubr.bf16.mxu1 %v3528_v10  ;;  %v3543_v9 = vld [vmem:[%s3908_s27 + $0x5f0] ss:$8 sps:$4 sm:$0xff]  }
  0x58   : > { %2482 = vmatprep.mubr.bf16.mxu0 %v3533_v11  ;;  %v3546_v10 = vld [vmem:[%s4324_s0 + $0x8] ss:$72 sps:$4 sm:$0xff]   ;;  %v3551_v11 = vld [vmem:[%s3908_s27 + $0x204] ss:$8 sps:$4 sm:$0xff]  }
  0x59   : > { %2284 = vmatpush1.bf16.msra.mxu1 %v3450_v12  ;;  %v3557_v12 = vld [vmem:[%s3908_s27 + $0x604] ss:$8 sps:$4 sm:$0xff]  }
  0x5a   : > { %2496 = vmatpush1.bf16.msra.mxu0 %v3453_v13  ;;  %2285 = vmatprep.subr.bf16.mxu1 %v3458_v14  ;;  %v3549_v13 = vld [vmem:[%s3908_s27 + $0x200] ss:$8 sps:$4 sm:$0xff]  }
  0x5b   : > { %2497 = vmatprep.subr.bf16.mxu0 %v3461_v15  ;;  %v3552_v14 = vld [vmem:[%s4324_s0 + $0x28] ss:$72 sps:$4 sm:$0xff]  }
  0x5c   : > { %2271 = vmatmul.mubr.bf16.gmra.mrb[4].mxu1 %v3538_v16  ;;  %v3555_v15 = vld [vmem:[%s3908_s27 + $0x600] ss:$8 sps:$4 sm:$0xff]   ;;  %v3560_v16 = vld [vmem:[%s3908_s27 + $0x214] ss:$8 sps:$4 sm:$0xff]  }
  0x5d   : > { %2483 = vmatmul.mubr.bf16.gmra.mrb[4].mxu0 %v3539_v17  ;;  %2286 = vmatpush1.bf16.msra.mxu1 %v3456_v18  ;;  %v3563_v17 = vld [vmem:[%s3908_s27 + $0x614] ss:$8 sps:$4 sm:$0xff]  }
  0x5e   : > { %2498 = vmatpush1.bf16.msra.mxu0 %v3459_v19  ;;  %2287 = vmatprep.subr.bf16.mxu1 %v3464_v20  ;;  %v3636_v18 = vld [vmem:[%s4324_s0 + $0x9c] ss:$72 sps:$4 sm:$0xff]   ;;  %v3558_v20 = vld [vmem:[%s3908_s27 + $0x210] ss:$8 sps:$4 sm:$0xff]  }
  0x5f   : > { %2499 = vmatprep.subr.bf16.mxu0 %v3467_v21  ;;  %2313 = vmatprep.mubr.bf16.mxu1 %v3548_v34  ;;  %v3641_v19 = vld [vmem:[%s4324_s0 + $0xbc] ss:$72 sps:$4 sm:$0xff]   ;;  %v3561_v21 = vld [vmem:[%s3908_s27 + $0x610] ss:$8 sps:$4 sm:$0xff]  }
  0x60   : > { %2525 = vmatprep.mubr.bf16.mxu0 %v3554_v37  ;;  %v3578_v34 = vld [vmem:[%s3908_s27 + $0x244] ss:$8 sps:$4 sm:$0xff]   ;;  %v3579_v37 = vld [vmem:[%s3908_s27 + $0x640] ss:$8 sps:$4 sm:$0xff]  }
  0x61   : > { %2288 = vmatpush1.bf16.msra.mxu1 %v3462_v22  ;;  %v3566_v22 = vld [vmem:[%s3908_s27 + $0x224] ss:$8 sps:$4 sm:$0xff]  }
  0x62   : > { %2500 = vmatpush1.bf16.msra.mxu0 %v3465_v23  ;;  %2289 = vmatprep.subr.bf16.mxu1 %v3470_v24  ;;  %v3569_v23 = vld [vmem:[%s3908_s27 + $0x624] ss:$8 sps:$4 sm:$0xff]   ;;  %v3564_v24 = vld [vmem:[%s3908_s27 + $0x220] ss:$8 sps:$4 sm:$0xff]  }
  0x63   : > { %2501 = vmatprep.subr.bf16.mxu0 %v3473_v25  ;;  %v3567_v25 = vld [vmem:[%s3908_s27 + $0x620] ss:$8 sps:$4 sm:$0xff]  }
  0x65   : > { %2290 = vmatpush1.bf16.msra.mxu1 %v3468_v26  ;;  %v3646_v26 = vld [vmem:[%s4324_s0 + $0x98] ss:$72 sps:$4 sm:$0xff]  }
  0x66   : > { %2502 = vmatpush1.bf16.msra.mxu0 %v3471_v27  ;;  %2291 = vmatprep.subr.bf16.mxu1 %v3476_v28  ;;  %v3647_v27 = vld [vmem:[%s4324_s0 + $0xb8] ss:$72 sps:$4 sm:$0xff]   ;;  %v3572_v28 = vld [vmem:[%s3908_s27 + $0x234] ss:$8 sps:$4 sm:$0xff]  }
  0x67   : > { %2503 = vmatprep.subr.bf16.mxu0 %v3479_v29  ;;  %v3575_v29 = vld [vmem:[%s3908_s27 + $0x634] ss:$8 sps:$4 sm:$0xff]  }
  0x69   : > { %2292 = vmatpush1.bf16.msra.mxu1 %v3474_v30  ;;  %v3656_v30 = vld [vmem:[%s4324_s0 + $0x14] ss:$72 sps:$4 sm:$0xff]  }
  0x6a   : > { %2504 = vmatpush1.bf16.msra.mxu0 %v3477_v31  ;;  %2293 = vmatprep.subr.bf16.mxu1 %v3482_v32  ;;  %v3662_v31 = vld [vmem:[%s4324_s0 + $0x34] ss:$72 sps:$4 sm:$0xff]   ;;  %v3570_v32 = vld [vmem:[%s3908_s27 + $0x230] ss:$8 sps:$4 sm:$0xff]  }
  0x6b   : > { %2505 = vmatprep.subr.bf16.mxu0 %v3485_v33  ;;  %v3573_v33 = vld [vmem:[%s3908_s27 + $0x630] ss:$8 sps:$4 sm:$0xff]  }
  0x6d   : > { %2294 = vmatpush1.bf16.msra.mxu1 %v3480_v35  ;;  %v3581_v35 = vld [vmem:[%s3908_s27 + $0x644] ss:$8 sps:$4 sm:$0xff]  }
  0x6e   : > { %2506 = vmatpush1.bf16.msra.mxu0 %v3483_v36  ;;  %2295 = vmatprep.subr.bf16.mxu1 %v3488_v38  ;;  %v3576_v36 = vld [vmem:[%s3908_s27 + $0x240] ss:$8 sps:$4 sm:$0xff]   ;;  %v3584_v38 = vld [vmem:[%s3908_s27 + $0x254] ss:$8 sps:$4 sm:$0xff]  }
  0x6f   : > { %2507 = vmatprep.subr.bf16.mxu0 %v3491_v39  ;;  %v3587_v39 = vld [vmem:[%s3908_s27 + $0x654] ss:$8 sps:$4 sm:$0xff]  }
  0x71   : > { %2296 = vmatpush1.bf16.msra.mxu1 %v3486_v40  ;;  %v3582_v40 = vld [vmem:[%s3908_s27 + $0x250] ss:$8 sps:$4 sm:$0xff]  }
  0x72   : > { %2508 = vmatpush1.bf16.msra.mxu0 %v3489_v41  ;;  %2297 = vmatprep.subr.bf16.mxu1 %v3494_v42  ;;  %v3585_v41 = vld [vmem:[%s3908_s27 + $0x650] ss:$8 sps:$4 sm:$0xff]   ;;  %v3590_v42 = vld [vmem:[%s3908_s27 + $0x264] ss:$8 sps:$4 sm:$0xff]  }
  0x73   : > { %2509 = vmatprep.subr.bf16.mxu0 %v3497_v43  ;;  %v3593_v43 = vld [vmem:[%s3908_s27 + $0x664] ss:$8 sps:$4 sm:$0xff]  }
  0x75   : > { %2298 = vmatpush1.bf16.msra.mxu1 %v3492_v44  ;;  %v3588_v44 = vld [vmem:[%s3908_s27 + $0x260] ss:$8 sps:$4 sm:$0xff]  }
  0x76   : > { %2510 = vmatpush1.bf16.msra.mxu0 %v3495_v45  ;;  %2299 = vmatprep.subr.bf16.mxu1 %v3500_v46  ;;  %v3591_v45 = vld [vmem:[%s3908_s27 + $0x660] ss:$8 sps:$4 sm:$0xff]   ;;  %v3596_v46 = vld [vmem:[%s3908_s27 + $0x274] ss:$8 sps:$4 sm:$0xff]  }
  0x77   : > { %2511 = vmatprep.subr.bf16.mxu0 %v3503_v47  ;;  %v3599_v47 = vld [vmem:[%s3908_s27 + $0x674] ss:$8 sps:$4 sm:$0xff]  }
  0x79   : > { %2300 = vmatpush1.bf16.msra.mxu1 %v3498_v48  ;;  %v3594_v48 = vld [vmem:[%s3908_s27 + $0x270] ss:$8 sps:$4 sm:$0xff]  }
  0x7a   : > { %2512 = vmatpush1.bf16.msra.mxu0 %v3501_v49  ;;  %2301 = vmatprep.subr.bf16.mxu1 %v3506_v50  ;;  %v3597_v49 = vld [vmem:[%s3908_s27 + $0x670] ss:$8 sps:$4 sm:$0xff]   ;;  %v3602_v50 = vld [vmem:[%s3908_s27 + $0x284] ss:$8 sps:$4 sm:$0xff]  }
  0x7b   : > { %2513 = vmatprep.subr.bf16.mxu0 %v3509_v51  ;;  %v3605_v51 = vld [vmem:[%s3908_s27 + $0x684] ss:$8 sps:$4 sm:$0xff]  }
  0x7d   : > { %2302 = vmatpush1.bf16.msra.mxu1 %v3504_v52  ;;  %v3600_v52 = vld [vmem:[%s3908_s27 + $0x280] ss:$8 sps:$4 sm:$0xff]  }
  0x7e   : > { %2514 = vmatpush1.bf16.msra.mxu0 %v3507_v53  ;;  %2303 = vmatprep.subr.bf16.mxu1 %v3512_v54  ;;  %v3603_v53 = vld [vmem:[%s3908_s27 + $0x680] ss:$8 sps:$4 sm:$0xff]   ;;  %v3608_v54 = vld [vmem:[%s3908_s27 + $0x294] ss:$8 sps:$4 sm:$0xff]  }
  0x7f   : > { %2515 = vmatprep.subr.bf16.mxu0 %v3515_v55  ;;  %v3611_v55 = vld [vmem:[%s3908_s27 + $0x694] ss:$8 sps:$4 sm:$0xff]  }
  0x81   : > { %2304 = vmatpush1.bf16.msra.mxu1 %v3510_v56  ;;  %v3606_v56 = vld [vmem:[%s3908_s27 + $0x290] ss:$8 sps:$4 sm:$0xff]  }
  0x82   : > { %2516 = vmatpush1.bf16.msra.mxu0 %v3513_v57  ;;  %2305 = vmatprep.subr.bf16.mxu1 %v3518_v58  ;;  %v3609_v57 = vld [vmem:[%s3908_s27 + $0x690] ss:$8 sps:$4 sm:$0xff]   ;;  %v3614_v58 = vld [vmem:[%s3908_s27 + $0x2a4] ss:$8 sps:$4 sm:$0xff]  }
  0x83   : > { %2517 = vmatprep.subr.bf16.mxu0 %v3521_v59  ;;  %v3617_v59 = vld [vmem:[%s3908_s27 + $0x6a4] ss:$8 sps:$4 sm:$0xff]  }
  0x85   : > { %2306 = vmatpush1.bf16.msra.mxu1 %v3516_v60  ;;  %v3612_v60 = vld [vmem:[%s3908_s27 + $0x2a0] ss:$8 sps:$4 sm:$0xff]  }
  0x86   : > { %2518 = vmatpush1.bf16.msra.mxu0 %v3519_v61  ;;  %2307 = vmatprep.subr.bf16.mxu1 %v3524_v62  ;;  %v3615_v61 = vld [vmem:[%s3908_s27 + $0x6a0] ss:$8 sps:$4 sm:$0xff]   ;;  %v3620_v62 = vld [vmem:[%s3908_s27 + $0x2b4] ss:$8 sps:$4 sm:$0xff]  }
  0x87   : > { %2519 = vmatprep.subr.bf16.mxu0 %v3527_v63  ;;  %v3623_v63 = vld [vmem:[%s3908_s27 + $0x6b4] ss:$8 sps:$4 sm:$0xff]  }
  0x89   : > { %2308 = vmatpush1.bf16.msra.mxu1 %v3522_v0  ;;  %v3618_v0 = vld [vmem:[%s3908_s27 + $0x2b0] ss:$8 sps:$4 sm:$0xff]  }
  0x8a   : > { %2520 = vmatpush1.bf16.msra.mxu0 %v3525_v1  ;;  %2309 = vmatprep.subr.bf16.mxu1 %v3532_v2  ;;  %v3621_v1 = vld [vmem:[%s3908_s27 + $0x6b0] ss:$8 sps:$4 sm:$0xff]   ;;  %v3626_v2 = vld [vmem:[%s3908_s27 + $0x2c4] ss:$8 sps:$4 sm:$0xff]  }
  0x8b   : > { %2521 = vmatprep.subr.bf16.mxu0 %v3537_v3  ;;  %v3629_v3 = vld [vmem:[%s3908_s27 + $0x6c4] ss:$8 sps:$4 sm:$0xff]  }
  0x8d   : > { %2310 = vmatpush1.bf16.msra.mxu1 %v3530_v4  ;;  %v3624_v4 = vld [vmem:[%s3908_s27 + $0x2c0] ss:$8 sps:$4 sm:$0xff]  }
  0x8e   : > { %2522 = vmatpush1.bf16.msra.mxu0 %v3535_v5  ;;  %2311 = vmatprep.subr.bf16.mxu1 %v3542_v6  ;;  %v3627_v5 = vld [vmem:[%s3908_s27 + $0x6c0] ss:$8 sps:$4 sm:$0xff]   ;;  %v3632_v6 = vld [vmem:[%s3908_s27 + $0x2d4] ss:$8 sps:$4 sm:$0xff]  }
  0x8f   : > { %2523 = vmatprep.subr.bf16.mxu0 %v3545_v7  ;;  %v3635_v7 = vld [vmem:[%s3908_s27 + $0x6d4] ss:$8 sps:$4 sm:$0xff]  }
  0x91   : > { %2312 = vmatpush1.bf16.msra.mxu1 %v3540_v8  ;;  %v3630_v8 = vld [vmem:[%s3908_s27 + $0x2d0] ss:$8 sps:$4 sm:$0xff]  }
  0x92   : > { %2524 = vmatpush1.bf16.msra.mxu0 %v3543_v9  ;;  %2334 = vmatprep.subr.bf16.mxu1 %v3551_v11  ;;  %v3633_v9 = vld [vmem:[%s3908_s27 + $0x6d0] ss:$8 sps:$4 sm:$0xff]   ;;  %v3645_v11 = vld [vmem:[%s3908_s27 + $0x6e4] ss:$8 sps:$4 sm:$0xff]  }
  0x93   : > { %2546 = vmatprep.subr.bf16.mxu0 %v3557_v12  ;;  %v3638_v12 = vld [vmem:[%s3908_s27 + $0x2e0] ss:$8 sps:$4 sm:$0xff]  }
  0x94   : > { %2314 = vmatmul.mubr.bf16.vlgmr.msra.gmra.mrb[0].mxu1 %v3546_v10  ;;  %v3640_v10 = vld [vmem:[%s3908_s27 + $0x2e4] ss:$8 sps:$4 sm:$0xff]  }
  0x95   : > { %2526 = vmatmul.mubr.bf16.vlgmr.msra.gmra.mrb[0].mxu0 %v3552_v14  ;;  %2335 = vmatpush1.bf16.msra.mxu1 %v3549_v13  ;;  %v3643_v13 = vld [vmem:[%s3908_s27 + $0x6e0] ss:$8 sps:$4 sm:$0xff]   ;;  %v3650_v14 = vld [vmem:[%s3908_s27 + $0x2f4] ss:$8 sps:$4 sm:$0xff]  }
  0x96   : > { %2547 = vmatpush1.bf16.msra.mxu0 %v3555_v15  ;;  %2336 = vmatprep.subr.bf16.mxu1 %v3560_v16  ;;  %v3653_v15 = vld [vmem:[%s3908_s27 + $0x6f4] ss:$8 sps:$4 sm:$0xff]   ;;  %v3648_v16 = vld [vmem:[%s3908_s27 + $0x2f0] ss:$8 sps:$4 sm:$0xff]  }
  0x97   : > { %2548 = vmatprep.subr.bf16.mxu0 %v3563_v17  ;;  %2323 = vmatprep.mubr.bf16.mxu1 %v3636_v18  ;;  %v3651_v17 = vld [vmem:[%s3908_s27 + $0x6f0] ss:$8 sps:$4 sm:$0xff]   ;;  %v3659_v18 = vld [vmem:[%s3908_s27 + $0x304] ss:$8 sps:$4 sm:$0xff]  }
  0x98   : > { %2535 = vmatprep.mubr.bf16.mxu0 %v3641_v19  ;;  %v3654_v19 = vld [vmem:[%s4324_s0 + $0x10] ss:$72 sps:$4 sm:$0xff]  }
  0x99   : > { %2337 = vmatpush1.bf16.msra.mxu1 %v3558_v20  ;;  %v3665_v20 = vld [vmem:[%s3908_s27 + $0x704] ss:$8 sps:$4 sm:$0xff]  }
  0x9a   : > { %2549 = vmatpush1.bf16.msra.mxu0 %v3561_v21  ;;  %2338 = vmatprep.subr.bf16.mxu1 %v3566_v22  ;;  %v3657_v21 = vld [vmem:[%s3908_s27 + $0x300] ss:$8 sps:$4 sm:$0xff]   ;;  %v3660_v22 = vld [vmem:[%s4324_s0 + $0x30] ss:$72 sps:$4 sm:$0xff]  }
  0x9b   : > { %2550 = vmatprep.subr.bf16.mxu0 %v3569_v23  ;;  %v3663_v23 = vld [vmem:[%s3908_s27 + $0x700] ss:$8 sps:$4 sm:$0xff]  }
  0x9c   : > { %2324 = vmatmul.mubr.bf16.gmra.mrb[4].mxu1 %v3646_v26  ;;  %v3744_v26 = vld [vmem:[%s4324_s0 + $0xa4] ss:$72 sps:$4 sm:$0xff]  }
  0x9d   : > { %2536 = vmatmul.mubr.bf16.gmra.mrb[4].mxu0 %v3647_v27  ;;  %2339 = vmatpush1.bf16.msra.mxu1 %v3564_v24  ;;  %v3668_v24 = vld [vmem:[%s3908_s27 + $0x314] ss:$8 sps:$4 sm:$0xff]   ;;  %v3746_v27 = vld [vmem:[%s4324_s0 + $0xc4] ss:$72 sps:$4 sm:$0xff]  }
  0x9e   : > { %2551 = vmatpush1.bf16.msra.mxu0 %v3567_v25  ;;  %2340 = vmatprep.subr.bf16.mxu1 %v3572_v28  ;;  %v3671_v25 = vld [vmem:[%s3908_s27 + $0x714] ss:$8 sps:$4 sm:$0xff]   ;;  %v3666_v28 = vld [vmem:[%s3908_s27 + $0x310] ss:$8 sps:$4 sm:$0xff]  }
  0x9f   : > { %2552 = vmatprep.subr.bf16.mxu0 %v3575_v29  ;;  %2366 = vmatprep.mubr.bf16.mxu1 %v3656_v30  ;;  %v3669_v29 = vld [vmem:[%s3908_s27 + $0x710] ss:$8 sps:$4 sm:$0xff]   ;;  %v3674_v30 = vld [vmem:[%s3908_s27 + $0x324] ss:$8 sps:$4 sm:$0xff]  }
  0xa0   : > { %2578 = vmatprep.mubr.bf16.mxu0 %v3662_v31  ;;  %v3677_v31 = vld [vmem:[%s3908_s27 + $0x724] ss:$8 sps:$4 sm:$0xff]  }
  0xa1   : > { %2341 = vmatpush1.bf16.msra.mxu1 %v3570_v32  ;;  %v3672_v32 = vld [vmem:[%s3908_s27 + $0x320] ss:$8 sps:$4 sm:$0xff]  }
  0xa2   : > { %2553 = vmatpush1.bf16.msra.mxu0 %v3573_v33  ;;  %2342 = vmatprep.subr.bf16.mxu1 %v3578_v34  ;;  %v3675_v33 = vld [vmem:[%s3908_s27 + $0x720] ss:$8 sps:$4 sm:$0xff]  }
  0xa3   : > { %2554 = vmatprep.subr.bf16.mxu0 %v3581_v35  ;;  %v3748_v34 = vld [vmem:[%s4324_s0 + $0xa0] ss:$72 sps:$4 sm:$0xff]  }
  0xa4   : > { %v3752_v35 = vld [vmem:[%s4324_s0 + $0xc0] ss:$72 sps:$4 sm:$0xff]  }
  0xa5   : > { %2343 = vmatpush1.bf16.msra.mxu1 %v3576_v36  ;;  %v3680_v36 = vld [vmem:[%s3908_s27 + $0x334] ss:$8 sps:$4 sm:$0xff]  }
  0xa6   : > { %2555 = vmatpush1.bf16.msra.mxu0 %v3579_v37  ;;  %2344 = vmatprep.subr.bf16.mxu1 %v3584_v38  ;;  %v3683_v37 = vld [vmem:[%s3908_s27 + $0x734] ss:$8 sps:$4 sm:$0xff]  }
  0xa7   : > { %2556 = vmatprep.subr.bf16.mxu0 %v3587_v39  ;;  %v3764_v38 = vld [vmem:[%s4324_s0 + $0x1c] ss:$72 sps:$4 sm:$0xff]  }
  0xa8   : > { %v3767_v39 = vld [vmem:[%s4324_s0 + $0x3c] ss:$72 sps:$4 sm:$0xff]  }
  0xa9   : > { %2345 = vmatpush1.bf16.msra.mxu1 %v3582_v40  ;;  %v3678_v40 = vld [vmem:[%s3908_s27 + $0x330] ss:$8 sps:$4 sm:$0xff]  }
  0xaa   : > { %2557 = vmatpush1.bf16.msra.mxu0 %v3585_v41  ;;  %2346 = vmatprep.subr.bf16.mxu1 %v3590_v42  ;;  %v3681_v41 = vld [vmem:[%s3908_s27 + $0x730] ss:$8 sps:$4 sm:$0xff]   ;;  %v3686_v42 = vld [vmem:[%s3908_s27 + $0x344] ss:$8 sps:$4 sm:$0xff]  }
  0xab   : > { %2558 = vmatprep.subr.bf16.mxu0 %v3593_v43  ;;  %v3689_v43 = vld [vmem:[%s3908_s27 + $0x744] ss:$8 sps:$4 sm:$0xff]  }
  0xad   : > { %2347 = vmatpush1.bf16.msra.mxu1 %v3588_v44  ;;  %v3684_v44 = vld [vmem:[%s3908_s27 + $0x340] ss:$8 sps:$4 sm:$0xff]  }
  0xae   : > { %2559 = vmatpush1.bf16.msra.mxu0 %v3591_v45  ;;  %2348 = vmatprep.subr.bf16.mxu1 %v3596_v46  ;;  %v3687_v45 = vld [vmem:[%s3908_s27 + $0x740] ss:$8 sps:$4 sm:$0xff]   ;;  %v3692_v46 = vld [vmem:[%s3908_s27 + $0x354] ss:$8 sps:$4 sm:$0xff]  }
  0xaf   : > { %2560 = vmatprep.subr.bf16.mxu0 %v3599_v47  ;;  %v3695_v47 = vld [vmem:[%s3908_s27 + $0x754] ss:$8 sps:$4 sm:$0xff]  }
  0xb1   : > { %2349 = vmatpush1.bf16.msra.mxu1 %v3594_v48  ;;  %v3690_v48 = vld [vmem:[%s3908_s27 + $0x350] ss:$8 sps:$4 sm:$0xff]  }
  0xb2   : > { %2561 = vmatpush1.bf16.msra.mxu0 %v3597_v49  ;;  %2350 = vmatprep.subr.bf16.mxu1 %v3602_v50  ;;  %v3693_v49 = vld [vmem:[%s3908_s27 + $0x750] ss:$8 sps:$4 sm:$0xff]   ;;  %v3698_v50 = vld [vmem:[%s3908_s27 + $0x364] ss:$8 sps:$4 sm:$0xff]  }
  0xb3   : > { %2562 = vmatprep.subr.bf16.mxu0 %v3605_v51  ;;  %v3701_v51 = vld [vmem:[%s3908_s27 + $0x764] ss:$8 sps:$4 sm:$0xff]  }
  0xb5   : > { %2351 = vmatpush1.bf16.msra.mxu1 %v3600_v52  ;;  %v3696_v52 = vld [vmem:[%s3908_s27 + $0x360] ss:$8 sps:$4 sm:$0xff]  }
  0xb6   : > { %2563 = vmatpush1.bf16.msra.mxu0 %v3603_v53  ;;  %2352 = vmatprep.subr.bf16.mxu1 %v3608_v54  ;;  %v3699_v53 = vld [vmem:[%s3908_s27 + $0x760] ss:$8 sps:$4 sm:$0xff]   ;;  %v3704_v54 = vld [vmem:[%s3908_s27 + $0x374] ss:$8 sps:$4 sm:$0xff]  }
  0xb7   : > { %2564 = vmatprep.subr.bf16.mxu0 %v3611_v55  ;;  %v3707_v55 = vld [vmem:[%s3908_s27 + $0x774] ss:$8 sps:$4 sm:$0xff]  }
  0xb9   : > { %2353 = vmatpush1.bf16.msra.mxu1 %v3606_v56  ;;  %v3702_v56 = vld [vmem:[%s3908_s27 + $0x370] ss:$8 sps:$4 sm:$0xff]  }
  0xba   : > { %2565 = vmatpush1.bf16.msra.mxu0 %v3609_v57  ;;  %2354 = vmatprep.subr.bf16.mxu1 %v3614_v58  ;;  %v3705_v57 = vld [vmem:[%s3908_s27 + $0x770] ss:$8 sps:$4 sm:$0xff]   ;;  %v3710_v58 = vld [vmem:[%s3908_s27 + $0x384] ss:$8 sps:$4 sm:$0xff]  }
  0xbb   : > { %2566 = vmatprep.subr.bf16.mxu0 %v3617_v59  ;;  %v3713_v59 = vld [vmem:[%s3908_s27 + $0x784] ss:$8 sps:$4 sm:$0xff]  }
  0xbd   : > { %2355 = vmatpush1.bf16.msra.mxu1 %v3612_v60  ;;  %v3708_v60 = vld [vmem:[%s3908_s27 + $0x380] ss:$8 sps:$4 sm:$0xff]  }
  0xbe   : > { %2567 = vmatpush1.bf16.msra.mxu0 %v3615_v61  ;;  %2356 = vmatprep.subr.bf16.mxu1 %v3620_v62  ;;  %v3711_v61 = vld [vmem:[%s3908_s27 + $0x780] ss:$8 sps:$4 sm:$0xff]   ;;  %v3716_v62 = vld [vmem:[%s3908_s27 + $0x394] ss:$8 sps:$4 sm:$0xff]  }
  0xbf   : > { %2568 = vmatprep.subr.bf16.mxu0 %v3623_v63  ;;  %v3719_v63 = vld [vmem:[%s3908_s27 + $0x794] ss:$8 sps:$4 sm:$0xff]  }
  0xc1   : > { %2357 = vmatpush1.bf16.msra.mxu1 %v3618_v0  ;;  %v3714_v0 = vld [vmem:[%s3908_s27 + $0x390] ss:$8 sps:$4 sm:$0xff]  }
  0xc2   : > { %2569 = vmatpush1.bf16.msra.mxu0 %v3621_v1  ;;  %2358 = vmatprep.subr.bf16.mxu1 %v3626_v2  ;;  %v3717_v1 = vld [vmem:[%s3908_s27 + $0x790] ss:$8 sps:$4 sm:$0xff]   ;;  %v3722_v2 = vld [vmem:[%s3908_s27 + $0x3a4] ss:$8 sps:$4 sm:$0xff]  }
  0xc3   : > { %2570 = vmatprep.subr.bf16.mxu0 %v3629_v3  ;;  %v3725_v3 = vld [vmem:[%s3908_s27 + $0x7a4] ss:$8 sps:$4 sm:$0xff]  }
  0xc5   : > { %2359 = vmatpush1.bf16.msra.mxu1 %v3624_v4  ;;  %v3720_v4 = vld [vmem:[%s3908_s27 + $0x3a0] ss:$8 sps:$4 sm:$0xff]  }
  0xc6   : > { %2571 = vmatpush1.bf16.msra.mxu0 %v3627_v5  ;;  %2360 = vmatprep.subr.bf16.mxu1 %v3632_v6  ;;  %v3723_v5 = vld [vmem:[%s3908_s27 + $0x7a0] ss:$8 sps:$4 sm:$0xff]   ;;  %v3728_v6 = vld [vmem:[%s3908_s27 + $0x3b4] ss:$8 sps:$4 sm:$0xff]  }
  0xc7   : > { %2572 = vmatprep.subr.bf16.mxu0 %v3635_v7  ;;  %v3731_v7 = vld [vmem:[%s3908_s27 + $0x7b4] ss:$8 sps:$4 sm:$0xff]  }
  0xc9   : > { %2361 = vmatpush1.bf16.msra.mxu1 %v3630_v8  ;;  %v3726_v8 = vld [vmem:[%s3908_s27 + $0x3b0] ss:$8 sps:$4 sm:$0xff]  }
  0xca   : > { %2573 = vmatpush1.bf16.msra.mxu0 %v3633_v9  ;;  %2362 = vmatprep.subr.bf16.mxu1 %v3640_v10  ;;  %v3729_v9 = vld [vmem:[%s3908_s27 + $0x7b0] ss:$8 sps:$4 sm:$0xff]   ;;  %v3734_v10 = vld [vmem:[%s3908_s27 + $0x3c4] ss:$8 sps:$4 sm:$0xff]  }
  0xcb   : > { %2574 = vmatprep.subr.bf16.mxu0 %v3645_v11  ;;  %v3737_v11 = vld [vmem:[%s3908_s27 + $0x7c4] ss:$8 sps:$4 sm:$0xff]  }
  0xcd   : > { %2363 = vmatpush1.bf16.msra.mxu1 %v3638_v12  ;;  %v3732_v12 = vld [vmem:[%s3908_s27 + $0x3c0] ss:$8 sps:$4 sm:$0xff]  }
  0xce   : > { %2575 = vmatpush1.bf16.msra.mxu0 %v3643_v13  ;;  %2364 = vmatprep.subr.bf16.mxu1 %v3650_v14  ;;  %v3735_v13 = vld [vmem:[%s3908_s27 + $0x7c0] ss:$8 sps:$4 sm:$0xff]   ;;  %v3740_v14 = vld [vmem:[%s3908_s27 + $0x3d4] ss:$8 sps:$4 sm:$0xff]  }
  0xcf   : > { %2576 = vmatprep.subr.bf16.mxu0 %v3653_v15  ;;  %v3743_v15 = vld [vmem:[%s3908_s27 + $0x7d4] ss:$8 sps:$4 sm:$0xff]  }
  0xd1   : > { %2365 = vmatpush1.bf16.msra.mxu1 %v3648_v16  ;;  %v3738_v16 = vld [vmem:[%s3908_s27 + $0x3d0] ss:$8 sps:$4 sm:$0xff]  }
  0xd2   : > { %2577 = vmatpush1.bf16.msra.mxu0 %v3651_v17  ;;  %2387 = vmatprep.subr.bf16.mxu1 %v3659_v18  ;;  %v3741_v17 = vld [vmem:[%s3908_s27 + $0x7d0] ss:$8 sps:$4 sm:$0xff]   ;;  %v3751_v18 = vld [vmem:[%s3908_s27 + $0x3e4] ss:$8 sps:$4 sm:$0xff]  }
  0xd3   : > { %2599 = vmatprep.subr.bf16.mxu0 %v3665_v20  ;;  %v3749_v20 = vld [vmem:[%s3908_s27 + $0x3e0] ss:$8 sps:$4 sm:$0xff]  }
  0xd4   : > { %2367 = vmatmul.mubr.bf16.vlgmr.msra.gmra.mrb[0].mxu1 %v3654_v19  ;;  %v3755_v19 = vld [vmem:[%s3908_s27 + $0x7e4] ss:$8 sps:$4 sm:$0xff]  }
  0xd5   : > { %2579 = vmatmul.mubr.bf16.vlgmr.msra.gmra.mrb[0].mxu0 %v3660_v22  ;;  %2388 = vmatpush1.bf16.msra.mxu1 %v3657_v21  ;;  %v3753_v21 = vld [vmem:[%s3908_s27 + $0x7e0] ss:$8 sps:$4 sm:$0xff]   ;;  %v3758_v22 = vld [vmem:[%s3908_s27 + $0x3f4] ss:$8 sps:$4 sm:$0xff]  }
  0xd6   : > { %2600 = vmatpush1.bf16.msra.mxu0 %v3663_v23  ;;  %2389 = vmatprep.subr.bf16.mxu1 %v3668_v24  ;;  %v3761_v23 = vld [vmem:[%s3908_s27 + $0x7f4] ss:$8 sps:$4 sm:$0xff]   ;;  %v3756_v24 = vld [vmem:[%s3908_s27 + $0x3f0] ss:$8 sps:$4 sm:$0xff]  }
  0xd7   : > { %2601 = vmatprep.subr.bf16.mxu0 %v3671_v25  ;;  %2376 = vmatprep.mubr.bf16.mxu1 %v3744_v26  ;;  %v3759_v25 = vld [vmem:[%s3908_s27 + $0x7f0] ss:$8 sps:$4 sm:$0xff]   ;;  %v3770_v26 = vld [vmem:[%s3908_s27 + $0x804] ss:$8 sps:$4 sm:$0xff]  }
  0xd8   : > { %2588 = vmatprep.mubr.bf16.mxu0 %v3746_v27  ;;  %v3762_v27 = vld [vmem:[%s4324_s0 + $0x18] ss:$72 sps:$4 sm:$0xff]  }
  0xd9   : > { %2390 = vmatpush1.bf16.msra.mxu1 %v3666_v28  ;;  %v3765_v28 = vld [vmem:[%s4324_s0 + $0x38] ss:$72 sps:$4 sm:$0xff]  }
  0xda   : > { %2602 = vmatpush1.bf16.msra.mxu0 %v3669_v29  ;;  %2391 = vmatprep.subr.bf16.mxu1 %v3674_v30  ;;  %v3768_v29 = vld [vmem:[%s3908_s27 + $0x800] ss:$8 sps:$4 sm:$0xff]   ;;  %v3773_v30 = vld [vmem:[%s3908_s27 + $0x814] ss:$8 sps:$4 sm:$0xff]  }
  0xdb   : > { %2603 = vmatprep.subr.bf16.mxu0 %v3677_v31  ;;  %v3774_v31 = vld [vmem:[%s4324_s0 + $0xac] ss:$72 sps:$4 sm:$0xff]  }
  0xdc   : > { %2377 = vmatmul.mubr.bf16.gmra.mrb[4].mxu1 %v3748_v34  ;;  %v3782_v34 = vld [vmem:[%s3908_s27 + $0x824] ss:$8 sps:$4 sm:$0xff]  }
  0xdd   : > { %2589 = vmatmul.mubr.bf16.gmra.mrb[4].mxu0 %v3752_v35  ;;  %2392 = vmatpush1.bf16.msra.mxu1 %v3672_v32  ;;  %v3776_v32 = vld [vmem:[%s4324_s0 + $0xcc] ss:$72 sps:$4 sm:$0xff]   ;;  %v3778_v35 = vld [vmem:[%s4324_s0 + $0xa8] ss:$72 sps:$4 sm:$0xff]  }
  0xde   : > { %2604 = vmatpush1.bf16.msra.mxu0 %v3675_v33  ;;  %2393 = vmatprep.subr.bf16.mxu1 %v3680_v36  ;;  %v3771_v33 = vld [vmem:[%s3908_s27 + $0x810] ss:$8 sps:$4 sm:$0xff]  }
  0xdf   : > { %2605 = vmatprep.subr.bf16.mxu0 %v3683_v37  ;;  %2419 = vmatprep.mubr.bf16.mxu1 %v3764_v38  ;;  %v3779_v36 = vld [vmem:[%s4324_s0 + $0xc8] ss:$72 sps:$4 sm:$0xff]   ;;  %v3785_v38 = vld [vmem:[%s3908_s27 + $0x834] ss:$8 sps:$4 sm:$0xff]  }
  0xe0   : > { %2631 = vmatprep.mubr.bf16.mxu0 %v3767_v39  ;;  %v3780_v37 = vld [vmem:[%s3908_s27 + $0x820] ss:$8 sps:$4 sm:$0xff]   ;;  %v3824_v39 = vld [vmem:[%s4324_s0 + $0x44] ss:$72 sps:$4 sm:$0xff]  }
  0xe1   : > { %2394 = vmatpush1.bf16.msra.mxu1 %v3678_v40  ;;  %v3827_v40 = vld [vmem:[%s4324_s0 + $0xd4] ss:$72 sps:$4 sm:$0xff]  }
  0xe2   : > { %2606 = vmatpush1.bf16.msra.mxu0 %v3681_v41  ;;  %2395 = vmatprep.subr.bf16.mxu1 %v3686_v42  ;;  %v3783_v41 = vld [vmem:[%s3908_s27 + $0x830] ss:$8 sps:$4 sm:$0xff]   ;;  %v3788_v42 = vld [vmem:[%s3908_s27 + $0x844] ss:$8 sps:$4 sm:$0xff]  }
  0xe3   : > { %2607 = vmatprep.subr.bf16.mxu0 %v3689_v43  ;;  %v3786_v43 = vld [vmem:[%s3908_s27 + $0x840] ss:$8 sps:$4 sm:$0xff]  }
  0xe5   : > { %2396 = vmatpush1.bf16.msra.mxu1 %v3684_v44  ;;  %v3791_v44 = vld [vmem:[%s3908_s27 + $0x854] ss:$8 sps:$4 sm:$0xff]  }
  0xe6   : > { %2608 = vmatpush1.bf16.msra.mxu0 %v3687_v45  ;;  %2397 = vmatprep.subr.bf16.mxu1 %v3692_v46  ;;  %v3789_v45 = vld [vmem:[%s3908_s27 + $0x850] ss:$8 sps:$4 sm:$0xff]   ;;  %v3794_v46 = vld [vmem:[%s3908_s27 + $0x864] ss:$8 sps:$4 sm:$0xff]  }
  0xe7   : > { %2609 = vmatprep.subr.bf16.mxu0 %v3695_v47  ;;  %v3792_v47 = vld [vmem:[%s3908_s27 + $0x860] ss:$8 sps:$4 sm:$0xff]  }
  0xe9   : > { %2398 = vmatpush1.bf16.msra.mxu1 %v3690_v48  ;;  %v3797_v48 = vld [vmem:[%s3908_s27 + $0x874] ss:$8 sps:$4 sm:$0xff]  }
  0xea   : > { %2610 = vmatpush1.bf16.msra.mxu0 %v3693_v49  ;;  %2399 = vmatprep.subr.bf16.mxu1 %v3698_v50  ;;  %v3795_v49 = vld [vmem:[%s3908_s27 + $0x870] ss:$8 sps:$4 sm:$0xff]   ;;  %v3800_v50 = vld [vmem:[%s3908_s27 + $0x884] ss:$8 sps:$4 sm:$0xff]  }
  0xeb   : > { %2611 = vmatprep.subr.bf16.mxu0 %v3701_v51  ;;  %v3798_v51 = vld [vmem:[%s3908_s27 + $0x880] ss:$8 sps:$4 sm:$0xff]  }
  0xed   : > { %2400 = vmatpush1.bf16.msra.mxu1 %v3696_v52  ;;  %v3803_v52 = vld [vmem:[%s3908_s27 + $0x894] ss:$8 sps:$4 sm:$0xff]  }
  0xee   : > { %2612 = vmatpush1.bf16.msra.mxu0 %v3699_v53  ;;  %2401 = vmatprep.subr.bf16.mxu1 %v3704_v54  ;;  %v3801_v53 = vld [vmem:[%s3908_s27 + $0x890] ss:$8 sps:$4 sm:$0xff]   ;;  %v3806_v54 = vld [vmem:[%s3908_s27 + $0x8a4] ss:$8 sps:$4 sm:$0xff]  }
  0xef   : > { %2613 = vmatprep.subr.bf16.mxu0 %v3707_v55  ;;  %v3804_v55 = vld [vmem:[%s3908_s27 + $0x8a0] ss:$8 sps:$4 sm:$0xff]  }
  0xf1   : > { %2402 = vmatpush1.bf16.msra.mxu1 %v3702_v56  ;;  %v3809_v56 = vld [vmem:[%s3908_s27 + $0x8b4] ss:$8 sps:$4 sm:$0xff]  }
  0xf2   : > { %2614 = vmatpush1.bf16.msra.mxu0 %v3705_v57  ;;  %2403 = vmatprep.subr.bf16.mxu1 %v3710_v58  ;;  %v3807_v57 = vld [vmem:[%s3908_s27 + $0x8b0] ss:$8 sps:$4 sm:$0xff]   ;;  %v3812_v58 = vld [vmem:[%s3908_s27 + $0x8c4] ss:$8 sps:$4 sm:$0xff]  }
  0xf3   : > { %2615 = vmatprep.subr.bf16.mxu0 %v3713_v59  ;;  %v3810_v59 = vld [vmem:[%s3908_s27 + $0x8c0] ss:$8 sps:$4 sm:$0xff]  }
  0xf5   : > { %2404 = vmatpush1.bf16.msra.mxu1 %v3708_v60  ;;  %v3815_v60 = vld [vmem:[%s3908_s27 + $0x8d4] ss:$8 sps:$4 sm:$0xff]  }
  0xf6   : > { %2616 = vmatpush1.bf16.msra.mxu0 %v3711_v61  ;;  %2405 = vmatprep.subr.bf16.mxu1 %v3716_v62  ;;  %v3813_v61 = vld [vmem:[%s3908_s27 + $0x8d0] ss:$8 sps:$4 sm:$0xff]   ;;  %v3818_v62 = vld [vmem:[%s3908_s27 + $0x8e4] ss:$8 sps:$4 sm:$0xff]  }
  0xf7   : > { %2617 = vmatprep.subr.bf16.mxu0 %v3719_v63  ;;  %v3816_v63 = vld [vmem:[%s3908_s27 + $0x8e0] ss:$8 sps:$4 sm:$0xff]  }
  0xf9   : > { %2406 = vmatpush1.bf16.msra.mxu1 %v3714_v0  ;;  %v3821_v0 = vld [vmem:[%s3908_s27 + $0x8f4] ss:$8 sps:$4 sm:$0xff]  }
  0xfa   : > { %2618 = vmatpush1.bf16.msra.mxu0 %v3717_v1  ;;  %2407 = vmatprep.subr.bf16.mxu1 %v3722_v2  ;;  %v3819_v1 = vld [vmem:[%s3908_s27 + $0x8f0] ss:$8 sps:$4 sm:$0xff]   ;;  %v3822_v2 = vld [vmem:[%s4324_s0 + $0x40] ss:$72 sps:$4 sm:$0xff]   ;;  %s2889_s27 = sshll.u32 %s3842_s15, 1 }
  0xfb   : > { %2619 = vmatprep.subr.bf16.mxu0 %v3725_v3  ;;  %v3825_v3 = vld [vmem:[%s4324_s0 + $0xd0] ss:$72 sps:$4 sm:$0xff]   ;;  %p265_p5 = scmp.lt.s32.totalorder %s2889_s27, 3 }
  0xfd   : > { %2408 = vmatpush1.bf16.msra.mxu1 %v3720_v4  ;;  %s4334_s27 = smov (!%p265_p5, %s2889_s27), 3 }
  0xfe   : > { %2620 = vmatpush1.bf16.msra.mxu0 %v3723_v5  ;;  %2409 = vmatprep.subr.bf16.mxu1 %v3728_v6  ;;  %s267_s9 = scalar_lea.vmem %s4326_s2, %s4334_s27  ;;  %s272_s12 = scalar_lea.vmem %s4327_s3, %s4334_s27 }
  0xff   : > { %2621 = vmatprep.subr.bf16.mxu0 %v3731_v7  ;;  %s2892_s15 = sshll.u32 %s4334_s27, 2 }
 0x100   : > { %s282_s19 = scalar_lea.vmem %s4328_s4, %s2892_s15 }
 0x101   : > { %2410 = vmatpush1.bf16.msra.mxu1 %v3726_v8 }
 0x102   : > { %2622 = vmatpush1.bf16.msra.mxu0 %v3729_v9  ;;  %2411 = vmatprep.subr.bf16.mxu1 %v3734_v10 }
 0x103   : > { %2623 = vmatprep.subr.bf16.mxu0 %v3737_v11 }
 0x105   : > { %2412 = vmatpush1.bf16.msra.mxu1 %v3732_v12 }
 0x106   : > { %2624 = vmatpush1.bf16.msra.mxu0 %v3735_v13  ;;  %2413 = vmatprep.subr.bf16.mxu1 %v3740_v14 }
 0x107   : > { %2625 = vmatprep.subr.bf16.mxu0 %v3743_v15 }
 0x109   : > { %2414 = vmatpush1.bf16.msra.mxu1 %v3738_v16 }
 0x10a   : > { %2626 = vmatpush1.bf16.msra.mxu0 %v3741_v17  ;;  %2415 = vmatprep.subr.bf16.mxu1 %v3751_v18 }
 0x10b   : > { %2627 = vmatprep.subr.bf16.mxu0 %v3755_v19 }
 0x10d   : > { %2416 = vmatpush1.bf16.msra.mxu1 %v3749_v20  ;;  %v2707_v20 = vlaneseq }
 0x10e   : > { %2628 = vmatpush1.bf16.msra.mxu0 %v3753_v21  ;;  %2417 = vmatprep.subr.bf16.mxu1 %v3758_v22 }
 0x10f   : > { %2629 = vmatprep.subr.bf16.mxu0 %v3761_v23  ;;  %v2708_v21 = vshrl.u32 %v2707_v20, 7  ;;  %v2705_v23 = vld [vmem:[%s267_s9] sm:$0x3] }
 0x111   : > { %2418 = vmatpush1.bf16.msra.mxu1 %v3756_v24  ;;  %v2709_v22 = vsub.s32 0, %v2708_v21  ;;  %v2713_v24 = vsub.s32 1, %v2708_v21 }
 0x112   : > { %2630 = vmatpush1.bf16.msra.mxu0 %v3759_v25  ;;  %3221 = vmatprep.subr.bf16.mxu1 %v3770_v26  ;;  %v2725_v25 = vld [vmem:[%s272_s12] sm:$0x3] }
 0x113   : > { %2652 = vmatprep.subr.bf16.mxu0 %v3770_v26  ;;  %v2710_v26 = vrot.slane %v2705_v23, %v2709_v22 }
 0x114   : > { %2420 = vmatmul.mubr.bf16.vlgmr.msra.gmra.mrb[0].mxu1 %v3762_v27 }
 0x115   : > { %2632 = vmatmul.mubr.bf16.vlgmr.msra.gmra.mrb[0].mxu0 %v3765_v28  ;;  %3237 = vmatpush1.bf16.msra.mxu1 %v3768_v29 }
 0x116   : > { %2653 = vmatpush1.bf16.msra.mxu0 %v3768_v29  ;;  %3222 = vmatprep.subr.bf16.mxu1 %v3773_v30  ;;  %v2714_v29 = vrot.slane %v2705_v23, %v2713_v24 }
 0x117   : > { %2654 = vmatprep.subr.bf16.mxu0 %v3773_v30  ;;  %2429 = vmatprep.mubr.bf16.mxu1 %v3774_v31  ;;  %v2730_v31 = vrot.slane %v2725_v25, %v2709_v22 }
 0x118   : > { %2641 = vmatprep.mubr.bf16.mxu0 %v3776_v32 }
 0x119   : > { %3238 = vmatpush1.bf16.msra.mxu1 %v3771_v33 }
 0x11a   : > { %2655 = vmatpush1.bf16.msra.mxu0 %v3771_v33  ;;  %3223 = vmatprep.subr.bf16.mxu1 %v3782_v34 }
 0x11b   : > { %2656 = vmatprep.subr.bf16.mxu0 %v3782_v34 }
 0x11c   : > { %2430 = vmatmul.mubr.bf16.gmra.mrb[4].mxu1 %v3778_v35 }
 0x11d   : > { %2642 = vmatmul.mubr.bf16.gmra.mrb[4].mxu0 %v3779_v36  ;;  %3239 = vmatpush1.bf16.msra.mxu1 %v3780_v37  ;;  %v2734_v36 = vrot.slane %v2725_v25, %v2713_v24 }
 0x11e   : > { %2657 = vmatpush1.bf16.msra.mxu0 %v3780_v37  ;;  %3224 = vmatprep.subr.bf16.mxu1 %v3785_v38 }
 0x11f   : > { %2658 = vmatprep.subr.bf16.mxu0 %v3785_v38  ;;  %2684 = vmatprep.mubr.bf16.mxu0 %v3824_v39 }
 0x120   : > { %2694 = vmatprep.mubr.bf16.mxu1 %v3827_v40 }
 0x121   : > { %3240 = vmatpush1.bf16.msra.mxu1 %v3783_v41 }
 0x122   : > { %2659 = vmatpush1.bf16.msra.mxu0 %v3783_v41  ;;  %3225 = vmatprep.subr.bf16.mxu1 %v3788_v42 }
 0x123   : > { %2660 = vmatprep.subr.bf16.mxu0 %v3788_v42 }
 0x125   : > { %3241 = vmatpush1.bf16.msra.mxu1 %v3786_v43 }
 0x126   : > { %2661 = vmatpush1.bf16.msra.mxu0 %v3786_v43  ;;  %3226 = vmatprep.subr.bf16.mxu1 %v3791_v44 }
 0x127   : > { %2662 = vmatprep.subr.bf16.mxu0 %v3791_v44 }
 0x129   : > { %3242 = vmatpush1.bf16.msra.mxu1 %v3789_v45 }
 0x12a   : > { %2663 = vmatpush1.bf16.msra.mxu0 %v3789_v45  ;;  %3227 = vmatprep.subr.bf16.mxu1 %v3794_v46 }
 0x12b   : > { %2664 = vmatprep.subr.bf16.mxu0 %v3794_v46 }
 0x12d   : > { %3243 = vmatpush1.bf16.msra.mxu1 %v3792_v47 }
 0x12e   : > { %2665 = vmatpush1.bf16.msra.mxu0 %v3792_v47  ;;  %3228 = vmatprep.subr.bf16.mxu1 %v3797_v48 }
 0x12f   : > { %2666 = vmatprep.subr.bf16.mxu0 %v3797_v48 }
 0x131   : > { %3244 = vmatpush1.bf16.msra.mxu1 %v3795_v49 }
 0x132   : > { %2667 = vmatpush1.bf16.msra.mxu0 %v3795_v49  ;;  %3229 = vmatprep.subr.bf16.mxu1 %v3800_v50 }
 0x133   : > { %2668 = vmatprep.subr.bf16.mxu0 %v3800_v50 }
 0x135   : > { %3245 = vmatpush1.bf16.msra.mxu1 %v3798_v51 }
 0x136   : > { %2669 = vmatpush1.bf16.msra.mxu0 %v3798_v51  ;;  %3230 = vmatprep.subr.bf16.mxu1 %v3803_v52 }
 0x137   : > { %2670 = vmatprep.subr.bf16.mxu0 %v3803_v52 }
 0x139   : > { %3246 = vmatpush1.bf16.msra.mxu1 %v3801_v53 }
 0x13a   : > { %2671 = vmatpush1.bf16.msra.mxu0 %v3801_v53  ;;  %3231 = vmatprep.subr.bf16.mxu1 %v3806_v54 }
 0x13b   : > { %2672 = vmatprep.subr.bf16.mxu0 %v3806_v54 }
 0x13d   : > { %3247 = vmatpush1.bf16.msra.mxu1 %v3804_v55 }
 0x13e   : > { %2673 = vmatpush1.bf16.msra.mxu0 %v3804_v55  ;;  %3232 = vmatprep.subr.bf16.mxu1 %v3809_v56 }
 0x13f   : > { %2674 = vmatprep.subr.bf16.mxu0 %v3809_v56 }
 0x141   : > { %3248 = vmatpush1.bf16.msra.mxu1 %v3807_v57 }
 0x142   : > { %2675 = vmatpush1.bf16.msra.mxu0 %v3807_v57  ;;  %3233 = vmatprep.subr.bf16.mxu1 %v3812_v58 }
 0x143   : > { %2676 = vmatprep.subr.bf16.mxu0 %v3812_v58 }
 0x145   : > { %3249 = vmatpush1.bf16.msra.mxu1 %v3810_v59 }
 0x146   : > { %2677 = vmatpush1.bf16.msra.mxu0 %v3810_v59  ;;  %3234 = vmatprep.subr.bf16.mxu1 %v3815_v60 }
 0x147   : > { %2678 = vmatprep.subr.bf16.mxu0 %v3815_v60 }
 0x149   : > { %3250 = vmatpush1.bf16.msra.mxu1 %v3813_v61 }
 0x14a   : > { %2679 = vmatpush1.bf16.msra.mxu0 %v3813_v61  ;;  %3235 = vmatprep.subr.bf16.mxu1 %v3818_v62 }
 0x14b   : > { %2680 = vmatprep.subr.bf16.mxu0 %v3818_v62 }
 0x14d   : > { %3251 = vmatpush1.bf16.msra.mxu1 %v3816_v63 }
 0x14e   : > { %2681 = vmatpush1.bf16.msra.mxu0 %v3816_v63  ;;  %3236 = vmatprep.subr.bf16.mxu1 %v3821_v0 }
 0x14f   : > { %2682 = vmatprep.subr.bf16.mxu0 %v3821_v0 }
 0x151   : > { %3252 = vmatpush1.bf16.msra.mxu1 %v3819_v1 }
 0x152   : > { %2683 = vmatpush1.bf16.msra.mxu0 %v3819_v1 }
 0x154   : > { %2695 = vmatmul.mubr.bf16.vlgmr.msra.gmra.mrb[8].mxu1 %v3825_v3 }
 0x155   : > { %2685 = vmatmul.mubr.bf16.vlgmr.msra.gmra.mrb[0].mxu0 %v3822_v2 }
 0x1e7   : > { %v2421_v4 = vpop.f32.mrb[0].mxu1 }
 0x1e8   : > { %v2423_v5 = vpop.f32.mrb[1].mxu1 }
 0x1e9   : > { %v2425_v6 = vpop.f32.mrb[2].mxu1 }
 0x1ea   : > { %v2427_v7 = vpop.f32.mrb[3].mxu1 }
 0x1ef   : > { %v2431_v8 = vpop.f32.mrb[4].mxu1 }
 0x1f0   : > { %v2643_v9 = vpop.f32.mrb[4].mxu0  ;;  %v2433_v11 = vpop.f32.mrb[5].mxu1 }
 0x1f1   : > { %v3257_v10 = vadd.f32 %v2643_v9, %v2431_v8  ;;  %v2645_v12 = vpop.f32.mrb[5].mxu0  ;;  %v2435_v14 = vpop.f32.mrb[6].mxu1 }
 0x1f2   : > { %v3259_v13 = vadd.f32 %v2645_v12, %v2433_v11  ;;  %v2647_v15 = vpop.f32.mrb[6].mxu0  ;;  %v2437_v17 = vpop.f32.mrb[7].mxu1 }
 0x1f3   : > { %v3261_v16 = vadd.f32 %v2647_v15, %v2435_v14  ;;  %v2649_v18 = vpop.f32.mrb[7].mxu0 }
 0x1f4   : > { %v3263_v19 = vadd.f32 %v2649_v18, %v2437_v17 }
 0x227   : > { %v2696_v28 = vpop.f32.mrb[8].mxu1 }
 0x228   : > { %v2686_v27 = vpop.f32.mrb[0].mxu0  ;;  %v3258_v32 = vadd.f32 %v3257_v10, %v2696_v28  ;;  %v2698_v34 = vpop.f32.mrb[9].mxu1 }
 0x229   : > { %v3253_v30 = vadd.f32 %v2686_v27, %v2421_v4  ;;  %v2688_v33 = vpop.f32.mrb[1].mxu0  ;;  %v3260_v37 = vadd.f32 %v3259_v13, %v2698_v34  ;;  %v2700_v39 = vpop.f32.mrb[10].mxu1 }
 0x22a   : > { %v3254_v35 = vadd.f32 %v2688_v33, %v2423_v5  ;;  %v2690_v38 = vpop.f32.mrb[2].mxu0  ;;  %v2721_v41 = vmul.f32 %v3258_v32, %v2710_v26  ;;  %v3262_v43 = vadd.f32 %v3261_v16, %v2700_v39  ;;  %v2702_v45 = vpop.f32.mrb[11].mxu1 }
 0x22b   : > { %v2717_v40 = vmul.f32 %v3253_v30, %v2710_v26  ;;  %v3255_v42 = vadd.f32 %v2690_v38, %v2425_v6  ;;  %v2692_v44 = vpop.f32.mrb[3].mxu0  ;;  %v2722_v47 = vmul.f32 %v3260_v37, %v2714_v29  ;;  %v3264_v49 = vadd.f32 %v3263_v19, %v2702_v45 }
 0x22c   : > { %v2718_v46 = vmul.f32 %v3254_v35, %v2714_v29  ;;  %v3256_v48 = vadd.f32 %v2692_v44, %v2427_v7  ;;  %v2741_v51 = vadd.f32 %v2730_v31, %v2721_v41  ;;  %v2723_v53 = vmul.f32 %v3262_v43, %v2710_v26 }
 0x22d   : > { %v2737_v50 = vadd.f32 %v2730_v31, %v2717_v40  ;;  %v2719_v52 = vmul.f32 %v3255_v42, %v2710_v26  ;;  %v2742_v55 = vadd.f32 %v2734_v36, %v2722_v47  ;;  %v2724_v57 = vmul.f32 %v3264_v49, %v2714_v29 }
 0x22e   : > { %v2738_v54 = vadd.f32 %v2734_v36, %v2718_v46  ;;  %v2720_v56 = vmul.f32 %v3256_v48, %v2714_v29  ;;  %v2743_v59 = vadd.f32 %v2730_v31, %v2723_v53  ;;  %v2749_v63 = vmax.f32 %v2741_v51, 0.0 }
 0x22f   : > { %v2739_v58 = vadd.f32 %v2730_v31, %v2719_v52  ;;  %v2744_v61 = vadd.f32 %v2734_v36, %v2724_v57  ;;  %v2745_v62 = vmax.f32 %v2737_v50, 0.0  ;;  %v2750_v3 = vmax.f32 %v2742_v55, 0.0 }
 0x230   : > { %v2740_v60 = vadd.f32 %v2734_v36, %v2720_v56  ;;  %v2751_v1 = vmax.f32 %v2743_v59, 0.0  ;;  %v2746_v2 = vmax.f32 %v2738_v54, 0.0 }
 0x231   : > { %v2747_v0 = vmax.f32 %v2739_v58, 0.0  ;;  %v2752_v5 = vmax.f32 %v2744_v61, 0.0 }
 0x232   : > { %v2748_v4 = vmax.f32 %v2740_v60, 0.0  ;;  %v2755_v7 = vmax.f32 %v2749_v63, %v2751_v1 }
 0x233   : > { %v2753_v6 = vmax.f32 %v2745_v62, %v2747_v0  ;;  %v2756_v9 = vmax.f32 %v2750_v3, %v2752_v5 }
 0x234   : > { %v2754_v8 = vmax.f32 %v2746_v2, %v2748_v4 }
 0x235   : > { %v2757_v10 = vmax.f32 %v2753_v6, %v2755_v7 }
 0x236   : > { %v2758_v11 = vmax.f32 %v2754_v8, %v2756_v9 }
 0x238   : > { %v3220_v12 = vpack.c.bf16 %v2758_v11, %v2757_v10 }
 0x23a   : > { %2767 = vst [vmem:[%s282_s19] sm:$0xff] %v3220_v12 }
 0x23b PF: > { %s14_s17 = sadd.s32 1, %s3850_s17   ;;  %s4329_s15 = smov %s3846_s16 }
 0x23c   : > { %p11_p6 = scmp.ge.s32.totalorder %s14_s17, 4   ;;  %s4330_s16 = smov %s4332_s18 }
 0x23e   :  { %13 = sbr.rel (!%p11_p6) target bundleno = 2 (0x2), region = 75 }

// kernel: custom_cnn_forward.9
= control target key start
LH: loop header
LB: loop body
LE: loop exit
PB: predicated region body
PF: predicated region fallthrough
CT: control target
= control target key end

     0   :  { %9 = vsyncpa [#allocation3], 0  ;;  %s14802_s0 = inlined_call_operand.vmem [shape: bf16[32,4608], index: 0, kind: input, shape index: {}]   ;;  %s14803_s1 = inlined_call_operand.hbm [shape: bf16[4,4608,512], index: 1, kind: input, shape index: {}]   ;;  %s14804_s2 = inlined_call_operand.vmem [shape: f32[1,2048], index: 2, kind: input, shape index: {}]   ;;  %s14805_s3 = inlined_call_operand.vmem [shape: f32[1,2048], index: 3, kind: input, shape index: {}]   ;;  %s14806_s4 = inlined_call_operand.vmem [shape: f32[8,2048], index: 4, kind: output, shape index: {}]  }
   0x1   :  { %11 = vsyncpa [#allocation3 + $0x1], 0  ;;  %s13304_s15 = smov 0   ;;  %s13306_s16 = smov 0  }
   0x2   :  { %s13308_s17 = smov 0   ;;  %s13310_s18 = smov 0  }
   0x3   :  { %s13312_s19 = smov 0   ;;  %s13314_s20 = smov 0  }
   0x4 LB: > { %s9789_s21 = sadd.s32 4294967295, %s13274_s20   ;;  %s26_s22 = sadd.s32 1, %s13270_s19  ;;  %s13274_s20 = sphi %s13314_s20, %s17_s20   ;;  %s13270_s19 = sphi %s13312_s19, %s14813_s19   ;;  %s13266_s18 = sphi %s13310_s18, %s14812_s18   ;;  %s13262_s17 = sphi %s13308_s17, %s14811_s17   ;;  %s13258_s16 = sphi %s13306_s16, %s14810_s16   ;;  %s13254_s15 = sphi %s13304_s15, %s14809_s15  }
   0x5   : > { %p27_p0 = scmp.ge.s32.totalorder %s26_s22, 4  ;;  %s62_s23 = sadd.s32 1, %s13262_s17 }
   0x6   : > { %p69_p1 = scmp.ne.s32.totalorder %s13262_s17, %s13258_s16  ;;  %p70_p2 = scmp.eq.s32.totalorder %s13274_s20, 0 }
   0x7   : > { %s14815_s22 = smov (%p27_p0, %s26_s22), 0  ;;  %p75_p4 = scmp.ne.s32.totalorder %s13258_s16, %s13254_s15 }
   0x8   : > { %p71_p3 = por %p70_p2, %p69_p1  ;;  %s59_s24 = ssub.s32 %s13270_s19, %s14815_s22 }
   0x9   : > { %p76_p5 = scmp.eq.s32.totalorder %s9789_s21, 0  ;;  %p60_p6 = scmp.eq.s32.totalorder %s59_s24, 0 }
   0xa   : > { %p11307_p8 = scmp.lt.s32.totalorder %s13274_s20, 4  ;;  %s189_s27 = sand.u32 1, %s13262_s17  }
   0xb   : > { %p13343_p7 = por %p76_p5, %p75_p4  ;;  %s11299_s28 = smul.u32 147456, %s13270_s19 }
   0xc   : > { %s13349_s26 = scalar_select %p60_p6, %s13262_s17, %s62_s23  }
   0xd   : > { %s11298_s29 = smul.u32 9216, %s189_s27  ;;  %s13356_s6 = scalar_lea.hbm %s14803_s1, %s11299_s28 }
   0xe   : > { %p13358_p9 = pnand %p11307_p8, %p71_p3  ;;  %s13364_s10 = scalar_lea.sflag [#allocation3], %s189_s27 }
   0xf   : > { %s193_s8 = scalar_lea.vmem [#allocation2], %s11298_s29  ;;  %s13194_s11 = scalar_lea.hbm %s13356_s6, 147456 }
  0x10   : > { %s200_s9 = sshll.u32 %s193_s8, 4  ;;  %p13195_p10 = scmp.ne.s32.totalorder %s13356_s6, %s13194_s11  ;;  %s13362_s9 = int_to_ptr.vmem [resolvable:$true] %s200_s9 }
  0x11   : > { %p13196_p11 = pneg %p13358_p9  ;;  %s13199_s14 = scalar_lea.hbm %s14803_s1, 589824 }
  0x12   : > { %p13200_p0 = scmp.lt.u32.totalorder %s13356_s6, %s14803_s1  ;;  %p13201_p1 = scmp.lt.u32.totalorder %s13199_s14, %s13194_s11 }
  0x13   : > { %p13197_p12 = pnand %p13196_p11, %p13195_p10  ;;  %p13203_p3 = scmp.lt.u32.totalorder %s13194_s11, %s13356_s6 }
  0x14   : > { %p13202_p2 = por %p13201_p1, %p13200_p0 }
  0x15   : > { %p13198_p13 = pneg %p13197_p12 }
  0x16   : > { %p13204_p4 = por %p13203_p3, %p13202_p2 }
  0x18   : > { %p13205_p5 = pnand %p13204_p4, %p13198_p13 }
  0x1a   : > { %13208 = shalt.err (!%p13205_p5)
}
  0x1b   : > { %s13209_s23 = scalar_lea.vmem %s13362_s9, 147456  ;;  %s13276_s24 = smov [#allocation2]  }
  0x1c   : > { %p13210_p6 = scmp.ne.s32.totalorder %s13362_s9, %s13209_s23  ;;  %s13214_s27 = sshll.u32 %s13276_s24, 4  ;;  %s13215_s27 = int_to_ptr.vmem [resolvable:$false] %s13214_s27 }
  0x1d   : > { %s13216_s28 = scalar_lea.vmem %s13215_s27, 294912  ;;  %p13217_p12 = scmp.lt.s32.totalorder %s13362_s9, %s13215_s27 }
  0x1e   : > { %p13212_p8 = pnand %p13210_p6, %p13196_p11  ;;  %p13218_p0 = scmp.lt.s32.totalorder %s13216_s28, %s13209_s23 }
  0x20   : > { %p13213_p10 = pneg %p13212_p8  ;;  %p13219_p1 = por %p13218_p0, %p13217_p12 }
  0x22   : > { %p13220_p2 = pnand %p13219_p1, %p13213_p10 }
  0x24   : > { %13223 = shalt.err (!%p13220_p2)
}
  0x25   : > { %s13277_s29 = smov 256   ;;  %s13278_s30 = smov 16  }
  0x26   : > { %11306 = dma.hbm_to_vmem [thread:$0]  (!%p13358_p9), %s13356_s6, 147456, %s13362_s9, %s13364_s10, %s13277_s29, %s13277_s29, %s13278_s30  }
  0x27   : > { %p9795_p11 = scmp.ge.s32.totalorder %s13274_s20, 1  ;;  %p224_p13 = scmp.lt.s32.totalorder %s13274_s20, 5 }
  0x29   : > { %p225_p3 = pnand %p9795_p11, %p224_p13 }
  0x2a   : > { %s230_s5 = sand.u32 (!%p225_p3), 1, %s13258_s16  }
  0x2b   : > { %228 = sbr.rel (%p225_p3) target bundleno = 1438 (0x59e), region = 36  ;;  %s231_s11 = scalar_lea.sflag (!%p225_p3), [#allocation3], %s230_s5 }
  0x2c   : > { %s11300_s8 = smul.u32 (!%p225_p3), 9216, %s230_s5 }
  0x2e   : > { %s13395_s12 = scalar_lea.vmem (!%p225_p3), [#allocation2], %s11300_s8 }
  0x32   : > { %13249 = dma.done.wait (%p13343_p7), %s231_s11, 147456  }
  0x33   : > { %13251 = vsyncadd (%p13343_p7), %s231_s11, 4294819840  ;;  %v11358_v0 = vld [vmem:[%s13395_s12 + $0x4] ss:$16 sps:$4 sm:$0xff]   ;;  %v11360_v1 = vld [vmem:[%s13395_s12 + $0xc] ss:$16 sps:$4 sm:$0xff]  }
  0x34   : > { %7648 = vmatprep.subr.bf16.mxu0 %v11358_v0  ;;  %v11362_v2 = vld [vmem:[%s13395_s12] ss:$16 sps:$4 sm:$0xff]   ;;  %v11363_v3 = vld [vmem:[%s13395_s12 + $0x8] ss:$16 sps:$4 sm:$0xff]   ;;  %8602 = vmatprep.subr.bf16.mxu1 %v11360_v1  ;;  %v11364_v4 = vld [vmem:[%s13395_s12 + $0x24] ss:$16 sps:$4 sm:$0xff]  }
  0x35   : > { %7649 = vmatpush1.bf16.msra.mxu0 %v11362_v2  ;;  %8603 = vmatpush1.bf16.msra.mxu1 %v11363_v3  ;;  %v11366_v5 = vld [vmem:[%s13395_s12 + $0x2c] ss:$16 sps:$4 sm:$0xff]   ;;  %v11368_v6 = vld [vmem:[%s13395_s12 + $0x20] ss:$16 sps:$4 sm:$0xff]   ;;  %v11369_v7 = vld [vmem:[%s13395_s12 + $0x28] ss:$16 sps:$4 sm:$0xff]  }
  0x36   : > { %7650 = vmatprep.subr.bf16.mxu0 %v11364_v4  ;;  %8604 = vmatprep.subr.bf16.mxu1 %v11366_v5  ;;  %v11370_v8 = vld [vmem:[%s13395_s12 + $0x44] ss:$16 sps:$4 sm:$0xff]   ;;  %v11372_v9 = vld [vmem:[%s13395_s12 + $0x4c] ss:$16 sps:$4 sm:$0xff]   ;;  %v11374_v10 = vld [vmem:[%s13395_s12 + $0x40] ss:$16 sps:$4 sm:$0xff]  }
  0x37   : > { %v11375_v11 = vld [vmem:[%s13395_s12 + $0x48] ss:$16 sps:$4 sm:$0xff]   ;;  %v11376_v12 = vld [vmem:[%s13395_s12 + $0x64] ss:$16 sps:$4 sm:$0xff]   ;;  %v11378_v13 = vld [vmem:[%s13395_s12 + $0x6c] ss:$16 sps:$4 sm:$0xff]  }
  0x38   : > { %v11380_v14 = vld [vmem:[%s13395_s12 + $0x60] ss:$16 sps:$4 sm:$0xff]   ;;  %v11381_v15 = vld [vmem:[%s13395_s12 + $0x68] ss:$16 sps:$4 sm:$0xff]   ;;  %v11382_v16 = vld [vmem:[%s13395_s12 + $0x84] ss:$16 sps:$4 sm:$0xff]  }
  0x39   : > { %7651 = vmatpush1.bf16.msra.mxu0 %v11368_v6  ;;  %8605 = vmatpush1.bf16.msra.mxu1 %v11369_v7  ;;  %v11384_v17 = vld [vmem:[%s13395_s12 + $0x8c] ss:$16 sps:$4 sm:$0xff]   ;;  %v11386_v18 = vld [vmem:[%s13395_s12 + $0x80] ss:$16 sps:$4 sm:$0xff]   ;;  %v11387_v19 = vld [vmem:[%s13395_s12 + $0x88] ss:$16 sps:$4 sm:$0xff]  }
  0x3a   : > { %7652 = vmatprep.subr.bf16.mxu0 %v11370_v8  ;;  %8606 = vmatprep.subr.bf16.mxu1 %v11372_v9  ;;  %v11388_v20 = vld [vmem:[%s13395_s12 + $0xa4] ss:$16 sps:$4 sm:$0xff]   ;;  %v11390_v21 = vld [vmem:[%s13395_s12 + $0xac] ss:$16 sps:$4 sm:$0xff]   ;;  %v11392_v22 = vld [vmem:[%s13395_s12 + $0xa0] ss:$16 sps:$4 sm:$0xff]  }
  0x3b   : > { %v11393_v23 = vld [vmem:[%s13395_s12 + $0xa8] ss:$16 sps:$4 sm:$0xff]   ;;  %v11394_v24 = vld [vmem:[%s13395_s12 + $0xc4] ss:$16 sps:$4 sm:$0xff]   ;;  %v11396_v25 = vld [vmem:[%s13395_s12 + $0xcc] ss:$16 sps:$4 sm:$0xff]  }
  0x3c   : > { %v11398_v26 = vld [vmem:[%s13395_s12 + $0xc0] ss:$16 sps:$4 sm:$0xff]   ;;  %v11399_v27 = vld [vmem:[%s13395_s12 + $0xc8] ss:$16 sps:$4 sm:$0xff]   ;;  %v11400_v28 = vld [vmem:[%s13395_s12 + $0xe4] ss:$16 sps:$4 sm:$0xff]  }
  0x3d   : > { %7653 = vmatpush1.bf16.msra.mxu0 %v11374_v10  ;;  %8607 = vmatpush1.bf16.msra.mxu1 %v11375_v11  ;;  %v11402_v29 = vld [vmem:[%s13395_s12 + $0xec] ss:$16 sps:$4 sm:$0xff]   ;;  %v11404_v30 = vld [vmem:[%s13395_s12 + $0xe0] ss:$16 sps:$4 sm:$0xff]   ;;  %v11405_v31 = vld [vmem:[%s13395_s12 + $0xe8] ss:$16 sps:$4 sm:$0xff]  }
  0x3e   : > { %7654 = vmatprep.subr.bf16.mxu0 %v11376_v12  ;;  %8608 = vmatprep.subr.bf16.mxu1 %v11378_v13  ;;  %v11406_v32 = vld [vmem:[%s13395_s12 + $0x104] ss:$16 sps:$4 sm:$0xff]   ;;  %v11408_v33 = vld [vmem:[%s13395_s12 + $0x10c] ss:$16 sps:$4 sm:$0xff]   ;;  %v11410_v34 = vld [vmem:[%s13395_s12 + $0x100] ss:$16 sps:$4 sm:$0xff]  }
  0x3f   : > { %v11411_v35 = vld [vmem:[%s13395_s12 + $0x108] ss:$16 sps:$4 sm:$0xff]   ;;  %v11412_v36 = vld [vmem:[%s13395_s12 + $0x124] ss:$16 sps:$4 sm:$0xff]   ;;  %v11414_v37 = vld [vmem:[%s13395_s12 + $0x12c] ss:$16 sps:$4 sm:$0xff]  }
  0x40   : > { %v11416_v38 = vld [vmem:[%s13395_s12 + $0x120] ss:$16 sps:$4 sm:$0xff]   ;;  %v11417_v39 = vld [vmem:[%s13395_s12 + $0x128] ss:$16 sps:$4 sm:$0xff]   ;;  %v11418_v40 = vld [vmem:[%s13395_s12 + $0x144] ss:$16 sps:$4 sm:$0xff]  }
  0x41   : > { %7655 = vmatpush1.bf16.msra.mxu0 %v11380_v14  ;;  %8609 = vmatpush1.bf16.msra.mxu1 %v11381_v15  ;;  %v11420_v41 = vld [vmem:[%s13395_s12 + $0x14c] ss:$16 sps:$4 sm:$0xff]   ;;  %v11422_v42 = vld [vmem:[%s13395_s12 + $0x140] ss:$16 sps:$4 sm:$0xff]   ;;  %v11423_v43 = vld [vmem:[%s13395_s12 + $0x148] ss:$16 sps:$4 sm:$0xff]  }
  0x42   : > { %7656 = vmatprep.subr.bf16.mxu0 %v11382_v16  ;;  %8610 = vmatprep.subr.bf16.mxu1 %v11384_v17  ;;  %v11424_v44 = vld [vmem:[%s13395_s12 + $0x164] ss:$16 sps:$4 sm:$0xff]   ;;  %v11426_v45 = vld [vmem:[%s13395_s12 + $0x16c] ss:$16 sps:$4 sm:$0xff]   ;;  %v11428_v46 = vld [vmem:[%s13395_s12 + $0x160] ss:$16 sps:$4 sm:$0xff]  }
  0x43   : > { %v11429_v47 = vld [vmem:[%s13395_s12 + $0x168] ss:$16 sps:$4 sm:$0xff]   ;;  %v11456_v48 = vld [vmem:[%s14802_s0 + $0x4] ss:$144 sps:$4 sm:$0xff]   ;;  %v11432_v50 = vld [vmem:[%s13395_s12 + $0x18c] ss:$16 sps:$4 sm:$0xff]  }
  0x44   : > { %v11430_v49 = vld [vmem:[%s13395_s12 + $0x184] ss:$16 sps:$4 sm:$0xff]   ;;  %7680 = vmatprep.mubr.bf16.mxu0 %v11456_v48  ;;  %8634 = vmatprep.mubr.bf16.mxu1 %v11456_v48  ;;  %v11434_v51 = vld [vmem:[%s13395_s12 + $0x180] ss:$16 sps:$4 sm:$0xff]   ;;  %v11435_v52 = vld [vmem:[%s13395_s12 + $0x188] ss:$16 sps:$4 sm:$0xff]  }
  0x45   : > { %7657 = vmatpush1.bf16.msra.mxu0 %v11386_v18  ;;  %8611 = vmatpush1.bf16.msra.mxu1 %v11387_v19  ;;  %v11436_v53 = vld [vmem:[%s13395_s12 + $0x1a4] ss:$16 sps:$4 sm:$0xff]   ;;  %v11438_v54 = vld [vmem:[%s13395_s12 + $0x1ac] ss:$16 sps:$4 sm:$0xff]   ;;  %v11440_v55 = vld [vmem:[%s13395_s12 + $0x1a0] ss:$16 sps:$4 sm:$0xff]  }
  0x46   : > { %7658 = vmatprep.subr.bf16.mxu0 %v11388_v20  ;;  %8612 = vmatprep.subr.bf16.mxu1 %v11390_v21  ;;  %v11441_v56 = vld [vmem:[%s13395_s12 + $0x1a8] ss:$16 sps:$4 sm:$0xff]   ;;  %v11442_v57 = vld [vmem:[%s13395_s12 + $0x1c4] ss:$16 sps:$4 sm:$0xff]   ;;  %v11444_v58 = vld [vmem:[%s13395_s12 + $0x1cc] ss:$16 sps:$4 sm:$0xff]  }
  0x47   : > { %v11446_v59 = vld [vmem:[%s13395_s12 + $0x1c0] ss:$16 sps:$4 sm:$0xff]   ;;  %v11447_v60 = vld [vmem:[%s13395_s12 + $0x1c8] ss:$16 sps:$4 sm:$0xff]   ;;  %v11448_v61 = vld [vmem:[%s13395_s12 + $0x1e4] ss:$16 sps:$4 sm:$0xff]  }
  0x48   : > { %v11450_v62 = vld [vmem:[%s13395_s12 + $0x1ec] ss:$16 sps:$4 sm:$0xff]   ;;  %v11452_v63 = vld [vmem:[%s13395_s12 + $0x1e0] ss:$16 sps:$4 sm:$0xff]   ;;  %v11453_v0 = vld [vmem:[%s13395_s12 + $0x1e8] ss:$16 sps:$4 sm:$0xff]  }
  0x49   : > { %7659 = vmatpush1.bf16.msra.mxu0 %v11392_v22  ;;  %8613 = vmatpush1.bf16.msra.mxu1 %v11393_v23  ;;  %v11459_v1 = vld [vmem:[%s13395_s12 + $0x204] ss:$16 sps:$4 sm:$0xff]   ;;  %v11462_v2 = vld [vmem:[%s13395_s12 + $0x20c] ss:$16 sps:$4 sm:$0xff]   ;;  %v11454_v3 = vld [vmem:[%s14802_s0] ss:$144 sps:$4 sm:$0xff]  }
  0x4a   : > { %7660 = vmatprep.subr.bf16.mxu0 %v11394_v24  ;;  %8614 = vmatprep.subr.bf16.mxu1 %v11396_v25  ;;  %v11457_v4 = vld [vmem:[%s13395_s12 + $0x200] ss:$16 sps:$4 sm:$0xff]   ;;  %v11460_v5 = vld [vmem:[%s13395_s12 + $0x208] ss:$16 sps:$4 sm:$0xff]   ;;  %v11465_v6 = vld [vmem:[%s13395_s12 + $0x224] ss:$16 sps:$4 sm:$0xff]  }
  0x4b   : > { %v11468_v7 = vld [vmem:[%s13395_s12 + $0x22c] ss:$16 sps:$4 sm:$0xff]   ;;  %v11463_v8 = vld [vmem:[%s13395_s12 + $0x220] ss:$16 sps:$4 sm:$0xff]   ;;  %v11466_v9 = vld [vmem:[%s13395_s12 + $0x228] ss:$16 sps:$4 sm:$0xff]  }
  0x4c   : > { %v11471_v10 = vld [vmem:[%s13395_s12 + $0x244] ss:$16 sps:$4 sm:$0xff]   ;;  %v11474_v11 = vld [vmem:[%s13395_s12 + $0x24c] ss:$16 sps:$4 sm:$0xff]   ;;  %v11469_v12 = vld [vmem:[%s13395_s12 + $0x240] ss:$16 sps:$4 sm:$0xff]  }
  0x4d   : > { %7661 = vmatpush1.bf16.msra.mxu0 %v11398_v26  ;;  %8615 = vmatpush1.bf16.msra.mxu1 %v11399_v27  ;;  %v11472_v13 = vld [vmem:[%s13395_s12 + $0x248] ss:$16 sps:$4 sm:$0xff]   ;;  %v11477_v14 = vld [vmem:[%s13395_s12 + $0x264] ss:$16 sps:$4 sm:$0xff]   ;;  %v11480_v15 = vld [vmem:[%s13395_s12 + $0x26c] ss:$16 sps:$4 sm:$0xff]  }
  0x4e   : > { %7662 = vmatprep.subr.bf16.mxu0 %v11400_v28  ;;  %8616 = vmatprep.subr.bf16.mxu1 %v11402_v29  ;;  %v11475_v16 = vld [vmem:[%s13395_s12 + $0x260] ss:$16 sps:$4 sm:$0xff]   ;;  %v11478_v17 = vld [vmem:[%s13395_s12 + $0x268] ss:$16 sps:$4 sm:$0xff]   ;;  %v11483_v18 = vld [vmem:[%s13395_s12 + $0x284] ss:$16 sps:$4 sm:$0xff]  }
  0x4f   : > { %v11486_v19 = vld [vmem:[%s13395_s12 + $0x28c] ss:$16 sps:$4 sm:$0xff]   ;;  %v11481_v20 = vld [vmem:[%s13395_s12 + $0x280] ss:$16 sps:$4 sm:$0xff]   ;;  %v11484_v21 = vld [vmem:[%s13395_s12 + $0x288] ss:$16 sps:$4 sm:$0xff]  }
  0x50   : > { %v11489_v22 = vld [vmem:[%s13395_s12 + $0x2a4] ss:$16 sps:$4 sm:$0xff]   ;;  %v11492_v23 = vld [vmem:[%s13395_s12 + $0x2ac] ss:$16 sps:$4 sm:$0xff]   ;;  %v11487_v25 = vld [vmem:[%s13395_s12 + $0x2a0] ss:$16 sps:$4 sm:$0xff]  }
  0x51   : > { %7663 = vmatpush1.bf16.msra.mxu0 %v11404_v30  ;;  %8617 = vmatpush1.bf16.msra.mxu1 %v11405_v31  ;;  %v11541_v24 = vld [vmem:[%s14802_s0 + $0x124] ss:$144 sps:$4 sm:$0xff]   ;;  %v11490_v26 = vld [vmem:[%s13395_s12 + $0x2a8] ss:$16 sps:$4 sm:$0xff]   ;;  %v11498_v28 = vld [vmem:[%s13395_s12 + $0x2cc] ss:$16 sps:$4 sm:$0xff]  }
  0x52   : > { %7664 = vmatprep.subr.bf16.mxu0 %v11406_v32  ;;  %8618 = vmatprep.subr.bf16.mxu1 %v11408_v33  ;;  %v11495_v27 = vld [vmem:[%s13395_s12 + $0x2c4] ss:$16 sps:$4 sm:$0xff]   ;;  %v11549_v29 = vld [vmem:[%s14802_s0 + $0x120] ss:$144 sps:$4 sm:$0xff]   ;;  %v11496_v31 = vld [vmem:[%s13395_s12 + $0x2c8] ss:$16 sps:$4 sm:$0xff]  }
  0x53   : > { %v11493_v30 = vld [vmem:[%s13395_s12 + $0x2c0] ss:$16 sps:$4 sm:$0xff]   ;;  %v11501_v32 = vld [vmem:[%s13395_s12 + $0x2e4] ss:$16 sps:$4 sm:$0xff]   ;;  %v11504_v33 = vld [vmem:[%s13395_s12 + $0x2ec] ss:$16 sps:$4 sm:$0xff]  }
  0x54   : > { %v11520_v48 = vld [vmem:[%s13395_s12 + $0x348] ss:$16 sps:$4 sm:$0xff]  }
  0x55   : > { %7665 = vmatpush1.bf16.msra.mxu0 %v11410_v34  ;;  %8619 = vmatpush1.bf16.msra.mxu1 %v11411_v35  ;;  %v11558_v34 = vld [vmem:[%s14802_s0 + $0xc] ss:$144 sps:$4 sm:$0xff]   ;;  %v11499_v35 = vld [vmem:[%s13395_s12 + $0x2e0] ss:$16 sps:$4 sm:$0xff]  }
  0x56   : > { %7666 = vmatprep.subr.bf16.mxu0 %v11412_v36  ;;  %8620 = vmatprep.subr.bf16.mxu1 %v11414_v37  ;;  %v11502_v36 = vld [vmem:[%s13395_s12 + $0x2e8] ss:$16 sps:$4 sm:$0xff]   ;;  %v11507_v37 = vld [vmem:[%s13395_s12 + $0x304] ss:$16 sps:$4 sm:$0xff]  }
  0x59   : > { %7667 = vmatpush1.bf16.msra.mxu0 %v11416_v38  ;;  %8621 = vmatpush1.bf16.msra.mxu1 %v11417_v39  ;;  %v11510_v38 = vld [vmem:[%s13395_s12 + $0x30c] ss:$16 sps:$4 sm:$0xff]   ;;  %v11505_v39 = vld [vmem:[%s13395_s12 + $0x300] ss:$16 sps:$4 sm:$0xff]  }
  0x5a   : > { %7668 = vmatprep.subr.bf16.mxu0 %v11418_v40  ;;  %8622 = vmatprep.subr.bf16.mxu1 %v11420_v41  ;;  %v11508_v40 = vld [vmem:[%s13395_s12 + $0x308] ss:$16 sps:$4 sm:$0xff]   ;;  %v11513_v41 = vld [vmem:[%s13395_s12 + $0x324] ss:$16 sps:$4 sm:$0xff]  }
  0x5d   : > { %7669 = vmatpush1.bf16.msra.mxu0 %v11422_v42  ;;  %8623 = vmatpush1.bf16.msra.mxu1 %v11423_v43  ;;  %v11516_v42 = vld [vmem:[%s13395_s12 + $0x32c] ss:$16 sps:$4 sm:$0xff]   ;;  %v11511_v43 = vld [vmem:[%s13395_s12 + $0x320] ss:$16 sps:$4 sm:$0xff]  }
  0x5e   : > { %7670 = vmatprep.subr.bf16.mxu0 %v11424_v44  ;;  %8624 = vmatprep.subr.bf16.mxu1 %v11426_v45  ;;  %v11514_v44 = vld [vmem:[%s13395_s12 + $0x328] ss:$16 sps:$4 sm:$0xff]   ;;  %v11519_v45 = vld [vmem:[%s13395_s12 + $0x344] ss:$16 sps:$4 sm:$0xff]  }
  0x61   : > { %7671 = vmatpush1.bf16.msra.mxu0 %v11428_v46  ;;  %8625 = vmatpush1.bf16.msra.mxu1 %v11429_v47  ;;  %v11522_v46 = vld [vmem:[%s13395_s12 + $0x34c] ss:$16 sps:$4 sm:$0xff]   ;;  %v11517_v47 = vld [vmem:[%s13395_s12 + $0x340] ss:$16 sps:$4 sm:$0xff]  }
  0x62   : > { %7672 = vmatprep.subr.bf16.mxu0 %v11430_v49  ;;  %8626 = vmatprep.subr.bf16.mxu1 %v11432_v50  ;;  %v11525_v49 = vld [vmem:[%s13395_s12 + $0x364] ss:$16 sps:$4 sm:$0xff]   ;;  %v11528_v50 = vld [vmem:[%s13395_s12 + $0x36c] ss:$16 sps:$4 sm:$0xff]  }
  0x65   : > { %7673 = vmatpush1.bf16.msra.mxu0 %v11434_v51  ;;  %8627 = vmatpush1.bf16.msra.mxu1 %v11435_v52  ;;  %v11523_v51 = vld [vmem:[%s13395_s12 + $0x360] ss:$16 sps:$4 sm:$0xff]   ;;  %v11526_v52 = vld [vmem:[%s13395_s12 + $0x368] ss:$16 sps:$4 sm:$0xff]  }
  0x66   : > { %7674 = vmatprep.subr.bf16.mxu0 %v11436_v53  ;;  %8628 = vmatprep.subr.bf16.mxu1 %v11438_v54  ;;  %v11531_v53 = vld [vmem:[%s13395_s12 + $0x384] ss:$16 sps:$4 sm:$0xff]   ;;  %v11534_v54 = vld [vmem:[%s13395_s12 + $0x38c] ss:$16 sps:$4 sm:$0xff]  }
  0x69   : > { %7675 = vmatpush1.bf16.msra.mxu0 %v11440_v55  ;;  %8629 = vmatpush1.bf16.msra.mxu1 %v11441_v56  ;;  %v11529_v55 = vld [vmem:[%s13395_s12 + $0x380] ss:$16 sps:$4 sm:$0xff]   ;;  %v11532_v56 = vld [vmem:[%s13395_s12 + $0x388] ss:$16 sps:$4 sm:$0xff]  }
  0x6a   : > { %7676 = vmatprep.subr.bf16.mxu0 %v11442_v57  ;;  %8630 = vmatprep.subr.bf16.mxu1 %v11444_v58  ;;  %v11537_v57 = vld [vmem:[%s13395_s12 + $0x3a4] ss:$16 sps:$4 sm:$0xff]   ;;  %v11540_v58 = vld [vmem:[%s13395_s12 + $0x3ac] ss:$16 sps:$4 sm:$0xff]  }
  0x6d   : > { %7677 = vmatpush1.bf16.msra.mxu0 %v11446_v59  ;;  %8631 = vmatpush1.bf16.msra.mxu1 %v11447_v60  ;;  %v11535_v59 = vld [vmem:[%s13395_s12 + $0x3a0] ss:$16 sps:$4 sm:$0xff]   ;;  %v11538_v60 = vld [vmem:[%s13395_s12 + $0x3a8] ss:$16 sps:$4 sm:$0xff]  }
  0x6e   : > { %7678 = vmatprep.subr.bf16.mxu0 %v11448_v61  ;;  %8632 = vmatprep.subr.bf16.mxu1 %v11450_v62  ;;  %v11545_v61 = vld [vmem:[%s13395_s12 + $0x3c4] ss:$16 sps:$4 sm:$0xff]   ;;  %v11548_v62 = vld [vmem:[%s13395_s12 + $0x3cc] ss:$16 sps:$4 sm:$0xff]  }
  0x71   : > { %7679 = vmatpush1.bf16.msra.mxu0 %v11452_v63  ;;  %8633 = vmatpush1.bf16.msra.mxu1 %v11453_v0  ;;  %v11543_v63 = vld [vmem:[%s13395_s12 + $0x3c0] ss:$16 sps:$4 sm:$0xff]   ;;  %v11546_v0 = vld [vmem:[%s13395_s12 + $0x3c8] ss:$16 sps:$4 sm:$0xff]  }
  0x72   : > { %7701 = vmatprep.subr.bf16.mxu0 %v11459_v1  ;;  %8655 = vmatprep.subr.bf16.mxu1 %v11462_v2  ;;  %v11552_v1 = vld [vmem:[%s13395_s12 + $0x3e4] ss:$16 sps:$4 sm:$0xff]   ;;  %v11555_v2 = vld [vmem:[%s13395_s12 + $0x3ec] ss:$16 sps:$4 sm:$0xff]  }
  0x74   : > { %7681 = vmatmul.mubr.bf16.vlgmr.msra.gmra.mrb[0].mxu0 %v11454_v3  ;;  %8635 = vmatmul.mubr.bf16.vlgmr.msra.gmra.mrb[0].mxu1 %v11454_v3  ;;  %v11550_v3 = vld [vmem:[%s13395_s12 + $0x3e0] ss:$16 sps:$4 sm:$0xff]  }
  0x75   : > { %7702 = vmatpush1.bf16.msra.mxu0 %v11457_v4  ;;  %8656 = vmatpush1.bf16.msra.mxu1 %v11460_v5  ;;  %v11553_v4 = vld [vmem:[%s13395_s12 + $0x3e8] ss:$16 sps:$4 sm:$0xff]   ;;  %v11561_v5 = vld [vmem:[%s13395_s12 + $0x404] ss:$16 sps:$4 sm:$0xff]  }
  0x76   : > { %7703 = vmatprep.subr.bf16.mxu0 %v11465_v6  ;;  %8657 = vmatprep.subr.bf16.mxu1 %v11468_v7  ;;  %v11564_v6 = vld [vmem:[%s13395_s12 + $0x40c] ss:$16 sps:$4 sm:$0xff]   ;;  %v11556_v7 = vld [vmem:[%s14802_s0 + $0x8] ss:$144 sps:$4 sm:$0xff]  }
  0x77   : > { %7690 = vmatprep.mubr.bf16.mxu0 %v11541_v24  ;;  %8644 = vmatprep.mubr.bf16.mxu1 %v11541_v24  ;;  %v11580_v24 = vld [vmem:[%s13395_s12 + $0x468] ss:$16 sps:$4 sm:$0xff]  }
  0x79   : > { %7704 = vmatpush1.bf16.msra.mxu0 %v11463_v8  ;;  %8658 = vmatpush1.bf16.msra.mxu1 %v11466_v9  ;;  %v11559_v8 = vld [vmem:[%s13395_s12 + $0x400] ss:$16 sps:$4 sm:$0xff]   ;;  %v11562_v9 = vld [vmem:[%s13395_s12 + $0x408] ss:$16 sps:$4 sm:$0xff]  }
  0x7a   : > { %7705 = vmatprep.subr.bf16.mxu0 %v11471_v10  ;;  %8659 = vmatprep.subr.bf16.mxu1 %v11474_v11  ;;  %v11567_v10 = vld [vmem:[%s13395_s12 + $0x424] ss:$16 sps:$4 sm:$0xff]   ;;  %v11570_v11 = vld [vmem:[%s13395_s12 + $0x42c] ss:$16 sps:$4 sm:$0xff]  }
  0x7c   : > { %7691 = vmatmul.mubr.bf16.gmra.mrb[4].mxu0 %v11549_v29  ;;  %8645 = vmatmul.mubr.bf16.gmra.mrb[4].mxu1 %v11549_v29  ;;  %v11591_v29 = vld [vmem:[%s13395_s12 + $0x4a4] ss:$16 sps:$4 sm:$0xff]  }
  0x7d   : > { %7706 = vmatpush1.bf16.msra.mxu0 %v11469_v12  ;;  %8660 = vmatpush1.bf16.msra.mxu1 %v11472_v13  ;;  %v11643_v12 = vld [vmem:[%s14802_s0 + $0x12c] ss:$144 sps:$4 sm:$0xff]   ;;  %v11565_v13 = vld [vmem:[%s13395_s12 + $0x420] ss:$16 sps:$4 sm:$0xff]  }
  0x7e   : > { %7707 = vmatprep.subr.bf16.mxu0 %v11477_v14  ;;  %8661 = vmatprep.subr.bf16.mxu1 %v11480_v15  ;;  %v11568_v14 = vld [vmem:[%s13395_s12 + $0x428] ss:$16 sps:$4 sm:$0xff]   ;;  %v11573_v15 = vld [vmem:[%s13395_s12 + $0x444] ss:$16 sps:$4 sm:$0xff]  }
  0x7f   : > { %7733 = vmatprep.mubr.bf16.mxu0 %v11558_v34  ;;  %8687 = vmatprep.mubr.bf16.mxu1 %v11558_v34  ;;  %v11600_v34 = vld [vmem:[%s13395_s12 + $0x4cc] ss:$16 sps:$4 sm:$0xff]  }
  0x81   : > { %7708 = vmatpush1.bf16.msra.mxu0 %v11475_v16  ;;  %8662 = vmatpush1.bf16.msra.mxu1 %v11478_v17  ;;  %v11576_v16 = vld [vmem:[%s13395_s12 + $0x44c] ss:$16 sps:$4 sm:$0xff]   ;;  %v11571_v17 = vld [vmem:[%s13395_s12 + $0x440] ss:$16 sps:$4 sm:$0xff]  }
  0x82   : > { %7709 = vmatprep.subr.bf16.mxu0 %v11483_v18  ;;  %8663 = vmatprep.subr.bf16.mxu1 %v11486_v19  ;;  %v11574_v18 = vld [vmem:[%s13395_s12 + $0x448] ss:$16 sps:$4 sm:$0xff]  }
  0x83   : > { %v11651_v19 = vld [vmem:[%s14802_s0 + $0x128] ss:$144 sps:$4 sm:$0xff]  }
  0x85   : > { %7710 = vmatpush1.bf16.msra.mxu0 %v11481_v20  ;;  %8664 = vmatpush1.bf16.msra.mxu1 %v11484_v21  ;;  %v11579_v20 = vld [vmem:[%s13395_s12 + $0x464] ss:$16 sps:$4 sm:$0xff]   ;;  %v11582_v21 = vld [vmem:[%s13395_s12 + $0x46c] ss:$16 sps:$4 sm:$0xff]  }
  0x86   : > { %7711 = vmatprep.subr.bf16.mxu0 %v11489_v22  ;;  %8665 = vmatprep.subr.bf16.mxu1 %v11492_v23  ;;  %v11660_v22 = vld [vmem:[%s14802_s0 + $0x14] ss:$144 sps:$4 sm:$0xff]   ;;  %v11577_v23 = vld [vmem:[%s13395_s12 + $0x460] ss:$16 sps:$4 sm:$0xff]  }
  0x89   : > { %7712 = vmatpush1.bf16.msra.mxu0 %v11487_v25  ;;  %8666 = vmatpush1.bf16.msra.mxu1 %v11490_v26  ;;  %v11585_v25 = vld [vmem:[%s13395_s12 + $0x484] ss:$16 sps:$4 sm:$0xff]   ;;  %v11588_v26 = vld [vmem:[%s13395_s12 + $0x48c] ss:$16 sps:$4 sm:$0xff]  }
  0x8a   : > { %7713 = vmatprep.subr.bf16.mxu0 %v11495_v27  ;;  %8667 = vmatprep.subr.bf16.mxu1 %v11498_v28  ;;  %v11583_v27 = vld [vmem:[%s13395_s12 + $0x480] ss:$16 sps:$4 sm:$0xff]   ;;  %v11586_v28 = vld [vmem:[%s13395_s12 + $0x488] ss:$16 sps:$4 sm:$0xff]  }
  0x8d   : > { %7714 = vmatpush1.bf16.msra.mxu0 %v11493_v30  ;;  %8668 = vmatpush1.bf16.msra.mxu1 %v11496_v31  ;;  %v11594_v30 = vld [vmem:[%s13395_s12 + $0x4ac] ss:$16 sps:$4 sm:$0xff]   ;;  %v11589_v31 = vld [vmem:[%s13395_s12 + $0x4a0] ss:$16 sps:$4 sm:$0xff]  }
  0x8e   : > { %7715 = vmatprep.subr.bf16.mxu0 %v11501_v32  ;;  %8669 = vmatprep.subr.bf16.mxu1 %v11504_v33  ;;  %v11592_v32 = vld [vmem:[%s13395_s12 + $0x4a8] ss:$16 sps:$4 sm:$0xff]   ;;  %v11597_v33 = vld [vmem:[%s13395_s12 + $0x4c4] ss:$16 sps:$4 sm:$0xff]  }
  0x91   : > { %7716 = vmatpush1.bf16.msra.mxu0 %v11499_v35  ;;  %8670 = vmatpush1.bf16.msra.mxu1 %v11502_v36  ;;  %v11595_v35 = vld [vmem:[%s13395_s12 + $0x4c0] ss:$16 sps:$4 sm:$0xff]   ;;  %v11598_v36 = vld [vmem:[%s13395_s12 + $0x4c8] ss:$16 sps:$4 sm:$0xff]  }
  0x92   : > { %7717 = vmatprep.subr.bf16.mxu0 %v11507_v37  ;;  %8671 = vmatprep.subr.bf16.mxu1 %v11510_v38  ;;  %v11603_v37 = vld [vmem:[%s13395_s12 + $0x4e4] ss:$16 sps:$4 sm:$0xff]   ;;  %v11606_v38 = vld [vmem:[%s13395_s12 + $0x4ec] ss:$16 sps:$4 sm:$0xff]  }
  0x95   : > { %7718 = vmatpush1.bf16.msra.mxu0 %v11505_v39  ;;  %8672 = vmatpush1.bf16.msra.mxu1 %v11508_v40  ;;  %v11601_v39 = vld [vmem:[%s13395_s12 + $0x4e0] ss:$16 sps:$4 sm:$0xff]   ;;  %v11604_v40 = vld [vmem:[%s13395_s12 + $0x4e8] ss:$16 sps:$4 sm:$0xff]  }
  0x96   : > { %7719 = vmatprep.subr.bf16.mxu0 %v11513_v41  ;;  %8673 = vmatprep.subr.bf16.mxu1 %v11516_v42  ;;  %v11609_v41 = vld [vmem:[%s13395_s12 + $0x504] ss:$16 sps:$4 sm:$0xff]   ;;  %v11612_v42 = vld [vmem:[%s13395_s12 + $0x50c] ss:$16 sps:$4 sm:$0xff]  }
  0x99   : > { %7720 = vmatpush1.bf16.msra.mxu0 %v11511_v43  ;;  %8674 = vmatpush1.bf16.msra.mxu1 %v11514_v44  ;;  %v11607_v43 = vld [vmem:[%s13395_s12 + $0x500] ss:$16 sps:$4 sm:$0xff]   ;;  %v11610_v44 = vld [vmem:[%s13395_s12 + $0x508] ss:$16 sps:$4 sm:$0xff]  }
  0x9a   : > { %7721 = vmatprep.subr.bf16.mxu0 %v11519_v45  ;;  %8675 = vmatprep.subr.bf16.mxu1 %v11522_v46  ;;  %v11615_v45 = vld [vmem:[%s13395_s12 + $0x524] ss:$16 sps:$4 sm:$0xff]   ;;  %v11618_v46 = vld [vmem:[%s13395_s12 + $0x52c] ss:$16 sps:$4 sm:$0xff]  }
  0x9d   : > { %7722 = vmatpush1.bf16.msra.mxu0 %v11517_v47  ;;  %8676 = vmatpush1.bf16.msra.mxu1 %v11520_v48  ;;  %v11613_v47 = vld [vmem:[%s13395_s12 + $0x520] ss:$16 sps:$4 sm:$0xff]   ;;  %v11616_v48 = vld [vmem:[%s13395_s12 + $0x528] ss:$16 sps:$4 sm:$0xff]  }
  0x9e   : > { %7723 = vmatprep.subr.bf16.mxu0 %v11525_v49  ;;  %8677 = vmatprep.subr.bf16.mxu1 %v11528_v50  ;;  %v11621_v49 = vld [vmem:[%s13395_s12 + $0x544] ss:$16 sps:$4 sm:$0xff]   ;;  %v11624_v50 = vld [vmem:[%s13395_s12 + $0x54c] ss:$16 sps:$4 sm:$0xff]  }
  0xa1   : > { %7724 = vmatpush1.bf16.msra.mxu0 %v11523_v51  ;;  %8678 = vmatpush1.bf16.msra.mxu1 %v11526_v52  ;;  %v11619_v51 = vld [vmem:[%s13395_s12 + $0x540] ss:$16 sps:$4 sm:$0xff]   ;;  %v11622_v52 = vld [vmem:[%s13395_s12 + $0x548] ss:$16 sps:$4 sm:$0xff]  }
  0xa2   : > { %7725 = vmatprep.subr.bf16.mxu0 %v11531_v53  ;;  %8679 = vmatprep.subr.bf16.mxu1 %v11534_v54  ;;  %v11627_v53 = vld [vmem:[%s13395_s12 + $0x564] ss:$16 sps:$4 sm:$0xff]   ;;  %v11630_v54 = vld [vmem:[%s13395_s12 + $0x56c] ss:$16 sps:$4 sm:$0xff]  }
  0xa5   : > { %7726 = vmatpush1.bf16.msra.mxu0 %v11529_v55  ;;  %8680 = vmatpush1.bf16.msra.mxu1 %v11532_v56  ;;  %v11625_v55 = vld [vmem:[%s13395_s12 + $0x560] ss:$16 sps:$4 sm:$0xff]   ;;  %v11628_v56 = vld [vmem:[%s13395_s12 + $0x568] ss:$16 sps:$4 sm:$0xff]  }
  0xa6   : > { %7727 = vmatprep.subr.bf16.mxu0 %v11537_v57  ;;  %8681 = vmatprep.subr.bf16.mxu1 %v11540_v58  ;;  %v11633_v57 = vld [vmem:[%s13395_s12 + $0x584] ss:$16 sps:$4 sm:$0xff]   ;;  %v11636_v58 = vld [vmem:[%s13395_s12 + $0x58c] ss:$16 sps:$4 sm:$0xff]  }
  0xa9   : > { %7728 = vmatpush1.bf16.msra.mxu0 %v11535_v59  ;;  %8682 = vmatpush1.bf16.msra.mxu1 %v11538_v60  ;;  %v11631_v59 = vld [vmem:[%s13395_s12 + $0x580] ss:$16 sps:$4 sm:$0xff]   ;;  %v11634_v60 = vld [vmem:[%s13395_s12 + $0x588] ss:$16 sps:$4 sm:$0xff]  }
  0xaa   : > { %7729 = vmatprep.subr.bf16.mxu0 %v11545_v61  ;;  %8683 = vmatprep.subr.bf16.mxu1 %v11548_v62  ;;  %v11639_v61 = vld [vmem:[%s13395_s12 + $0x5a4] ss:$16 sps:$4 sm:$0xff]   ;;  %v11642_v62 = vld [vmem:[%s13395_s12 + $0x5ac] ss:$16 sps:$4 sm:$0xff]  }
  0xad   : > { %7730 = vmatpush1.bf16.msra.mxu0 %v11543_v63  ;;  %8684 = vmatpush1.bf16.msra.mxu1 %v11546_v0  ;;  %v11637_v63 = vld [vmem:[%s13395_s12 + $0x5a0] ss:$16 sps:$4 sm:$0xff]   ;;  %v11640_v0 = vld [vmem:[%s13395_s12 + $0x5a8] ss:$16 sps:$4 sm:$0xff]  }
  0xae   : > { %7731 = vmatprep.subr.bf16.mxu0 %v11552_v1  ;;  %8685 = vmatprep.subr.bf16.mxu1 %v11555_v2  ;;  %v11647_v1 = vld [vmem:[%s13395_s12 + $0x5c4] ss:$16 sps:$4 sm:$0xff]   ;;  %v11650_v2 = vld [vmem:[%s13395_s12 + $0x5cc] ss:$16 sps:$4 sm:$0xff]  }
  0xb1   : > { %7732 = vmatpush1.bf16.msra.mxu0 %v11550_v3  ;;  %8686 = vmatpush1.bf16.msra.mxu1 %v11553_v4  ;;  %v11645_v3 = vld [vmem:[%s13395_s12 + $0x5c0] ss:$16 sps:$4 sm:$0xff]   ;;  %v11648_v4 = vld [vmem:[%s13395_s12 + $0x5c8] ss:$16 sps:$4 sm:$0xff]  }
  0xb2   : > { %7754 = vmatprep.subr.bf16.mxu0 %v11561_v5  ;;  %8708 = vmatprep.subr.bf16.mxu1 %v11564_v6  ;;  %v11654_v5 = vld [vmem:[%s13395_s12 + $0x5e4] ss:$16 sps:$4 sm:$0xff]   ;;  %v11657_v6 = vld [vmem:[%s13395_s12 + $0x5ec] ss:$16 sps:$4 sm:$0xff]  }
  0xb4   : > { %7734 = vmatmul.mubr.bf16.vlgmr.msra.gmra.mrb[0].mxu0 %v11556_v7  ;;  %8688 = vmatmul.mubr.bf16.vlgmr.msra.gmra.mrb[0].mxu1 %v11556_v7  ;;  %v11652_v7 = vld [vmem:[%s13395_s12 + $0x5e0] ss:$16 sps:$4 sm:$0xff]  }
  0xb5   : > { %7755 = vmatpush1.bf16.msra.mxu0 %v11559_v8  ;;  %8709 = vmatpush1.bf16.msra.mxu1 %v11562_v9  ;;  %v11655_v8 = vld [vmem:[%s13395_s12 + $0x5e8] ss:$16 sps:$4 sm:$0xff]   ;;  %v11663_v9 = vld [vmem:[%s13395_s12 + $0x604] ss:$16 sps:$4 sm:$0xff]  }
  0xb6   : > { %7756 = vmatprep.subr.bf16.mxu0 %v11567_v10  ;;  %8710 = vmatprep.subr.bf16.mxu1 %v11570_v11  ;;  %v11666_v10 = vld [vmem:[%s13395_s12 + $0x60c] ss:$16 sps:$4 sm:$0xff]   ;;  %v11658_v11 = vld [vmem:[%s14802_s0 + $0x10] ss:$144 sps:$4 sm:$0xff]  }
  0xb7   : > { %7743 = vmatprep.mubr.bf16.mxu0 %v11643_v12  ;;  %8697 = vmatprep.mubr.bf16.mxu1 %v11643_v12  ;;  %v11661_v12 = vld [vmem:[%s13395_s12 + $0x600] ss:$16 sps:$4 sm:$0xff]  }
  0xb9   : > { %7757 = vmatpush1.bf16.msra.mxu0 %v11565_v13  ;;  %8711 = vmatpush1.bf16.msra.mxu1 %v11568_v14  ;;  %v11664_v13 = vld [vmem:[%s13395_s12 + $0x608] ss:$16 sps:$4 sm:$0xff]   ;;  %v11669_v14 = vld [vmem:[%s13395_s12 + $0x624] ss:$16 sps:$4 sm:$0xff]  }
  0xba   : > { %7758 = vmatprep.subr.bf16.mxu0 %v11573_v15  ;;  %8712 = vmatprep.subr.bf16.mxu1 %v11576_v16  ;;  %v11672_v15 = vld [vmem:[%s13395_s12 + $0x62c] ss:$16 sps:$4 sm:$0xff]   ;;  %v11745_v16 = vld [vmem:[%s14802_s0 + $0x134] ss:$144 sps:$4 sm:$0xff]  }
  0xbc   : > { %7744 = vmatmul.mubr.bf16.gmra.mrb[4].mxu0 %v11651_v19  ;;  %8698 = vmatmul.mubr.bf16.gmra.mrb[4].mxu1 %v11651_v19  ;;  %v11675_v19 = vld [vmem:[%s13395_s12 + $0x644] ss:$16 sps:$4 sm:$0xff]  }
  0xbd   : > { %7759 = vmatpush1.bf16.msra.mxu0 %v11571_v17  ;;  %8713 = vmatpush1.bf16.msra.mxu1 %v11574_v18  ;;  %v11667_v17 = vld [vmem:[%s13395_s12 + $0x620] ss:$16 sps:$4 sm:$0xff]   ;;  %v11670_v18 = vld [vmem:[%s13395_s12 + $0x628] ss:$16 sps:$4 sm:$0xff]  }
  0xbe   : > { %7760 = vmatprep.subr.bf16.mxu0 %v11579_v20  ;;  %8714 = vmatprep.subr.bf16.mxu1 %v11582_v21  ;;  %v11678_v20 = vld [vmem:[%s13395_s12 + $0x64c] ss:$16 sps:$4 sm:$0xff]   ;;  %v11673_v21 = vld [vmem:[%s13395_s12 + $0x640] ss:$16 sps:$4 sm:$0xff]  }
  0xbf   : > { %7786 = vmatprep.mubr.bf16.mxu0 %v11660_v22  ;;  %8740 = vmatprep.mubr.bf16.mxu1 %v11660_v22  ;;  %v11676_v22 = vld [vmem:[%s13395_s12 + $0x648] ss:$16 sps:$4 sm:$0xff]  }
  0xc1   : > { %7761 = vmatpush1.bf16.msra.mxu0 %v11577_v23  ;;  %8715 = vmatpush1.bf16.msra.mxu1 %v11580_v24  ;;  %v11753_v23 = vld [vmem:[%s14802_s0 + $0x130] ss:$144 sps:$4 sm:$0xff]   ;;  %v11681_v24 = vld [vmem:[%s13395_s12 + $0x664] ss:$16 sps:$4 sm:$0xff]  }
  0xc2   : > { %7762 = vmatprep.subr.bf16.mxu0 %v11585_v25  ;;  %8716 = vmatprep.subr.bf16.mxu1 %v11588_v26  ;;  %v11684_v25 = vld [vmem:[%s13395_s12 + $0x66c] ss:$16 sps:$4 sm:$0xff]  }
  0xc3   : > { %v11762_v26 = vld [vmem:[%s14802_s0 + $0x1c] ss:$144 sps:$4 sm:$0xff]  }
  0xc5   : > { %7763 = vmatpush1.bf16.msra.mxu0 %v11583_v27  ;;  %8717 = vmatpush1.bf16.msra.mxu1 %v11586_v28  ;;  %v11679_v27 = vld [vmem:[%s13395_s12 + $0x660] ss:$16 sps:$4 sm:$0xff]   ;;  %v11682_v28 = vld [vmem:[%s13395_s12 + $0x668] ss:$16 sps:$4 sm:$0xff]  }
  0xc6   : > { %7764 = vmatprep.subr.bf16.mxu0 %v11591_v29  ;;  %8718 = vmatprep.subr.bf16.mxu1 %v11594_v30  ;;  %v11687_v29 = vld [vmem:[%s13395_s12 + $0x684] ss:$16 sps:$4 sm:$0xff]   ;;  %v11690_v30 = vld [vmem:[%s13395_s12 + $0x68c] ss:$16 sps:$4 sm:$0xff]  }
  0xc9   : > { %7765 = vmatpush1.bf16.msra.mxu0 %v11589_v31  ;;  %8719 = vmatpush1.bf16.msra.mxu1 %v11592_v32  ;;  %v11685_v31 = vld [vmem:[%s13395_s12 + $0x680] ss:$16 sps:$4 sm:$0xff]   ;;  %v11688_v32 = vld [vmem:[%s13395_s12 + $0x688] ss:$16 sps:$4 sm:$0xff]  }
  0xca   : > { %7766 = vmatprep.subr.bf16.mxu0 %v11597_v33  ;;  %8720 = vmatprep.subr.bf16.mxu1 %v11600_v34  ;;  %v11693_v33 = vld [vmem:[%s13395_s12 + $0x6a4] ss:$16 sps:$4 sm:$0xff]   ;;  %v11696_v34 = vld [vmem:[%s13395_s12 + $0x6ac] ss:$16 sps:$4 sm:$0xff]  }
  0xcd   : > { %7767 = vmatpush1.bf16.msra.mxu0 %v11595_v35  ;;  %8721 = vmatpush1.bf16.msra.mxu1 %v11598_v36  ;;  %v11691_v35 = vld [vmem:[%s13395_s12 + $0x6a0] ss:$16 sps:$4 sm:$0xff]   ;;  %v11694_v36 = vld [vmem:[%s13395_s12 + $0x6a8] ss:$16 sps:$4 sm:$0xff]  }
  0xce   : > { %7768 = vmatprep.subr.bf16.mxu0 %v11603_v37  ;;  %8722 = vmatprep.subr.bf16.mxu1 %v11606_v38  ;;  %v11699_v37 = vld [vmem:[%s13395_s12 + $0x6c4] ss:$16 sps:$4 sm:$0xff]   ;;  %v11702_v38 = vld [vmem:[%s13395_s12 + $0x6cc] ss:$16 sps:$4 sm:$0xff]  }
  0xd1   : > { %7769 = vmatpush1.bf16.msra.mxu0 %v11601_v39  ;;  %8723 = vmatpush1.bf16.msra.mxu1 %v11604_v40  ;;  %v11697_v39 = vld [vmem:[%s13395_s12 + $0x6c0] ss:$16 sps:$4 sm:$0xff]   ;;  %v11700_v40 = vld [vmem:[%s13395_s12 + $0x6c8] ss:$16 sps:$4 sm:$0xff]  }
  0xd2   : > { %7770 = vmatprep.subr.bf16.mxu0 %v11609_v41  ;;  %8724 = vmatprep.subr.bf16.mxu1 %v11612_v42  ;;  %v11705_v41 = vld [vmem:[%s13395_s12 + $0x6e4] ss:$16 sps:$4 sm:$0xff]   ;;  %v11708_v42 = vld [vmem:[%s13395_s12 + $0x6ec] ss:$16 sps:$4 sm:$0xff]  }
  0xd5   : > { %7771 = vmatpush1.bf16.msra.mxu0 %v11607_v43  ;;  %8725 = vmatpush1.bf16.msra.mxu1 %v11610_v44  ;;  %v11703_v43 = vld [vmem:[%s13395_s12 + $0x6e0] ss:$16 sps:$4 sm:$0xff]   ;;  %v11706_v44 = vld [vmem:[%s13395_s12 + $0x6e8] ss:$16 sps:$4 sm:$0xff]  }
  0xd6   : > { %7772 = vmatprep.subr.bf16.mxu0 %v11615_v45  ;;  %8726 = vmatprep.subr.bf16.mxu1 %v11618_v46  ;;  %v11711_v45 = vld [vmem:[%s13395_s12 + $0x704] ss:$16 sps:$4 sm:$0xff]   ;;  %v11714_v46 = vld [vmem:[%s13395_s12 + $0x70c] ss:$16 sps:$4 sm:$0xff]  }
  0xd9   : > { %7773 = vmatpush1.bf16.msra.mxu0 %v11613_v47  ;;  %8727 = vmatpush1.bf16.msra.mxu1 %v11616_v48  ;;  %v11709_v47 = vld [vmem:[%s13395_s12 + $0x700] ss:$16 sps:$4 sm:$0xff]   ;;  %v11712_v48 = vld [vmem:[%s13395_s12 + $0x708] ss:$16 sps:$4 sm:$0xff]  }
  0xda   : > { %7774 = vmatprep.subr.bf16.mxu0 %v11621_v49  ;;  %8728 = vmatprep.subr.bf16.mxu1 %v11624_v50  ;;  %v11717_v49 = vld [vmem:[%s13395_s12 + $0x724] ss:$16 sps:$4 sm:$0xff]   ;;  %v11720_v50 = vld [vmem:[%s13395_s12 + $0x72c] ss:$16 sps:$4 sm:$0xff]  }
  0xdd   : > { %7775 = vmatpush1.bf16.msra.mxu0 %v11619_v51  ;;  %8729 = vmatpush1.bf16.msra.mxu1 %v11622_v52  ;;  %v11715_v51 = vld [vmem:[%s13395_s12 + $0x720] ss:$16 sps:$4 sm:$0xff]   ;;  %v11718_v52 = vld [vmem:[%s13395_s12 + $0x728] ss:$16 sps:$4 sm:$0xff]  }
  0xde   : > { %7776 = vmatprep.subr.bf16.mxu0 %v11627_v53  ;;  %8730 = vmatprep.subr.bf16.mxu1 %v11630_v54  ;;  %v11723_v53 = vld [vmem:[%s13395_s12 + $0x744] ss:$16 sps:$4 sm:$0xff]   ;;  %v11726_v54 = vld [vmem:[%s13395_s12 + $0x74c] ss:$16 sps:$4 sm:$0xff]  }
  0xe1   : > { %7777 = vmatpush1.bf16.msra.mxu0 %v11625_v55  ;;  %8731 = vmatpush1.bf16.msra.mxu1 %v11628_v56  ;;  %v11721_v55 = vld [vmem:[%s13395_s12 + $0x740] ss:$16 sps:$4 sm:$0xff]   ;;  %v11724_v56 = vld [vmem:[%s13395_s12 + $0x748] ss:$16 sps:$4 sm:$0xff]  }
  0xe2   : > { %7778 = vmatprep.subr.bf16.mxu0 %v11633_v57  ;;  %8732 = vmatprep.subr.bf16.mxu1 %v11636_v58  ;;  %v11729_v57 = vld [vmem:[%s13395_s12 + $0x764] ss:$16 sps:$4 sm:$0xff]   ;;  %v11732_v58 = vld [vmem:[%s13395_s12 + $0x76c] ss:$16 sps:$4 sm:$0xff]  }
  0xe5   : > { %7779 = vmatpush1.bf16.msra.mxu0 %v11631_v59  ;;  %8733 = vmatpush1.bf16.msra.mxu1 %v11634_v60  ;;  %v11727_v59 = vld [vmem:[%s13395_s12 + $0x760] ss:$16 sps:$4 sm:$0xff]   ;;  %v11730_v60 = vld [vmem:[%s13395_s12 + $0x768] ss:$16 sps:$4 sm:$0xff]  }
  0xe6   : > { %7780 = vmatprep.subr.bf16.mxu0 %v11639_v61  ;;  %8734 = vmatprep.subr.bf16.mxu1 %v11642_v62  ;;  %v11735_v61 = vld [vmem:[%s13395_s12 + $0x784] ss:$16 sps:$4 sm:$0xff]   ;;  %v11738_v62 = vld [vmem:[%s13395_s12 + $0x78c] ss:$16 sps:$4 sm:$0xff]  }
  0xe9   : > { %7781 = vmatpush1.bf16.msra.mxu0 %v11637_v63  ;;  %8735 = vmatpush1.bf16.msra.mxu1 %v11640_v0  ;;  %v11733_v63 = vld [vmem:[%s13395_s12 + $0x780] ss:$16 sps:$4 sm:$0xff]   ;;  %v11736_v0 = vld [vmem:[%s13395_s12 + $0x788] ss:$16 sps:$4 sm:$0xff]  }
  0xea   : > { %7782 = vmatprep.subr.bf16.mxu0 %v11647_v1  ;;  %8736 = vmatprep.subr.bf16.mxu1 %v11650_v2  ;;  %v11741_v1 = vld [vmem:[%s13395_s12 + $0x7a4] ss:$16 sps:$4 sm:$0xff]   ;;  %v11744_v2 = vld [vmem:[%s13395_s12 + $0x7ac] ss:$16 sps:$4 sm:$0xff]  }
  0xed   : > { %7783 = vmatpush1.bf16.msra.mxu0 %v11645_v3  ;;  %8737 = vmatpush1.bf16.msra.mxu1 %v11648_v4  ;;  %v11739_v3 = vld [vmem:[%s13395_s12 + $0x7a0] ss:$16 sps:$4 sm:$0xff]   ;;  %v11742_v4 = vld [vmem:[%s13395_s12 + $0x7a8] ss:$16 sps:$4 sm:$0xff]  }
  0xee   : > { %7784 = vmatprep.subr.bf16.mxu0 %v11654_v5  ;;  %8738 = vmatprep.subr.bf16.mxu1 %v11657_v6  ;;  %v11749_v5 = vld [vmem:[%s13395_s12 + $0x7c4] ss:$16 sps:$4 sm:$0xff]   ;;  %v11752_v6 = vld [vmem:[%s13395_s12 + $0x7cc] ss:$16 sps:$4 sm:$0xff]  }
  0xf1   : > { %7785 = vmatpush1.bf16.msra.mxu0 %v11652_v7  ;;  %8739 = vmatpush1.bf16.msra.mxu1 %v11655_v8  ;;  %v11747_v7 = vld [vmem:[%s13395_s12 + $0x7c0] ss:$16 sps:$4 sm:$0xff]   ;;  %v11750_v8 = vld [vmem:[%s13395_s12 + $0x7c8] ss:$16 sps:$4 sm:$0xff]  }
  0xf2   : > { %7807 = vmatprep.subr.bf16.mxu0 %v11663_v9  ;;  %8761 = vmatprep.subr.bf16.mxu1 %v11666_v10  ;;  %v11756_v9 = vld [vmem:[%s13395_s12 + $0x7e4] ss:$16 sps:$4 sm:$0xff]   ;;  %v11759_v10 = vld [vmem:[%s13395_s12 + $0x7ec] ss:$16 sps:$4 sm:$0xff]  }
  0xf4   : > { %7787 = vmatmul.mubr.bf16.vlgmr.msra.gmra.mrb[0].mxu0 %v11658_v11  ;;  %8741 = vmatmul.mubr.bf16.vlgmr.msra.gmra.mrb[0].mxu1 %v11658_v11  ;;  %v11754_v11 = vld [vmem:[%s13395_s12 + $0x7e0] ss:$16 sps:$4 sm:$0xff]  }
  0xf5   : > { %7808 = vmatpush1.bf16.msra.mxu0 %v11661_v12  ;;  %8762 = vmatpush1.bf16.msra.mxu1 %v11664_v13  ;;  %v11757_v12 = vld [vmem:[%s13395_s12 + $0x7e8] ss:$16 sps:$4 sm:$0xff]   ;;  %v11765_v13 = vld [vmem:[%s13395_s12 + $0x804] ss:$16 sps:$4 sm:$0xff]  }
  0xf6   : > { %7809 = vmatprep.subr.bf16.mxu0 %v11669_v14  ;;  %8763 = vmatprep.subr.bf16.mxu1 %v11672_v15  ;;  %v11768_v14 = vld [vmem:[%s13395_s12 + $0x80c] ss:$16 sps:$4 sm:$0xff]   ;;  %v11760_v15 = vld [vmem:[%s14802_s0 + $0x18] ss:$144 sps:$4 sm:$0xff]  }
  0xf7   : > { %7796 = vmatprep.mubr.bf16.mxu0 %v11745_v16  ;;  %8750 = vmatprep.mubr.bf16.mxu1 %v11745_v16  ;;  %v11763_v16 = vld [vmem:[%s13395_s12 + $0x800] ss:$16 sps:$4 sm:$0xff]  }
  0xf9   : > { %7810 = vmatpush1.bf16.msra.mxu0 %v11667_v17  ;;  %8764 = vmatpush1.bf16.msra.mxu1 %v11670_v18  ;;  %v11766_v17 = vld [vmem:[%s13395_s12 + $0x808] ss:$16 sps:$4 sm:$0xff]   ;;  %v11771_v18 = vld [vmem:[%s13395_s12 + $0x824] ss:$16 sps:$4 sm:$0xff]  }
  0xfa   : > { %7811 = vmatprep.subr.bf16.mxu0 %v11675_v19  ;;  %8765 = vmatprep.subr.bf16.mxu1 %v11678_v20  ;;  %v11774_v19 = vld [vmem:[%s13395_s12 + $0x82c] ss:$16 sps:$4 sm:$0xff]  }
  0xfb   : > { %v11847_v20 = vld [vmem:[%s14802_s0 + $0x13c] ss:$144 sps:$4 sm:$0xff]  }
  0xfc   : > { %7797 = vmatmul.mubr.bf16.gmra.mrb[4].mxu0 %v11753_v23  ;;  %8751 = vmatmul.mubr.bf16.gmra.mrb[4].mxu1 %v11753_v23  ;;  %v11777_v23 = vld [vmem:[%s13395_s12 + $0x844] ss:$16 sps:$4 sm:$0xff]  }
  0xfd   : > { %7812 = vmatpush1.bf16.msra.mxu0 %v11673_v21  ;;  %8766 = vmatpush1.bf16.msra.mxu1 %v11676_v22  ;;  %v11769_v21 = vld [vmem:[%s13395_s12 + $0x820] ss:$16 sps:$4 sm:$0xff]   ;;  %v11772_v22 = vld [vmem:[%s13395_s12 + $0x828] ss:$16 sps:$4 sm:$0xff]  }
  0xfe   : > { %7813 = vmatprep.subr.bf16.mxu0 %v11681_v24  ;;  %8767 = vmatprep.subr.bf16.mxu1 %v11684_v25  ;;  %v11780_v24 = vld [vmem:[%s13395_s12 + $0x84c] ss:$16 sps:$4 sm:$0xff]   ;;  %v11775_v25 = vld [vmem:[%s13395_s12 + $0x840] ss:$16 sps:$4 sm:$0xff]  }
  0xff   : > { %7839 = vmatprep.mubr.bf16.mxu0 %v11762_v26  ;;  %8793 = vmatprep.mubr.bf16.mxu1 %v11762_v26  ;;  %v11855_v26 = vld [vmem:[%s14802_s0 + $0x138] ss:$144 sps:$4 sm:$0xff]  }
 0x101   : > { %7814 = vmatpush1.bf16.msra.mxu0 %v11679_v27  ;;  %8768 = vmatpush1.bf16.msra.mxu1 %v11682_v28  ;;  %v11778_v27 = vld [vmem:[%s13395_s12 + $0x848] ss:$16 sps:$4 sm:$0xff]   ;;  %v11783_v28 = vld [vmem:[%s13395_s12 + $0x864] ss:$16 sps:$4 sm:$0xff]  }
 0x102   : > { %7815 = vmatprep.subr.bf16.mxu0 %v11687_v29  ;;  %8769 = vmatprep.subr.bf16.mxu1 %v11690_v30  ;;  %v11786_v29 = vld [vmem:[%s13395_s12 + $0x86c] ss:$16 sps:$4 sm:$0xff]   ;;  %v11864_v30 = vld [vmem:[%s14802_s0 + $0x24] ss:$144 sps:$4 sm:$0xff]  }
 0x105   : > { %7816 = vmatpush1.bf16.msra.mxu0 %v11685_v31  ;;  %8770 = vmatpush1.bf16.msra.mxu1 %v11688_v32  ;;  %v11781_v31 = vld [vmem:[%s13395_s12 + $0x860] ss:$16 sps:$4 sm:$0xff]   ;;  %v11784_v32 = vld [vmem:[%s13395_s12 + $0x868] ss:$16 sps:$4 sm:$0xff]  }
 0x106   : > { %7817 = vmatprep.subr.bf16.mxu0 %v11693_v33  ;;  %8771 = vmatprep.subr.bf16.mxu1 %v11696_v34  ;;  %v11789_v33 = vld [vmem:[%s13395_s12 + $0x884] ss:$16 sps:$4 sm:$0xff]   ;;  %v11792_v34 = vld [vmem:[%s13395_s12 + $0x88c] ss:$16 sps:$4 sm:$0xff]  }
 0x109   : > { %7818 = vmatpush1.bf16.msra.mxu0 %v11691_v35  ;;  %8772 = vmatpush1.bf16.msra.mxu1 %v11694_v36  ;;  %v11787_v35 = vld [vmem:[%s13395_s12 + $0x880] ss:$16 sps:$4 sm:$0xff]   ;;  %v11790_v36 = vld [vmem:[%s13395_s12 + $0x888] ss:$16 sps:$4 sm:$0xff]  }
 0x10a   : > { %7819 = vmatprep.subr.bf16.mxu0 %v11699_v37  ;;  %8773 = vmatprep.subr.bf16.mxu1 %v11702_v38  ;;  %v11795_v37 = vld [vmem:[%s13395_s12 + $0x8a4] ss:$16 sps:$4 sm:$0xff]   ;;  %v11798_v38 = vld [vmem:[%s13395_s12 + $0x8ac] ss:$16 sps:$4 sm:$0xff]  }
 0x10d   : > { %7820 = vmatpush1.bf16.msra.mxu0 %v11697_v39  ;;  %8774 = vmatpush1.bf16.msra.mxu1 %v11700_v40  ;;  %v11793_v39 = vld [vmem:[%s13395_s12 + $0x8a0] ss:$16 sps:$4 sm:$0xff]   ;;  %v11796_v40 = vld [vmem:[%s13395_s12 + $0x8a8] ss:$16 sps:$4 sm:$0xff]  }
 0x10e   : > { %7821 = vmatprep.subr.bf16.mxu0 %v11705_v41  ;;  %8775 = vmatprep.subr.bf16.mxu1 %v11708_v42  ;;  %v11801_v41 = vld [vmem:[%s13395_s12 + $0x8c4] ss:$16 sps:$4 sm:$0xff]   ;;  %v11804_v42 = vld [vmem:[%s13395_s12 + $0x8cc] ss:$16 sps:$4 sm:$0xff]  }
 0x111   : > { %7822 = vmatpush1.bf16.msra.mxu0 %v11703_v43  ;;  %8776 = vmatpush1.bf16.msra.mxu1 %v11706_v44  ;;  %v11799_v43 = vld [vmem:[%s13395_s12 + $0x8c0] ss:$16 sps:$4 sm:$0xff]   ;;  %v11802_v44 = vld [vmem:[%s13395_s12 + $0x8c8] ss:$16 sps:$4 sm:$0xff]  }
 0x112   : > { %7823 = vmatprep.subr.bf16.mxu0 %v11711_v45  ;;  %8777 = vmatprep.subr.bf16.mxu1 %v11714_v46  ;;  %v11807_v45 = vld [vmem:[%s13395_s12 + $0x8e4] ss:$16 sps:$4 sm:$0xff]   ;;  %v11810_v46 = vld [vmem:[%s13395_s12 + $0x8ec] ss:$16 sps:$4 sm:$0xff]  }
 0x115   : > { %7824 = vmatpush1.bf16.msra.mxu0 %v11709_v47  ;;  %8778 = vmatpush1.bf16.msra.mxu1 %v11712_v48  ;;  %v11805_v47 = vld [vmem:[%s13395_s12 + $0x8e0] ss:$16 sps:$4 sm:$0xff]   ;;  %v11808_v48 = vld [vmem:[%s13395_s12 + $0x8e8] ss:$16 sps:$4 sm:$0xff]  }
 0x116   : > { %7825 = vmatprep.subr.bf16.mxu0 %v11717_v49  ;;  %8779 = vmatprep.subr.bf16.mxu1 %v11720_v50  ;;  %v11813_v49 = vld [vmem:[%s13395_s12 + $0x904] ss:$16 sps:$4 sm:$0xff]   ;;  %v11816_v50 = vld [vmem:[%s13395_s12 + $0x90c] ss:$16 sps:$4 sm:$0xff]  }
 0x119   : > { %7826 = vmatpush1.bf16.msra.mxu0 %v11715_v51  ;;  %8780 = vmatpush1.bf16.msra.mxu1 %v11718_v52  ;;  %v11811_v51 = vld [vmem:[%s13395_s12 + $0x900] ss:$16 sps:$4 sm:$0xff]   ;;  %v11814_v52 = vld [vmem:[%s13395_s12 + $0x908] ss:$16 sps:$4 sm:$0xff]  }
 0x11a   : > { %7827 = vmatprep.subr.bf16.mxu0 %v11723_v53  ;;  %8781 = vmatprep.subr.bf16.mxu1 %v11726_v54  ;;  %v11819_v53 = vld [vmem:[%s13395_s12 + $0x924] ss:$16 sps:$4 sm:$0xff]   ;;  %v11822_v54 = vld [vmem:[%s13395_s12 + $0x92c] ss:$16 sps:$4 sm:$0xff]  }
 0x11d   : > { %7828 = vmatpush1.bf16.msra.mxu0 %v11721_v55  ;;  %8782 = vmatpush1.bf16.msra.mxu1 %v11724_v56  ;;  %v11817_v55 = vld [vmem:[%s13395_s12 + $0x920] ss:$16 sps:$4 sm:$0xff]   ;;  %v11820_v56 = vld [vmem:[%s13395_s12 + $0x928] ss:$16 sps:$4 sm:$0xff]  }
 0x11e   : > { %7829 = vmatprep.subr.bf16.mxu0 %v11729_v57  ;;  %8783 = vmatprep.subr.bf16.mxu1 %v11732_v58  ;;  %v11825_v57 = vld [vmem:[%s13395_s12 + $0x944] ss:$16 sps:$4 sm:$0xff]   ;;  %v11828_v58 = vld [vmem:[%s13395_s12 + $0x94c] ss:$16 sps:$4 sm:$0xff]  }
 0x121   : > { %7830 = vmatpush1.bf16.msra.mxu0 %v11727_v59  ;;  %8784 = vmatpush1.bf16.msra.mxu1 %v11730_v60  ;;  %v11823_v59 = vld [vmem:[%s13395_s12 + $0x940] ss:$16 sps:$4 sm:$0xff]   ;;  %v11826_v60 = vld [vmem:[%s13395_s12 + $0x948] ss:$16 sps:$4 sm:$0xff]  }
 0x122   : > { %7831 = vmatprep.subr.bf16.mxu0 %v11735_v61  ;;  %8785 = vmatprep.subr.bf16.mxu1 %v11738_v62  ;;  %v11831_v61 = vld [vmem:[%s13395_s12 + $0x964] ss:$16 sps:$4 sm:$0xff]   ;;  %v11834_v62 = vld [vmem:[%s13395_s12 + $0x96c] ss:$16 sps:$4 sm:$0xff]  }
 0x125   : > { %7832 = vmatpush1.bf16.msra.mxu0 %v11733_v63  ;;  %8786 = vmatpush1.bf16.msra.mxu1 %v11736_v0  ;;  %v11829_v63 = vld [vmem:[%s13395_s12 + $0x960] ss:$16 sps:$4 sm:$0xff]   ;;  %v11832_v0 = vld [vmem:[%s13395_s12 + $0x968] ss:$16 sps:$4 sm:$0xff]  }
 0x126   : > { %7833 = vmatprep.subr.bf16.mxu0 %v11741_v1  ;;  %8787 = vmatprep.subr.bf16.mxu1 %v11744_v2  ;;  %v11837_v1 = vld [vmem:[%s13395_s12 + $0x984] ss:$16 sps:$4 sm:$0xff]   ;;  %v11840_v2 = vld [vmem:[%s13395_s12 + $0x98c] ss:$16 sps:$4 sm:$0xff]  }
 0x129   : > { %7834 = vmatpush1.bf16.msra.mxu0 %v11739_v3  ;;  %8788 = vmatpush1.bf16.msra.mxu1 %v11742_v4  ;;  %v11835_v3 = vld [vmem:[%s13395_s12 + $0x980] ss:$16 sps:$4 sm:$0xff]   ;;  %v11838_v4 = vld [vmem:[%s13395_s12 + $0x988] ss:$16 sps:$4 sm:$0xff]  }
 0x12a   : > { %7835 = vmatprep.subr.bf16.mxu0 %v11749_v5  ;;  %8789 = vmatprep.subr.bf16.mxu1 %v11752_v6  ;;  %v11843_v5 = vld [vmem:[%s13395_s12 + $0x9a4] ss:$16 sps:$4 sm:$0xff]   ;;  %v11846_v6 = vld [vmem:[%s13395_s12 + $0x9ac] ss:$16 sps:$4 sm:$0xff]  }
 0x12d   : > { %7836 = vmatpush1.bf16.msra.mxu0 %v11747_v7  ;;  %8790 = vmatpush1.bf16.msra.mxu1 %v11750_v8  ;;  %v11841_v7 = vld [vmem:[%s13395_s12 + $0x9a0] ss:$16 sps:$4 sm:$0xff]   ;;  %v11844_v8 = vld [vmem:[%s13395_s12 + $0x9a8] ss:$16 sps:$4 sm:$0xff]  }
 0x12e   : > { %7837 = vmatprep.subr.bf16.mxu0 %v11756_v9  ;;  %8791 = vmatprep.subr.bf16.mxu1 %v11759_v10  ;;  %v11851_v9 = vld [vmem:[%s13395_s12 + $0x9c4] ss:$16 sps:$4 sm:$0xff]   ;;  %v11854_v10 = vld [vmem:[%s13395_s12 + $0x9cc] ss:$16 sps:$4 sm:$0xff]  }
 0x131   : > { %7838 = vmatpush1.bf16.msra.mxu0 %v11754_v11  ;;  %8792 = vmatpush1.bf16.msra.mxu1 %v11757_v12  ;;  %v11849_v11 = vld [vmem:[%s13395_s12 + $0x9c0] ss:$16 sps:$4 sm:$0xff]   ;;  %v11852_v12 = vld [vmem:[%s13395_s12 + $0x9c8] ss:$16 sps:$4 sm:$0xff]  }
 0x132   : > { %7860 = vmatprep.subr.bf16.mxu0 %v11765_v13  ;;  %8814 = vmatprep.subr.bf16.mxu1 %v11768_v14  ;;  %v11858_v13 = vld [vmem:[%s13395_s12 + $0x9e4] ss:$16 sps:$4 sm:$0xff]   ;;  %v11861_v14 = vld [vmem:[%s13395_s12 + $0x9ec] ss:$16 sps:$4 sm:$0xff]  }
 0x134   : > { %7840 = vmatmul.mubr.bf16.vlgmr.msra.gmra.mrb[0].mxu0 %v11760_v15  ;;  %8794 = vmatmul.mubr.bf16.vlgmr.msra.gmra.mrb[0].mxu1 %v11760_v15  ;;  %v11856_v15 = vld [vmem:[%s13395_s12 + $0x9e0] ss:$16 sps:$4 sm:$0xff]  }
 0x135   : > { %7861 = vmatpush1.bf16.msra.mxu0 %v11763_v16  ;;  %8815 = vmatpush1.bf16.msra.mxu1 %v11766_v17  ;;  %v11859_v16 = vld [vmem:[%s13395_s12 + $0x9e8] ss:$16 sps:$4 sm:$0xff]   ;;  %v11862_v17 = vld [vmem:[%s14802_s0 + $0x20] ss:$144 sps:$4 sm:$0xff]  }
 0x136   : > { %7862 = vmatprep.subr.bf16.mxu0 %v11771_v18  ;;  %8816 = vmatprep.subr.bf16.mxu1 %v11774_v19  ;;  %v11867_v18 = vld [vmem:[%s13395_s12 + $0xa04] ss:$16 sps:$4 sm:$0xff]   ;;  %v11870_v19 = vld [vmem:[%s13395_s12 + $0xa0c] ss:$16 sps:$4 sm:$0xff]  }
 0x137   : > { %7849 = vmatprep.mubr.bf16.mxu0 %v11847_v20  ;;  %8803 = vmatprep.mubr.bf16.mxu1 %v11847_v20  ;;  %v11865_v20 = vld [vmem:[%s13395_s12 + $0xa00] ss:$16 sps:$4 sm:$0xff]  }
 0x139   : > { %7863 = vmatpush1.bf16.msra.mxu0 %v11769_v21  ;;  %8817 = vmatpush1.bf16.msra.mxu1 %v11772_v22  ;;  %v11868_v21 = vld [vmem:[%s13395_s12 + $0xa08] ss:$16 sps:$4 sm:$0xff]   ;;  %v11873_v22 = vld [vmem:[%s13395_s12 + $0xa24] ss:$16 sps:$4 sm:$0xff]  }
 0x13a   : > { %7864 = vmatprep.subr.bf16.mxu0 %v11777_v23  ;;  %8818 = vmatprep.subr.bf16.mxu1 %v11780_v24  ;;  %v11876_v23 = vld [vmem:[%s13395_s12 + $0xa2c] ss:$16 sps:$4 sm:$0xff]   ;;  %v11949_v24 = vld [vmem:[%s14802_s0 + $0x144] ss:$144 sps:$4 sm:$0xff]  }
 0x13c   : > { %7850 = vmatmul.mubr.bf16.gmra.mrb[4].mxu0 %v11855_v26  ;;  %8804 = vmatmul.mubr.bf16.gmra.mrb[4].mxu1 %v11855_v26  ;;  %v11874_v26 = vld [vmem:[%s13395_s12 + $0xa28] ss:$16 sps:$4 sm:$0xff]  }
 0x13d   : > { %7865 = vmatpush1.bf16.msra.mxu0 %v11775_v25  ;;  %8819 = vmatpush1.bf16.msra.mxu1 %v11778_v27  ;;  %v11871_v25 = vld [vmem:[%s13395_s12 + $0xa20] ss:$16 sps:$4 sm:$0xff]   ;;  %v11879_v27 = vld [vmem:[%s13395_s12 + $0xa44] ss:$16 sps:$4 sm:$0xff]  }
 0x13e   : > { %7866 = vmatprep.subr.bf16.mxu0 %v11783_v28  ;;  %8820 = vmatprep.subr.bf16.mxu1 %v11786_v29  ;;  %v11882_v28 = vld [vmem:[%s13395_s12 + $0xa4c] ss:$16 sps:$4 sm:$0xff]   ;;  %v11957_v29 = vld [vmem:[%s14802_s0 + $0x140] ss:$144 sps:$4 sm:$0xff]  }
 0x13f   : > { %7892 = vmatprep.mubr.bf16.mxu0 %v11864_v30  ;;  %8846 = vmatprep.mubr.bf16.mxu1 %v11864_v30  ;;  %v11877_v30 = vld [vmem:[%s13395_s12 + $0xa40] ss:$16 sps:$4 sm:$0xff]  }
 0x141   : > { %7867 = vmatpush1.bf16.msra.mxu0 %v11781_v31  ;;  %8821 = vmatpush1.bf16.msra.mxu1 %v11784_v32  ;;  %v11880_v31 = vld [vmem:[%s13395_s12 + $0xa48] ss:$16 sps:$4 sm:$0xff]   ;;  %v11885_v32 = vld [vmem:[%s13395_s12 + $0xa64] ss:$16 sps:$4 sm:$0xff]  }
 0x142   : > { %7868 = vmatprep.subr.bf16.mxu0 %v11789_v33  ;;  %8822 = vmatprep.subr.bf16.mxu1 %v11792_v34  ;;  %v11888_v33 = vld [vmem:[%s13395_s12 + $0xa6c] ss:$16 sps:$4 sm:$0xff]  }
 0x143   : > { %v11966_v34 = vld [vmem:[%s14802_s0 + $0x2c] ss:$144 sps:$4 sm:$0xff]  }
 0x145   : > { %7869 = vmatpush1.bf16.msra.mxu0 %v11787_v35  ;;  %8823 = vmatpush1.bf16.msra.mxu1 %v11790_v36  ;;  %v11883_v35 = vld [vmem:[%s13395_s12 + $0xa60] ss:$16 sps:$4 sm:$0xff]   ;;  %v11886_v36 = vld [vmem:[%s13395_s12 + $0xa68] ss:$16 sps:$4 sm:$0xff]  }
 0x146   : > { %7870 = vmatprep.subr.bf16.mxu0 %v11795_v37  ;;  %8824 = vmatprep.subr.bf16.mxu1 %v11798_v38  ;;  %v11891_v37 = vld [vmem:[%s13395_s12 + $0xa84] ss:$16 sps:$4 sm:$0xff]   ;;  %v11894_v38 = vld [vmem:[%s13395_s12 + $0xa8c] ss:$16 sps:$4 sm:$0xff]  }
 0x149   : > { %7871 = vmatpush1.bf16.msra.mxu0 %v11793_v39  ;;  %8825 = vmatpush1.bf16.msra.mxu1 %v11796_v40  ;;  %v11889_v39 = vld [vmem:[%s13395_s12 + $0xa80] ss:$16 sps:$4 sm:$0xff]   ;;  %v11892_v40 = vld [vmem:[%s13395_s12 + $0xa88] ss:$16 sps:$4 sm:$0xff]  }
 0x14a   : > { %7872 = vmatprep.subr.bf16.mxu0 %v11801_v41  ;;  %8826 = vmatprep.subr.bf16.mxu1 %v11804_v42  ;;  %v11897_v41 = vld [vmem:[%s13395_s12 + $0xaa4] ss:$16 sps:$4 sm:$0xff]   ;;  %v11900_v42 = vld [vmem:[%s13395_s12 + $0xaac] ss:$16 sps:$4 sm:$0xff]  }
 0x14d   : > { %7873 = vmatpush1.bf16.msra.mxu0 %v11799_v43  ;;  %8827 = vmatpush1.bf16.msra.mxu1 %v11802_v44  ;;  %v11895_v43 = vld [vmem:[%s13395_s12 + $0xaa0] ss:$16 sps:$4 sm:$0xff]   ;;  %v11898_v44 = vld [vmem:[%s13395_s12 + $0xaa8] ss:$16 sps:$4 sm:$0xff]  }
 0x14e   : > { %7874 = vmatprep.subr.bf16.mxu0 %v11807_v45  ;;  %8828 = vmatprep.subr.bf16.mxu1 %v11810_v46  ;;  %v11903_v45 = vld [vmem:[%s13395_s12 + $0xac4] ss:$16 sps:$4 sm:$0xff]   ;;  %v11906_v46 = vld [vmem:[%s13395_s12 + $0xacc] ss:$16 sps:$4 sm:$0xff]  }
 0x151   : > { %7875 = vmatpush1.bf16.msra.mxu0 %v11805_v47  ;;  %8829 = vmatpush1.bf16.msra.mxu1 %v11808_v48  ;;  %v11901_v47 = vld [vmem:[%s13395_s12 + $0xac0] ss:$16 sps:$4 sm:$0xff]   ;;  %v11904_v48 = vld [vmem:[%s13395_s12 + $0xac8] ss:$16 sps:$4 sm:$0xff]  }
 0x152   : > { %7876 = vmatprep.subr.bf16.mxu0 %v11813_v49  ;;  %8830 = vmatprep.subr.bf16.mxu1 %v11816_v50  ;;  %v11909_v49 = vld [vmem:[%s13395_s12 + $0xae4] ss:$16 sps:$4 sm:$0xff]   ;;  %v11912_v50 = vld [vmem:[%s13395_s12 + $0xaec] ss:$16 sps:$4 sm:$0xff]  }
 0x155   : > { %7877 = vmatpush1.bf16.msra.mxu0 %v11811_v51  ;;  %8831 = vmatpush1.bf16.msra.mxu1 %v11814_v52  ;;  %v11907_v51 = vld [vmem:[%s13395_s12 + $0xae0] ss:$16 sps:$4 sm:$0xff]   ;;  %v11910_v52 = vld [vmem:[%s13395_s12 + $0xae8] ss:$16 sps:$4 sm:$0xff]  }
 0x156   : > { %7878 = vmatprep.subr.bf16.mxu0 %v11819_v53  ;;  %8832 = vmatprep.subr.bf16.mxu1 %v11822_v54  ;;  %v11915_v53 = vld [vmem:[%s13395_s12 + $0xb04] ss:$16 sps:$4 sm:$0xff]   ;;  %v11918_v54 = vld [vmem:[%s13395_s12 + $0xb0c] ss:$16 sps:$4 sm:$0xff]  }
 0x159   : > { %7879 = vmatpush1.bf16.msra.mxu0 %v11817_v55  ;;  %8833 = vmatpush1.bf16.msra.mxu1 %v11820_v56  ;;  %v11913_v55 = vld [vmem:[%s13395_s12 + $0xb00] ss:$16 sps:$4 sm:$0xff]   ;;  %v11916_v56 = vld [vmem:[%s13395_s12 + $0xb08] ss:$16 sps:$4 sm:$0xff]  }
 0x15a   : > { %7880 = vmatprep.subr.bf16.mxu0 %v11825_v57  ;;  %8834 = vmatprep.subr.bf16.mxu1 %v11828_v58  ;;  %v11921_v57 = vld [vmem:[%s13395_s12 + $0xb24] ss:$16 sps:$4 sm:$0xff]   ;;  %v11924_v58 = vld [vmem:[%s13395_s12 + $0xb2c] ss:$16 sps:$4 sm:$0xff]  }
 0x15d   : > { %7881 = vmatpush1.bf16.msra.mxu0 %v11823_v59  ;;  %8835 = vmatpush1.bf16.msra.mxu1 %v11826_v60  ;;  %v11919_v59 = vld [vmem:[%s13395_s12 + $0xb20] ss:$16 sps:$4 sm:$0xff]   ;;  %v11922_v60 = vld [vmem:[%s13395_s12 + $0xb28] ss:$16 sps:$4 sm:$0xff]  }
 0x15e   : > { %7882 = vmatprep.subr.bf16.mxu0 %v11831_v61  ;;  %8836 = vmatprep.subr.bf16.mxu1 %v11834_v62  ;;  %v11927_v61 = vld [vmem:[%s13395_s12 + $0xb44] ss:$16 sps:$4 sm:$0xff]   ;;  %v11930_v62 = vld [vmem:[%s13395_s12 + $0xb4c] ss:$16 sps:$4 sm:$0xff]  }
 0x161   : > { %7883 = vmatpush1.bf16.msra.mxu0 %v11829_v63  ;;  %8837 = vmatpush1.bf16.msra.mxu1 %v11832_v0  ;;  %v11925_v63 = vld [vmem:[%s13395_s12 + $0xb40] ss:$16 sps:$4 sm:$0xff]   ;;  %v11928_v0 = vld [vmem:[%s13395_s12 + $0xb48] ss:$16 sps:$4 sm:$0xff]  }
 0x162   : > { %7884 = vmatprep.subr.bf16.mxu0 %v11837_v1  ;;  %8838 = vmatprep.subr.bf16.mxu1 %v11840_v2  ;;  %v11933_v1 = vld [vmem:[%s13395_s12 + $0xb64] ss:$16 sps:$4 sm:$0xff]   ;;  %v11936_v2 = vld [vmem:[%s13395_s12 + $0xb6c] ss:$16 sps:$4 sm:$0xff]  }
 0x165   : > { %7885 = vmatpush1.bf16.msra.mxu0 %v11835_v3  ;;  %8839 = vmatpush1.bf16.msra.mxu1 %v11838_v4  ;;  %v11931_v3 = vld [vmem:[%s13395_s12 + $0xb60] ss:$16 sps:$4 sm:$0xff]   ;;  %v11934_v4 = vld [vmem:[%s13395_s12 + $0xb68] ss:$16 sps:$4 sm:$0xff]  }
 0x166   : > { %7886 = vmatprep.subr.bf16.mxu0 %v11843_v5  ;;  %8840 = vmatprep.subr.bf16.mxu1 %v11846_v6  ;;  %v11939_v5 = vld [vmem:[%s13395_s12 + $0xb84] ss:$16 sps:$4 sm:$0xff]   ;;  %v11942_v6 = vld [vmem:[%s13395_s12 + $0xb8c] ss:$16 sps:$4 sm:$0xff]  }
 0x169   : > { %7887 = vmatpush1.bf16.msra.mxu0 %v11841_v7  ;;  %8841 = vmatpush1.bf16.msra.mxu1 %v11844_v8  ;;  %v11937_v7 = vld [vmem:[%s13395_s12 + $0xb80] ss:$16 sps:$4 sm:$0xff]   ;;  %v11940_v8 = vld [vmem:[%s13395_s12 + $0xb88] ss:$16 sps:$4 sm:$0xff]  }
 0x16a   : > { %7888 = vmatprep.subr.bf16.mxu0 %v11851_v9  ;;  %8842 = vmatprep.subr.bf16.mxu1 %v11854_v10  ;;  %v11945_v9 = vld [vmem:[%s13395_s12 + $0xba4] ss:$16 sps:$4 sm:$0xff]   ;;  %v11948_v10 = vld [vmem:[%s13395_s12 + $0xbac] ss:$16 sps:$4 sm:$0xff]  }
 0x16d   : > { %7889 = vmatpush1.bf16.msra.mxu0 %v11849_v11  ;;  %8843 = vmatpush1.bf16.msra.mxu1 %v11852_v12  ;;  %v11943_v11 = vld [vmem:[%s13395_s12 + $0xba0] ss:$16 sps:$4 sm:$0xff]   ;;  %v11946_v12 = vld [vmem:[%s13395_s12 + $0xba8] ss:$16 sps:$4 sm:$0xff]  }
 0x16e   : > { %7890 = vmatprep.subr.bf16.mxu0 %v11858_v13  ;;  %8844 = vmatprep.subr.bf16.mxu1 %v11861_v14  ;;  %v11953_v13 = vld [vmem:[%s13395_s12 + $0xbc4] ss:$16 sps:$4 sm:$0xff]   ;;  %v11956_v14 = vld [vmem:[%s13395_s12 + $0xbcc] ss:$16 sps:$4 sm:$0xff]  }
 0x171   : > { %7891 = vmatpush1.bf16.msra.mxu0 %v11856_v15  ;;  %8845 = vmatpush1.bf16.msra.mxu1 %v11859_v16  ;;  %v11951_v15 = vld [vmem:[%s13395_s12 + $0xbc0] ss:$16 sps:$4 sm:$0xff]   ;;  %v11954_v16 = vld [vmem:[%s13395_s12 + $0xbc8] ss:$16 sps:$4 sm:$0xff]  }
 0x172   : > { %7913 = vmatprep.subr.bf16.mxu0 %v11867_v18  ;;  %8867 = vmatprep.subr.bf16.mxu1 %v11870_v19  ;;  %v11963_v18 = vld [vmem:[%s13395_s12 + $0xbec] ss:$16 sps:$4 sm:$0xff]   ;;  %v11958_v19 = vld [vmem:[%s13395_s12 + $0xbe0] ss:$16 sps:$4 sm:$0xff]  }
 0x174   : > { %7893 = vmatmul.mubr.bf16.vlgmr.msra.gmra.mrb[0].mxu0 %v11862_v17  ;;  %8847 = vmatmul.mubr.bf16.vlgmr.msra.gmra.mrb[0].mxu1 %v11862_v17  ;;  %v11960_v17 = vld [vmem:[%s13395_s12 + $0xbe4] ss:$16 sps:$4 sm:$0xff]  }
 0x175   : > { %7914 = vmatpush1.bf16.msra.mxu0 %v11865_v20  ;;  %8868 = vmatpush1.bf16.msra.mxu1 %v11868_v21  ;;  %v11961_v20 = vld [vmem:[%s13395_s12 + $0xbe8] ss:$16 sps:$4 sm:$0xff]  }
 0x176   : > { %7915 = vmatprep.subr.bf16.mxu0 %v11873_v22  ;;  %8869 = vmatprep.subr.bf16.mxu1 %v11876_v23  ;;  %v11964_v21 = vld [vmem:[%s14802_s0 + $0x28] ss:$144 sps:$4 sm:$0xff]   ;;  %v11969_v22 = vld [vmem:[%s13395_s12 + $0xc04] ss:$16 sps:$4 sm:$0xff]   ;;  %v11972_v23 = vld [vmem:[%s13395_s12 + $0xc0c] ss:$16 sps:$4 sm:$0xff]  }
 0x177   : > { %7902 = vmatprep.mubr.bf16.mxu0 %v11949_v24  ;;  %8856 = vmatprep.mubr.bf16.mxu1 %v11949_v24  ;;  %v11967_v24 = vld [vmem:[%s13395_s12 + $0xc00] ss:$16 sps:$4 sm:$0xff]  }
 0x179   : > { %7916 = vmatpush1.bf16.msra.mxu0 %v11871_v25  ;;  %8870 = vmatpush1.bf16.msra.mxu1 %v11874_v26  ;;  %v11970_v25 = vld [vmem:[%s13395_s12 + $0xc08] ss:$16 sps:$4 sm:$0xff]   ;;  %v11975_v26 = vld [vmem:[%s13395_s12 + $0xc24] ss:$16 sps:$4 sm:$0xff]  }
 0x17a   : > { %7917 = vmatprep.subr.bf16.mxu0 %v11879_v27  ;;  %8871 = vmatprep.subr.bf16.mxu1 %v11882_v28  ;;  %v11978_v27 = vld [vmem:[%s13395_s12 + $0xc2c] ss:$16 sps:$4 sm:$0xff]  }
 0x17b   : > { %v12051_v28 = vld [vmem:[%s14802_s0 + $0x14c] ss:$144 sps:$4 sm:$0xff]  }
 0x17c   : > { %7903 = vmatmul.mubr.bf16.gmra.mrb[4].mxu0 %v11957_v29  ;;  %8857 = vmatmul.mubr.bf16.gmra.mrb[4].mxu1 %v11957_v29  ;;  %v11973_v29 = vld [vmem:[%s13395_s12 + $0xc20] ss:$16 sps:$4 sm:$0xff]  }
 0x17d   : > { %7918 = vmatpush1.bf16.msra.mxu0 %v11877_v30  ;;  %8872 = vmatpush1.bf16.msra.mxu1 %v11880_v31  ;;  %v11976_v30 = vld [vmem:[%s13395_s12 + $0xc28] ss:$16 sps:$4 sm:$0xff]   ;;  %v11981_v31 = vld [vmem:[%s13395_s12 + $0xc44] ss:$16 sps:$4 sm:$0xff]  }
 0x17e   : > { %7919 = vmatprep.subr.bf16.mxu0 %v11885_v32  ;;  %8873 = vmatprep.subr.bf16.mxu1 %v11888_v33  ;;  %v11984_v32 = vld [vmem:[%s13395_s12 + $0xc4c] ss:$16 sps:$4 sm:$0xff]   ;;  %v12059_v33 = vld [vmem:[%s14802_s0 + $0x148] ss:$144 sps:$4 sm:$0xff]  }
 0x17f   : > { %7945 = vmatprep.mubr.bf16.mxu0 %v11966_v34  ;;  %8899 = vmatprep.mubr.bf16.mxu1 %v11966_v34  ;;  %v11979_v34 = vld [vmem:[%s13395_s12 + $0xc40] ss:$16 sps:$4 sm:$0xff]  }
 0x181   : > { %7920 = vmatpush1.bf16.msra.mxu0 %v11883_v35  ;;  %8874 = vmatpush1.bf16.msra.mxu1 %v11886_v36  ;;  %v11982_v35 = vld [vmem:[%s13395_s12 + $0xc48] ss:$16 sps:$4 sm:$0xff]   ;;  %v11987_v36 = vld [vmem:[%s13395_s12 + $0xc64] ss:$16 sps:$4 sm:$0xff]  }
 0x182   : > { %7921 = vmatprep.subr.bf16.mxu0 %v11891_v37  ;;  %8875 = vmatprep.subr.bf16.mxu1 %v11894_v38  ;;  %v11990_v37 = vld [vmem:[%s13395_s12 + $0xc6c] ss:$16 sps:$4 sm:$0xff]   ;;  %v12068_v38 = vld [vmem:[%s14802_s0 + $0x34] ss:$144 sps:$4 sm:$0xff]  }
 0x185   : > { %7922 = vmatpush1.bf16.msra.mxu0 %v11889_v39  ;;  %8876 = vmatpush1.bf16.msra.mxu1 %v11892_v40  ;;  %v11985_v39 = vld [vmem:[%s13395_s12 + $0xc60] ss:$16 sps:$4 sm:$0xff]   ;;  %v11988_v40 = vld [vmem:[%s13395_s12 + $0xc68] ss:$16 sps:$4 sm:$0xff]  }
 0x186   : > { %7923 = vmatprep.subr.bf16.mxu0 %v11897_v41  ;;  %8877 = vmatprep.subr.bf16.mxu1 %v11900_v42  ;;  %v11993_v41 = vld [vmem:[%s13395_s12 + $0xc84] ss:$16 sps:$4 sm:$0xff]   ;;  %v11996_v42 = vld [vmem:[%s13395_s12 + $0xc8c] ss:$16 sps:$4 sm:$0xff]  }
 0x189   : > { %7924 = vmatpush1.bf16.msra.mxu0 %v11895_v43  ;;  %8878 = vmatpush1.bf16.msra.mxu1 %v11898_v44  ;;  %v11991_v43 = vld [vmem:[%s13395_s12 + $0xc80] ss:$16 sps:$4 sm:$0xff]   ;;  %v11994_v44 = vld [vmem:[%s13395_s12 + $0xc88] ss:$16 sps:$4 sm:$0xff]  }
 0x18a   : > { %7925 = vmatprep.subr.bf16.mxu0 %v11903_v45  ;;  %8879 = vmatprep.subr.bf16.mxu1 %v11906_v46  ;;  %v11999_v45 = vld [vmem:[%s13395_s12 + $0xca4] ss:$16 sps:$4 sm:$0xff]   ;;  %v12002_v46 = vld [vmem:[%s13395_s12 + $0xcac] ss:$16 sps:$4 sm:$0xff]  }
 0x18d   : > { %7926 = vmatpush1.bf16.msra.mxu0 %v11901_v47  ;;  %8880 = vmatpush1.bf16.msra.mxu1 %v11904_v48  ;;  %v11997_v47 = vld [vmem:[%s13395_s12 + $0xca0] ss:$16 sps:$4 sm:$0xff]   ;;  %v12000_v48 = vld [vmem:[%s13395_s12 + $0xca8] ss:$16 sps:$4 sm:$0xff]  }
 0x18e   : > { %7927 = vmatprep.subr.bf16.mxu0 %v11909_v49  ;;  %8881 = vmatprep.subr.bf16.mxu1 %v11912_v50  ;;  %v12005_v49 = vld [vmem:[%s13395_s12 + $0xcc4] ss:$16 sps:$4 sm:$0xff]   ;;  %v12008_v50 = vld [vmem:[%s13395_s12 + $0xccc] ss:$16 sps:$4 sm:$0xff]  }
 0x191   : > { %7928 = vmatpush1.bf16.msra.mxu0 %v11907_v51  ;;  %8882 = vmatpush1.bf16.msra.mxu1 %v11910_v52  ;;  %v12003_v51 = vld [vmem:[%s13395_s12 + $0xcc0] ss:$16 sps:$4 sm:$0xff]   ;;  %v12006_v52 = vld [vmem:[%s13395_s12 + $0xcc8] ss:$16 sps:$4 sm:$0xff]  }
 0x192   : > { %7929 = vmatprep.subr.bf16.mxu0 %v11915_v53  ;;  %8883 = vmatprep.subr.bf16.mxu1 %v11918_v54  ;;  %v12011_v53 = vld [vmem:[%s13395_s12 + $0xce4] ss:$16 sps:$4 sm:$0xff]   ;;  %v12014_v54 = vld [vmem:[%s13395_s12 + $0xcec] ss:$16 sps:$4 sm:$0xff]  }
 0x195   : > { %7930 = vmatpush1.bf16.msra.mxu0 %v11913_v55  ;;  %8884 = vmatpush1.bf16.msra.mxu1 %v11916_v56  ;;  %v12009_v55 = vld [vmem:[%s13395_s12 + $0xce0] ss:$16 sps:$4 sm:$0xff]   ;;  %v12012_v56 = vld [vmem:[%s13395_s12 + $0xce8] ss:$16 sps:$4 sm:$0xff]  }
 0x196   : > { %7931 = vmatprep.subr.bf16.mxu0 %v11921_v57  ;;  %8885 = vmatprep.subr.bf16.mxu1 %v11924_v58  ;;  %v12017_v57 = vld [vmem:[%s13395_s12 + $0xd04] ss:$16 sps:$4 sm:$0xff]   ;;  %v12020_v58 = vld [vmem:[%s13395_s12 + $0xd0c] ss:$16 sps:$4 sm:$0xff]  }
 0x199   : > { %7932 = vmatpush1.bf16.msra.mxu0 %v11919_v59  ;;  %8886 = vmatpush1.bf16.msra.mxu1 %v11922_v60  ;;  %v12015_v59 = vld [vmem:[%s13395_s12 + $0xd00] ss:$16 sps:$4 sm:$0xff]   ;;  %v12018_v60 = vld [vmem:[%s13395_s12 + $0xd08] ss:$16 sps:$4 sm:$0xff]  }
 0x19a   : > { %7933 = vmatprep.subr.bf16.mxu0 %v11927_v61  ;;  %8887 = vmatprep.subr.bf16.mxu1 %v11930_v62  ;;  %v12023_v61 = vld [vmem:[%s13395_s12 + $0xd24] ss:$16 sps:$4 sm:$0xff]   ;;  %v12026_v62 = vld [vmem:[%s13395_s12 + $0xd2c] ss:$16 sps:$4 sm:$0xff]  }
 0x19d   : > { %7934 = vmatpush1.bf16.msra.mxu0 %v11925_v63  ;;  %8888 = vmatpush1.bf16.msra.mxu1 %v11928_v0  ;;  %v12021_v63 = vld [vmem:[%s13395_s12 + $0xd20] ss:$16 sps:$4 sm:$0xff]   ;;  %v12024_v0 = vld [vmem:[%s13395_s12 + $0xd28] ss:$16 sps:$4 sm:$0xff]  }
 0x19e   : > { %7935 = vmatprep.subr.bf16.mxu0 %v11933_v1  ;;  %8889 = vmatprep.subr.bf16.mxu1 %v11936_v2  ;;  %v12029_v1 = vld [vmem:[%s13395_s12 + $0xd44] ss:$16 sps:$4 sm:$0xff]   ;;  %v12032_v2 = vld [vmem:[%s13395_s12 + $0xd4c] ss:$16 sps:$4 sm:$0xff]  }
 0x1a1   : > { %7936 = vmatpush1.bf16.msra.mxu0 %v11931_v3  ;;  %8890 = vmatpush1.bf16.msra.mxu1 %v11934_v4  ;;  %v12027_v3 = vld [vmem:[%s13395_s12 + $0xd40] ss:$16 sps:$4 sm:$0xff]   ;;  %v12030_v4 = vld [vmem:[%s13395_s12 + $0xd48] ss:$16 sps:$4 sm:$0xff]  }
 0x1a2   : > { %7937 = vmatprep.subr.bf16.mxu0 %v11939_v5  ;;  %8891 = vmatprep.subr.bf16.mxu1 %v11942_v6  ;;  %v12035_v5 = vld [vmem:[%s13395_s12 + $0xd64] ss:$16 sps:$4 sm:$0xff]   ;;  %v12038_v6 = vld [vmem:[%s13395_s12 + $0xd6c] ss:$16 sps:$4 sm:$0xff]  }
 0x1a5   : > { %7938 = vmatpush1.bf16.msra.mxu0 %v11937_v7  ;;  %8892 = vmatpush1.bf16.msra.mxu1 %v11940_v8  ;;  %v12033_v7 = vld [vmem:[%s13395_s12 + $0xd60] ss:$16 sps:$4 sm:$0xff]   ;;  %v12036_v8 = vld [vmem:[%s13395_s12 + $0xd68] ss:$16 sps:$4 sm:$0xff]  }
 0x1a6   : > { %7939 = vmatprep.subr.bf16.mxu0 %v11945_v9  ;;  %8893 = vmatprep.subr.bf16.mxu1 %v11948_v10  ;;  %v12041_v9 = vld [vmem:[%s13395_s12 + $0xd84] ss:$16 sps:$4 sm:$0xff]   ;;  %v12044_v10 = vld [vmem:[%s13395_s12 + $0xd8c] ss:$16 sps:$4 sm:$0xff]  }
 0x1a9   : > { %7940 = vmatpush1.bf16.msra.mxu0 %v11943_v11  ;;  %8894 = vmatpush1.bf16.msra.mxu1 %v11946_v12  ;;  %v12039_v11 = vld [vmem:[%s13395_s12 + $0xd80] ss:$16 sps:$4 sm:$0xff]   ;;  %v12042_v12 = vld [vmem:[%s13395_s12 + $0xd88] ss:$16 sps:$4 sm:$0xff]  }
 0x1aa   : > { %7941 = vmatprep.subr.bf16.mxu0 %v11953_v13  ;;  %8895 = vmatprep.subr.bf16.mxu1 %v11956_v14  ;;  %v12047_v13 = vld [vmem:[%s13395_s12 + $0xda4] ss:$16 sps:$4 sm:$0xff]   ;;  %v12050_v14 = vld [vmem:[%s13395_s12 + $0xdac] ss:$16 sps:$4 sm:$0xff]  }
 0x1ad   : > { %7942 = vmatpush1.bf16.msra.mxu0 %v11951_v15  ;;  %8896 = vmatpush1.bf16.msra.mxu1 %v11954_v16  ;;  %v12045_v15 = vld [vmem:[%s13395_s12 + $0xda0] ss:$16 sps:$4 sm:$0xff]   ;;  %v12048_v16 = vld [vmem:[%s13395_s12 + $0xda8] ss:$16 sps:$4 sm:$0xff]  }
 0x1ae   : > { %7943 = vmatprep.subr.bf16.mxu0 %v11960_v17  ;;  %8897 = vmatprep.subr.bf16.mxu1 %v11963_v18  ;;  %v12055_v17 = vld [vmem:[%s13395_s12 + $0xdc4] ss:$16 sps:$4 sm:$0xff]   ;;  %v12058_v18 = vld [vmem:[%s13395_s12 + $0xdcc] ss:$16 sps:$4 sm:$0xff]  }
 0x1b1   : > { %7944 = vmatpush1.bf16.msra.mxu0 %v11958_v19  ;;  %8898 = vmatpush1.bf16.msra.mxu1 %v11961_v20  ;;  %v12053_v19 = vld [vmem:[%s13395_s12 + $0xdc0] ss:$16 sps:$4 sm:$0xff]   ;;  %v12056_v20 = vld [vmem:[%s13395_s12 + $0xdc8] ss:$16 sps:$4 sm:$0xff]  }
 0x1b2   : > { %7966 = vmatprep.subr.bf16.mxu0 %v11969_v22  ;;  %8920 = vmatprep.subr.bf16.mxu1 %v11972_v23  ;;  %v12065_v22 = vld [vmem:[%s13395_s12 + $0xdec] ss:$16 sps:$4 sm:$0xff]   ;;  %v12060_v23 = vld [vmem:[%s13395_s12 + $0xde0] ss:$16 sps:$4 sm:$0xff]  }
 0x1b4   : > { %7946 = vmatmul.mubr.bf16.vlgmr.msra.gmra.mrb[0].mxu0 %v11964_v21  ;;  %8900 = vmatmul.mubr.bf16.vlgmr.msra.gmra.mrb[0].mxu1 %v11964_v21  ;;  %v12062_v21 = vld [vmem:[%s13395_s12 + $0xde4] ss:$16 sps:$4 sm:$0xff]  }
 0x1b5   : > { %7967 = vmatpush1.bf16.msra.mxu0 %v11967_v24  ;;  %8921 = vmatpush1.bf16.msra.mxu1 %v11970_v25  ;;  %v12063_v24 = vld [vmem:[%s13395_s12 + $0xde8] ss:$16 sps:$4 sm:$0xff]   ;;  %v12066_v25 = vld [vmem:[%s14802_s0 + $0x30] ss:$144 sps:$4 sm:$0xff]  }
 0x1b6   : > { %7968 = vmatprep.subr.bf16.mxu0 %v11975_v26  ;;  %8922 = vmatprep.subr.bf16.mxu1 %v11978_v27  ;;  %v12071_v26 = vld [vmem:[%s13395_s12 + $0xe04] ss:$16 sps:$4 sm:$0xff]   ;;  %v12074_v27 = vld [vmem:[%s13395_s12 + $0xe0c] ss:$16 sps:$4 sm:$0xff]  }
 0x1b7   : > { %7955 = vmatprep.mubr.bf16.mxu0 %v12051_v28  ;;  %8909 = vmatprep.mubr.bf16.mxu1 %v12051_v28  ;;  %v12069_v28 = vld [vmem:[%s13395_s12 + $0xe00] ss:$16 sps:$4 sm:$0xff]  }
 0x1b9   : > { %7969 = vmatpush1.bf16.msra.mxu0 %v11973_v29  ;;  %8923 = vmatpush1.bf16.msra.mxu1 %v11976_v30  ;;  %v12072_v29 = vld [vmem:[%s13395_s12 + $0xe08] ss:$16 sps:$4 sm:$0xff]   ;;  %v12077_v30 = vld [vmem:[%s13395_s12 + $0xe24] ss:$16 sps:$4 sm:$0xff]  }
 0x1ba   : > { %7970 = vmatprep.subr.bf16.mxu0 %v11981_v31  ;;  %8924 = vmatprep.subr.bf16.mxu1 %v11984_v32  ;;  %v12080_v31 = vld [vmem:[%s13395_s12 + $0xe2c] ss:$16 sps:$4 sm:$0xff]   ;;  %v12153_v32 = vld [vmem:[%s14802_s0 + $0x154] ss:$144 sps:$4 sm:$0xff]  }
 0x1bc   : > { %7956 = vmatmul.mubr.bf16.gmra.mrb[4].mxu0 %v12059_v33  ;;  %8910 = vmatmul.mubr.bf16.gmra.mrb[4].mxu1 %v12059_v33  ;;  %v12075_v33 = vld [vmem:[%s13395_s12 + $0xe20] ss:$16 sps:$4 sm:$0xff]  }
 0x1bd   : > { %7971 = vmatpush1.bf16.msra.mxu0 %v11979_v34  ;;  %8925 = vmatpush1.bf16.msra.mxu1 %v11982_v35  ;;  %v12078_v34 = vld [vmem:[%s13395_s12 + $0xe28] ss:$16 sps:$4 sm:$0xff]   ;;  %v12083_v35 = vld [vmem:[%s13395_s12 + $0xe44] ss:$16 sps:$4 sm:$0xff]  }
 0x1be   : > { %7972 = vmatprep.subr.bf16.mxu0 %v11987_v36  ;;  %8926 = vmatprep.subr.bf16.mxu1 %v11990_v37  ;;  %v12086_v36 = vld [vmem:[%s13395_s12 + $0xe4c] ss:$16 sps:$4 sm:$0xff]   ;;  %v12161_v37 = vld [vmem:[%s14802_s0 + $0x150] ss:$144 sps:$4 sm:$0xff]  }
 0x1bf   : > { %7998 = vmatprep.mubr.bf16.mxu0 %v12068_v38  ;;  %8952 = vmatprep.mubr.bf16.mxu1 %v12068_v38  ;;  %v12081_v38 = vld [vmem:[%s13395_s12 + $0xe40] ss:$16 sps:$4 sm:$0xff]  }
 0x1c1   : > { %7973 = vmatpush1.bf16.msra.mxu0 %v11985_v39  ;;  %8927 = vmatpush1.bf16.msra.mxu1 %v11988_v40  ;;  %v12084_v39 = vld [vmem:[%s13395_s12 + $0xe48] ss:$16 sps:$4 sm:$0xff]   ;;  %v12089_v40 = vld [vmem:[%s13395_s12 + $0xe64] ss:$16 sps:$4 sm:$0xff]  }
 0x1c2   : > { %7974 = vmatprep.subr.bf16.mxu0 %v11993_v41  ;;  %8928 = vmatprep.subr.bf16.mxu1 %v11996_v42  ;;  %v12092_v41 = vld [vmem:[%s13395_s12 + $0xe6c] ss:$16 sps:$4 sm:$0xff]  }
 0x1c3   : > { %v12170_v42 = vld [vmem:[%s14802_s0 + $0x3c] ss:$144 sps:$4 sm:$0xff]  }
 0x1c5   : > { %7975 = vmatpush1.bf16.msra.mxu0 %v11991_v43  ;;  %8929 = vmatpush1.bf16.msra.mxu1 %v11994_v44  ;;  %v12087_v43 = vld [vmem:[%s13395_s12 + $0xe60] ss:$16 sps:$4 sm:$0xff]   ;;  %v12090_v44 = vld [vmem:[%s13395_s12 + $0xe68] ss:$16 sps:$4 sm:$0xff]  }
 0x1c6   : > { %7976 = vmatprep.subr.bf16.mxu0 %v11999_v45  ;;  %8930 = vmatprep.subr.bf16.mxu1 %v12002_v46  ;;  %v12095_v45 = vld [vmem:[%s13395_s12 + $0xe84] ss:$16 sps:$4 sm:$0xff]   ;;  %v12098_v46 = vld [vmem:[%s13395_s12 + $0xe8c] ss:$16 sps:$4 sm:$0xff]  }
 0x1c9   : > { %7977 = vmatpush1.bf16.msra.mxu0 %v11997_v47  ;;  %8931 = vmatpush1.bf16.msra.mxu1 %v12000_v48  ;;  %v12093_v47 = vld [vmem:[%s13395_s12 + $0xe80] ss:$16 sps:$4 sm:$0xff]   ;;  %v12096_v48 = vld [vmem:[%s13395_s12 + $0xe88] ss:$16 sps:$4 sm:$0xff]  }
 0x1ca   : > { %7978 = vmatprep.subr.bf16.mxu0 %v12005_v49  ;;  %8932 = vmatprep.subr.bf16.mxu1 %v12008_v50  ;;  %v12101_v49 = vld [vmem:[%s13395_s12 + $0xea4] ss:$16 sps:$4 sm:$0xff]   ;;  %v12104_v50 = vld [vmem:[%s13395_s12 + $0xeac] ss:$16 sps:$4 sm:$0xff]  }
 0x1cd   : > { %7979 = vmatpush1.bf16.msra.mxu0 %v12003_v51  ;;  %8933 = vmatpush1.bf16.msra.mxu1 %v12006_v52  ;;  %v12099_v51 = vld [vmem:[%s13395_s12 + $0xea0] ss:$16 sps:$4 sm:$0xff]   ;;  %v12102_v52 = vld [vmem:[%s13395_s12 + $0xea8] ss:$16 sps:$4 sm:$0xff]  }
 0x1ce   : > { %7980 = vmatprep.subr.bf16.mxu0 %v12011_v53  ;;  %8934 = vmatprep.subr.bf16.mxu1 %v12014_v54  ;;  %v12107_v53 = vld [vmem:[%s13395_s12 + $0xec4] ss:$16 sps:$4 sm:$0xff]   ;;  %v12110_v54 = vld [vmem:[%s13395_s12 + $0xecc] ss:$16 sps:$4 sm:$0xff]  }
 0x1d1   : > { %7981 = vmatpush1.bf16.msra.mxu0 %v12009_v55  ;;  %8935 = vmatpush1.bf16.msra.mxu1 %v12012_v56  ;;  %v12105_v55 = vld [vmem:[%s13395_s12 + $0xec0] ss:$16 sps:$4 sm:$0xff]   ;;  %v12108_v56 = vld [vmem:[%s13395_s12 + $0xec8] ss:$16 sps:$4 sm:$0xff]  }
 0x1d2   : > { %7982 = vmatprep.subr.bf16.mxu0 %v12017_v57  ;;  %8936 = vmatprep.subr.bf16.mxu1 %v12020_v58  ;;  %v12113_v57 = vld [vmem:[%s13395_s12 + $0xee4] ss:$16 sps:$4 sm:$0xff]   ;;  %v12116_v58 = vld [vmem:[%s13395_s12 + $0xeec] ss:$16 sps:$4 sm:$0xff]  }
 0x1d5   : > { %7983 = vmatpush1.bf16.msra.mxu0 %v12015_v59  ;;  %8937 = vmatpush1.bf16.msra.mxu1 %v12018_v60  ;;  %v12111_v59 = vld [vmem:[%s13395_s12 + $0xee0] ss:$16 sps:$4 sm:$0xff]   ;;  %v12114_v60 = vld [vmem:[%s13395_s12 + $0xee8] ss:$16 sps:$4 sm:$0xff]  }
 0x1d6   : > { %7984 = vmatprep.subr.bf16.mxu0 %v12023_v61  ;;  %8938 = vmatprep.subr.bf16.mxu1 %v12026_v62  ;;  %v12119_v61 = vld [vmem:[%s13395_s12 + $0xf04] ss:$16 sps:$4 sm:$0xff]   ;;  %v12122_v62 = vld [vmem:[%s13395_s12 + $0xf0c] ss:$16 sps:$4 sm:$0xff]  }
 0x1d9   : > { %7985 = vmatpush1.bf16.msra.mxu0 %v12021_v63  ;;  %8939 = vmatpush1.bf16.msra.mxu1 %v12024_v0  ;;  %v12117_v63 = vld [vmem:[%s13395_s12 + $0xf00] ss:$16 sps:$4 sm:$0xff]   ;;  %v12120_v0 = vld [vmem:[%s13395_s12 + $0xf08] ss:$16 sps:$4 sm:$0xff]  }
 0x1da   : > { %7986 = vmatprep.subr.bf16.mxu0 %v12029_v1  ;;  %8940 = vmatprep.subr.bf16.mxu1 %v12032_v2  ;;  %v12125_v1 = vld [vmem:[%s13395_s12 + $0xf24] ss:$16 sps:$4 sm:$0xff]   ;;  %v12128_v2 = vld [vmem:[%s13395_s12 + $0xf2c] ss:$16 sps:$4 sm:$0xff]  }
 0x1dd   : > { %7987 = vmatpush1.bf16.msra.mxu0 %v12027_v3  ;;  %8941 = vmatpush1.bf16.msra.mxu1 %v12030_v4  ;;  %v12123_v3 = vld [vmem:[%s13395_s12 + $0xf20] ss:$16 sps:$4 sm:$0xff]   ;;  %v12126_v4 = vld [vmem:[%s13395_s12 + $0xf28] ss:$16 sps:$4 sm:$0xff]  }
 0x1de   : > { %7988 = vmatprep.subr.bf16.mxu0 %v12035_v5  ;;  %8942 = vmatprep.subr.bf16.mxu1 %v12038_v6  ;;  %v12131_v5 = vld [vmem:[%s13395_s12 + $0xf44] ss:$16 sps:$4 sm:$0xff]   ;;  %v12134_v6 = vld [vmem:[%s13395_s12 + $0xf4c] ss:$16 sps:$4 sm:$0xff]  }
 0x1e1   : > { %7989 = vmatpush1.bf16.msra.mxu0 %v12033_v7  ;;  %8943 = vmatpush1.bf16.msra.mxu1 %v12036_v8  ;;  %v12129_v7 = vld [vmem:[%s13395_s12 + $0xf40] ss:$16 sps:$4 sm:$0xff]   ;;  %v12132_v8 = vld [vmem:[%s13395_s12 + $0xf48] ss:$16 sps:$4 sm:$0xff]  }
 0x1e2   : > { %7990 = vmatprep.subr.bf16.mxu0 %v12041_v9  ;;  %8944 = vmatprep.subr.bf16.mxu1 %v12044_v10  ;;  %v12137_v9 = vld [vmem:[%s13395_s12 + $0xf64] ss:$16 sps:$4 sm:$0xff]   ;;  %v12140_v10 = vld [vmem:[%s13395_s12 + $0xf6c] ss:$16 sps:$4 sm:$0xff]  }
 0x1e5   : > { %7991 = vmatpush1.bf16.msra.mxu0 %v12039_v11  ;;  %8945 = vmatpush1.bf16.msra.mxu1 %v12042_v12  ;;  %v12135_v11 = vld [vmem:[%s13395_s12 + $0xf60] ss:$16 sps:$4 sm:$0xff]   ;;  %v12138_v12 = vld [vmem:[%s13395_s12 + $0xf68] ss:$16 sps:$4 sm:$0xff]  }
 0x1e6   : > { %7992 = vmatprep.subr.bf16.mxu0 %v12047_v13  ;;  %8946 = vmatprep.subr.bf16.mxu1 %v12050_v14  ;;  %v12143_v13 = vld [vmem:[%s13395_s12 + $0xf84] ss:$16 sps:$4 sm:$0xff]   ;;  %v12146_v14 = vld [vmem:[%s13395_s12 + $0xf8c] ss:$16 sps:$4 sm:$0xff]  }
 0x1e9   : > { %7993 = vmatpush1.bf16.msra.mxu0 %v12045_v15  ;;  %8947 = vmatpush1.bf16.msra.mxu1 %v12048_v16  ;;  %v12141_v15 = vld [vmem:[%s13395_s12 + $0xf80] ss:$16 sps:$4 sm:$0xff]   ;;  %v12144_v16 = vld [vmem:[%s13395_s12 + $0xf88] ss:$16 sps:$4 sm:$0xff]  }
 0x1ea   : > { %7994 = vmatprep.subr.bf16.mxu0 %v12055_v17  ;;  %8948 = vmatprep.subr.bf16.mxu1 %v12058_v18  ;;  %v12149_v17 = vld [vmem:[%s13395_s12 + $0xfa4] ss:$16 sps:$4 sm:$0xff]   ;;  %v12152_v18 = vld [vmem:[%s13395_s12 + $0xfac] ss:$16 sps:$4 sm:$0xff]  }
 0x1ed   : > { %7995 = vmatpush1.bf16.msra.mxu0 %v12053_v19  ;;  %8949 = vmatpush1.bf16.msra.mxu1 %v12056_v20  ;;  %v12147_v19 = vld [vmem:[%s13395_s12 + $0xfa0] ss:$16 sps:$4 sm:$0xff]   ;;  %v12150_v20 = vld [vmem:[%s13395_s12 + $0xfa8] ss:$16 sps:$4 sm:$0xff]  }
 0x1ee   : > { %7996 = vmatprep.subr.bf16.mxu0 %v12062_v21  ;;  %8950 = vmatprep.subr.bf16.mxu1 %v12065_v22  ;;  %v12157_v21 = vld [vmem:[%s13395_s12 + $0xfc4] ss:$16 sps:$4 sm:$0xff]   ;;  %v12160_v22 = vld [vmem:[%s13395_s12 + $0xfcc] ss:$16 sps:$4 sm:$0xff]  }
 0x1f1   : > { %7997 = vmatpush1.bf16.msra.mxu0 %v12060_v23  ;;  %8951 = vmatpush1.bf16.msra.mxu1 %v12063_v24  ;;  %v12155_v23 = vld [vmem:[%s13395_s12 + $0xfc0] ss:$16 sps:$4 sm:$0xff]   ;;  %v12158_v24 = vld [vmem:[%s13395_s12 + $0xfc8] ss:$16 sps:$4 sm:$0xff]  }
 0x1f2   : > { %8019 = vmatprep.subr.bf16.mxu0 %v12071_v26  ;;  %8973 = vmatprep.subr.bf16.mxu1 %v12074_v27  ;;  %v12167_v26 = vld [vmem:[%s13395_s12 + $0xfec] ss:$16 sps:$4 sm:$0xff]   ;;  %v12162_v27 = vld [vmem:[%s13395_s12 + $0xfe0] ss:$16 sps:$4 sm:$0xff]  }
 0x1f4   : > { %7999 = vmatmul.mubr.bf16.vlgmr.msra.gmra.mrb[0].mxu0 %v12066_v25  ;;  %8953 = vmatmul.mubr.bf16.vlgmr.msra.gmra.mrb[0].mxu1 %v12066_v25  ;;  %v12164_v25 = vld [vmem:[%s13395_s12 + $0xfe4] ss:$16 sps:$4 sm:$0xff]  }
 0x1f5   : > { %8020 = vmatpush1.bf16.msra.mxu0 %v12069_v28  ;;  %8974 = vmatpush1.bf16.msra.mxu1 %v12072_v29  ;;  %v12165_v28 = vld [vmem:[%s13395_s12 + $0xfe8] ss:$16 sps:$4 sm:$0xff]  }
 0x1f6   : > { %8021 = vmatprep.subr.bf16.mxu0 %v12077_v30  ;;  %8975 = vmatprep.subr.bf16.mxu1 %v12080_v31  ;;  %v12168_v29 = vld [vmem:[%s14802_s0 + $0x38] ss:$144 sps:$4 sm:$0xff]   ;;  %v12173_v30 = vld [vmem:[%s13395_s12 + $0x1004] ss:$16 sps:$4 sm:$0xff]   ;;  %v12176_v31 = vld [vmem:[%s13395_s12 + $0x100c] ss:$16 sps:$4 sm:$0xff]  }
 0x1f7   : > { %8008 = vmatprep.mubr.bf16.mxu0 %v12153_v32  ;;  %8962 = vmatprep.mubr.bf16.mxu1 %v12153_v32  ;;  %v12171_v32 = vld [vmem:[%s13395_s12 + $0x1000] ss:$16 sps:$4 sm:$0xff]  }
 0x1f9   : > { %8022 = vmatpush1.bf16.msra.mxu0 %v12075_v33  ;;  %8976 = vmatpush1.bf16.msra.mxu1 %v12078_v34  ;;  %v12174_v33 = vld [vmem:[%s13395_s12 + $0x1008] ss:$16 sps:$4 sm:$0xff]   ;;  %v12179_v34 = vld [vmem:[%s13395_s12 + $0x1024] ss:$16 sps:$4 sm:$0xff]  }
 0x1fa   : > { %8023 = vmatprep.subr.bf16.mxu0 %v12083_v35  ;;  %8977 = vmatprep.subr.bf16.mxu1 %v12086_v36  ;;  %v12182_v35 = vld [vmem:[%s13395_s12 + $0x102c] ss:$16 sps:$4 sm:$0xff]  }
 0x1fb   : > { %v12255_v36 = vld [vmem:[%s14802_s0 + $0x15c] ss:$144 sps:$4 sm:$0xff]  }
 0x1fc   : > { %8009 = vmatmul.mubr.bf16.gmra.mrb[4].mxu0 %v12161_v37  ;;  %8963 = vmatmul.mubr.bf16.gmra.mrb[4].mxu1 %v12161_v37  ;;  %v12177_v37 = vld [vmem:[%s13395_s12 + $0x1020] ss:$16 sps:$4 sm:$0xff]  }
 0x1fd   : > { %8024 = vmatpush1.bf16.msra.mxu0 %v12081_v38  ;;  %8978 = vmatpush1.bf16.msra.mxu1 %v12084_v39  ;;  %v12180_v38 = vld [vmem:[%s13395_s12 + $0x1028] ss:$16 sps:$4 sm:$0xff]   ;;  %v12185_v39 = vld [vmem:[%s13395_s12 + $0x1044] ss:$16 sps:$4 sm:$0xff]  }
 0x1fe   : > { %8025 = vmatprep.subr.bf16.mxu0 %v12089_v40  ;;  %8979 = vmatprep.subr.bf16.mxu1 %v12092_v41  ;;  %v12188_v40 = vld [vmem:[%s13395_s12 + $0x104c] ss:$16 sps:$4 sm:$0xff]   ;;  %v12263_v41 = vld [vmem:[%s14802_s0 + $0x158] ss:$144 sps:$4 sm:$0xff]  }
 0x1ff   : > { %8051 = vmatprep.mubr.bf16.mxu0 %v12170_v42  ;;  %9005 = vmatprep.mubr.bf16.mxu1 %v12170_v42  ;;  %v12183_v42 = vld [vmem:[%s13395_s12 + $0x1040] ss:$16 sps:$4 sm:$0xff]  }
 0x201   : > { %8026 = vmatpush1.bf16.msra.mxu0 %v12087_v43  ;;  %8980 = vmatpush1.bf16.msra.mxu1 %v12090_v44  ;;  %v12186_v43 = vld [vmem:[%s13395_s12 + $0x1048] ss:$16 sps:$4 sm:$0xff]   ;;  %v12191_v44 = vld [vmem:[%s13395_s12 + $0x1064] ss:$16 sps:$4 sm:$0xff]  }
 0x202   : > { %8027 = vmatprep.subr.bf16.mxu0 %v12095_v45  ;;  %8981 = vmatprep.subr.bf16.mxu1 %v12098_v46  ;;  %v12194_v45 = vld [vmem:[%s13395_s12 + $0x106c] ss:$16 sps:$4 sm:$0xff]   ;;  %v12272_v46 = vld [vmem:[%s14802_s0 + $0x44] ss:$144 sps:$4 sm:$0xff]  }
 0x205   : > { %8028 = vmatpush1.bf16.msra.mxu0 %v12093_v47  ;;  %8982 = vmatpush1.bf16.msra.mxu1 %v12096_v48  ;;  %v12189_v47 = vld [vmem:[%s13395_s12 + $0x1060] ss:$16 sps:$4 sm:$0xff]   ;;  %v12192_v48 = vld [vmem:[%s13395_s12 + $0x1068] ss:$16 sps:$4 sm:$0xff]  }
 0x206   : > { %8029 = vmatprep.subr.bf16.mxu0 %v12101_v49  ;;  %8983 = vmatprep.subr.bf16.mxu1 %v12104_v50  ;;  %v12197_v49 = vld [vmem:[%s13395_s12 + $0x1084] ss:$16 sps:$4 sm:$0xff]   ;;  %v12200_v50 = vld [vmem:[%s13395_s12 + $0x108c] ss:$16 sps:$4 sm:$0xff]  }
 0x209   : > { %8030 = vmatpush1.bf16.msra.mxu0 %v12099_v51  ;;  %8984 = vmatpush1.bf16.msra.mxu1 %v12102_v52  ;;  %v12195_v51 = vld [vmem:[%s13395_s12 + $0x1080] ss:$16 sps:$4 sm:$0xff]   ;;  %v12198_v52 = vld [vmem:[%s13395_s12 + $0x1088] ss:$16 sps:$4 sm:$0xff]  }
 0x20a   : > { %8031 = vmatprep.subr.bf16.mxu0 %v12107_v53  ;;  %8985 = vmatprep.subr.bf16.mxu1 %v12110_v54  ;;  %v12203_v53 = vld [vmem:[%s13395_s12 + $0x10a4] ss:$16 sps:$4 sm:$0xff]   ;;  %v12206_v54 = vld [vmem:[%s13395_s12 + $0x10ac] ss:$16 sps:$4 sm:$0xff]  }
 0x20d   : > { %8032 = vmatpush1.bf16.msra.mxu0 %v12105_v55  ;;  %8986 = vmatpush1.bf16.msra.mxu1 %v12108_v56  ;;  %v12201_v55 = vld [vmem:[%s13395_s12 + $0x10a0] ss:$16 sps:$4 sm:$0xff]   ;;  %v12204_v56 = vld [vmem:[%s13395_s12 + $0x10a8] ss:$16 sps:$4 sm:$0xff]  }
 0x20e   : > { %8033 = vmatprep.subr.bf16.mxu0 %v12113_v57  ;;  %8987 = vmatprep.subr.bf16.mxu1 %v12116_v58  ;;  %v12209_v57 = vld [vmem:[%s13395_s12 + $0x10c4] ss:$16 sps:$4 sm:$0xff]   ;;  %v12212_v58 = vld [vmem:[%s13395_s12 + $0x10cc] ss:$16 sps:$4 sm:$0xff]  }
 0x211   : > { %8034 = vmatpush1.bf16.msra.mxu0 %v12111_v59  ;;  %8988 = vmatpush1.bf16.msra.mxu1 %v12114_v60  ;;  %v12207_v59 = vld [vmem:[%s13395_s12 + $0x10c0] ss:$16 sps:$4 sm:$0xff]   ;;  %v12210_v60 = vld [vmem:[%s13395_s12 + $0x10c8] ss:$16 sps:$4 sm:$0xff]  }
 0x212   : > { %8035 = vmatprep.subr.bf16.mxu0 %v12119_v61  ;;  %8989 = vmatprep.subr.bf16.mxu1 %v12122_v62  ;;  %v12215_v61 = vld [vmem:[%s13395_s12 + $0x10e4] ss:$16 sps:$4 sm:$0xff]   ;;  %v12218_v62 = vld [vmem:[%s13395_s12 + $0x10ec] ss:$16 sps:$4 sm:$0xff]  }
 0x215   : > { %8036 = vmatpush1.bf16.msra.mxu0 %v12117_v63  ;;  %8990 = vmatpush1.bf16.msra.mxu1 %v12120_v0  ;;  %v12213_v63 = vld [vmem:[%s13395_s12 + $0x10e0] ss:$16 sps:$4 sm:$0xff]   ;;  %v12216_v0 = vld [vmem:[%s13395_s12 + $0x10e8] ss:$16 sps:$4 sm:$0xff]  }
 0x216   : > { %8037 = vmatprep.subr.bf16.mxu0 %v12125_v1  ;;  %8991 = vmatprep.subr.bf16.mxu1 %v12128_v2  ;;  %v12221_v1 = vld [vmem:[%s13395_s12 + $0x1104] ss:$16 sps:$4 sm:$0xff]   ;;  %v12224_v2 = vld [vmem:[%s13395_s12 + $0x110c] ss:$16 sps:$4 sm:$0xff]  }
 0x219   : > { %8038 = vmatpush1.bf16.msra.mxu0 %v12123_v3  ;;  %8992 = vmatpush1.bf16.msra.mxu1 %v12126_v4  ;;  %v12219_v3 = vld [vmem:[%s13395_s12 + $0x1100] ss:$16 sps:$4 sm:$0xff]   ;;  %v12222_v4 = vld [vmem:[%s13395_s12 + $0x1108] ss:$16 sps:$4 sm:$0xff]  }
 0x21a   : > { %8039 = vmatprep.subr.bf16.mxu0 %v12131_v5  ;;  %8993 = vmatprep.subr.bf16.mxu1 %v12134_v6  ;;  %v12227_v5 = vld [vmem:[%s13395_s12 + $0x1124] ss:$16 sps:$4 sm:$0xff]   ;;  %v12230_v6 = vld [vmem:[%s13395_s12 + $0x112c] ss:$16 sps:$4 sm:$0xff]  }
 0x21d   : > { %8040 = vmatpush1.bf16.msra.mxu0 %v12129_v7  ;;  %8994 = vmatpush1.bf16.msra.mxu1 %v12132_v8  ;;  %v12225_v7 = vld [vmem:[%s13395_s12 + $0x1120] ss:$16 sps:$4 sm:$0xff]   ;;  %v12228_v8 = vld [vmem:[%s13395_s12 + $0x1128] ss:$16 sps:$4 sm:$0xff]  }
 0x21e   : > { %8041 = vmatprep.subr.bf16.mxu0 %v12137_v9  ;;  %8995 = vmatprep.subr.bf16.mxu1 %v12140_v10  ;;  %v12233_v9 = vld [vmem:[%s13395_s12 + $0x1144] ss:$16 sps:$4 sm:$0xff]   ;;  %v12236_v10 = vld [vmem:[%s13395_s12 + $0x114c] ss:$16 sps:$4 sm:$0xff]  }
 0x221   : > { %8042 = vmatpush1.bf16.msra.mxu0 %v12135_v11  ;;  %8996 = vmatpush1.bf16.msra.mxu1 %v12138_v12  ;;  %v12231_v11 = vld [vmem:[%s13395_s12 + $0x1140] ss:$16 sps:$4 sm:$0xff]   ;;  %v12234_v12 = vld [vmem:[%s13395_s12 + $0x1148] ss:$16 sps:$4 sm:$0xff]  }
 0x222   : > { %8043 = vmatprep.subr.bf16.mxu0 %v12143_v13  ;;  %8997 = vmatprep.subr.bf16.mxu1 %v12146_v14  ;;  %v12239_v13 = vld [vmem:[%s13395_s12 + $0x1164] ss:$16 sps:$4 sm:$0xff]   ;;  %v12242_v14 = vld [vmem:[%s13395_s12 + $0x116c] ss:$16 sps:$4 sm:$0xff]  }
 0x225   : > { %8044 = vmatpush1.bf16.msra.mxu0 %v12141_v15  ;;  %8998 = vmatpush1.bf16.msra.mxu1 %v12144_v16  ;;  %v12237_v15 = vld [vmem:[%s13395_s12 + $0x1160] ss:$16 sps:$4 sm:$0xff]   ;;  %v12240_v16 = vld [vmem:[%s13395_s12 + $0x1168] ss:$16 sps:$4 sm:$0xff]  }
 0x226   : > { %8045 = vmatprep.subr.bf16.mxu0 %v12149_v17  ;;  %8999 = vmatprep.subr.bf16.mxu1 %v12152_v18  ;;  %v12245_v17 = vld [vmem:[%s13395_s12 + $0x1184] ss:$16 sps:$4 sm:$0xff]   ;;  %v12248_v18 = vld [vmem:[%s13395_s12 + $0x118c] ss:$16 sps:$4 sm:$0xff]  }
 0x229   : > { %8046 = vmatpush1.bf16.msra.mxu0 %v12147_v19  ;;  %9000 = vmatpush1.bf16.msra.mxu1 %v12150_v20  ;;  %v12243_v19 = vld [vmem:[%s13395_s12 + $0x1180] ss:$16 sps:$4 sm:$0xff]   ;;  %v12246_v20 = vld [vmem:[%s13395_s12 + $0x1188] ss:$16 sps:$4 sm:$0xff]  }
 0x22a   : > { %8047 = vmatprep.subr.bf16.mxu0 %v12157_v21  ;;  %9001 = vmatprep.subr.bf16.mxu1 %v12160_v22  ;;  %v12251_v21 = vld [vmem:[%s13395_s12 + $0x11a4] ss:$16 sps:$4 sm:$0xff]   ;;  %v12254_v22 = vld [vmem:[%s13395_s12 + $0x11ac] ss:$16 sps:$4 sm:$0xff]  }
 0x22d   : > { %8048 = vmatpush1.bf16.msra.mxu0 %v12155_v23  ;;  %9002 = vmatpush1.bf16.msra.mxu1 %v12158_v24  ;;  %v12249_v23 = vld [vmem:[%s13395_s12 + $0x11a0] ss:$16 sps:$4 sm:$0xff]   ;;  %v12252_v24 = vld [vmem:[%s13395_s12 + $0x11a8] ss:$16 sps:$4 sm:$0xff]  }
 0x22e   : > { %8049 = vmatprep.subr.bf16.mxu0 %v12164_v25  ;;  %9003 = vmatprep.subr.bf16.mxu1 %v12167_v26  ;;  %v12259_v25 = vld [vmem:[%s13395_s12 + $0x11c4] ss:$16 sps:$4 sm:$0xff]   ;;  %v12262_v26 = vld [vmem:[%s13395_s12 + $0x11cc] ss:$16 sps:$4 sm:$0xff]  }
 0x231   : > { %8050 = vmatpush1.bf16.msra.mxu0 %v12162_v27  ;;  %9004 = vmatpush1.bf16.msra.mxu1 %v12165_v28  ;;  %v12257_v27 = vld [vmem:[%s13395_s12 + $0x11c0] ss:$16 sps:$4 sm:$0xff]   ;;  %v12260_v28 = vld [vmem:[%s13395_s12 + $0x11c8] ss:$16 sps:$4 sm:$0xff]  }
 0x232   : > { %8072 = vmatprep.subr.bf16.mxu0 %v12173_v30  ;;  %9026 = vmatprep.subr.bf16.mxu1 %v12176_v31  ;;  %v12269_v30 = vld [vmem:[%s13395_s12 + $0x11ec] ss:$16 sps:$4 sm:$0xff]   ;;  %v12264_v31 = vld [vmem:[%s13395_s12 + $0x11e0] ss:$16 sps:$4 sm:$0xff]  }
 0x234   : > { %8052 = vmatmul.mubr.bf16.vlgmr.msra.gmra.mrb[0].mxu0 %v12168_v29  ;;  %9006 = vmatmul.mubr.bf16.vlgmr.msra.gmra.mrb[0].mxu1 %v12168_v29  ;;  %v12266_v29 = vld [vmem:[%s13395_s12 + $0x11e4] ss:$16 sps:$4 sm:$0xff]  }
 0x235   : > { %8073 = vmatpush1.bf16.msra.mxu0 %v12171_v32  ;;  %9027 = vmatpush1.bf16.msra.mxu1 %v12174_v33  ;;  %v12267_v32 = vld [vmem:[%s13395_s12 + $0x11e8] ss:$16 sps:$4 sm:$0xff]   ;;  %v12270_v33 = vld [vmem:[%s14802_s0 + $0x40] ss:$144 sps:$4 sm:$0xff]  }
 0x236   : > { %8074 = vmatprep.subr.bf16.mxu0 %v12179_v34  ;;  %9028 = vmatprep.subr.bf16.mxu1 %v12182_v35  ;;  %v12275_v34 = vld [vmem:[%s13395_s12 + $0x1204] ss:$16 sps:$4 sm:$0xff]   ;;  %v12278_v35 = vld [vmem:[%s13395_s12 + $0x120c] ss:$16 sps:$4 sm:$0xff]  }
 0x237   : > { %8061 = vmatprep.mubr.bf16.mxu0 %v12255_v36  ;;  %9015 = vmatprep.mubr.bf16.mxu1 %v12255_v36  ;;  %v12273_v36 = vld [vmem:[%s13395_s12 + $0x1200] ss:$16 sps:$4 sm:$0xff]  }
 0x239   : > { %8075 = vmatpush1.bf16.msra.mxu0 %v12177_v37  ;;  %9029 = vmatpush1.bf16.msra.mxu1 %v12180_v38  ;;  %v12276_v37 = vld [vmem:[%s13395_s12 + $0x1208] ss:$16 sps:$4 sm:$0xff]   ;;  %v12281_v38 = vld [vmem:[%s13395_s12 + $0x1224] ss:$16 sps:$4 sm:$0xff]  }
 0x23a   : > { %8076 = vmatprep.subr.bf16.mxu0 %v12185_v39  ;;  %9030 = vmatprep.subr.bf16.mxu1 %v12188_v40  ;;  %v12284_v39 = vld [vmem:[%s13395_s12 + $0x122c] ss:$16 sps:$4 sm:$0xff]   ;;  %v12357_v40 = vld [vmem:[%s14802_s0 + $0x164] ss:$144 sps:$4 sm:$0xff]  }
 0x23c   : > { %8062 = vmatmul.mubr.bf16.gmra.mrb[4].mxu0 %v12263_v41  ;;  %9016 = vmatmul.mubr.bf16.gmra.mrb[4].mxu1 %v12263_v41  ;;  %v12279_v41 = vld [vmem:[%s13395_s12 + $0x1220] ss:$16 sps:$4 sm:$0xff]  }
 0x23d   : > { %8077 = vmatpush1.bf16.msra.mxu0 %v12183_v42  ;;  %9031 = vmatpush1.bf16.msra.mxu1 %v12186_v43  ;;  %v12282_v42 = vld [vmem:[%s13395_s12 + $0x1228] ss:$16 sps:$4 sm:$0xff]   ;;  %v12287_v43 = vld [vmem:[%s13395_s12 + $0x1244] ss:$16 sps:$4 sm:$0xff]  }
 0x23e   : > { %8078 = vmatprep.subr.bf16.mxu0 %v12191_v44  ;;  %9032 = vmatprep.subr.bf16.mxu1 %v12194_v45  ;;  %v12290_v44 = vld [vmem:[%s13395_s12 + $0x124c] ss:$16 sps:$4 sm:$0xff]   ;;  %v12365_v45 = vld [vmem:[%s14802_s0 + $0x160] ss:$144 sps:$4 sm:$0xff]  }
 0x23f   : > { %8104 = vmatprep.mubr.bf16.mxu0 %v12272_v46  ;;  %9058 = vmatprep.mubr.bf16.mxu1 %v12272_v46  ;;  %v12285_v46 = vld [vmem:[%s13395_s12 + $0x1240] ss:$16 sps:$4 sm:$0xff]  }
 0x241   : > { %8079 = vmatpush1.bf16.msra.mxu0 %v12189_v47  ;;  %9033 = vmatpush1.bf16.msra.mxu1 %v12192_v48  ;;  %v12288_v47 = vld [vmem:[%s13395_s12 + $0x1248] ss:$16 sps:$4 sm:$0xff]   ;;  %v12293_v48 = vld [vmem:[%s13395_s12 + $0x1264] ss:$16 sps:$4 sm:$0xff]  }
 0x242   : > { %8080 = vmatprep.subr.bf16.mxu0 %v12197_v49  ;;  %9034 = vmatprep.subr.bf16.mxu1 %v12200_v50  ;;  %v12296_v49 = vld [vmem:[%s13395_s12 + $0x126c] ss:$16 sps:$4 sm:$0xff]  }
 0x243   : > { %v12374_v50 = vld [vmem:[%s14802_s0 + $0x4c] ss:$144 sps:$4 sm:$0xff]  }
 0x245   : > { %8081 = vmatpush1.bf16.msra.mxu0 %v12195_v51  ;;  %9035 = vmatpush1.bf16.msra.mxu1 %v12198_v52  ;;  %v12291_v51 = vld [vmem:[%s13395_s12 + $0x1260] ss:$16 sps:$4 sm:$0xff]   ;;  %v12294_v52 = vld [vmem:[%s13395_s12 + $0x1268] ss:$16 sps:$4 sm:$0xff]  }
 0x246   : > { %8082 = vmatprep.subr.bf16.mxu0 %v12203_v53  ;;  %9036 = vmatprep.subr.bf16.mxu1 %v12206_v54  ;;  %v12299_v53 = vld [vmem:[%s13395_s12 + $0x1284] ss:$16 sps:$4 sm:$0xff]   ;;  %v12302_v54 = vld [vmem:[%s13395_s12 + $0x128c] ss:$16 sps:$4 sm:$0xff]  }
 0x249   : > { %8083 = vmatpush1.bf16.msra.mxu0 %v12201_v55  ;;  %9037 = vmatpush1.bf16.msra.mxu1 %v12204_v56  ;;  %v12297_v55 = vld [vmem:[%s13395_s12 + $0x1280] ss:$16 sps:$4 sm:$0xff]   ;;  %v12300_v56 = vld [vmem:[%s13395_s12 + $0x1288] ss:$16 sps:$4 sm:$0xff]  }
 0x24a   : > { %8084 = vmatprep.subr.bf16.mxu0 %v12209_v57  ;;  %9038 = vmatprep.subr.bf16.mxu1 %v12212_v58  ;;  %v12305_v57 = vld [vmem:[%s13395_s12 + $0x12a4] ss:$16 sps:$4 sm:$0xff]   ;;  %v12308_v58 = vld [vmem:[%s13395_s12 + $0x12ac] ss:$16 sps:$4 sm:$0xff]  }
 0x24d   : > { %8085 = vmatpush1.bf16.msra.mxu0 %v12207_v59  ;;  %9039 = vmatpush1.bf16.msra.mxu1 %v12210_v60  ;;  %v12303_v59 = vld [vmem:[%s13395_s12 + $0x12a0] ss:$16 sps:$4 sm:$0xff]   ;;  %v12306_v60 = vld [vmem:[%s13395_s12 + $0x12a8] ss:$16 sps:$4 sm:$0xff]  }
 0x24e   : > { %8086 = vmatprep.subr.bf16.mxu0 %v12215_v61  ;;  %9040 = vmatprep.subr.bf16.mxu1 %v12218_v62  ;;  %v12311_v61 = vld [vmem:[%s13395_s12 + $0x12c4] ss:$16 sps:$4 sm:$0xff]   ;;  %v12314_v62 = vld [vmem:[%s13395_s12 + $0x12cc] ss:$16 sps:$4 sm:$0xff]  }
 0x251   : > { %8087 = vmatpush1.bf16.msra.mxu0 %v12213_v63  ;;  %9041 = vmatpush1.bf16.msra.mxu1 %v12216_v0  ;;  %v12309_v63 = vld [vmem:[%s13395_s12 + $0x12c0] ss:$16 sps:$4 sm:$0xff]   ;;  %v12312_v0 = vld [vmem:[%s13395_s12 + $0x12c8] ss:$16 sps:$4 sm:$0xff]  }
 0x252   : > { %8088 = vmatprep.subr.bf16.mxu0 %v12221_v1  ;;  %9042 = vmatprep.subr.bf16.mxu1 %v12224_v2  ;;  %v12317_v1 = vld [vmem:[%s13395_s12 + $0x12e4] ss:$16 sps:$4 sm:$0xff]   ;;  %v12320_v2 = vld [vmem:[%s13395_s12 + $0x12ec] ss:$16 sps:$4 sm:$0xff]  }
 0x255   : > { %8089 = vmatpush1.bf16.msra.mxu0 %v12219_v3  ;;  %9043 = vmatpush1.bf16.msra.mxu1 %v12222_v4  ;;  %v12315_v3 = vld [vmem:[%s13395_s12 + $0x12e0] ss:$16 sps:$4 sm:$0xff]   ;;  %v12318_v4 = vld [vmem:[%s13395_s12 + $0x12e8] ss:$16 sps:$4 sm:$0xff]  }
 0x256   : > { %8090 = vmatprep.subr.bf16.mxu0 %v12227_v5  ;;  %9044 = vmatprep.subr.bf16.mxu1 %v12230_v6  ;;  %v12323_v5 = vld [vmem:[%s13395_s12 + $0x1304] ss:$16 sps:$4 sm:$0xff]   ;;  %v12326_v6 = vld [vmem:[%s13395_s12 + $0x130c] ss:$16 sps:$4 sm:$0xff]  }
 0x259   : > { %8091 = vmatpush1.bf16.msra.mxu0 %v12225_v7  ;;  %9045 = vmatpush1.bf16.msra.mxu1 %v12228_v8  ;;  %v12321_v7 = vld [vmem:[%s13395_s12 + $0x1300] ss:$16 sps:$4 sm:$0xff]   ;;  %v12324_v8 = vld [vmem:[%s13395_s12 + $0x1308] ss:$16 sps:$4 sm:$0xff]  }
 0x25a   : > { %8092 = vmatprep.subr.bf16.mxu0 %v12233_v9  ;;  %9046 = vmatprep.subr.bf16.mxu1 %v12236_v10  ;;  %v12329_v9 = vld [vmem:[%s13395_s12 + $0x1324] ss:$16 sps:$4 sm:$0xff]   ;;  %v12332_v10 = vld [vmem:[%s13395_s12 + $0x132c] ss:$16 sps:$4 sm:$0xff]  }
 0x25d   : > { %8093 = vmatpush1.bf16.msra.mxu0 %v12231_v11  ;;  %9047 = vmatpush1.bf16.msra.mxu1 %v12234_v12  ;;  %v12327_v11 = vld [vmem:[%s13395_s12 + $0x1320] ss:$16 sps:$4 sm:$0xff]   ;;  %v12330_v12 = vld [vmem:[%s13395_s12 + $0x1328] ss:$16 sps:$4 sm:$0xff]  }
 0x25e   : > { %8094 = vmatprep.subr.bf16.mxu0 %v12239_v13  ;;  %9048 = vmatprep.subr.bf16.mxu1 %v12242_v14  ;;  %v12335_v13 = vld [vmem:[%s13395_s12 + $0x1344] ss:$16 sps:$4 sm:$0xff]   ;;  %v12338_v14 = vld [vmem:[%s13395_s12 + $0x134c] ss:$16 sps:$4 sm:$0xff]  }
 0x261   : > { %8095 = vmatpush1.bf16.msra.mxu0 %v12237_v15  ;;  %9049 = vmatpush1.bf16.msra.mxu1 %v12240_v16  ;;  %v12333_v15 = vld [vmem:[%s13395_s12 + $0x1340] ss:$16 sps:$4 sm:$0xff]   ;;  %v12336_v16 = vld [vmem:[%s13395_s12 + $0x1348] ss:$16 sps:$4 sm:$0xff]  }
 0x262   : > { %8096 = vmatprep.subr.bf16.mxu0 %v12245_v17  ;;  %9050 = vmatprep.subr.bf16.mxu1 %v12248_v18  ;;  %v12341_v17 = vld [vmem:[%s13395_s12 + $0x1364] ss:$16 sps:$4 sm:$0xff]   ;;  %v12344_v18 = vld [vmem:[%s13395_s12 + $0x136c] ss:$16 sps:$4 sm:$0xff]  }
 0x265   : > { %8097 = vmatpush1.bf16.msra.mxu0 %v12243_v19  ;;  %9051 = vmatpush1.bf16.msra.mxu1 %v12246_v20  ;;  %v12339_v19 = vld [vmem:[%s13395_s12 + $0x1360] ss:$16 sps:$4 sm:$0xff]   ;;  %v12342_v20 = vld [vmem:[%s13395_s12 + $0x1368] ss:$16 sps:$4 sm:$0xff]  }
 0x266   : > { %8098 = vmatprep.subr.bf16.mxu0 %v12251_v21  ;;  %9052 = vmatprep.subr.bf16.mxu1 %v12254_v22  ;;  %v12347_v21 = vld [vmem:[%s13395_s12 + $0x1384] ss:$16 sps:$4 sm:$0xff]   ;;  %v12350_v22 = vld [vmem:[%s13395_s12 + $0x138c] ss:$16 sps:$4 sm:$0xff]  }
 0x269   : > { %8099 = vmatpush1.bf16.msra.mxu0 %v12249_v23  ;;  %9053 = vmatpush1.bf16.msra.mxu1 %v12252_v24  ;;  %v12345_v23 = vld [vmem:[%s13395_s12 + $0x1380] ss:$16 sps:$4 sm:$0xff]   ;;  %v12348_v24 = vld [vmem:[%s13395_s12 + $0x1388] ss:$16 sps:$4 sm:$0xff]  }
 0x26a   : > { %8100 = vmatprep.subr.bf16.mxu0 %v12259_v25  ;;  %9054 = vmatprep.subr.bf16.mxu1 %v12262_v26  ;;  %v12353_v25 = vld [vmem:[%s13395_s12 + $0x13a4] ss:$16 sps:$4 sm:$0xff]   ;;  %v12356_v26 = vld [vmem:[%s13395_s12 + $0x13ac] ss:$16 sps:$4 sm:$0xff]  }
 0x26d   : > { %8101 = vmatpush1.bf16.msra.mxu0 %v12257_v27  ;;  %9055 = vmatpush1.bf16.msra.mxu1 %v12260_v28  ;;  %v12351_v27 = vld [vmem:[%s13395_s12 + $0x13a0] ss:$16 sps:$4 sm:$0xff]   ;;  %v12354_v28 = vld [vmem:[%s13395_s12 + $0x13a8] ss:$16 sps:$4 sm:$0xff]  }
 0x26e   : > { %8102 = vmatprep.subr.bf16.mxu0 %v12266_v29  ;;  %9056 = vmatprep.subr.bf16.mxu1 %v12269_v30  ;;  %v12361_v29 = vld [vmem:[%s13395_s12 + $0x13c4] ss:$16 sps:$4 sm:$0xff]   ;;  %v12364_v30 = vld [vmem:[%s13395_s12 + $0x13cc] ss:$16 sps:$4 sm:$0xff]  }
 0x271   : > { %8103 = vmatpush1.bf16.msra.mxu0 %v12264_v31  ;;  %9057 = vmatpush1.bf16.msra.mxu1 %v12267_v32  ;;  %v12359_v31 = vld [vmem:[%s13395_s12 + $0x13c0] ss:$16 sps:$4 sm:$0xff]   ;;  %v12362_v32 = vld [vmem:[%s13395_s12 + $0x13c8] ss:$16 sps:$4 sm:$0xff]  }
 0x272   : > { %8125 = vmatprep.subr.bf16.mxu0 %v12275_v34  ;;  %9079 = vmatprep.subr.bf16.mxu1 %v12278_v35  ;;  %v12371_v34 = vld [vmem:[%s13395_s12 + $0x13ec] ss:$16 sps:$4 sm:$0xff]   ;;  %v12366_v35 = vld [vmem:[%s13395_s12 + $0x13e0] ss:$16 sps:$4 sm:$0xff]  }
 0x274   : > { %8105 = vmatmul.mubr.bf16.vlgmr.msra.gmra.mrb[0].mxu0 %v12270_v33  ;;  %9059 = vmatmul.mubr.bf16.vlgmr.msra.gmra.mrb[0].mxu1 %v12270_v33  ;;  %v12368_v33 = vld [vmem:[%s13395_s12 + $0x13e4] ss:$16 sps:$4 sm:$0xff]  }
 0x275   : > { %8126 = vmatpush1.bf16.msra.mxu0 %v12273_v36  ;;  %9080 = vmatpush1.bf16.msra.mxu1 %v12276_v37  ;;  %v12369_v36 = vld [vmem:[%s13395_s12 + $0x13e8] ss:$16 sps:$4 sm:$0xff]  }
 0x276   : > { %8127 = vmatprep.subr.bf16.mxu0 %v12281_v38  ;;  %9081 = vmatprep.subr.bf16.mxu1 %v12284_v39  ;;  %v12372_v37 = vld [vmem:[%s14802_s0 + $0x48] ss:$144 sps:$4 sm:$0xff]   ;;  %v12377_v38 = vld [vmem:[%s13395_s12 + $0x1404] ss:$16 sps:$4 sm:$0xff]   ;;  %v12380_v39 = vld [vmem:[%s13395_s12 + $0x140c] ss:$16 sps:$4 sm:$0xff]  }
 0x277   : > { %8114 = vmatprep.mubr.bf16.mxu0 %v12357_v40  ;;  %9068 = vmatprep.mubr.bf16.mxu1 %v12357_v40  ;;  %v12375_v40 = vld [vmem:[%s13395_s12 + $0x1400] ss:$16 sps:$4 sm:$0xff]  }
 0x279   : > { %8128 = vmatpush1.bf16.msra.mxu0 %v12279_v41  ;;  %9082 = vmatpush1.bf16.msra.mxu1 %v12282_v42  ;;  %v12378_v41 = vld [vmem:[%s13395_s12 + $0x1408] ss:$16 sps:$4 sm:$0xff]   ;;  %v12383_v42 = vld [vmem:[%s13395_s12 + $0x1424] ss:$16 sps:$4 sm:$0xff]  }
 0x27a   : > { %8129 = vmatprep.subr.bf16.mxu0 %v12287_v43  ;;  %9083 = vmatprep.subr.bf16.mxu1 %v12290_v44  ;;  %v12386_v43 = vld [vmem:[%s13395_s12 + $0x142c] ss:$16 sps:$4 sm:$0xff]  }
 0x27b   : > { %v12459_v44 = vld [vmem:[%s14802_s0 + $0x16c] ss:$144 sps:$4 sm:$0xff]  }
 0x27c   : > { %8115 = vmatmul.mubr.bf16.gmra.mrb[4].mxu0 %v12365_v45  ;;  %9069 = vmatmul.mubr.bf16.gmra.mrb[4].mxu1 %v12365_v45  ;;  %v12381_v45 = vld [vmem:[%s13395_s12 + $0x1420] ss:$16 sps:$4 sm:$0xff]  }
 0x27d   : > { %8130 = vmatpush1.bf16.msra.mxu0 %v12285_v46  ;;  %9084 = vmatpush1.bf16.msra.mxu1 %v12288_v47  ;;  %v12384_v46 = vld [vmem:[%s13395_s12 + $0x1428] ss:$16 sps:$4 sm:$0xff]   ;;  %v12389_v47 = vld [vmem:[%s13395_s12 + $0x1444] ss:$16 sps:$4 sm:$0xff]  }
 0x27e   : > { %8131 = vmatprep.subr.bf16.mxu0 %v12293_v48  ;;  %9085 = vmatprep.subr.bf16.mxu1 %v12296_v49  ;;  %v12392_v48 = vld [vmem:[%s13395_s12 + $0x144c] ss:$16 sps:$4 sm:$0xff]   ;;  %v12467_v49 = vld [vmem:[%s14802_s0 + $0x168] ss:$144 sps:$4 sm:$0xff]  }
 0x27f   : > { %8157 = vmatprep.mubr.bf16.mxu0 %v12374_v50  ;;  %9111 = vmatprep.mubr.bf16.mxu1 %v12374_v50  ;;  %v12387_v50 = vld [vmem:[%s13395_s12 + $0x1440] ss:$16 sps:$4 sm:$0xff]  }
 0x281   : > { %8132 = vmatpush1.bf16.msra.mxu0 %v12291_v51  ;;  %9086 = vmatpush1.bf16.msra.mxu1 %v12294_v52  ;;  %v12390_v51 = vld [vmem:[%s13395_s12 + $0x1448] ss:$16 sps:$4 sm:$0xff]   ;;  %v12395_v52 = vld [vmem:[%s13395_s12 + $0x1464] ss:$16 sps:$4 sm:$0xff]  }
 0x282   : > { %8133 = vmatprep.subr.bf16.mxu0 %v12299_v53  ;;  %9087 = vmatprep.subr.bf16.mxu1 %v12302_v54  ;;  %v12398_v53 = vld [vmem:[%s13395_s12 + $0x146c] ss:$16 sps:$4 sm:$0xff]   ;;  %v12476_v54 = vld [vmem:[%s14802_s0 + $0x54] ss:$144 sps:$4 sm:$0xff]  }
 0x285   : > { %8134 = vmatpush1.bf16.msra.mxu0 %v12297_v55  ;;  %9088 = vmatpush1.bf16.msra.mxu1 %v12300_v56  ;;  %v12393_v55 = vld [vmem:[%s13395_s12 + $0x1460] ss:$16 sps:$4 sm:$0xff]   ;;  %v12396_v56 = vld [vmem:[%s13395_s12 + $0x1468] ss:$16 sps:$4 sm:$0xff]  }
 0x286   : > { %8135 = vmatprep.subr.bf16.mxu0 %v12305_v57  ;;  %9089 = vmatprep.subr.bf16.mxu1 %v12308_v58  ;;  %v12401_v57 = vld [vmem:[%s13395_s12 + $0x1484] ss:$16 sps:$4 sm:$0xff]   ;;  %v12404_v58 = vld [vmem:[%s13395_s12 + $0x148c] ss:$16 sps:$4 sm:$0xff]  }
 0x289   : > { %8136 = vmatpush1.bf16.msra.mxu0 %v12303_v59  ;;  %9090 = vmatpush1.bf16.msra.mxu1 %v12306_v60  ;;  %v12399_v59 = vld [vmem:[%s13395_s12 + $0x1480] ss:$16 sps:$4 sm:$0xff]   ;;  %v12402_v60 = vld [vmem:[%s13395_s12 + $0x1488] ss:$16 sps:$4 sm:$0xff]  }
 0x28a   : > { %8137 = vmatprep.subr.bf16.mxu0 %v12311_v61  ;;  %9091 = vmatprep.subr.bf16.mxu1 %v12314_v62  ;;  %v12407_v61 = vld [vmem:[%s13395_s12 + $0x14a4] ss:$16 sps:$4 sm:$0xff]   ;;  %v12410_v62 = vld [vmem:[%s13395_s12 + $0x14ac] ss:$16 sps:$4 sm:$0xff]  }
 0x28d   : > { %8138 = vmatpush1.bf16.msra.mxu0 %v12309_v63  ;;  %9092 = vmatpush1.bf16.msra.mxu1 %v12312_v0  ;;  %v12405_v63 = vld [vmem:[%s13395_s12 + $0x14a0] ss:$16 sps:$4 sm:$0xff]   ;;  %v12408_v0 = vld [vmem:[%s13395_s12 + $0x14a8] ss:$16 sps:$4 sm:$0xff]  }
 0x28e   : > { %8139 = vmatprep.subr.bf16.mxu0 %v12317_v1  ;;  %9093 = vmatprep.subr.bf16.mxu1 %v12320_v2  ;;  %v12413_v1 = vld [vmem:[%s13395_s12 + $0x14c4] ss:$16 sps:$4 sm:$0xff]   ;;  %v12416_v2 = vld [vmem:[%s13395_s12 + $0x14cc] ss:$16 sps:$4 sm:$0xff]  }
 0x291   : > { %8140 = vmatpush1.bf16.msra.mxu0 %v12315_v3  ;;  %9094 = vmatpush1.bf16.msra.mxu1 %v12318_v4  ;;  %v12411_v3 = vld [vmem:[%s13395_s12 + $0x14c0] ss:$16 sps:$4 sm:$0xff]   ;;  %v12414_v4 = vld [vmem:[%s13395_s12 + $0x14c8] ss:$16 sps:$4 sm:$0xff]  }
 0x292   : > { %8141 = vmatprep.subr.bf16.mxu0 %v12323_v5  ;;  %9095 = vmatprep.subr.bf16.mxu1 %v12326_v6  ;;  %v12419_v5 = vld [vmem:[%s13395_s12 + $0x14e4] ss:$16 sps:$4 sm:$0xff]   ;;  %v12422_v6 = vld [vmem:[%s13395_s12 + $0x14ec] ss:$16 sps:$4 sm:$0xff]  }
 0x295   : > { %8142 = vmatpush1.bf16.msra.mxu0 %v12321_v7  ;;  %9096 = vmatpush1.bf16.msra.mxu1 %v12324_v8  ;;  %v12417_v7 = vld [vmem:[%s13395_s12 + $0x14e0] ss:$16 sps:$4 sm:$0xff]   ;;  %v12420_v8 = vld [vmem:[%s13395_s12 + $0x14e8] ss:$16 sps:$4 sm:$0xff]  }
 0x296   : > { %8143 = vmatprep.subr.bf16.mxu0 %v12329_v9  ;;  %9097 = vmatprep.subr.bf16.mxu1 %v12332_v10  ;;  %v12425_v9 = vld [vmem:[%s13395_s12 + $0x1504] ss:$16 sps:$4 sm:$0xff]   ;;  %v12428_v10 = vld [vmem:[%s13395_s12 + $0x150c] ss:$16 sps:$4 sm:$0xff]  }
 0x299   : > { %8144 = vmatpush1.bf16.msra.mxu0 %v12327_v11  ;;  %9098 = vmatpush1.bf16.msra.mxu1 %v12330_v12  ;;  %v12423_v11 = vld [vmem:[%s13395_s12 + $0x1500] ss:$16 sps:$4 sm:$0xff]   ;;  %v12426_v12 = vld [vmem:[%s13395_s12 + $0x1508] ss:$16 sps:$4 sm:$0xff]  }
 0x29a   : > { %8145 = vmatprep.subr.bf16.mxu0 %v12335_v13  ;;  %9099 = vmatprep.subr.bf16.mxu1 %v12338_v14  ;;  %v12431_v13 = vld [vmem:[%s13395_s12 + $0x1524] ss:$16 sps:$4 sm:$0xff]   ;;  %v12434_v14 = vld [vmem:[%s13395_s12 + $0x152c] ss:$16 sps:$4 sm:$0xff]  }
 0x29d   : > { %8146 = vmatpush1.bf16.msra.mxu0 %v12333_v15  ;;  %9100 = vmatpush1.bf16.msra.mxu1 %v12336_v16  ;;  %v12429_v15 = vld [vmem:[%s13395_s12 + $0x1520] ss:$16 sps:$4 sm:$0xff]   ;;  %v12432_v16 = vld [vmem:[%s13395_s12 + $0x1528] ss:$16 sps:$4 sm:$0xff]  }
 0x29e   : > { %8147 = vmatprep.subr.bf16.mxu0 %v12341_v17  ;;  %9101 = vmatprep.subr.bf16.mxu1 %v12344_v18  ;;  %v12437_v17 = vld [vmem:[%s13395_s12 + $0x1544] ss:$16 sps:$4 sm:$0xff]   ;;  %v12440_v18 = vld [vmem:[%s13395_s12 + $0x154c] ss:$16 sps:$4 sm:$0xff]  }
 0x2a1   : > { %8148 = vmatpush1.bf16.msra.mxu0 %v12339_v19  ;;  %9102 = vmatpush1.bf16.msra.mxu1 %v12342_v20  ;;  %v12435_v19 = vld [vmem:[%s13395_s12 + $0x1540] ss:$16 sps:$4 sm:$0xff]   ;;  %v12438_v20 = vld [vmem:[%s13395_s12 + $0x1548] ss:$16 sps:$4 sm:$0xff]  }
 0x2a2   : > { %8149 = vmatprep.subr.bf16.mxu0 %v12347_v21  ;;  %9103 = vmatprep.subr.bf16.mxu1 %v12350_v22  ;;  %v12443_v21 = vld [vmem:[%s13395_s12 + $0x1564] ss:$16 sps:$4 sm:$0xff]   ;;  %v12446_v22 = vld [vmem:[%s13395_s12 + $0x156c] ss:$16 sps:$4 sm:$0xff]  }
 0x2a5   : > { %8150 = vmatpush1.bf16.msra.mxu0 %v12345_v23  ;;  %9104 = vmatpush1.bf16.msra.mxu1 %v12348_v24  ;;  %v12441_v23 = vld [vmem:[%s13395_s12 + $0x1560] ss:$16 sps:$4 sm:$0xff]   ;;  %v12444_v24 = vld [vmem:[%s13395_s12 + $0x1568] ss:$16 sps:$4 sm:$0xff]  }
 0x2a6   : > { %8151 = vmatprep.subr.bf16.mxu0 %v12353_v25  ;;  %9105 = vmatprep.subr.bf16.mxu1 %v12356_v26  ;;  %v12449_v25 = vld [vmem:[%s13395_s12 + $0x1584] ss:$16 sps:$4 sm:$0xff]   ;;  %v12452_v26 = vld [vmem:[%s13395_s12 + $0x158c] ss:$16 sps:$4 sm:$0xff]  }
 0x2a9   : > { %8152 = vmatpush1.bf16.msra.mxu0 %v12351_v27  ;;  %9106 = vmatpush1.bf16.msra.mxu1 %v12354_v28  ;;  %v12447_v27 = vld [vmem:[%s13395_s12 + $0x1580] ss:$16 sps:$4 sm:$0xff]   ;;  %v12450_v28 = vld [vmem:[%s13395_s12 + $0x1588] ss:$16 sps:$4 sm:$0xff]  }
 0x2aa   : > { %8153 = vmatprep.subr.bf16.mxu0 %v12361_v29  ;;  %9107 = vmatprep.subr.bf16.mxu1 %v12364_v30  ;;  %v12455_v29 = vld [vmem:[%s13395_s12 + $0x15a4] ss:$16 sps:$4 sm:$0xff]   ;;  %v12458_v30 = vld [vmem:[%s13395_s12 + $0x15ac] ss:$16 sps:$4 sm:$0xff]  }
 0x2ad   : > { %8154 = vmatpush1.bf16.msra.mxu0 %v12359_v31  ;;  %9108 = vmatpush1.bf16.msra.mxu1 %v12362_v32  ;;  %v12453_v31 = vld [vmem:[%s13395_s12 + $0x15a0] ss:$16 sps:$4 sm:$0xff]   ;;  %v12456_v32 = vld [vmem:[%s13395_s12 + $0x15a8] ss:$16 sps:$4 sm:$0xff]  }
 0x2ae   : > { %8155 = vmatprep.subr.bf16.mxu0 %v12368_v33  ;;  %9109 = vmatprep.subr.bf16.mxu1 %v12371_v34  ;;  %v12463_v33 = vld [vmem:[%s13395_s12 + $0x15c4] ss:$16 sps:$4 sm:$0xff]   ;;  %v12466_v34 = vld [vmem:[%s13395_s12 + $0x15cc] ss:$16 sps:$4 sm:$0xff]  }
 0x2b1   : > { %8156 = vmatpush1.bf16.msra.mxu0 %v12366_v35  ;;  %9110 = vmatpush1.bf16.msra.mxu1 %v12369_v36  ;;  %v12461_v35 = vld [vmem:[%s13395_s12 + $0x15c0] ss:$16 sps:$4 sm:$0xff]   ;;  %v12464_v36 = vld [vmem:[%s13395_s12 + $0x15c8] ss:$16 sps:$4 sm:$0xff]  }
 0x2b2   : > { %8178 = vmatprep.subr.bf16.mxu0 %v12377_v38  ;;  %9132 = vmatprep.subr.bf16.mxu1 %v12380_v39  ;;  %v12473_v38 = vld [vmem:[%s13395_s12 + $0x15ec] ss:$16 sps:$4 sm:$0xff]   ;;  %v12468_v39 = vld [vmem:[%s13395_s12 + $0x15e0] ss:$16 sps:$4 sm:$0xff]  }
 0x2b4   : > { %8158 = vmatmul.mubr.bf16.vlgmr.msra.gmra.mrb[0].mxu0 %v12372_v37  ;;  %9112 = vmatmul.mubr.bf16.vlgmr.msra.gmra.mrb[0].mxu1 %v12372_v37  ;;  %v12470_v37 = vld [vmem:[%s13395_s12 + $0x15e4] ss:$16 sps:$4 sm:$0xff]  }
 0x2b5   : > { %8179 = vmatpush1.bf16.msra.mxu0 %v12375_v40  ;;  %9133 = vmatpush1.bf16.msra.mxu1 %v12378_v41  ;;  %v12471_v40 = vld [vmem:[%s13395_s12 + $0x15e8] ss:$16 sps:$4 sm:$0xff]   ;;  %v12479_v41 = vld [vmem:[%s13395_s12 + $0x1604] ss:$16 sps:$4 sm:$0xff]  }
 0x2b6   : > { %8180 = vmatprep.subr.bf16.mxu0 %v12383_v42  ;;  %9134 = vmatprep.subr.bf16.mxu1 %v12386_v43  ;;  %v12482_v42 = vld [vmem:[%s13395_s12 + $0x160c] ss:$16 sps:$4 sm:$0xff]   ;;  %v12474_v43 = vld [vmem:[%s14802_s0 + $0x50] ss:$144 sps:$4 sm:$0xff]  }
 0x2b7   : > { %8167 = vmatprep.mubr.bf16.mxu0 %v12459_v44  ;;  %9121 = vmatprep.mubr.bf16.mxu1 %v12459_v44  ;;  %v12477_v44 = vld [vmem:[%s13395_s12 + $0x1600] ss:$16 sps:$4 sm:$0xff]  }
 0x2b9   : > { %8181 = vmatpush1.bf16.msra.mxu0 %v12381_v45  ;;  %9135 = vmatpush1.bf16.msra.mxu1 %v12384_v46  ;;  %v12480_v45 = vld [vmem:[%s13395_s12 + $0x1608] ss:$16 sps:$4 sm:$0xff]   ;;  %v12485_v46 = vld [vmem:[%s13395_s12 + $0x1624] ss:$16 sps:$4 sm:$0xff]  }
 0x2ba   : > { %8182 = vmatprep.subr.bf16.mxu0 %v12389_v47  ;;  %9136 = vmatprep.subr.bf16.mxu1 %v12392_v48  ;;  %v12488_v47 = vld [vmem:[%s13395_s12 + $0x162c] ss:$16 sps:$4 sm:$0xff]   ;;  %v12561_v48 = vld [vmem:[%s14802_s0 + $0x174] ss:$144 sps:$4 sm:$0xff]  }
 0x2bc   : > { %8168 = vmatmul.mubr.bf16.gmra.mrb[4].mxu0 %v12467_v49  ;;  %9122 = vmatmul.mubr.bf16.gmra.mrb[4].mxu1 %v12467_v49  ;;  %v12483_v49 = vld [vmem:[%s13395_s12 + $0x1620] ss:$16 sps:$4 sm:$0xff]  }
 0x2bd   : > { %8183 = vmatpush1.bf16.msra.mxu0 %v12387_v50  ;;  %9137 = vmatpush1.bf16.msra.mxu1 %v12390_v51  ;;  %v12486_v50 = vld [vmem:[%s13395_s12 + $0x1628] ss:$16 sps:$4 sm:$0xff]   ;;  %v12491_v51 = vld [vmem:[%s13395_s12 + $0x1644] ss:$16 sps:$4 sm:$0xff]  }
 0x2be   : > { %8184 = vmatprep.subr.bf16.mxu0 %v12395_v52  ;;  %9138 = vmatprep.subr.bf16.mxu1 %v12398_v53  ;;  %v12494_v52 = vld [vmem:[%s13395_s12 + $0x164c] ss:$16 sps:$4 sm:$0xff]   ;;  %v12569_v53 = vld [vmem:[%s14802_s0 + $0x170] ss:$144 sps:$4 sm:$0xff]  }
 0x2bf   : > { %8210 = vmatprep.mubr.bf16.mxu0 %v12476_v54  ;;  %9164 = vmatprep.mubr.bf16.mxu1 %v12476_v54  ;;  %v12489_v54 = vld [vmem:[%s13395_s12 + $0x1640] ss:$16 sps:$4 sm:$0xff]  }
 0x2c1   : > { %8185 = vmatpush1.bf16.msra.mxu0 %v12393_v55  ;;  %9139 = vmatpush1.bf16.msra.mxu1 %v12396_v56  ;;  %v12492_v55 = vld [vmem:[%s13395_s12 + $0x1648] ss:$16 sps:$4 sm:$0xff]   ;;  %v12497_v56 = vld [vmem:[%s13395_s12 + $0x1664] ss:$16 sps:$4 sm:$0xff]  }
 0x2c2   : > { %8186 = vmatprep.subr.bf16.mxu0 %v12401_v57  ;;  %9140 = vmatprep.subr.bf16.mxu1 %v12404_v58  ;;  %v12500_v57 = vld [vmem:[%s13395_s12 + $0x166c] ss:$16 sps:$4 sm:$0xff]  }
 0x2c3   : > { %v12578_v58 = vld [vmem:[%s14802_s0 + $0x5c] ss:$144 sps:$4 sm:$0xff]  }
 0x2c5   : > { %8187 = vmatpush1.bf16.msra.mxu0 %v12399_v59  ;;  %9141 = vmatpush1.bf16.msra.mxu1 %v12402_v60  ;;  %v12495_v59 = vld [vmem:[%s13395_s12 + $0x1660] ss:$16 sps:$4 sm:$0xff]   ;;  %v12498_v60 = vld [vmem:[%s13395_s12 + $0x1668] ss:$16 sps:$4 sm:$0xff]  }
 0x2c6   : > { %8188 = vmatprep.subr.bf16.mxu0 %v12407_v61  ;;  %9142 = vmatprep.subr.bf16.mxu1 %v12410_v62  ;;  %v12503_v61 = vld [vmem:[%s13395_s12 + $0x1684] ss:$16 sps:$4 sm:$0xff]   ;;  %v12506_v62 = vld [vmem:[%s13395_s12 + $0x168c] ss:$16 sps:$4 sm:$0xff]  }
 0x2c9   : > { %8189 = vmatpush1.bf16.msra.mxu0 %v12405_v63  ;;  %9143 = vmatpush1.bf16.msra.mxu1 %v12408_v0  ;;  %v12501_v63 = vld [vmem:[%s13395_s12 + $0x1680] ss:$16 sps:$4 sm:$0xff]   ;;  %v12504_v0 = vld [vmem:[%s13395_s12 + $0x1688] ss:$16 sps:$4 sm:$0xff]  }
 0x2ca   : > { %8190 = vmatprep.subr.bf16.mxu0 %v12413_v1  ;;  %9144 = vmatprep.subr.bf16.mxu1 %v12416_v2  ;;  %v12509_v1 = vld [vmem:[%s13395_s12 + $0x16a4] ss:$16 sps:$4 sm:$0xff]   ;;  %v12512_v2 = vld [vmem:[%s13395_s12 + $0x16ac] ss:$16 sps:$4 sm:$0xff]  }
 0x2cd   : > { %8191 = vmatpush1.bf16.msra.mxu0 %v12411_v3  ;;  %9145 = vmatpush1.bf16.msra.mxu1 %v12414_v4  ;;  %v12507_v3 = vld [vmem:[%s13395_s12 + $0x16a0] ss:$16 sps:$4 sm:$0xff]   ;;  %v12510_v4 = vld [vmem:[%s13395_s12 + $0x16a8] ss:$16 sps:$4 sm:$0xff]  }
 0x2ce   : > { %8192 = vmatprep.subr.bf16.mxu0 %v12419_v5  ;;  %9146 = vmatprep.subr.bf16.mxu1 %v12422_v6  ;;  %v12515_v5 = vld [vmem:[%s13395_s12 + $0x16c4] ss:$16 sps:$4 sm:$0xff]   ;;  %v12518_v6 = vld [vmem:[%s13395_s12 + $0x16cc] ss:$16 sps:$4 sm:$0xff]  }
 0x2d1   : > { %8193 = vmatpush1.bf16.msra.mxu0 %v12417_v7  ;;  %9147 = vmatpush1.bf16.msra.mxu1 %v12420_v8  ;;  %v12513_v7 = vld [vmem:[%s13395_s12 + $0x16c0] ss:$16 sps:$4 sm:$0xff]   ;;  %v12516_v8 = vld [vmem:[%s13395_s12 + $0x16c8] ss:$16 sps:$4 sm:$0xff]  }
 0x2d2   : > { %8194 = vmatprep.subr.bf16.mxu0 %v12425_v9  ;;  %9148 = vmatprep.subr.bf16.mxu1 %v12428_v10  ;;  %v12521_v9 = vld [vmem:[%s13395_s12 + $0x16e4] ss:$16 sps:$4 sm:$0xff]   ;;  %v12524_v10 = vld [vmem:[%s13395_s12 + $0x16ec] ss:$16 sps:$4 sm:$0xff]  }
 0x2d5   : > { %8195 = vmatpush1.bf16.msra.mxu0 %v12423_v11  ;;  %9149 = vmatpush1.bf16.msra.mxu1 %v12426_v12  ;;  %v12519_v11 = vld [vmem:[%s13395_s12 + $0x16e0] ss:$16 sps:$4 sm:$0xff]   ;;  %v12522_v12 = vld [vmem:[%s13395_s12 + $0x16e8] ss:$16 sps:$4 sm:$0xff]  }
 0x2d6   : > { %8196 = vmatprep.subr.bf16.mxu0 %v12431_v13  ;;  %9150 = vmatprep.subr.bf16.mxu1 %v12434_v14  ;;  %v12527_v13 = vld [vmem:[%s13395_s12 + $0x1704] ss:$16 sps:$4 sm:$0xff]   ;;  %v12530_v14 = vld [vmem:[%s13395_s12 + $0x170c] ss:$16 sps:$4 sm:$0xff]  }
 0x2d9   : > { %8197 = vmatpush1.bf16.msra.mxu0 %v12429_v15  ;;  %9151 = vmatpush1.bf16.msra.mxu1 %v12432_v16  ;;  %v12525_v15 = vld [vmem:[%s13395_s12 + $0x1700] ss:$16 sps:$4 sm:$0xff]   ;;  %v12528_v16 = vld [vmem:[%s13395_s12 + $0x1708] ss:$16 sps:$4 sm:$0xff]  }
 0x2da   : > { %8198 = vmatprep.subr.bf16.mxu0 %v12437_v17  ;;  %9152 = vmatprep.subr.bf16.mxu1 %v12440_v18  ;;  %v12533_v17 = vld [vmem:[%s13395_s12 + $0x1724] ss:$16 sps:$4 sm:$0xff]   ;;  %v12536_v18 = vld [vmem:[%s13395_s12 + $0x172c] ss:$16 sps:$4 sm:$0xff]  }
 0x2dd   : > { %8199 = vmatpush1.bf16.msra.mxu0 %v12435_v19  ;;  %9153 = vmatpush1.bf16.msra.mxu1 %v12438_v20  ;;  %v12531_v19 = vld [vmem:[%s13395_s12 + $0x1720] ss:$16 sps:$4 sm:$0xff]   ;;  %v12534_v20 = vld [vmem:[%s13395_s12 + $0x1728] ss:$16 sps:$4 sm:$0xff]  }
 0x2de   : > { %8200 = vmatprep.subr.bf16.mxu0 %v12443_v21  ;;  %9154 = vmatprep.subr.bf16.mxu1 %v12446_v22  ;;  %v12539_v21 = vld [vmem:[%s13395_s12 + $0x1744] ss:$16 sps:$4 sm:$0xff]   ;;  %v12542_v22 = vld [vmem:[%s13395_s12 + $0x174c] ss:$16 sps:$4 sm:$0xff]  }
 0x2e1   : > { %8201 = vmatpush1.bf16.msra.mxu0 %v12441_v23  ;;  %9155 = vmatpush1.bf16.msra.mxu1 %v12444_v24  ;;  %v12537_v23 = vld [vmem:[%s13395_s12 + $0x1740] ss:$16 sps:$4 sm:$0xff]   ;;  %v12540_v24 = vld [vmem:[%s13395_s12 + $0x1748] ss:$16 sps:$4 sm:$0xff]  }
 0x2e2   : > { %8202 = vmatprep.subr.bf16.mxu0 %v12449_v25  ;;  %9156 = vmatprep.subr.bf16.mxu1 %v12452_v26  ;;  %v12545_v25 = vld [vmem:[%s13395_s12 + $0x1764] ss:$16 sps:$4 sm:$0xff]   ;;  %v12548_v26 = vld [vmem:[%s13395_s12 + $0x176c] ss:$16 sps:$4 sm:$0xff]  }
 0x2e5   : > { %8203 = vmatpush1.bf16.msra.mxu0 %v12447_v27  ;;  %9157 = vmatpush1.bf16.msra.mxu1 %v12450_v28  ;;  %v12543_v27 = vld [vmem:[%s13395_s12 + $0x1760] ss:$16 sps:$4 sm:$0xff]   ;;  %v12546_v28 = vld [vmem:[%s13395_s12 + $0x1768] ss:$16 sps:$4 sm:$0xff]  }
 0x2e6   : > { %8204 = vmatprep.subr.bf16.mxu0 %v12455_v29  ;;  %9158 = vmatprep.subr.bf16.mxu1 %v12458_v30  ;;  %v12551_v29 = vld [vmem:[%s13395_s12 + $0x1784] ss:$16 sps:$4 sm:$0xff]   ;;  %v12554_v30 = vld [vmem:[%s13395_s12 + $0x178c] ss:$16 sps:$4 sm:$0xff]  }
 0x2e9   : > { %8205 = vmatpush1.bf16.msra.mxu0 %v12453_v31  ;;  %9159 = vmatpush1.bf16.msra.mxu1 %v12456_v32  ;;  %v12549_v31 = vld [vmem:[%s13395_s12 + $0x1780] ss:$16 sps:$4 sm:$0xff]   ;;  %v12552_v32 = vld [vmem:[%s13395_s12 + $0x1788] ss:$16 sps:$4 sm:$0xff]  }
 0x2ea   : > { %8206 = vmatprep.subr.bf16.mxu0 %v12463_v33  ;;  %9160 = vmatprep.subr.bf16.mxu1 %v12466_v34  ;;  %v12557_v33 = vld [vmem:[%s13395_s12 + $0x17a4] ss:$16 sps:$4 sm:$0xff]   ;;  %v12560_v34 = vld [vmem:[%s13395_s12 + $0x17ac] ss:$16 sps:$4 sm:$0xff]  }
 0x2ed   : > { %8207 = vmatpush1.bf16.msra.mxu0 %v12461_v35  ;;  %9161 = vmatpush1.bf16.msra.mxu1 %v12464_v36  ;;  %v12555_v35 = vld [vmem:[%s13395_s12 + $0x17a0] ss:$16 sps:$4 sm:$0xff]   ;;  %v12558_v36 = vld [vmem:[%s13395_s12 + $0x17a8] ss:$16 sps:$4 sm:$0xff]  }
 0x2ee   : > { %8208 = vmatprep.subr.bf16.mxu0 %v12470_v37  ;;  %9162 = vmatprep.subr.bf16.mxu1 %v12473_v38  ;;  %v12565_v37 = vld [vmem:[%s13395_s12 + $0x17c4] ss:$16 sps:$4 sm:$0xff]   ;;  %v12568_v38 = vld [vmem:[%s13395_s12 + $0x17cc] ss:$16 sps:$4 sm:$0xff]  }
 0x2f1   : > { %8209 = vmatpush1.bf16.msra.mxu0 %v12468_v39  ;;  %9163 = vmatpush1.bf16.msra.mxu1 %v12471_v40  ;;  %v12563_v39 = vld [vmem:[%s13395_s12 + $0x17c0] ss:$16 sps:$4 sm:$0xff]   ;;  %v12566_v40 = vld [vmem:[%s13395_s12 + $0x17c8] ss:$16 sps:$4 sm:$0xff]  }
 0x2f2   : > { %8231 = vmatprep.subr.bf16.mxu0 %v12479_v41  ;;  %9185 = vmatprep.subr.bf16.mxu1 %v12482_v42  ;;  %v12572_v41 = vld [vmem:[%s13395_s12 + $0x17e4] ss:$16 sps:$4 sm:$0xff]   ;;  %v12575_v42 = vld [vmem:[%s13395_s12 + $0x17ec] ss:$16 sps:$4 sm:$0xff]  }
 0x2f4   : > { %8211 = vmatmul.mubr.bf16.vlgmr.msra.gmra.mrb[0].mxu0 %v12474_v43  ;;  %9165 = vmatmul.mubr.bf16.vlgmr.msra.gmra.mrb[0].mxu1 %v12474_v43  ;;  %v12570_v43 = vld [vmem:[%s13395_s12 + $0x17e0] ss:$16 sps:$4 sm:$0xff]  }
 0x2f5   : > { %8232 = vmatpush1.bf16.msra.mxu0 %v12477_v44  ;;  %9186 = vmatpush1.bf16.msra.mxu1 %v12480_v45  ;;  %v12573_v44 = vld [vmem:[%s13395_s12 + $0x17e8] ss:$16 sps:$4 sm:$0xff]   ;;  %v12581_v45 = vld [vmem:[%s13395_s12 + $0x1804] ss:$16 sps:$4 sm:$0xff]  }
 0x2f6   : > { %8233 = vmatprep.subr.bf16.mxu0 %v12485_v46  ;;  %9187 = vmatprep.subr.bf16.mxu1 %v12488_v47  ;;  %v12584_v46 = vld [vmem:[%s13395_s12 + $0x180c] ss:$16 sps:$4 sm:$0xff]   ;;  %v12576_v47 = vld [vmem:[%s14802_s0 + $0x58] ss:$144 sps:$4 sm:$0xff]  }
 0x2f7   : > { %8220 = vmatprep.mubr.bf16.mxu0 %v12561_v48  ;;  %9174 = vmatprep.mubr.bf16.mxu1 %v12561_v48  ;;  %v12579_v48 = vld [vmem:[%s13395_s12 + $0x1800] ss:$16 sps:$4 sm:$0xff]  }
 0x2f9   : > { %8234 = vmatpush1.bf16.msra.mxu0 %v12483_v49  ;;  %9188 = vmatpush1.bf16.msra.mxu1 %v12486_v50  ;;  %v12582_v49 = vld [vmem:[%s13395_s12 + $0x1808] ss:$16 sps:$4 sm:$0xff]   ;;  %v12587_v50 = vld [vmem:[%s13395_s12 + $0x1824] ss:$16 sps:$4 sm:$0xff]  }
 0x2fa   : > { %8235 = vmatprep.subr.bf16.mxu0 %v12491_v51  ;;  %9189 = vmatprep.subr.bf16.mxu1 %v12494_v52  ;;  %v12590_v51 = vld [vmem:[%s13395_s12 + $0x182c] ss:$16 sps:$4 sm:$0xff]  }
 0x2fb   : > { %v12663_v52 = vld [vmem:[%s14802_s0 + $0x17c] ss:$144 sps:$4 sm:$0xff]  }
 0x2fc   : > { %8221 = vmatmul.mubr.bf16.gmra.mrb[4].mxu0 %v12569_v53  ;;  %9175 = vmatmul.mubr.bf16.gmra.mrb[4].mxu1 %v12569_v53  ;;  %v12585_v53 = vld [vmem:[%s13395_s12 + $0x1820] ss:$16 sps:$4 sm:$0xff]  }
 0x2fd   : > { %8236 = vmatpush1.bf16.msra.mxu0 %v12489_v54  ;;  %9190 = vmatpush1.bf16.msra.mxu1 %v12492_v55  ;;  %v12588_v54 = vld [vmem:[%s13395_s12 + $0x1828] ss:$16 sps:$4 sm:$0xff]   ;;  %v12593_v55 = vld [vmem:[%s13395_s12 + $0x1844] ss:$16 sps:$4 sm:$0xff]  }
 0x2fe   : > { %8237 = vmatprep.subr.bf16.mxu0 %v12497_v56  ;;  %9191 = vmatprep.subr.bf16.mxu1 %v12500_v57  ;;  %v12596_v56 = vld [vmem:[%s13395_s12 + $0x184c] ss:$16 sps:$4 sm:$0xff]   ;;  %v12671_v57 = vld [vmem:[%s14802_s0 + $0x178] ss:$144 sps:$4 sm:$0xff]  }
 0x2ff   : > { %8263 = vmatprep.mubr.bf16.mxu0 %v12578_v58  ;;  %9217 = vmatprep.mubr.bf16.mxu1 %v12578_v58  ;;  %v12591_v58 = vld [vmem:[%s13395_s12 + $0x1840] ss:$16 sps:$4 sm:$0xff]  }
 0x301   : > { %8238 = vmatpush1.bf16.msra.mxu0 %v12495_v59  ;;  %9192 = vmatpush1.bf16.msra.mxu1 %v12498_v60  ;;  %v12594_v59 = vld [vmem:[%s13395_s12 + $0x1848] ss:$16 sps:$4 sm:$0xff]   ;;  %v12599_v60 = vld [vmem:[%s13395_s12 + $0x1864] ss:$16 sps:$4 sm:$0xff]  }
 0x302   : > { %8239 = vmatprep.subr.bf16.mxu0 %v12503_v61  ;;  %9193 = vmatprep.subr.bf16.mxu1 %v12506_v62  ;;  %v12602_v61 = vld [vmem:[%s13395_s12 + $0x186c] ss:$16 sps:$4 sm:$0xff]   ;;  %v12680_v62 = vld [vmem:[%s14802_s0 + $0x64] ss:$144 sps:$4 sm:$0xff]  }
 0x305   : > { %8240 = vmatpush1.bf16.msra.mxu0 %v12501_v63  ;;  %9194 = vmatpush1.bf16.msra.mxu1 %v12504_v0  ;;  %v12597_v63 = vld [vmem:[%s13395_s12 + $0x1860] ss:$16 sps:$4 sm:$0xff]   ;;  %v12600_v0 = vld [vmem:[%s13395_s12 + $0x1868] ss:$16 sps:$4 sm:$0xff]  }
 0x306   : > { %8241 = vmatprep.subr.bf16.mxu0 %v12509_v1  ;;  %9195 = vmatprep.subr.bf16.mxu1 %v12512_v2  ;;  %v12605_v1 = vld [vmem:[%s13395_s12 + $0x1884] ss:$16 sps:$4 sm:$0xff]   ;;  %v12608_v2 = vld [vmem:[%s13395_s12 + $0x188c] ss:$16 sps:$4 sm:$0xff]  }
 0x309   : > { %8242 = vmatpush1.bf16.msra.mxu0 %v12507_v3  ;;  %9196 = vmatpush1.bf16.msra.mxu1 %v12510_v4  ;;  %v12603_v3 = vld [vmem:[%s13395_s12 + $0x1880] ss:$16 sps:$4 sm:$0xff]   ;;  %v12606_v4 = vld [vmem:[%s13395_s12 + $0x1888] ss:$16 sps:$4 sm:$0xff]  }
 0x30a   : > { %8243 = vmatprep.subr.bf16.mxu0 %v12515_v5  ;;  %9197 = vmatprep.subr.bf16.mxu1 %v12518_v6  ;;  %v12611_v5 = vld [vmem:[%s13395_s12 + $0x18a4] ss:$16 sps:$4 sm:$0xff]   ;;  %v12614_v6 = vld [vmem:[%s13395_s12 + $0x18ac] ss:$16 sps:$4 sm:$0xff]  }
 0x30d   : > { %8244 = vmatpush1.bf16.msra.mxu0 %v12513_v7  ;;  %9198 = vmatpush1.bf16.msra.mxu1 %v12516_v8  ;;  %v12609_v7 = vld [vmem:[%s13395_s12 + $0x18a0] ss:$16 sps:$4 sm:$0xff]   ;;  %v12612_v8 = vld [vmem:[%s13395_s12 + $0x18a8] ss:$16 sps:$4 sm:$0xff]  }
 0x30e   : > { %8245 = vmatprep.subr.bf16.mxu0 %v12521_v9  ;;  %9199 = vmatprep.subr.bf16.mxu1 %v12524_v10  ;;  %v12617_v9 = vld [vmem:[%s13395_s12 + $0x18c4] ss:$16 sps:$4 sm:$0xff]   ;;  %v12620_v10 = vld [vmem:[%s13395_s12 + $0x18cc] ss:$16 sps:$4 sm:$0xff]  }
 0x311   : > { %8246 = vmatpush1.bf16.msra.mxu0 %v12519_v11  ;;  %9200 = vmatpush1.bf16.msra.mxu1 %v12522_v12  ;;  %v12615_v11 = vld [vmem:[%s13395_s12 + $0x18c0] ss:$16 sps:$4 sm:$0xff]   ;;  %v12618_v12 = vld [vmem:[%s13395_s12 + $0x18c8] ss:$16 sps:$4 sm:$0xff]  }
 0x312   : > { %8247 = vmatprep.subr.bf16.mxu0 %v12527_v13  ;;  %9201 = vmatprep.subr.bf16.mxu1 %v12530_v14  ;;  %v12623_v13 = vld [vmem:[%s13395_s12 + $0x18e4] ss:$16 sps:$4 sm:$0xff]   ;;  %v12626_v14 = vld [vmem:[%s13395_s12 + $0x18ec] ss:$16 sps:$4 sm:$0xff]  }
 0x315   : > { %8248 = vmatpush1.bf16.msra.mxu0 %v12525_v15  ;;  %9202 = vmatpush1.bf16.msra.mxu1 %v12528_v16  ;;  %v12621_v15 = vld [vmem:[%s13395_s12 + $0x18e0] ss:$16 sps:$4 sm:$0xff]   ;;  %v12624_v16 = vld [vmem:[%s13395_s12 + $0x18e8] ss:$16 sps:$4 sm:$0xff]  }
 0x316   : > { %8249 = vmatprep.subr.bf16.mxu0 %v12533_v17  ;;  %9203 = vmatprep.subr.bf16.mxu1 %v12536_v18  ;;  %v12629_v17 = vld [vmem:[%s13395_s12 + $0x1904] ss:$16 sps:$4 sm:$0xff]   ;;  %v12632_v18 = vld [vmem:[%s13395_s12 + $0x190c] ss:$16 sps:$4 sm:$0xff]  }
 0x319   : > { %8250 = vmatpush1.bf16.msra.mxu0 %v12531_v19  ;;  %9204 = vmatpush1.bf16.msra.mxu1 %v12534_v20  ;;  %v12627_v19 = vld [vmem:[%s13395_s12 + $0x1900] ss:$16 sps:$4 sm:$0xff]   ;;  %v12630_v20 = vld [vmem:[%s13395_s12 + $0x1908] ss:$16 sps:$4 sm:$0xff]  }
 0x31a   : > { %8251 = vmatprep.subr.bf16.mxu0 %v12539_v21  ;;  %9205 = vmatprep.subr.bf16.mxu1 %v12542_v22  ;;  %v12635_v21 = vld [vmem:[%s13395_s12 + $0x1924] ss:$16 sps:$4 sm:$0xff]   ;;  %v12638_v22 = vld [vmem:[%s13395_s12 + $0x192c] ss:$16 sps:$4 sm:$0xff]  }
 0x31d   : > { %8252 = vmatpush1.bf16.msra.mxu0 %v12537_v23  ;;  %9206 = vmatpush1.bf16.msra.mxu1 %v12540_v24  ;;  %v12633_v23 = vld [vmem:[%s13395_s12 + $0x1920] ss:$16 sps:$4 sm:$0xff]   ;;  %v12636_v24 = vld [vmem:[%s13395_s12 + $0x1928] ss:$16 sps:$4 sm:$0xff]  }
 0x31e   : > { %8253 = vmatprep.subr.bf16.mxu0 %v12545_v25  ;;  %9207 = vmatprep.subr.bf16.mxu1 %v12548_v26  ;;  %v12641_v25 = vld [vmem:[%s13395_s12 + $0x1944] ss:$16 sps:$4 sm:$0xff]   ;;  %v12644_v26 = vld [vmem:[%s13395_s12 + $0x194c] ss:$16 sps:$4 sm:$0xff]  }
 0x321   : > { %8254 = vmatpush1.bf16.msra.mxu0 %v12543_v27  ;;  %9208 = vmatpush1.bf16.msra.mxu1 %v12546_v28  ;;  %v12639_v27 = vld [vmem:[%s13395_s12 + $0x1940] ss:$16 sps:$4 sm:$0xff]   ;;  %v12642_v28 = vld [vmem:[%s13395_s12 + $0x1948] ss:$16 sps:$4 sm:$0xff]  }
 0x322   : > { %8255 = vmatprep.subr.bf16.mxu0 %v12551_v29  ;;  %9209 = vmatprep.subr.bf16.mxu1 %v12554_v30  ;;  %v12647_v29 = vld [vmem:[%s13395_s12 + $0x1964] ss:$16 sps:$4 sm:$0xff]   ;;  %v12650_v30 = vld [vmem:[%s13395_s12 + $0x196c] ss:$16 sps:$4 sm:$0xff]  }
 0x325   : > { %8256 = vmatpush1.bf16.msra.mxu0 %v12549_v31  ;;  %9210 = vmatpush1.bf16.msra.mxu1 %v12552_v32  ;;  %v12645_v31 = vld [vmem:[%s13395_s12 + $0x1960] ss:$16 sps:$4 sm:$0xff]   ;;  %v12648_v32 = vld [vmem:[%s13395_s12 + $0x1968] ss:$16 sps:$4 sm:$0xff]  }
 0x326   : > { %8257 = vmatprep.subr.bf16.mxu0 %v12557_v33  ;;  %9211 = vmatprep.subr.bf16.mxu1 %v12560_v34  ;;  %v12653_v33 = vld [vmem:[%s13395_s12 + $0x1984] ss:$16 sps:$4 sm:$0xff]   ;;  %v12656_v34 = vld [vmem:[%s13395_s12 + $0x198c] ss:$16 sps:$4 sm:$0xff]  }
 0x329   : > { %8258 = vmatpush1.bf16.msra.mxu0 %v12555_v35  ;;  %9212 = vmatpush1.bf16.msra.mxu1 %v12558_v36  ;;  %v12651_v35 = vld [vmem:[%s13395_s12 + $0x1980] ss:$16 sps:$4 sm:$0xff]   ;;  %v12654_v36 = vld [vmem:[%s13395_s12 + $0x1988] ss:$16 sps:$4 sm:$0xff]  }
 0x32a   : > { %8259 = vmatprep.subr.bf16.mxu0 %v12565_v37  ;;  %9213 = vmatprep.subr.bf16.mxu1 %v12568_v38  ;;  %v12659_v37 = vld [vmem:[%s13395_s12 + $0x19a4] ss:$16 sps:$4 sm:$0xff]   ;;  %v12662_v38 = vld [vmem:[%s13395_s12 + $0x19ac] ss:$16 sps:$4 sm:$0xff]  }
 0x32d   : > { %8260 = vmatpush1.bf16.msra.mxu0 %v12563_v39  ;;  %9214 = vmatpush1.bf16.msra.mxu1 %v12566_v40  ;;  %v12657_v39 = vld [vmem:[%s13395_s12 + $0x19a0] ss:$16 sps:$4 sm:$0xff]   ;;  %v12660_v40 = vld [vmem:[%s13395_s12 + $0x19a8] ss:$16 sps:$4 sm:$0xff]  }
 0x32e   : > { %8261 = vmatprep.subr.bf16.mxu0 %v12572_v41  ;;  %9215 = vmatprep.subr.bf16.mxu1 %v12575_v42  ;;  %v12667_v41 = vld [vmem:[%s13395_s12 + $0x19c4] ss:$16 sps:$4 sm:$0xff]   ;;  %v12670_v42 = vld [vmem:[%s13395_s12 + $0x19cc] ss:$16 sps:$4 sm:$0xff]  }
 0x331   : > { %8262 = vmatpush1.bf16.msra.mxu0 %v12570_v43  ;;  %9216 = vmatpush1.bf16.msra.mxu1 %v12573_v44  ;;  %v12665_v43 = vld [vmem:[%s13395_s12 + $0x19c0] ss:$16 sps:$4 sm:$0xff]   ;;  %v12668_v44 = vld [vmem:[%s13395_s12 + $0x19c8] ss:$16 sps:$4 sm:$0xff]  }
 0x332   : > { %8284 = vmatprep.subr.bf16.mxu0 %v12581_v45  ;;  %9238 = vmatprep.subr.bf16.mxu1 %v12584_v46  ;;  %v12674_v45 = vld [vmem:[%s13395_s12 + $0x19e4] ss:$16 sps:$4 sm:$0xff]   ;;  %v12677_v46 = vld [vmem:[%s13395_s12 + $0x19ec] ss:$16 sps:$4 sm:$0xff]  }
 0x334   : > { %8264 = vmatmul.mubr.bf16.vlgmr.msra.gmra.mrb[0].mxu0 %v12576_v47  ;;  %9218 = vmatmul.mubr.bf16.vlgmr.msra.gmra.mrb[0].mxu1 %v12576_v47  ;;  %v12672_v47 = vld [vmem:[%s13395_s12 + $0x19e0] ss:$16 sps:$4 sm:$0xff]  }
 0x335   : > { %8285 = vmatpush1.bf16.msra.mxu0 %v12579_v48  ;;  %9239 = vmatpush1.bf16.msra.mxu1 %v12582_v49  ;;  %v12675_v48 = vld [vmem:[%s13395_s12 + $0x19e8] ss:$16 sps:$4 sm:$0xff]   ;;  %v12683_v49 = vld [vmem:[%s13395_s12 + $0x1a04] ss:$16 sps:$4 sm:$0xff]  }
 0x336   : > { %8286 = vmatprep.subr.bf16.mxu0 %v12587_v50  ;;  %9240 = vmatprep.subr.bf16.mxu1 %v12590_v51  ;;  %v12686_v50 = vld [vmem:[%s13395_s12 + $0x1a0c] ss:$16 sps:$4 sm:$0xff]   ;;  %v12678_v51 = vld [vmem:[%s14802_s0 + $0x60] ss:$144 sps:$4 sm:$0xff]  }
 0x337   : > { %8273 = vmatprep.mubr.bf16.mxu0 %v12663_v52  ;;  %9227 = vmatprep.mubr.bf16.mxu1 %v12663_v52  ;;  %v12681_v52 = vld [vmem:[%s13395_s12 + $0x1a00] ss:$16 sps:$4 sm:$0xff]  }
 0x339   : > { %8287 = vmatpush1.bf16.msra.mxu0 %v12585_v53  ;;  %9241 = vmatpush1.bf16.msra.mxu1 %v12588_v54  ;;  %v12684_v53 = vld [vmem:[%s13395_s12 + $0x1a08] ss:$16 sps:$4 sm:$0xff]   ;;  %v12689_v54 = vld [vmem:[%s13395_s12 + $0x1a24] ss:$16 sps:$4 sm:$0xff]  }
 0x33a   : > { %8288 = vmatprep.subr.bf16.mxu0 %v12593_v55  ;;  %9242 = vmatprep.subr.bf16.mxu1 %v12596_v56  ;;  %v12692_v55 = vld [vmem:[%s13395_s12 + $0x1a2c] ss:$16 sps:$4 sm:$0xff]   ;;  %v12765_v56 = vld [vmem:[%s14802_s0 + $0x184] ss:$144 sps:$4 sm:$0xff]  }
 0x33c   : > { %8274 = vmatmul.mubr.bf16.gmra.mrb[4].mxu0 %v12671_v57  ;;  %9228 = vmatmul.mubr.bf16.gmra.mrb[4].mxu1 %v12671_v57  ;;  %v12687_v57 = vld [vmem:[%s13395_s12 + $0x1a20] ss:$16 sps:$4 sm:$0xff]  }
 0x33d   : > { %8289 = vmatpush1.bf16.msra.mxu0 %v12591_v58  ;;  %9243 = vmatpush1.bf16.msra.mxu1 %v12594_v59  ;;  %v12690_v58 = vld [vmem:[%s13395_s12 + $0x1a28] ss:$16 sps:$4 sm:$0xff]   ;;  %v12695_v59 = vld [vmem:[%s13395_s12 + $0x1a44] ss:$16 sps:$4 sm:$0xff]  }
 0x33e   : > { %8290 = vmatprep.subr.bf16.mxu0 %v12599_v60  ;;  %9244 = vmatprep.subr.bf16.mxu1 %v12602_v61  ;;  %v12698_v60 = vld [vmem:[%s13395_s12 + $0x1a4c] ss:$16 sps:$4 sm:$0xff]   ;;  %v12773_v61 = vld [vmem:[%s14802_s0 + $0x180] ss:$144 sps:$4 sm:$0xff]  }
 0x33f   : > { %8316 = vmatprep.mubr.bf16.mxu0 %v12680_v62  ;;  %9270 = vmatprep.mubr.bf16.mxu1 %v12680_v62  ;;  %v12693_v62 = vld [vmem:[%s13395_s12 + $0x1a40] ss:$16 sps:$4 sm:$0xff]  }
 0x341   : > { %8291 = vmatpush1.bf16.msra.mxu0 %v12597_v63  ;;  %9245 = vmatpush1.bf16.msra.mxu1 %v12600_v0  ;;  %v12696_v63 = vld [vmem:[%s13395_s12 + $0x1a48] ss:$16 sps:$4 sm:$0xff]   ;;  %v12701_v0 = vld [vmem:[%s13395_s12 + $0x1a64] ss:$16 sps:$4 sm:$0xff]  }
 0x342   : > { %8292 = vmatprep.subr.bf16.mxu0 %v12605_v1  ;;  %9246 = vmatprep.subr.bf16.mxu1 %v12608_v2  ;;  %v12704_v1 = vld [vmem:[%s13395_s12 + $0x1a6c] ss:$16 sps:$4 sm:$0xff]  }
 0x343   : > { %v12782_v2 = vld [vmem:[%s14802_s0 + $0x6c] ss:$144 sps:$4 sm:$0xff]  }
 0x345   : > { %8293 = vmatpush1.bf16.msra.mxu0 %v12603_v3  ;;  %9247 = vmatpush1.bf16.msra.mxu1 %v12606_v4  ;;  %v12699_v3 = vld [vmem:[%s13395_s12 + $0x1a60] ss:$16 sps:$4 sm:$0xff]   ;;  %v12702_v4 = vld [vmem:[%s13395_s12 + $0x1a68] ss:$16 sps:$4 sm:$0xff]  }
 0x346   : > { %8294 = vmatprep.subr.bf16.mxu0 %v12611_v5  ;;  %9248 = vmatprep.subr.bf16.mxu1 %v12614_v6  ;;  %v12707_v5 = vld [vmem:[%s13395_s12 + $0x1a84] ss:$16 sps:$4 sm:$0xff]   ;;  %v12710_v6 = vld [vmem:[%s13395_s12 + $0x1a8c] ss:$16 sps:$4 sm:$0xff]  }
 0x349   : > { %8295 = vmatpush1.bf16.msra.mxu0 %v12609_v7  ;;  %9249 = vmatpush1.bf16.msra.mxu1 %v12612_v8  ;;  %v12705_v7 = vld [vmem:[%s13395_s12 + $0x1a80] ss:$16 sps:$4 sm:$0xff]   ;;  %v12708_v8 = vld [vmem:[%s13395_s12 + $0x1a88] ss:$16 sps:$4 sm:$0xff]  }
 0x34a   : > { %8296 = vmatprep.subr.bf16.mxu0 %v12617_v9  ;;  %9250 = vmatprep.subr.bf16.mxu1 %v12620_v10  ;;  %v12713_v9 = vld [vmem:[%s13395_s12 + $0x1aa4] ss:$16 sps:$4 sm:$0xff]   ;;  %v12716_v10 = vld [vmem:[%s13395_s12 + $0x1aac] ss:$16 sps:$4 sm:$0xff]  }
 0x34d   : > { %8297 = vmatpush1.bf16.msra.mxu0 %v12615_v11  ;;  %9251 = vmatpush1.bf16.msra.mxu1 %v12618_v12  ;;  %v12711_v11 = vld [vmem:[%s13395_s12 + $0x1aa0] ss:$16 sps:$4 sm:$0xff]   ;;  %v12714_v12 = vld [vmem:[%s13395_s12 + $0x1aa8] ss:$16 sps:$4 sm:$0xff]  }
 0x34e   : > { %8298 = vmatprep.subr.bf16.mxu0 %v12623_v13  ;;  %9252 = vmatprep.subr.bf16.mxu1 %v12626_v14  ;;  %v12719_v13 = vld [vmem:[%s13395_s12 + $0x1ac4] ss:$16 sps:$4 sm:$0xff]   ;;  %v12722_v14 = vld [vmem:[%s13395_s12 + $0x1acc] ss:$16 sps:$4 sm:$0xff]  }
 0x351   : > { %8299 = vmatpush1.bf16.msra.mxu0 %v12621_v15  ;;  %9253 = vmatpush1.bf16.msra.mxu1 %v12624_v16  ;;  %v12717_v15 = vld [vmem:[%s13395_s12 + $0x1ac0] ss:$16 sps:$4 sm:$0xff]   ;;  %v12720_v16 = vld [vmem:[%s13395_s12 + $0x1ac8] ss:$16 sps:$4 sm:$0xff]  }
 0x352   : > { %8300 = vmatprep.subr.bf16.mxu0 %v12629_v17  ;;  %9254 = vmatprep.subr.bf16.mxu1 %v12632_v18  ;;  %v12725_v17 = vld [vmem:[%s13395_s12 + $0x1ae4] ss:$16 sps:$4 sm:$0xff]   ;;  %v12728_v18 = vld [vmem:[%s13395_s12 + $0x1aec] ss:$16 sps:$4 sm:$0xff]  }
 0x355   : > { %8301 = vmatpush1.bf16.msra.mxu0 %v12627_v19  ;;  %9255 = vmatpush1.bf16.msra.mxu1 %v12630_v20  ;;  %v12723_v19 = vld [vmem:[%s13395_s12 + $0x1ae0] ss:$16 sps:$4 sm:$0xff]   ;;  %v12726_v20 = vld [vmem:[%s13395_s12 + $0x1ae8] ss:$16 sps:$4 sm:$0xff]  }
 0x356   : > { %8302 = vmatprep.subr.bf16.mxu0 %v12635_v21  ;;  %9256 = vmatprep.subr.bf16.mxu1 %v12638_v22  ;;  %v12731_v21 = vld [vmem:[%s13395_s12 + $0x1b04] ss:$16 sps:$4 sm:$0xff]   ;;  %v12734_v22 = vld [vmem:[%s13395_s12 + $0x1b0c] ss:$16 sps:$4 sm:$0xff]  }
 0x359   : > { %8303 = vmatpush1.bf16.msra.mxu0 %v12633_v23  ;;  %9257 = vmatpush1.bf16.msra.mxu1 %v12636_v24  ;;  %v12729_v23 = vld [vmem:[%s13395_s12 + $0x1b00] ss:$16 sps:$4 sm:$0xff]   ;;  %v12732_v24 = vld [vmem:[%s13395_s12 + $0x1b08] ss:$16 sps:$4 sm:$0xff]  }
 0x35a   : > { %8304 = vmatprep.subr.bf16.mxu0 %v12641_v25  ;;  %9258 = vmatprep.subr.bf16.mxu1 %v12644_v26  ;;  %v12737_v25 = vld [vmem:[%s13395_s12 + $0x1b24] ss:$16 sps:$4 sm:$0xff]   ;;  %v12740_v26 = vld [vmem:[%s13395_s12 + $0x1b2c] ss:$16 sps:$4 sm:$0xff]  }
 0x35d   : > { %8305 = vmatpush1.bf16.msra.mxu0 %v12639_v27  ;;  %9259 = vmatpush1.bf16.msra.mxu1 %v12642_v28  ;;  %v12735_v27 = vld [vmem:[%s13395_s12 + $0x1b20] ss:$16 sps:$4 sm:$0xff]   ;;  %v12738_v28 = vld [vmem:[%s13395_s12 + $0x1b28] ss:$16 sps:$4 sm:$0xff]  }
 0x35e   : > { %8306 = vmatprep.subr.bf16.mxu0 %v12647_v29  ;;  %9260 = vmatprep.subr.bf16.mxu1 %v12650_v30  ;;  %v12743_v29 = vld [vmem:[%s13395_s12 + $0x1b44] ss:$16 sps:$4 sm:$0xff]   ;;  %v12746_v30 = vld [vmem:[%s13395_s12 + $0x1b4c] ss:$16 sps:$4 sm:$0xff]  }
 0x361   : > { %8307 = vmatpush1.bf16.msra.mxu0 %v12645_v31  ;;  %9261 = vmatpush1.bf16.msra.mxu1 %v12648_v32  ;;  %v12741_v31 = vld [vmem:[%s13395_s12 + $0x1b40] ss:$16 sps:$4 sm:$0xff]   ;;  %v12744_v32 = vld [vmem:[%s13395_s12 + $0x1b48] ss:$16 sps:$4 sm:$0xff]  }
 0x362   : > { %8308 = vmatprep.subr.bf16.mxu0 %v12653_v33  ;;  %9262 = vmatprep.subr.bf16.mxu1 %v12656_v34  ;;  %v12749_v33 = vld [vmem:[%s13395_s12 + $0x1b64] ss:$16 sps:$4 sm:$0xff]   ;;  %v12752_v34 = vld [vmem:[%s13395_s12 + $0x1b6c] ss:$16 sps:$4 sm:$0xff]  }
 0x365   : > { %8309 = vmatpush1.bf16.msra.mxu0 %v12651_v35  ;;  %9263 = vmatpush1.bf16.msra.mxu1 %v12654_v36  ;;  %v12747_v35 = vld [vmem:[%s13395_s12 + $0x1b60] ss:$16 sps:$4 sm:$0xff]   ;;  %v12750_v36 = vld [vmem:[%s13395_s12 + $0x1b68] ss:$16 sps:$4 sm:$0xff]  }
 0x366   : > { %8310 = vmatprep.subr.bf16.mxu0 %v12659_v37  ;;  %9264 = vmatprep.subr.bf16.mxu1 %v12662_v38  ;;  %v12755_v37 = vld [vmem:[%s13395_s12 + $0x1b84] ss:$16 sps:$4 sm:$0xff]   ;;  %v12758_v38 = vld [vmem:[%s13395_s12 + $0x1b8c] ss:$16 sps:$4 sm:$0xff]  }
 0x369   : > { %8311 = vmatpush1.bf16.msra.mxu0 %v12657_v39  ;;  %9265 = vmatpush1.bf16.msra.mxu1 %v12660_v40  ;;  %v12753_v39 = vld [vmem:[%s13395_s12 + $0x1b80] ss:$16 sps:$4 sm:$0xff]   ;;  %v12756_v40 = vld [vmem:[%s13395_s12 + $0x1b88] ss:$16 sps:$4 sm:$0xff]  }
 0x36a   : > { %8312 = vmatprep.subr.bf16.mxu0 %v12667_v41  ;;  %9266 = vmatprep.subr.bf16.mxu1 %v12670_v42  ;;  %v12761_v41 = vld [vmem:[%s13395_s12 + $0x1ba4] ss:$16 sps:$4 sm:$0xff]   ;;  %v12764_v42 = vld [vmem:[%s13395_s12 + $0x1bac] ss:$16 sps:$4 sm:$0xff]  }
 0x36d   : > { %8313 = vmatpush1.bf16.msra.mxu0 %v12665_v43  ;;  %9267 = vmatpush1.bf16.msra.mxu1 %v12668_v44  ;;  %v12759_v43 = vld [vmem:[%s13395_s12 + $0x1ba0] ss:$16 sps:$4 sm:$0xff]   ;;  %v12762_v44 = vld [vmem:[%s13395_s12 + $0x1ba8] ss:$16 sps:$4 sm:$0xff]  }
 0x36e   : > { %8314 = vmatprep.subr.bf16.mxu0 %v12674_v45  ;;  %9268 = vmatprep.subr.bf16.mxu1 %v12677_v46  ;;  %v12769_v45 = vld [vmem:[%s13395_s12 + $0x1bc4] ss:$16 sps:$4 sm:$0xff]   ;;  %v12772_v46 = vld [vmem:[%s13395_s12 + $0x1bcc] ss:$16 sps:$4 sm:$0xff]  }
 0x371   : > { %8315 = vmatpush1.bf16.msra.mxu0 %v12672_v47  ;;  %9269 = vmatpush1.bf16.msra.mxu1 %v12675_v48  ;;  %v12767_v47 = vld [vmem:[%s13395_s12 + $0x1bc0] ss:$16 sps:$4 sm:$0xff]   ;;  %v12770_v48 = vld [vmem:[%s13395_s12 + $0x1bc8] ss:$16 sps:$4 sm:$0xff]  }
 0x372   : > { %8337 = vmatprep.subr.bf16.mxu0 %v12683_v49  ;;  %9291 = vmatprep.subr.bf16.mxu1 %v12686_v50  ;;  %v12776_v49 = vld [vmem:[%s13395_s12 + $0x1be4] ss:$16 sps:$4 sm:$0xff]   ;;  %v12779_v50 = vld [vmem:[%s13395_s12 + $0x1bec] ss:$16 sps:$4 sm:$0xff]  }
 0x374   : > { %8317 = vmatmul.mubr.bf16.vlgmr.msra.gmra.mrb[0].mxu0 %v12678_v51  ;;  %9271 = vmatmul.mubr.bf16.vlgmr.msra.gmra.mrb[0].mxu1 %v12678_v51  ;;  %v12774_v51 = vld [vmem:[%s13395_s12 + $0x1be0] ss:$16 sps:$4 sm:$0xff]  }
 0x375   : > { %8338 = vmatpush1.bf16.msra.mxu0 %v12681_v52  ;;  %9292 = vmatpush1.bf16.msra.mxu1 %v12684_v53  ;;  %v12777_v52 = vld [vmem:[%s13395_s12 + $0x1be8] ss:$16 sps:$4 sm:$0xff]   ;;  %v12785_v53 = vld [vmem:[%s13395_s12 + $0x1c04] ss:$16 sps:$4 sm:$0xff]  }
 0x376   : > { %8339 = vmatprep.subr.bf16.mxu0 %v12689_v54  ;;  %9293 = vmatprep.subr.bf16.mxu1 %v12692_v55  ;;  %v12788_v54 = vld [vmem:[%s13395_s12 + $0x1c0c] ss:$16 sps:$4 sm:$0xff]   ;;  %v12780_v55 = vld [vmem:[%s14802_s0 + $0x68] ss:$144 sps:$4 sm:$0xff]  }
 0x377   : > { %8326 = vmatprep.mubr.bf16.mxu0 %v12765_v56  ;;  %9280 = vmatprep.mubr.bf16.mxu1 %v12765_v56  ;;  %v12783_v56 = vld [vmem:[%s13395_s12 + $0x1c00] ss:$16 sps:$4 sm:$0xff]  }
 0x379   : > { %8340 = vmatpush1.bf16.msra.mxu0 %v12687_v57  ;;  %9294 = vmatpush1.bf16.msra.mxu1 %v12690_v58  ;;  %v12786_v57 = vld [vmem:[%s13395_s12 + $0x1c08] ss:$16 sps:$4 sm:$0xff]   ;;  %v12791_v58 = vld [vmem:[%s13395_s12 + $0x1c24] ss:$16 sps:$4 sm:$0xff]  }
 0x37a   : > { %8341 = vmatprep.subr.bf16.mxu0 %v12695_v59  ;;  %9295 = vmatprep.subr.bf16.mxu1 %v12698_v60  ;;  %v12794_v59 = vld [vmem:[%s13395_s12 + $0x1c2c] ss:$16 sps:$4 sm:$0xff]  }
 0x37b   : > { %v12867_v60 = vld [vmem:[%s14802_s0 + $0x18c] ss:$144 sps:$4 sm:$0xff]  }
 0x37c   : > { %8327 = vmatmul.mubr.bf16.gmra.mrb[4].mxu0 %v12773_v61  ;;  %9281 = vmatmul.mubr.bf16.gmra.mrb[4].mxu1 %v12773_v61  ;;  %v12789_v61 = vld [vmem:[%s13395_s12 + $0x1c20] ss:$16 sps:$4 sm:$0xff]  }
 0x37d   : > { %8342 = vmatpush1.bf16.msra.mxu0 %v12693_v62  ;;  %9296 = vmatpush1.bf16.msra.mxu1 %v12696_v63  ;;  %v12792_v62 = vld [vmem:[%s13395_s12 + $0x1c28] ss:$16 sps:$4 sm:$0xff]   ;;  %v12797_v63 = vld [vmem:[%s13395_s12 + $0x1c44] ss:$16 sps:$4 sm:$0xff]  }
 0x37e   : > { %8343 = vmatprep.subr.bf16.mxu0 %v12701_v0  ;;  %9297 = vmatprep.subr.bf16.mxu1 %v12704_v1  ;;  %v12800_v0 = vld [vmem:[%s13395_s12 + $0x1c4c] ss:$16 sps:$4 sm:$0xff]   ;;  %v12875_v1 = vld [vmem:[%s14802_s0 + $0x188] ss:$144 sps:$4 sm:$0xff]  }
 0x37f   : > { %8369 = vmatprep.mubr.bf16.mxu0 %v12782_v2  ;;  %9323 = vmatprep.mubr.bf16.mxu1 %v12782_v2  ;;  %v12795_v2 = vld [vmem:[%s13395_s12 + $0x1c40] ss:$16 sps:$4 sm:$0xff]  }
 0x381   : > { %8344 = vmatpush1.bf16.msra.mxu0 %v12699_v3  ;;  %9298 = vmatpush1.bf16.msra.mxu1 %v12702_v4  ;;  %v12798_v3 = vld [vmem:[%s13395_s12 + $0x1c48] ss:$16 sps:$4 sm:$0xff]   ;;  %v12803_v4 = vld [vmem:[%s13395_s12 + $0x1c64] ss:$16 sps:$4 sm:$0xff]  }
 0x382   : > { %8345 = vmatprep.subr.bf16.mxu0 %v12707_v5  ;;  %9299 = vmatprep.subr.bf16.mxu1 %v12710_v6  ;;  %v12806_v5 = vld [vmem:[%s13395_s12 + $0x1c6c] ss:$16 sps:$4 sm:$0xff]   ;;  %v12884_v6 = vld [vmem:[%s14802_s0 + $0x74] ss:$144 sps:$4 sm:$0xff]  }
 0x385   : > { %8346 = vmatpush1.bf16.msra.mxu0 %v12705_v7  ;;  %9300 = vmatpush1.bf16.msra.mxu1 %v12708_v8  ;;  %v12801_v7 = vld [vmem:[%s13395_s12 + $0x1c60] ss:$16 sps:$4 sm:$0xff]   ;;  %v12804_v8 = vld [vmem:[%s13395_s12 + $0x1c68] ss:$16 sps:$4 sm:$0xff]  }
 0x386   : > { %8347 = vmatprep.subr.bf16.mxu0 %v12713_v9  ;;  %9301 = vmatprep.subr.bf16.mxu1 %v12716_v10  ;;  %v12809_v9 = vld [vmem:[%s13395_s12 + $0x1c84] ss:$16 sps:$4 sm:$0xff]   ;;  %v12812_v10 = vld [vmem:[%s13395_s12 + $0x1c8c] ss:$16 sps:$4 sm:$0xff]  }
 0x389   : > { %8348 = vmatpush1.bf16.msra.mxu0 %v12711_v11  ;;  %9302 = vmatpush1.bf16.msra.mxu1 %v12714_v12  ;;  %v12807_v11 = vld [vmem:[%s13395_s12 + $0x1c80] ss:$16 sps:$4 sm:$0xff]   ;;  %v12810_v12 = vld [vmem:[%s13395_s12 + $0x1c88] ss:$16 sps:$4 sm:$0xff]  }
 0x38a   : > { %8349 = vmatprep.subr.bf16.mxu0 %v12719_v13  ;;  %9303 = vmatprep.subr.bf16.mxu1 %v12722_v14  ;;  %v12815_v13 = vld [vmem:[%s13395_s12 + $0x1ca4] ss:$16 sps:$4 sm:$0xff]   ;;  %v12818_v14 = vld [vmem:[%s13395_s12 + $0x1cac] ss:$16 sps:$4 sm:$0xff]  }
 0x38d   : > { %8350 = vmatpush1.bf16.msra.mxu0 %v12717_v15  ;;  %9304 = vmatpush1.bf16.msra.mxu1 %v12720_v16  ;;  %v12813_v15 = vld [vmem:[%s13395_s12 + $0x1ca0] ss:$16 sps:$4 sm:$0xff]   ;;  %v12816_v16 = vld [vmem:[%s13395_s12 + $0x1ca8] ss:$16 sps:$4 sm:$0xff]  }
 0x38e   : > { %8351 = vmatprep.subr.bf16.mxu0 %v12725_v17  ;;  %9305 = vmatprep.subr.bf16.mxu1 %v12728_v18  ;;  %v12821_v17 = vld [vmem:[%s13395_s12 + $0x1cc4] ss:$16 sps:$4 sm:$0xff]   ;;  %v12824_v18 = vld [vmem:[%s13395_s12 + $0x1ccc] ss:$16 sps:$4 sm:$0xff]  }
 0x391   : > { %8352 = vmatpush1.bf16.msra.mxu0 %v12723_v19  ;;  %9306 = vmatpush1.bf16.msra.mxu1 %v12726_v20  ;;  %v12819_v19 = vld [vmem:[%s13395_s12 + $0x1cc0] ss:$16 sps:$4 sm:$0xff]   ;;  %v12822_v20 = vld [vmem:[%s13395_s12 + $0x1cc8] ss:$16 sps:$4 sm:$0xff]  }
 0x392   : > { %8353 = vmatprep.subr.bf16.mxu0 %v12731_v21  ;;  %9307 = vmatprep.subr.bf16.mxu1 %v12734_v22  ;;  %v12827_v21 = vld [vmem:[%s13395_s12 + $0x1ce4] ss:$16 sps:$4 sm:$0xff]   ;;  %v12830_v22 = vld [vmem:[%s13395_s12 + $0x1cec] ss:$16 sps:$4 sm:$0xff]  }
 0x395   : > { %8354 = vmatpush1.bf16.msra.mxu0 %v12729_v23  ;;  %9308 = vmatpush1.bf16.msra.mxu1 %v12732_v24  ;;  %v12825_v23 = vld [vmem:[%s13395_s12 + $0x1ce0] ss:$16 sps:$4 sm:$0xff]   ;;  %v12828_v24 = vld [vmem:[%s13395_s12 + $0x1ce8] ss:$16 sps:$4 sm:$0xff]  }
 0x396   : > { %8355 = vmatprep.subr.bf16.mxu0 %v12737_v25  ;;  %9309 = vmatprep.subr.bf16.mxu1 %v12740_v26  ;;  %v12833_v25 = vld [vmem:[%s13395_s12 + $0x1d04] ss:$16 sps:$4 sm:$0xff]   ;;  %v12836_v26 = vld [vmem:[%s13395_s12 + $0x1d0c] ss:$16 sps:$4 sm:$0xff]  }
 0x399   : > { %8356 = vmatpush1.bf16.msra.mxu0 %v12735_v27  ;;  %9310 = vmatpush1.bf16.msra.mxu1 %v12738_v28  ;;  %v12831_v27 = vld [vmem:[%s13395_s12 + $0x1d00] ss:$16 sps:$4 sm:$0xff]   ;;  %v12834_v28 = vld [vmem:[%s13395_s12 + $0x1d08] ss:$16 sps:$4 sm:$0xff]  }
 0x39a   : > { %8357 = vmatprep.subr.bf16.mxu0 %v12743_v29  ;;  %9311 = vmatprep.subr.bf16.mxu1 %v12746_v30  ;;  %v12839_v29 = vld [vmem:[%s13395_s12 + $0x1d24] ss:$16 sps:$4 sm:$0xff]   ;;  %v12842_v30 = vld [vmem:[%s13395_s12 + $0x1d2c] ss:$16 sps:$4 sm:$0xff]  }
 0x39d   : > { %8358 = vmatpush1.bf16.msra.mxu0 %v12741_v31  ;;  %9312 = vmatpush1.bf16.msra.mxu1 %v12744_v32  ;;  %v12837_v31 = vld [vmem:[%s13395_s12 + $0x1d20] ss:$16 sps:$4 sm:$0xff]   ;;  %v12840_v32 = vld [vmem:[%s13395_s12 + $0x1d28] ss:$16 sps:$4 sm:$0xff]  }
 0x39e   : > { %8359 = vmatprep.subr.bf16.mxu0 %v12749_v33  ;;  %9313 = vmatprep.subr.bf16.mxu1 %v12752_v34  ;;  %v12845_v33 = vld [vmem:[%s13395_s12 + $0x1d44] ss:$16 sps:$4 sm:$0xff]   ;;  %v12848_v34 = vld [vmem:[%s13395_s12 + $0x1d4c] ss:$16 sps:$4 sm:$0xff]  }
 0x3a1   : > { %8360 = vmatpush1.bf16.msra.mxu0 %v12747_v35  ;;  %9314 = vmatpush1.bf16.msra.mxu1 %v12750_v36  ;;  %v12843_v35 = vld [vmem:[%s13395_s12 + $0x1d40] ss:$16 sps:$4 sm:$0xff]   ;;  %v12846_v36 = vld [vmem:[%s13395_s12 + $0x1d48] ss:$16 sps:$4 sm:$0xff]  }
 0x3a2   : > { %8361 = vmatprep.subr.bf16.mxu0 %v12755_v37  ;;  %9315 = vmatprep.subr.bf16.mxu1 %v12758_v38  ;;  %v12851_v37 = vld [vmem:[%s13395_s12 + $0x1d64] ss:$16 sps:$4 sm:$0xff]   ;;  %v12854_v38 = vld [vmem:[%s13395_s12 + $0x1d6c] ss:$16 sps:$4 sm:$0xff]  }
 0x3a5   : > { %8362 = vmatpush1.bf16.msra.mxu0 %v12753_v39  ;;  %9316 = vmatpush1.bf16.msra.mxu1 %v12756_v40  ;;  %v12849_v39 = vld [vmem:[%s13395_s12 + $0x1d60] ss:$16 sps:$4 sm:$0xff]   ;;  %v12852_v40 = vld [vmem:[%s13395_s12 + $0x1d68] ss:$16 sps:$4 sm:$0xff]  }
 0x3a6   : > { %8363 = vmatprep.subr.bf16.mxu0 %v12761_v41  ;;  %9317 = vmatprep.subr.bf16.mxu1 %v12764_v42  ;;  %v12857_v41 = vld [vmem:[%s13395_s12 + $0x1d84] ss:$16 sps:$4 sm:$0xff]   ;;  %v12860_v42 = vld [vmem:[%s13395_s12 + $0x1d8c] ss:$16 sps:$4 sm:$0xff]  }
 0x3a9   : > { %8364 = vmatpush1.bf16.msra.mxu0 %v12759_v43  ;;  %9318 = vmatpush1.bf16.msra.mxu1 %v12762_v44  ;;  %v12855_v43 = vld [vmem:[%s13395_s12 + $0x1d80] ss:$16 sps:$4 sm:$0xff]   ;;  %v12858_v44 = vld [vmem:[%s13395_s12 + $0x1d88] ss:$16 sps:$4 sm:$0xff]  }
 0x3aa   : > { %8365 = vmatprep.subr.bf16.mxu0 %v12769_v45  ;;  %9319 = vmatprep.subr.bf16.mxu1 %v12772_v46  ;;  %v12863_v45 = vld [vmem:[%s13395_s12 + $0x1da4] ss:$16 sps:$4 sm:$0xff]   ;;  %v12866_v46 = vld [vmem:[%s13395_s12 + $0x1dac] ss:$16 sps:$4 sm:$0xff]  }
 0x3ad   : > { %8366 = vmatpush1.bf16.msra.mxu0 %v12767_v47  ;;  %9320 = vmatpush1.bf16.msra.mxu1 %v12770_v48  ;;  %v12861_v47 = vld [vmem:[%s13395_s12 + $0x1da0] ss:$16 sps:$4 sm:$0xff]   ;;  %v12864_v48 = vld [vmem:[%s13395_s12 + $0x1da8] ss:$16 sps:$4 sm:$0xff]  }
 0x3ae   : > { %8367 = vmatprep.subr.bf16.mxu0 %v12776_v49  ;;  %9321 = vmatprep.subr.bf16.mxu1 %v12779_v50  ;;  %v12871_v49 = vld [vmem:[%s13395_s12 + $0x1dc4] ss:$16 sps:$4 sm:$0xff]   ;;  %v12874_v50 = vld [vmem:[%s13395_s12 + $0x1dcc] ss:$16 sps:$4 sm:$0xff]  }
 0x3b1   : > { %8368 = vmatpush1.bf16.msra.mxu0 %v12774_v51  ;;  %9322 = vmatpush1.bf16.msra.mxu1 %v12777_v52  ;;  %v12869_v51 = vld [vmem:[%s13395_s12 + $0x1dc0] ss:$16 sps:$4 sm:$0xff]   ;;  %v12872_v52 = vld [vmem:[%s13395_s12 + $0x1dc8] ss:$16 sps:$4 sm:$0xff]  }
 0x3b2   : > { %8390 = vmatprep.subr.bf16.mxu0 %v12785_v53  ;;  %9344 = vmatprep.subr.bf16.mxu1 %v12788_v54  ;;  %v12878_v53 = vld [vmem:[%s13395_s12 + $0x1de4] ss:$16 sps:$4 sm:$0xff]   ;;  %v12881_v54 = vld [vmem:[%s13395_s12 + $0x1dec] ss:$16 sps:$4 sm:$0xff]  }
 0x3b4   : > { %8370 = vmatmul.mubr.bf16.vlgmr.msra.gmra.mrb[0].mxu0 %v12780_v55  ;;  %9324 = vmatmul.mubr.bf16.vlgmr.msra.gmra.mrb[0].mxu1 %v12780_v55  ;;  %v12876_v55 = vld [vmem:[%s13395_s12 + $0x1de0] ss:$16 sps:$4 sm:$0xff]  }
 0x3b5   : > { %8391 = vmatpush1.bf16.msra.mxu0 %v12783_v56  ;;  %9345 = vmatpush1.bf16.msra.mxu1 %v12786_v57  ;;  %v12879_v56 = vld [vmem:[%s13395_s12 + $0x1de8] ss:$16 sps:$4 sm:$0xff]   ;;  %v12887_v57 = vld [vmem:[%s13395_s12 + $0x1e04] ss:$16 sps:$4 sm:$0xff]  }
 0x3b6   : > { %8392 = vmatprep.subr.bf16.mxu0 %v12791_v58  ;;  %9346 = vmatprep.subr.bf16.mxu1 %v12794_v59  ;;  %v12890_v58 = vld [vmem:[%s13395_s12 + $0x1e0c] ss:$16 sps:$4 sm:$0xff]   ;;  %v12882_v59 = vld [vmem:[%s14802_s0 + $0x70] ss:$144 sps:$4 sm:$0xff]  }
 0x3b7   : > { %8379 = vmatprep.mubr.bf16.mxu0 %v12867_v60  ;;  %9333 = vmatprep.mubr.bf16.mxu1 %v12867_v60  ;;  %v12885_v60 = vld [vmem:[%s13395_s12 + $0x1e00] ss:$16 sps:$4 sm:$0xff]  }
 0x3b9   : > { %8393 = vmatpush1.bf16.msra.mxu0 %v12789_v61  ;;  %9347 = vmatpush1.bf16.msra.mxu1 %v12792_v62  ;;  %v12888_v61 = vld [vmem:[%s13395_s12 + $0x1e08] ss:$16 sps:$4 sm:$0xff]   ;;  %v12893_v62 = vld [vmem:[%s13395_s12 + $0x1e24] ss:$16 sps:$4 sm:$0xff]  }
 0x3ba   : > { %8394 = vmatprep.subr.bf16.mxu0 %v12797_v63  ;;  %9348 = vmatprep.subr.bf16.mxu1 %v12800_v0  ;;  %v12896_v63 = vld [vmem:[%s13395_s12 + $0x1e2c] ss:$16 sps:$4 sm:$0xff]   ;;  %v12969_v0 = vld [vmem:[%s14802_s0 + $0x194] ss:$144 sps:$4 sm:$0xff]  }
 0x3bc   : > { %8380 = vmatmul.mubr.bf16.gmra.mrb[4].mxu0 %v12875_v1  ;;  %9334 = vmatmul.mubr.bf16.gmra.mrb[4].mxu1 %v12875_v1  ;;  %v12891_v1 = vld [vmem:[%s13395_s12 + $0x1e20] ss:$16 sps:$4 sm:$0xff]  }
 0x3bd   : > { %8395 = vmatpush1.bf16.msra.mxu0 %v12795_v2  ;;  %9349 = vmatpush1.bf16.msra.mxu1 %v12798_v3  ;;  %v12894_v2 = vld [vmem:[%s13395_s12 + $0x1e28] ss:$16 sps:$4 sm:$0xff]   ;;  %v12899_v3 = vld [vmem:[%s13395_s12 + $0x1e44] ss:$16 sps:$4 sm:$0xff]  }
 0x3be   : > { %8396 = vmatprep.subr.bf16.mxu0 %v12803_v4  ;;  %9350 = vmatprep.subr.bf16.mxu1 %v12806_v5  ;;  %v12902_v4 = vld [vmem:[%s13395_s12 + $0x1e4c] ss:$16 sps:$4 sm:$0xff]   ;;  %v12977_v5 = vld [vmem:[%s14802_s0 + $0x190] ss:$144 sps:$4 sm:$0xff]  }
 0x3bf   : > { %8422 = vmatprep.mubr.bf16.mxu0 %v12884_v6  ;;  %9376 = vmatprep.mubr.bf16.mxu1 %v12884_v6  ;;  %v12897_v6 = vld [vmem:[%s13395_s12 + $0x1e40] ss:$16 sps:$4 sm:$0xff]  }
 0x3c1   : > { %8397 = vmatpush1.bf16.msra.mxu0 %v12801_v7  ;;  %9351 = vmatpush1.bf16.msra.mxu1 %v12804_v8  ;;  %v12900_v7 = vld [vmem:[%s13395_s12 + $0x1e48] ss:$16 sps:$4 sm:$0xff]   ;;  %v12905_v8 = vld [vmem:[%s13395_s12 + $0x1e64] ss:$16 sps:$4 sm:$0xff]  }
 0x3c2   : > { %8398 = vmatprep.subr.bf16.mxu0 %v12809_v9  ;;  %9352 = vmatprep.subr.bf16.mxu1 %v12812_v10  ;;  %v12908_v9 = vld [vmem:[%s13395_s12 + $0x1e6c] ss:$16 sps:$4 sm:$0xff]  }
 0x3c3   : > { %v12986_v10 = vld [vmem:[%s14802_s0 + $0x7c] ss:$144 sps:$4 sm:$0xff]  }
 0x3c5   : > { %8399 = vmatpush1.bf16.msra.mxu0 %v12807_v11  ;;  %9353 = vmatpush1.bf16.msra.mxu1 %v12810_v12  ;;  %v12903_v11 = vld [vmem:[%s13395_s12 + $0x1e60] ss:$16 sps:$4 sm:$0xff]   ;;  %v12906_v12 = vld [vmem:[%s13395_s12 + $0x1e68] ss:$16 sps:$4 sm:$0xff]  }
 0x3c6   : > { %8400 = vmatprep.subr.bf16.mxu0 %v12815_v13  ;;  %9354 = vmatprep.subr.bf16.mxu1 %v12818_v14  ;;  %v12911_v13 = vld [vmem:[%s13395_s12 + $0x1e84] ss:$16 sps:$4 sm:$0xff]   ;;  %v12914_v14 = vld [vmem:[%s13395_s12 + $0x1e8c] ss:$16 sps:$4 sm:$0xff]  }
 0x3c9   : > { %8401 = vmatpush1.bf16.msra.mxu0 %v12813_v15  ;;  %9355 = vmatpush1.bf16.msra.mxu1 %v12816_v16  ;;  %v12909_v15 = vld [vmem:[%s13395_s12 + $0x1e80] ss:$16 sps:$4 sm:$0xff]   ;;  %v12912_v16 = vld [vmem:[%s13395_s12 + $0x1e88] ss:$16 sps:$4 sm:$0xff]  }
 0x3ca   : > { %8402 = vmatprep.subr.bf16.mxu0 %v12821_v17  ;;  %9356 = vmatprep.subr.bf16.mxu1 %v12824_v18  ;;  %v12917_v17 = vld [vmem:[%s13395_s12 + $0x1ea4] ss:$16 sps:$4 sm:$0xff]   ;;  %v12920_v18 = vld [vmem:[%s13395_s12 + $0x1eac] ss:$16 sps:$4 sm:$0xff]  }
 0x3cd   : > { %8403 = vmatpush1.bf16.msra.mxu0 %v12819_v19  ;;  %9357 = vmatpush1.bf16.msra.mxu1 %v12822_v20  ;;  %v12915_v19 = vld [vmem:[%s13395_s12 + $0x1ea0] ss:$16 sps:$4 sm:$0xff]   ;;  %v12918_v20 = vld [vmem:[%s13395_s12 + $0x1ea8] ss:$16 sps:$4 sm:$0xff]  }
 0x3ce   : > { %8404 = vmatprep.subr.bf16.mxu0 %v12827_v21  ;;  %9358 = vmatprep.subr.bf16.mxu1 %v12830_v22  ;;  %v12923_v21 = vld [vmem:[%s13395_s12 + $0x1ec4] ss:$16 sps:$4 sm:$0xff]   ;;  %v12926_v22 = vld [vmem:[%s13395_s12 + $0x1ecc] ss:$16 sps:$4 sm:$0xff]  }
 0x3d1   : > { %8405 = vmatpush1.bf16.msra.mxu0 %v12825_v23  ;;  %9359 = vmatpush1.bf16.msra.mxu1 %v12828_v24  ;;  %v12921_v23 = vld [vmem:[%s13395_s12 + $0x1ec0] ss:$16 sps:$4 sm:$0xff]   ;;  %v12924_v24 = vld [vmem:[%s13395_s12 + $0x1ec8] ss:$16 sps:$4 sm:$0xff]  }
 0x3d2   : > { %8406 = vmatprep.subr.bf16.mxu0 %v12833_v25  ;;  %9360 = vmatprep.subr.bf16.mxu1 %v12836_v26  ;;  %v12929_v25 = vld [vmem:[%s13395_s12 + $0x1ee4] ss:$16 sps:$4 sm:$0xff]   ;;  %v12932_v26 = vld [vmem:[%s13395_s12 + $0x1eec] ss:$16 sps:$4 sm:$0xff]  }
 0x3d5   : > { %8407 = vmatpush1.bf16.msra.mxu0 %v12831_v27  ;;  %9361 = vmatpush1.bf16.msra.mxu1 %v12834_v28  ;;  %v12927_v27 = vld [vmem:[%s13395_s12 + $0x1ee0] ss:$16 sps:$4 sm:$0xff]   ;;  %v12930_v28 = vld [vmem:[%s13395_s12 + $0x1ee8] ss:$16 sps:$4 sm:$0xff]  }
 0x3d6   : > { %8408 = vmatprep.subr.bf16.mxu0 %v12839_v29  ;;  %9362 = vmatprep.subr.bf16.mxu1 %v12842_v30  ;;  %v12935_v29 = vld [vmem:[%s13395_s12 + $0x1f04] ss:$16 sps:$4 sm:$0xff]   ;;  %v12938_v30 = vld [vmem:[%s13395_s12 + $0x1f0c] ss:$16 sps:$4 sm:$0xff]  }
 0x3d9   : > { %8409 = vmatpush1.bf16.msra.mxu0 %v12837_v31  ;;  %9363 = vmatpush1.bf16.msra.mxu1 %v12840_v32  ;;  %v12933_v31 = vld [vmem:[%s13395_s12 + $0x1f00] ss:$16 sps:$4 sm:$0xff]   ;;  %v12936_v32 = vld [vmem:[%s13395_s12 + $0x1f08] ss:$16 sps:$4 sm:$0xff]  }
 0x3da   : > { %8410 = vmatprep.subr.bf16.mxu0 %v12845_v33  ;;  %9364 = vmatprep.subr.bf16.mxu1 %v12848_v34  ;;  %v12941_v33 = vld [vmem:[%s13395_s12 + $0x1f24] ss:$16 sps:$4 sm:$0xff]   ;;  %v12944_v34 = vld [vmem:[%s13395_s12 + $0x1f2c] ss:$16 sps:$4 sm:$0xff]  }
 0x3dd   : > { %8411 = vmatpush1.bf16.msra.mxu0 %v12843_v35  ;;  %9365 = vmatpush1.bf16.msra.mxu1 %v12846_v36  ;;  %v12939_v35 = vld [vmem:[%s13395_s12 + $0x1f20] ss:$16 sps:$4 sm:$0xff]   ;;  %v12942_v36 = vld [vmem:[%s13395_s12 + $0x1f28] ss:$16 sps:$4 sm:$0xff]  }
 0x3de   : > { %8412 = vmatprep.subr.bf16.mxu0 %v12851_v37  ;;  %9366 = vmatprep.subr.bf16.mxu1 %v12854_v38  ;;  %v12947_v37 = vld [vmem:[%s13395_s12 + $0x1f44] ss:$16 sps:$4 sm:$0xff]   ;;  %v12950_v38 = vld [vmem:[%s13395_s12 + $0x1f4c] ss:$16 sps:$4 sm:$0xff]  }
 0x3e1   : > { %8413 = vmatpush1.bf16.msra.mxu0 %v12849_v39  ;;  %9367 = vmatpush1.bf16.msra.mxu1 %v12852_v40  ;;  %v12945_v39 = vld [vmem:[%s13395_s12 + $0x1f40] ss:$16 sps:$4 sm:$0xff]   ;;  %v12948_v40 = vld [vmem:[%s13395_s12 + $0x1f48] ss:$16 sps:$4 sm:$0xff]  }
 0x3e2   : > { %8414 = vmatprep.subr.bf16.mxu0 %v12857_v41  ;;  %9368 = vmatprep.subr.bf16.mxu1 %v12860_v42  ;;  %v12953_v41 = vld [vmem:[%s13395_s12 + $0x1f64] ss:$16 sps:$4 sm:$0xff]   ;;  %v12956_v42 = vld [vmem:[%s13395_s12 + $0x1f6c] ss:$16 sps:$4 sm:$0xff]  }
 0x3e5   : > { %8415 = vmatpush1.bf16.msra.mxu0 %v12855_v43  ;;  %9369 = vmatpush1.bf16.msra.mxu1 %v12858_v44  ;;  %v12951_v43 = vld [vmem:[%s13395_s12 + $0x1f60] ss:$16 sps:$4 sm:$0xff]   ;;  %v12954_v44 = vld [vmem:[%s13395_s12 + $0x1f68] ss:$16 sps:$4 sm:$0xff]  }
 0x3e6   : > { %8416 = vmatprep.subr.bf16.mxu0 %v12863_v45  ;;  %9370 = vmatprep.subr.bf16.mxu1 %v12866_v46  ;;  %v12959_v45 = vld [vmem:[%s13395_s12 + $0x1f84] ss:$16 sps:$4 sm:$0xff]   ;;  %v12962_v46 = vld [vmem:[%s13395_s12 + $0x1f8c] ss:$16 sps:$4 sm:$0xff]  }
 0x3e9   : > { %8417 = vmatpush1.bf16.msra.mxu0 %v12861_v47  ;;  %9371 = vmatpush1.bf16.msra.mxu1 %v12864_v48  ;;  %v12957_v47 = vld [vmem:[%s13395_s12 + $0x1f80] ss:$16 sps:$4 sm:$0xff]   ;;  %v12960_v48 = vld [vmem:[%s13395_s12 + $0x1f88] ss:$16 sps:$4 sm:$0xff]  }
 0x3ea   : > { %8418 = vmatprep.subr.bf16.mxu0 %v12871_v49  ;;  %9372 = vmatprep.subr.bf16.mxu1 %v12874_v50  ;;  %v12965_v49 = vld [vmem:[%s13395_s12 + $0x1fa4] ss:$16 sps:$4 sm:$0xff]   ;;  %v12968_v50 = vld [vmem:[%s13395_s12 + $0x1fac] ss:$16 sps:$4 sm:$0xff]  }
 0x3ed   : > { %8419 = vmatpush1.bf16.msra.mxu0 %v12869_v51  ;;  %9373 = vmatpush1.bf16.msra.mxu1 %v12872_v52  ;;  %v12963_v51 = vld [vmem:[%s13395_s12 + $0x1fa0] ss:$16 sps:$4 sm:$0xff]   ;;  %v12966_v52 = vld [vmem:[%s13395_s12 + $0x1fa8] ss:$16 sps:$4 sm:$0xff]  }
 0x3ee   : > { %8420 = vmatprep.subr.bf16.mxu0 %v12878_v53  ;;  %9374 = vmatprep.subr.bf16.mxu1 %v12881_v54  ;;  %v12973_v53 = vld [vmem:[%s13395_s12 + $0x1fc4] ss:$16 sps:$4 sm:$0xff]   ;;  %v12976_v54 = vld [vmem:[%s13395_s12 + $0x1fcc] ss:$16 sps:$4 sm:$0xff]  }
 0x3f1   : > { %8421 = vmatpush1.bf16.msra.mxu0 %v12876_v55  ;;  %9375 = vmatpush1.bf16.msra.mxu1 %v12879_v56  ;;  %v12971_v55 = vld [vmem:[%s13395_s12 + $0x1fc0] ss:$16 sps:$4 sm:$0xff]   ;;  %v12974_v56 = vld [vmem:[%s13395_s12 + $0x1fc8] ss:$16 sps:$4 sm:$0xff]  }
 0x3f2   : > { %8443 = vmatprep.subr.bf16.mxu0 %v12887_v57  ;;  %9397 = vmatprep.subr.bf16.mxu1 %v12890_v58  ;;  %v12980_v57 = vld [vmem:[%s13395_s12 + $0x1fe4] ss:$16 sps:$4 sm:$0xff]   ;;  %v12983_v58 = vld [vmem:[%s13395_s12 + $0x1fec] ss:$16 sps:$4 sm:$0xff]  }
 0x3f4   : > { %8423 = vmatmul.mubr.bf16.vlgmr.msra.gmra.mrb[0].mxu0 %v12882_v59  ;;  %9377 = vmatmul.mubr.bf16.vlgmr.msra.gmra.mrb[0].mxu1 %v12882_v59  ;;  %v12978_v59 = vld [vmem:[%s13395_s12 + $0x1fe0] ss:$16 sps:$4 sm:$0xff]  }
 0x3f5   : > { %8444 = vmatpush1.bf16.msra.mxu0 %v12885_v60  ;;  %9398 = vmatpush1.bf16.msra.mxu1 %v12888_v61  ;;  %v12981_v60 = vld [vmem:[%s13395_s12 + $0x1fe8] ss:$16 sps:$4 sm:$0xff]   ;;  %v12989_v61 = vld [vmem:[%s13395_s12 + $0x2004] ss:$16 sps:$4 sm:$0xff]  }
 0x3f6   : > { %8445 = vmatprep.subr.bf16.mxu0 %v12893_v62  ;;  %9399 = vmatprep.subr.bf16.mxu1 %v12896_v63  ;;  %v12992_v62 = vld [vmem:[%s13395_s12 + $0x200c] ss:$16 sps:$4 sm:$0xff]   ;;  %v12984_v63 = vld [vmem:[%s14802_s0 + $0x78] ss:$144 sps:$4 sm:$0xff]  }
 0x3f7   : > { %8432 = vmatprep.mubr.bf16.mxu0 %v12969_v0  ;;  %9386 = vmatprep.mubr.bf16.mxu1 %v12969_v0  ;;  %v12987_v0 = vld [vmem:[%s13395_s12 + $0x2000] ss:$16 sps:$4 sm:$0xff]  }
 0x3f9   : > { %8446 = vmatpush1.bf16.msra.mxu0 %v12891_v1  ;;  %9400 = vmatpush1.bf16.msra.mxu1 %v12894_v2  ;;  %v12990_v1 = vld [vmem:[%s13395_s12 + $0x2008] ss:$16 sps:$4 sm:$0xff]   ;;  %v12995_v2 = vld [vmem:[%s13395_s12 + $0x2024] ss:$16 sps:$4 sm:$0xff]  }
 0x3fa   : > { %8447 = vmatprep.subr.bf16.mxu0 %v12899_v3  ;;  %9401 = vmatprep.subr.bf16.mxu1 %v12902_v4  ;;  %v12998_v3 = vld [vmem:[%s13395_s12 + $0x202c] ss:$16 sps:$4 sm:$0xff]  }
 0x3fb   : > { %v13071_v4 = vld [vmem:[%s14802_s0 + $0x19c] ss:$144 sps:$4 sm:$0xff]  }
 0x3fc   : > { %8433 = vmatmul.mubr.bf16.gmra.mrb[4].mxu0 %v12977_v5  ;;  %9387 = vmatmul.mubr.bf16.gmra.mrb[4].mxu1 %v12977_v5  ;;  %v12993_v5 = vld [vmem:[%s13395_s12 + $0x2020] ss:$16 sps:$4 sm:$0xff]  }
 0x3fd   : > { %8448 = vmatpush1.bf16.msra.mxu0 %v12897_v6  ;;  %9402 = vmatpush1.bf16.msra.mxu1 %v12900_v7  ;;  %v12996_v6 = vld [vmem:[%s13395_s12 + $0x2028] ss:$16 sps:$4 sm:$0xff]   ;;  %v13001_v7 = vld [vmem:[%s13395_s12 + $0x2044] ss:$16 sps:$4 sm:$0xff]  }
 0x3fe   : > { %8449 = vmatprep.subr.bf16.mxu0 %v12905_v8  ;;  %9403 = vmatprep.subr.bf16.mxu1 %v12908_v9  ;;  %v13004_v8 = vld [vmem:[%s13395_s12 + $0x204c] ss:$16 sps:$4 sm:$0xff]   ;;  %v13079_v9 = vld [vmem:[%s14802_s0 + $0x198] ss:$144 sps:$4 sm:$0xff]  }
 0x3ff   : > { %8475 = vmatprep.mubr.bf16.mxu0 %v12986_v10  ;;  %9429 = vmatprep.mubr.bf16.mxu1 %v12986_v10  ;;  %v12999_v10 = vld [vmem:[%s13395_s12 + $0x2040] ss:$16 sps:$4 sm:$0xff]  }
 0x401   : > { %8450 = vmatpush1.bf16.msra.mxu0 %v12903_v11  ;;  %9404 = vmatpush1.bf16.msra.mxu1 %v12906_v12  ;;  %v13002_v11 = vld [vmem:[%s13395_s12 + $0x2048] ss:$16 sps:$4 sm:$0xff]   ;;  %v13007_v12 = vld [vmem:[%s13395_s12 + $0x2064] ss:$16 sps:$4 sm:$0xff]  }
 0x402   : > { %8451 = vmatprep.subr.bf16.mxu0 %v12911_v13  ;;  %9405 = vmatprep.subr.bf16.mxu1 %v12914_v14  ;;  %v13010_v13 = vld [vmem:[%s13395_s12 + $0x206c] ss:$16 sps:$4 sm:$0xff]   ;;  %v13088_v14 = vld [vmem:[%s14802_s0 + $0x84] ss:$144 sps:$4 sm:$0xff]  }
 0x405   : > { %8452 = vmatpush1.bf16.msra.mxu0 %v12909_v15  ;;  %9406 = vmatpush1.bf16.msra.mxu1 %v12912_v16  ;;  %v13005_v15 = vld [vmem:[%s13395_s12 + $0x2060] ss:$16 sps:$4 sm:$0xff]   ;;  %v13008_v16 = vld [vmem:[%s13395_s12 + $0x2068] ss:$16 sps:$4 sm:$0xff]  }
 0x406   : > { %8453 = vmatprep.subr.bf16.mxu0 %v12917_v17  ;;  %9407 = vmatprep.subr.bf16.mxu1 %v12920_v18  ;;  %v13013_v17 = vld [vmem:[%s13395_s12 + $0x2084] ss:$16 sps:$4 sm:$0xff]   ;;  %v13016_v18 = vld [vmem:[%s13395_s12 + $0x208c] ss:$16 sps:$4 sm:$0xff]  }
 0x409   : > { %8454 = vmatpush1.bf16.msra.mxu0 %v12915_v19  ;;  %9408 = vmatpush1.bf16.msra.mxu1 %v12918_v20  ;;  %v13011_v19 = vld [vmem:[%s13395_s12 + $0x2080] ss:$16 sps:$4 sm:$0xff]   ;;  %v13014_v20 = vld [vmem:[%s13395_s12 + $0x2088] ss:$16 sps:$4 sm:$0xff]  }
 0x40a   : > { %8455 = vmatprep.subr.bf16.mxu0 %v12923_v21  ;;  %9409 = vmatprep.subr.bf16.mxu1 %v12926_v22  ;;  %v13019_v21 = vld [vmem:[%s13395_s12 + $0x20a4] ss:$16 sps:$4 sm:$0xff]   ;;  %v13022_v22 = vld [vmem:[%s13395_s12 + $0x20ac] ss:$16 sps:$4 sm:$0xff]  }
 0x40d   : > { %8456 = vmatpush1.bf16.msra.mxu0 %v12921_v23  ;;  %9410 = vmatpush1.bf16.msra.mxu1 %v12924_v24  ;;  %v13017_v23 = vld [vmem:[%s13395_s12 + $0x20a0] ss:$16 sps:$4 sm:$0xff]   ;;  %v13020_v24 = vld [vmem:[%s13395_s12 + $0x20a8] ss:$16 sps:$4 sm:$0xff]  }
 0x40e   : > { %8457 = vmatprep.subr.bf16.mxu0 %v12929_v25  ;;  %9411 = vmatprep.subr.bf16.mxu1 %v12932_v26  ;;  %v13025_v25 = vld [vmem:[%s13395_s12 + $0x20c4] ss:$16 sps:$4 sm:$0xff]   ;;  %v13028_v26 = vld [vmem:[%s13395_s12 + $0x20cc] ss:$16 sps:$4 sm:$0xff]  }
 0x411   : > { %8458 = vmatpush1.bf16.msra.mxu0 %v12927_v27  ;;  %9412 = vmatpush1.bf16.msra.mxu1 %v12930_v28  ;;  %v13023_v27 = vld [vmem:[%s13395_s12 + $0x20c0] ss:$16 sps:$4 sm:$0xff]   ;;  %v13026_v28 = vld [vmem:[%s13395_s12 + $0x20c8] ss:$16 sps:$4 sm:$0xff]  }
 0x412   : > { %8459 = vmatprep.subr.bf16.mxu0 %v12935_v29  ;;  %9413 = vmatprep.subr.bf16.mxu1 %v12938_v30  ;;  %v13031_v29 = vld [vmem:[%s13395_s12 + $0x20e4] ss:$16 sps:$4 sm:$0xff]   ;;  %v13034_v30 = vld [vmem:[%s13395_s12 + $0x20ec] ss:$16 sps:$4 sm:$0xff]  }
 0x415   : > { %8460 = vmatpush1.bf16.msra.mxu0 %v12933_v31  ;;  %9414 = vmatpush1.bf16.msra.mxu1 %v12936_v32  ;;  %v13029_v31 = vld [vmem:[%s13395_s12 + $0x20e0] ss:$16 sps:$4 sm:$0xff]   ;;  %v13032_v32 = vld [vmem:[%s13395_s12 + $0x20e8] ss:$16 sps:$4 sm:$0xff]  }
 0x416   : > { %8461 = vmatprep.subr.bf16.mxu0 %v12941_v33  ;;  %9415 = vmatprep.subr.bf16.mxu1 %v12944_v34  ;;  %v13037_v33 = vld [vmem:[%s13395_s12 + $0x2104] ss:$16 sps:$4 sm:$0xff]   ;;  %v13040_v34 = vld [vmem:[%s13395_s12 + $0x210c] ss:$16 sps:$4 sm:$0xff]  }
 0x419   : > { %8462 = vmatpush1.bf16.msra.mxu0 %v12939_v35  ;;  %9416 = vmatpush1.bf16.msra.mxu1 %v12942_v36  ;;  %v13035_v35 = vld [vmem:[%s13395_s12 + $0x2100] ss:$16 sps:$4 sm:$0xff]   ;;  %v13038_v36 = vld [vmem:[%s13395_s12 + $0x2108] ss:$16 sps:$4 sm:$0xff]  }
 0x41a   : > { %8463 = vmatprep.subr.bf16.mxu0 %v12947_v37  ;;  %9417 = vmatprep.subr.bf16.mxu1 %v12950_v38  ;;  %v13043_v37 = vld [vmem:[%s13395_s12 + $0x2124] ss:$16 sps:$4 sm:$0xff]   ;;  %v13046_v38 = vld [vmem:[%s13395_s12 + $0x212c] ss:$16 sps:$4 sm:$0xff]  }
 0x41d   : > { %8464 = vmatpush1.bf16.msra.mxu0 %v12945_v39  ;;  %9418 = vmatpush1.bf16.msra.mxu1 %v12948_v40  ;;  %v13041_v39 = vld [vmem:[%s13395_s12 + $0x2120] ss:$16 sps:$4 sm:$0xff]   ;;  %v13044_v40 = vld [vmem:[%s13395_s12 + $0x2128] ss:$16 sps:$4 sm:$0xff]  }
 0x41e   : > { %8465 = vmatprep.subr.bf16.mxu0 %v12953_v41  ;;  %9419 = vmatprep.subr.bf16.mxu1 %v12956_v42  ;;  %v13049_v41 = vld [vmem:[%s13395_s12 + $0x2144] ss:$16 sps:$4 sm:$0xff]   ;;  %v13052_v42 = vld [vmem:[%s13395_s12 + $0x214c] ss:$16 sps:$4 sm:$0xff]  }
 0x421   : > { %8466 = vmatpush1.bf16.msra.mxu0 %v12951_v43  ;;  %9420 = vmatpush1.bf16.msra.mxu1 %v12954_v44  ;;  %v13047_v43 = vld [vmem:[%s13395_s12 + $0x2140] ss:$16 sps:$4 sm:$0xff]   ;;  %v13050_v44 = vld [vmem:[%s13395_s12 + $0x2148] ss:$16 sps:$4 sm:$0xff]  }
 0x422   : > { %8467 = vmatprep.subr.bf16.mxu0 %v12959_v45  ;;  %9421 = vmatprep.subr.bf16.mxu1 %v12962_v46  ;;  %v13055_v45 = vld [vmem:[%s13395_s12 + $0x2164] ss:$16 sps:$4 sm:$0xff]   ;;  %v13058_v46 = vld [vmem:[%s13395_s12 + $0x216c] ss:$16 sps:$4 sm:$0xff]  }
 0x425   : > { %8468 = vmatpush1.bf16.msra.mxu0 %v12957_v47  ;;  %9422 = vmatpush1.bf16.msra.mxu1 %v12960_v48  ;;  %v13053_v47 = vld [vmem:[%s13395_s12 + $0x2160] ss:$16 sps:$4 sm:$0xff]   ;;  %v13056_v48 = vld [vmem:[%s13395_s12 + $0x2168] ss:$16 sps:$4 sm:$0xff]  }
 0x426   : > { %8469 = vmatprep.subr.bf16.mxu0 %v12965_v49  ;;  %9423 = vmatprep.subr.bf16.mxu1 %v12968_v50  ;;  %v13061_v49 = vld [vmem:[%s13395_s12 + $0x2184] ss:$16 sps:$4 sm:$0xff]   ;;  %v13064_v50 = vld [vmem:[%s13395_s12 + $0x218c] ss:$16 sps:$4 sm:$0xff]  }
 0x429   : > { %8470 = vmatpush1.bf16.msra.mxu0 %v12963_v51  ;;  %9424 = vmatpush1.bf16.msra.mxu1 %v12966_v52  ;;  %v13059_v51 = vld [vmem:[%s13395_s12 + $0x2180] ss:$16 sps:$4 sm:$0xff]   ;;  %v13062_v52 = vld [vmem:[%s13395_s12 + $0x2188] ss:$16 sps:$4 sm:$0xff]  }
 0x42a   : > { %8471 = vmatprep.subr.bf16.mxu0 %v12973_v53  ;;  %9425 = vmatprep.subr.bf16.mxu1 %v12976_v54  ;;  %v13067_v53 = vld [vmem:[%s13395_s12 + $0x21a4] ss:$16 sps:$4 sm:$0xff]   ;;  %v13070_v54 = vld [vmem:[%s13395_s12 + $0x21ac] ss:$16 sps:$4 sm:$0xff]  }
 0x42d   : > { %8472 = vmatpush1.bf16.msra.mxu0 %v12971_v55  ;;  %9426 = vmatpush1.bf16.msra.mxu1 %v12974_v56  ;;  %v13065_v55 = vld [vmem:[%s13395_s12 + $0x21a0] ss:$16 sps:$4 sm:$0xff]   ;;  %v13068_v56 = vld [vmem:[%s13395_s12 + $0x21a8] ss:$16 sps:$4 sm:$0xff]  }
 0x42e   : > { %8473 = vmatprep.subr.bf16.mxu0 %v12980_v57  ;;  %9427 = vmatprep.subr.bf16.mxu1 %v12983_v58  ;;  %v13075_v57 = vld [vmem:[%s13395_s12 + $0x21c4] ss:$16 sps:$4 sm:$0xff]   ;;  %v13078_v58 = vld [vmem:[%s13395_s12 + $0x21cc] ss:$16 sps:$4 sm:$0xff]  }
 0x431   : > { %8474 = vmatpush1.bf16.msra.mxu0 %v12978_v59  ;;  %9428 = vmatpush1.bf16.msra.mxu1 %v12981_v60  ;;  %v13073_v59 = vld [vmem:[%s13395_s12 + $0x21c0] ss:$16 sps:$4 sm:$0xff]   ;;  %v13076_v60 = vld [vmem:[%s13395_s12 + $0x21c8] ss:$16 sps:$4 sm:$0xff]  }
 0x432   : > { %8496 = vmatprep.subr.bf16.mxu0 %v12989_v61  ;;  %9450 = vmatprep.subr.bf16.mxu1 %v12992_v62  ;;  %v13082_v61 = vld [vmem:[%s13395_s12 + $0x21e4] ss:$16 sps:$4 sm:$0xff]   ;;  %v13085_v62 = vld [vmem:[%s13395_s12 + $0x21ec] ss:$16 sps:$4 sm:$0xff]  }
 0x434   : > { %8476 = vmatmul.mubr.bf16.vlgmr.msra.gmra.mrb[0].mxu0 %v12984_v63  ;;  %9430 = vmatmul.mubr.bf16.vlgmr.msra.gmra.mrb[0].mxu1 %v12984_v63  ;;  %v13080_v63 = vld [vmem:[%s13395_s12 + $0x21e0] ss:$16 sps:$4 sm:$0xff]  }
 0x435   : > { %8497 = vmatpush1.bf16.msra.mxu0 %v12987_v0  ;;  %9451 = vmatpush1.bf16.msra.mxu1 %v12990_v1  ;;  %v13083_v0 = vld [vmem:[%s13395_s12 + $0x21e8] ss:$16 sps:$4 sm:$0xff]   ;;  %v13091_v1 = vld [vmem:[%s13395_s12 + $0x2204] ss:$16 sps:$4 sm:$0xff]  }
 0x436   : > { %8498 = vmatprep.subr.bf16.mxu0 %v12995_v2  ;;  %9452 = vmatprep.subr.bf16.mxu1 %v12998_v3  ;;  %v13094_v2 = vld [vmem:[%s13395_s12 + $0x220c] ss:$16 sps:$4 sm:$0xff]   ;;  %v13086_v3 = vld [vmem:[%s14802_s0 + $0x80] ss:$144 sps:$4 sm:$0xff]  }
 0x437   : > { %8485 = vmatprep.mubr.bf16.mxu0 %v13071_v4  ;;  %9439 = vmatprep.mubr.bf16.mxu1 %v13071_v4  ;;  %v13089_v4 = vld [vmem:[%s13395_s12 + $0x2200] ss:$16 sps:$4 sm:$0xff]  }
 0x439   : > { %8499 = vmatpush1.bf16.msra.mxu0 %v12993_v5  ;;  %9453 = vmatpush1.bf16.msra.mxu1 %v12996_v6  ;;  %v13092_v5 = vld [vmem:[%s13395_s12 + $0x2208] ss:$16 sps:$4 sm:$0xff]   ;;  %v13097_v6 = vld [vmem:[%s13395_s12 + $0x2224] ss:$16 sps:$4 sm:$0xff]  }
 0x43a   : > { %8500 = vmatprep.subr.bf16.mxu0 %v13001_v7  ;;  %9454 = vmatprep.subr.bf16.mxu1 %v13004_v8  ;;  %v13100_v7 = vld [vmem:[%s13395_s12 + $0x222c] ss:$16 sps:$4 sm:$0xff]   ;;  %v13173_v8 = vld [vmem:[%s14802_s0 + $0x1a4] ss:$144 sps:$4 sm:$0xff]  }
 0x43c   : > { %8486 = vmatmul.mubr.bf16.gmra.mrb[4].mxu0 %v13079_v9  ;;  %9440 = vmatmul.mubr.bf16.gmra.mrb[4].mxu1 %v13079_v9  ;;  %v13095_v9 = vld [vmem:[%s13395_s12 + $0x2220] ss:$16 sps:$4 sm:$0xff]  }
 0x43d   : > { %8501 = vmatpush1.bf16.msra.mxu0 %v12999_v10  ;;  %9455 = vmatpush1.bf16.msra.mxu1 %v13002_v11  ;;  %v13098_v10 = vld [vmem:[%s13395_s12 + $0x2228] ss:$16 sps:$4 sm:$0xff]   ;;  %v13103_v11 = vld [vmem:[%s13395_s12 + $0x2244] ss:$16 sps:$4 sm:$0xff]  }
 0x43e   : > { %8502 = vmatprep.subr.bf16.mxu0 %v13007_v12  ;;  %9456 = vmatprep.subr.bf16.mxu1 %v13010_v13  ;;  %v13106_v12 = vld [vmem:[%s13395_s12 + $0x224c] ss:$16 sps:$4 sm:$0xff]   ;;  %v13175_v13 = vld [vmem:[%s14802_s0 + $0x1a0] ss:$144 sps:$4 sm:$0xff]  }
 0x43f   : > { %8528 = vmatprep.mubr.bf16.mxu0 %v13088_v14  ;;  %9482 = vmatprep.mubr.bf16.mxu1 %v13088_v14  ;;  %v13101_v14 = vld [vmem:[%s13395_s12 + $0x2240] ss:$16 sps:$4 sm:$0xff]  }
 0x441   : > { %8503 = vmatpush1.bf16.msra.mxu0 %v13005_v15  ;;  %9457 = vmatpush1.bf16.msra.mxu1 %v13008_v16  ;;  %v13104_v15 = vld [vmem:[%s13395_s12 + $0x2248] ss:$16 sps:$4 sm:$0xff]   ;;  %v13109_v16 = vld [vmem:[%s13395_s12 + $0x2264] ss:$16 sps:$4 sm:$0xff]  }
 0x442   : > { %8504 = vmatprep.subr.bf16.mxu0 %v13013_v17  ;;  %9458 = vmatprep.subr.bf16.mxu1 %v13016_v18  ;;  %v13112_v17 = vld [vmem:[%s13395_s12 + $0x226c] ss:$16 sps:$4 sm:$0xff]  }
 0x443   : > { %v13190_v18 = vld [vmem:[%s14802_s0 + $0x8c] ss:$144 sps:$4 sm:$0xff]  }
 0x445   : > { %8505 = vmatpush1.bf16.msra.mxu0 %v13011_v19  ;;  %9459 = vmatpush1.bf16.msra.mxu1 %v13014_v20  ;;  %v13107_v19 = vld [vmem:[%s13395_s12 + $0x2260] ss:$16 sps:$4 sm:$0xff]   ;;  %v13110_v20 = vld [vmem:[%s13395_s12 + $0x2268] ss:$16 sps:$4 sm:$0xff]  }
 0x446   : > { %8506 = vmatprep.subr.bf16.mxu0 %v13019_v21  ;;  %9460 = vmatprep.subr.bf16.mxu1 %v13022_v22  ;;  %v13115_v21 = vld [vmem:[%s13395_s12 + $0x2284] ss:$16 sps:$4 sm:$0xff]   ;;  %v13118_v22 = vld [vmem:[%s13395_s12 + $0x228c] ss:$16 sps:$4 sm:$0xff]  }
 0x449   : > { %8507 = vmatpush1.bf16.msra.mxu0 %v13017_v23  ;;  %9461 = vmatpush1.bf16.msra.mxu1 %v13020_v24  ;;  %v13113_v23 = vld [vmem:[%s13395_s12 + $0x2280] ss:$16 sps:$4 sm:$0xff]   ;;  %v13116_v24 = vld [vmem:[%s13395_s12 + $0x2288] ss:$16 sps:$4 sm:$0xff]  }
 0x44a   : > { %8508 = vmatprep.subr.bf16.mxu0 %v13025_v25  ;;  %9462 = vmatprep.subr.bf16.mxu1 %v13028_v26  ;;  %v13121_v25 = vld [vmem:[%s13395_s12 + $0x22a4] ss:$16 sps:$4 sm:$0xff]   ;;  %v13124_v26 = vld [vmem:[%s13395_s12 + $0x22ac] ss:$16 sps:$4 sm:$0xff]  }
 0x44d   : > { %8509 = vmatpush1.bf16.msra.mxu0 %v13023_v27  ;;  %9463 = vmatpush1.bf16.msra.mxu1 %v13026_v28  ;;  %v13119_v27 = vld [vmem:[%s13395_s12 + $0x22a0] ss:$16 sps:$4 sm:$0xff]   ;;  %v13122_v28 = vld [vmem:[%s13395_s12 + $0x22a8] ss:$16 sps:$4 sm:$0xff]  }
 0x44e   : > { %8510 = vmatprep.subr.bf16.mxu0 %v13031_v29  ;;  %9464 = vmatprep.subr.bf16.mxu1 %v13034_v30  ;;  %v13127_v29 = vld [vmem:[%s13395_s12 + $0x22c4] ss:$16 sps:$4 sm:$0xff]   ;;  %v13130_v30 = vld [vmem:[%s13395_s12 + $0x22cc] ss:$16 sps:$4 sm:$0xff]  }
 0x451   : > { %8511 = vmatpush1.bf16.msra.mxu0 %v13029_v31  ;;  %9465 = vmatpush1.bf16.msra.mxu1 %v13032_v32  ;;  %v13125_v31 = vld [vmem:[%s13395_s12 + $0x22c0] ss:$16 sps:$4 sm:$0xff]   ;;  %v13128_v32 = vld [vmem:[%s13395_s12 + $0x22c8] ss:$16 sps:$4 sm:$0xff]  }
 0x452   : > { %8512 = vmatprep.subr.bf16.mxu0 %v13037_v33  ;;  %9466 = vmatprep.subr.bf16.mxu1 %v13040_v34  ;;  %v13133_v33 = vld [vmem:[%s13395_s12 + $0x22e4] ss:$16 sps:$4 sm:$0xff]   ;;  %v13136_v34 = vld [vmem:[%s13395_s12 + $0x22ec] ss:$16 sps:$4 sm:$0xff]  }
 0x455   : > { %8513 = vmatpush1.bf16.msra.mxu0 %v13035_v35  ;;  %9467 = vmatpush1.bf16.msra.mxu1 %v13038_v36  ;;  %v13131_v35 = vld [vmem:[%s13395_s12 + $0x22e0] ss:$16 sps:$4 sm:$0xff]   ;;  %v13134_v36 = vld [vmem:[%s13395_s12 + $0x22e8] ss:$16 sps:$4 sm:$0xff]  }
 0x456   : > { %8514 = vmatprep.subr.bf16.mxu0 %v13043_v37  ;;  %9468 = vmatprep.subr.bf16.mxu1 %v13046_v38  ;;  %v13139_v37 = vld [vmem:[%s13395_s12 + $0x2304] ss:$16 sps:$4 sm:$0xff]   ;;  %v13142_v38 = vld [vmem:[%s13395_s12 + $0x230c] ss:$16 sps:$4 sm:$0xff]  }
 0x459   : > { %8515 = vmatpush1.bf16.msra.mxu0 %v13041_v39  ;;  %9469 = vmatpush1.bf16.msra.mxu1 %v13044_v40  ;;  %v13137_v39 = vld [vmem:[%s13395_s12 + $0x2300] ss:$16 sps:$4 sm:$0xff]   ;;  %v13140_v40 = vld [vmem:[%s13395_s12 + $0x2308] ss:$16 sps:$4 sm:$0xff]  }
 0x45a   : > { %8516 = vmatprep.subr.bf16.mxu0 %v13049_v41  ;;  %9470 = vmatprep.subr.bf16.mxu1 %v13052_v42  ;;  %v13145_v41 = vld [vmem:[%s13395_s12 + $0x2324] ss:$16 sps:$4 sm:$0xff]   ;;  %v13148_v42 = vld [vmem:[%s13395_s12 + $0x232c] ss:$16 sps:$4 sm:$0xff]  }
 0x45d   : > { %8517 = vmatpush1.bf16.msra.mxu0 %v13047_v43  ;;  %9471 = vmatpush1.bf16.msra.mxu1 %v13050_v44  ;;  %v13143_v43 = vld [vmem:[%s13395_s12 + $0x2320] ss:$16 sps:$4 sm:$0xff]   ;;  %v13146_v44 = vld [vmem:[%s13395_s12 + $0x2328] ss:$16 sps:$4 sm:$0xff]  }
 0x45e   : > { %8518 = vmatprep.subr.bf16.mxu0 %v13055_v45  ;;  %9472 = vmatprep.subr.bf16.mxu1 %v13058_v46  ;;  %v13151_v45 = vld [vmem:[%s13395_s12 + $0x2344] ss:$16 sps:$4 sm:$0xff]   ;;  %v13154_v46 = vld [vmem:[%s13395_s12 + $0x234c] ss:$16 sps:$4 sm:$0xff]  }
 0x461   : > { %8519 = vmatpush1.bf16.msra.mxu0 %v13053_v47  ;;  %9473 = vmatpush1.bf16.msra.mxu1 %v13056_v48  ;;  %v13149_v47 = vld [vmem:[%s13395_s12 + $0x2340] ss:$16 sps:$4 sm:$0xff]   ;;  %v13152_v48 = vld [vmem:[%s13395_s12 + $0x2348] ss:$16 sps:$4 sm:$0xff]  }
 0x462   : > { %8520 = vmatprep.subr.bf16.mxu0 %v13061_v49  ;;  %9474 = vmatprep.subr.bf16.mxu1 %v13064_v50  ;;  %v13157_v49 = vld [vmem:[%s13395_s12 + $0x2364] ss:$16 sps:$4 sm:$0xff]   ;;  %v13160_v50 = vld [vmem:[%s13395_s12 + $0x236c] ss:$16 sps:$4 sm:$0xff]  }
 0x465   : > { %8521 = vmatpush1.bf16.msra.mxu0 %v13059_v51  ;;  %9475 = vmatpush1.bf16.msra.mxu1 %v13062_v52  ;;  %v13155_v51 = vld [vmem:[%s13395_s12 + $0x2360] ss:$16 sps:$4 sm:$0xff]   ;;  %v13158_v52 = vld [vmem:[%s13395_s12 + $0x2368] ss:$16 sps:$4 sm:$0xff]  }
 0x466   : > { %8522 = vmatprep.subr.bf16.mxu0 %v13067_v53  ;;  %9476 = vmatprep.subr.bf16.mxu1 %v13070_v54  ;;  %v13163_v53 = vld [vmem:[%s13395_s12 + $0x2384] ss:$16 sps:$4 sm:$0xff]   ;;  %v13166_v54 = vld [vmem:[%s13395_s12 + $0x238c] ss:$16 sps:$4 sm:$0xff]  }
 0x469   : > { %8523 = vmatpush1.bf16.msra.mxu0 %v13065_v55  ;;  %9477 = vmatpush1.bf16.msra.mxu1 %v13068_v56  ;;  %v13161_v55 = vld [vmem:[%s13395_s12 + $0x2380] ss:$16 sps:$4 sm:$0xff]   ;;  %v13164_v56 = vld [vmem:[%s13395_s12 + $0x2388] ss:$16 sps:$4 sm:$0xff]  }
 0x46a   : > { %8524 = vmatprep.subr.bf16.mxu0 %v13075_v57  ;;  %9478 = vmatprep.subr.bf16.mxu1 %v13078_v58  ;;  %v13169_v57 = vld [vmem:[%s13395_s12 + $0x23a4] ss:$16 sps:$4 sm:$0xff]   ;;  %v13172_v58 = vld [vmem:[%s13395_s12 + $0x23ac] ss:$16 sps:$4 sm:$0xff]  }
 0x46d   : > { %8525 = vmatpush1.bf16.msra.mxu0 %v13073_v59  ;;  %9479 = vmatpush1.bf16.msra.mxu1 %v13076_v60  ;;  %v13167_v59 = vld [vmem:[%s13395_s12 + $0x23a0] ss:$16 sps:$4 sm:$0xff]   ;;  %v13170_v60 = vld [vmem:[%s13395_s12 + $0x23a8] ss:$16 sps:$4 sm:$0xff]  }
 0x46e   : > { %8526 = vmatprep.subr.bf16.mxu0 %v13082_v61  ;;  %9480 = vmatprep.subr.bf16.mxu1 %v13085_v62  ;;  %v13178_v61 = vld [vmem:[%s13395_s12 + $0x23c4] ss:$16 sps:$4 sm:$0xff]   ;;  %v13181_v62 = vld [vmem:[%s13395_s12 + $0x23cc] ss:$16 sps:$4 sm:$0xff]  }
 0x471   : > { %8527 = vmatpush1.bf16.msra.mxu0 %v13080_v63  ;;  %9481 = vmatpush1.bf16.msra.mxu1 %v13083_v0  ;;  %v13176_v63 = vld [vmem:[%s13395_s12 + $0x23c0] ss:$16 sps:$4 sm:$0xff]   ;;  %v13179_v0 = vld [vmem:[%s13395_s12 + $0x23c8] ss:$16 sps:$4 sm:$0xff]  }
 0x472   : > { %8549 = vmatprep.subr.bf16.mxu0 %v13091_v1  ;;  %9503 = vmatprep.subr.bf16.mxu1 %v13094_v2  ;;  %v13184_v1 = vld [vmem:[%s13395_s12 + $0x23e4] ss:$16 sps:$4 sm:$0xff]   ;;  %v13187_v2 = vld [vmem:[%s13395_s12 + $0x23ec] ss:$16 sps:$4 sm:$0xff]  }
 0x474   : > { %8529 = vmatmul.mubr.bf16.vlgmr.msra.gmra.mrb[0].mxu0 %v13086_v3  ;;  %9483 = vmatmul.mubr.bf16.vlgmr.msra.gmra.mrb[0].mxu1 %v13086_v3  ;;  %v13182_v3 = vld [vmem:[%s13395_s12 + $0x23e0] ss:$16 sps:$4 sm:$0xff]  }
 0x475   : > { %8550 = vmatpush1.bf16.msra.mxu0 %v13089_v4  ;;  %9504 = vmatpush1.bf16.msra.mxu1 %v13092_v5  ;;  %v13185_v4 = vld [vmem:[%s13395_s12 + $0x23e8] ss:$16 sps:$4 sm:$0xff]   ;;  %s9796_s12 = sshll.u32 %s13266_s18, 2 }
 0x476   : > { %8551 = vmatprep.subr.bf16.mxu0 %v13097_v6  ;;  %9505 = vmatprep.subr.bf16.mxu1 %v13100_v7  ;;  %v13188_v5 = vld [vmem:[%s14802_s0 + $0x88] ss:$144 sps:$4 sm:$0xff]   ;;  %v13191_v6 = vld [vmem:[%s14802_s0 + $0x1ac] ss:$144 sps:$4 sm:$0xff]   ;;  %p285_p7 = scmp.lt.s32.totalorder %s9796_s12, 15 }
 0x477   : > { %8538 = vmatprep.mubr.bf16.mxu0 %v13173_v8  ;;  %9492 = vmatprep.mubr.bf16.mxu1 %v13173_v8  ;;  %v13193_v7 = vld [vmem:[%s14802_s0 + $0x1a8] ss:$144 sps:$4 sm:$0xff]   ;;  %v9558_v8 = vlaneseq }
 0x478   : > { %s14817_s12 = smov (!%p285_p7, %s9796_s12), 15 }
 0x479   : > { %8552 = vmatpush1.bf16.msra.mxu0 %v13095_v9  ;;  %9506 = vmatpush1.bf16.msra.mxu1 %v13098_v10  ;;  %v9559_v9 = vshrl.u32 %v9558_v8, 7  ;;  %s287_s7 = scalar_lea.vmem %s14804_s2, %s14817_s12  ;;  %s292_s13 = scalar_lea.vmem %s14805_s3, %s14817_s12 }
 0x47a   : > { %8553 = vmatprep.subr.bf16.mxu0 %v13103_v11  ;;  %9507 = vmatprep.subr.bf16.mxu1 %v13106_v12  ;;  %v9556_v12 = vld [vmem:[%s287_s7] sm:$0xf]  ;;  %s9799_s18 = sshll.u32 %s14817_s12, 3 }
 0x47b   : > { %v9560_v10 = vsub.s32 0, %v9559_v9  ;;  %v9568_v11 = vsub.s32 2, %v9559_v9  ;;  %s302_s21 = scalar_lea.vmem %s14806_s4, %s9799_s18 }
 0x47c   : > { %8539 = vmatmul.mubr.bf16.gmra.mrb[4].mxu0 %v13175_v13  ;;  %9493 = vmatmul.mubr.bf16.gmra.mrb[4].mxu1 %v13175_v13  ;;  %v9564_v13 = vsub.s32 1, %v9559_v9 }
 0x47d   : > { %8554 = vmatpush1.bf16.msra.mxu0 %v13101_v14  ;;  %9508 = vmatpush1.bf16.msra.mxu1 %v13104_v15  ;;  %v9572_v14 = vsub.s32 3, %v9559_v9  ;;  %v9594_v15 = vld [vmem:[%s292_s13] sm:$0xf] }
 0x47e   : > { %8555 = vmatprep.subr.bf16.mxu0 %v13109_v16  ;;  %9509 = vmatprep.subr.bf16.mxu1 %v13112_v17  ;;  %v9561_v16 = vrot.slane %v9556_v12, %v9560_v10  ;;  %v9569_v17 = vrot.slane %v9556_v12, %v9568_v11 }
 0x47f   : > { %8581 = vmatprep.mubr.bf16.mxu0 %v13190_v18  ;;  %9535 = vmatprep.mubr.bf16.mxu1 %v13190_v18  ;;  %v9565_v18 = vrot.slane %v9556_v12, %v9564_v13 }
 0x481   : > { %8556 = vmatpush1.bf16.msra.mxu0 %v13107_v19  ;;  %9510 = vmatpush1.bf16.msra.mxu1 %v13110_v20  ;;  %v9573_v19 = vrot.slane %v9556_v12, %v9572_v14  ;;  %v9599_v20 = vrot.slane %v9594_v15, %v9560_v10 }
 0x482   : > { %8557 = vmatprep.subr.bf16.mxu0 %v13115_v21  ;;  %9511 = vmatprep.subr.bf16.mxu1 %v13118_v22  ;;  %v9607_v21 = vrot.slane %v9594_v15, %v9568_v11 }
 0x485   : > { %8558 = vmatpush1.bf16.msra.mxu0 %v13113_v23  ;;  %9512 = vmatpush1.bf16.msra.mxu1 %v13116_v24  ;;  %v9603_v24 = vrot.slane %v9594_v15, %v9564_v13 }
 0x486   : > { %8559 = vmatprep.subr.bf16.mxu0 %v13121_v25  ;;  %9513 = vmatprep.subr.bf16.mxu1 %v13124_v26  ;;  %v9611_v25 = vrot.slane %v9594_v15, %v9572_v14 }
 0x489   : > { %8560 = vmatpush1.bf16.msra.mxu0 %v13119_v27  ;;  %9514 = vmatpush1.bf16.msra.mxu1 %v13122_v28 }
 0x48a   : > { %8561 = vmatprep.subr.bf16.mxu0 %v13127_v29  ;;  %9515 = vmatprep.subr.bf16.mxu1 %v13130_v30 }
 0x48d   : > { %8562 = vmatpush1.bf16.msra.mxu0 %v13125_v31  ;;  %9516 = vmatpush1.bf16.msra.mxu1 %v13128_v32 }
 0x48e   : > { %8563 = vmatprep.subr.bf16.mxu0 %v13133_v33  ;;  %9517 = vmatprep.subr.bf16.mxu1 %v13136_v34 }
 0x491   : > { %8564 = vmatpush1.bf16.msra.mxu0 %v13131_v35  ;;  %9518 = vmatpush1.bf16.msra.mxu1 %v13134_v36 }
 0x492   : > { %8565 = vmatprep.subr.bf16.mxu0 %v13139_v37  ;;  %9519 = vmatprep.subr.bf16.mxu1 %v13142_v38 }
 0x495   : > { %8566 = vmatpush1.bf16.msra.mxu0 %v13137_v39  ;;  %9520 = vmatpush1.bf16.msra.mxu1 %v13140_v40 }
 0x496   : > { %8567 = vmatprep.subr.bf16.mxu0 %v13145_v41  ;;  %9521 = vmatprep.subr.bf16.mxu1 %v13148_v42 }
 0x499   : > { %8568 = vmatpush1.bf16.msra.mxu0 %v13143_v43  ;;  %9522 = vmatpush1.bf16.msra.mxu1 %v13146_v44 }
 0x49a   : > { %8569 = vmatprep.subr.bf16.mxu0 %v13151_v45  ;;  %9523 = vmatprep.subr.bf16.mxu1 %v13154_v46 }
 0x49d   : > { %8570 = vmatpush1.bf16.msra.mxu0 %v13149_v47  ;;  %9524 = vmatpush1.bf16.msra.mxu1 %v13152_v48 }
 0x49e   : > { %8571 = vmatprep.subr.bf16.mxu0 %v13157_v49  ;;  %9525 = vmatprep.subr.bf16.mxu1 %v13160_v50 }
 0x4a1   : > { %8572 = vmatpush1.bf16.msra.mxu0 %v13155_v51  ;;  %9526 = vmatpush1.bf16.msra.mxu1 %v13158_v52 }
 0x4a2   : > { %8573 = vmatprep.subr.bf16.mxu0 %v13163_v53  ;;  %9527 = vmatprep.subr.bf16.mxu1 %v13166_v54 }
 0x4a5   : > { %8574 = vmatpush1.bf16.msra.mxu0 %v13161_v55  ;;  %9528 = vmatpush1.bf16.msra.mxu1 %v13164_v56 }
 0x4a6   : > { %8575 = vmatprep.subr.bf16.mxu0 %v13169_v57  ;;  %9529 = vmatprep.subr.bf16.mxu1 %v13172_v58 }
 0x4a9   : > { %8576 = vmatpush1.bf16.msra.mxu0 %v13167_v59  ;;  %9530 = vmatpush1.bf16.msra.mxu1 %v13170_v60 }
 0x4aa   : > { %8577 = vmatprep.subr.bf16.mxu0 %v13178_v61  ;;  %9531 = vmatprep.subr.bf16.mxu1 %v13181_v62 }
 0x4ad   : > { %8578 = vmatpush1.bf16.msra.mxu0 %v13176_v63  ;;  %9532 = vmatpush1.bf16.msra.mxu1 %v13179_v0 }
 0x4ae   : > { %8579 = vmatprep.subr.bf16.mxu0 %v13184_v1  ;;  %9533 = vmatprep.subr.bf16.mxu1 %v13187_v2 }
 0x4b1   : > { %8580 = vmatpush1.bf16.msra.mxu0 %v13182_v3  ;;  %9534 = vmatpush1.bf16.msra.mxu1 %v13185_v4 }
 0x4b4   : > { %8582 = vmatmul.mubr.bf16.vlgmr.msra.gmra.mrb[0].mxu0 %v13188_v5  ;;  %9536 = vmatmul.mubr.bf16.vlgmr.msra.gmra.mrb[0].mxu1 %v13188_v5 }
 0x4b5   : > { %8591 = vmatprep.mubr.bf16.mxu0 %v13191_v6  ;;  %9545 = vmatprep.mubr.bf16.mxu1 %v13191_v6 }
 0x4bc   : > { %8592 = vmatmul.mubr.bf16.gmra.mrb[4].mxu0 %v13193_v7  ;;  %9546 = vmatmul.mubr.bf16.gmra.mrb[4].mxu1 %v13193_v7 }
 0x587   : > { %v8583_v22 = vpop.f32.mrb[0].mxu0  ;;  %v9537_v23 = vpop.f32.mrb[0].mxu1 }
 0x588   : > { %v9578_v26 = vmul.f32 %v9561_v16, %v8583_v22  ;;  %v9580_v27 = vmul.f32 %v9569_v17, %v9537_v23  ;;  %v8585_v28 = vpop.f32.mrb[1].mxu0  ;;  %v9539_v29 = vpop.f32.mrb[1].mxu1 }
 0x589   : > { %v9579_v30 = vmul.f32 %v9565_v18, %v8585_v28  ;;  %v9581_v31 = vmul.f32 %v9573_v19, %v9539_v29  ;;  %v8587_v32 = vpop.f32.mrb[2].mxu0  ;;  %v9541_v33 = vpop.f32.mrb[2].mxu1 }
 0x58a   : > { %v9616_v34 = vadd.f32 %v9599_v20, %v9578_v26  ;;  %v9618_v35 = vadd.f32 %v9607_v21, %v9580_v27  ;;  %v9582_v36 = vmul.f32 %v9561_v16, %v8587_v32  ;;  %v9584_v37 = vmul.f32 %v9569_v17, %v9541_v33  ;;  %v8589_v38 = vpop.f32.mrb[3].mxu0  ;;  %v9543_v39 = vpop.f32.mrb[3].mxu1 }
 0x58b   : > { %v9617_v40 = vadd.f32 %v9603_v24, %v9579_v30  ;;  %v9619_v41 = vadd.f32 %v9611_v25, %v9581_v31  ;;  %v9583_v42 = vmul.f32 %v9565_v18, %v8589_v38  ;;  %v9585_v43 = vmul.f32 %v9573_v19, %v9543_v39 }
 0x58c   : > { %v9620_v44 = vadd.f32 %v9599_v20, %v9582_v36  ;;  %v9622_v45 = vadd.f32 %v9607_v21, %v9584_v37  ;;  %v9632_v48 = vmax.f32 %v9616_v34, 0.0  ;;  %v9634_v49 = vmax.f32 %v9618_v35, 0.0 }
 0x58d   : > { %v9621_v46 = vadd.f32 %v9603_v24, %v9583_v42  ;;  %v9623_v47 = vadd.f32 %v9611_v25, %v9585_v43  ;;  %v9633_v52 = vmax.f32 %v9617_v40, 0.0  ;;  %v9635_v53 = vmax.f32 %v9619_v41, 0.0 }
 0x58e   : > { %v9636_v50 = vmax.f32 %v9620_v44, 0.0  ;;  %v9638_v51 = vmax.f32 %v9622_v45, 0.0 }
 0x58f   : > { %v9637_v54 = vmax.f32 %v9621_v46, 0.0  ;;  %v9639_v55 = vmax.f32 %v9623_v47, 0.0  ;;  %v8593_v56 = vpop.f32.mrb[4].mxu0  ;;  %v9547_v57 = vpop.f32.mrb[4].mxu1 }
 0x590   : > { %v9648_v58 = vmax.f32 %v9632_v48, %v9636_v50  ;;  %v9650_v59 = vmax.f32 %v9634_v49, %v9638_v51  ;;  %v9586_v60 = vmul.f32 %v9561_v16, %v8593_v56  ;;  %v9588_v61 = vmul.f32 %v9569_v17, %v9547_v57  ;;  %v8595_v62 = vpop.f32.mrb[5].mxu0  ;;  %v9549_v63 = vpop.f32.mrb[5].mxu1 }
 0x591   : > { %v9649_v0 = vmax.f32 %v9633_v52, %v9637_v54  ;;  %v9651_v1 = vmax.f32 %v9635_v53, %v9639_v55  ;;  %v9587_v2 = vmul.f32 %v9565_v18, %v8595_v62  ;;  %v9589_v3 = vmul.f32 %v9573_v19, %v9549_v63  ;;  %v8597_v4 = vpop.f32.mrb[6].mxu0  ;;  %v9551_v5 = vpop.f32.mrb[6].mxu1 }
 0x592   : > { %v9624_v6 = vadd.f32 %v9599_v20, %v9586_v60  ;;  %v9626_v7 = vadd.f32 %v9607_v21, %v9588_v61  ;;  %v9590_v8 = vmul.f32 %v9561_v16, %v8597_v4  ;;  %v9592_v9 = vmul.f32 %v9569_v17, %v9551_v5  ;;  %v8599_v10 = vpop.f32.mrb[7].mxu0  ;;  %v9553_v11 = vpop.f32.mrb[7].mxu1 }
 0x593   : > { %v9625_v12 = vadd.f32 %v9603_v24, %v9587_v2  ;;  %v9627_v13 = vadd.f32 %v9611_v25, %v9589_v3  ;;  %v9591_v14 = vmul.f32 %v9565_v18, %v8599_v10  ;;  %v9593_v15 = vmul.f32 %v9573_v19, %v9553_v11 }
 0x594   : > { %v9628_v22 = vadd.f32 %v9599_v20, %v9590_v8  ;;  %v9630_v23 = vadd.f32 %v9607_v21, %v9592_v9  ;;  %v9640_v28 = vmax.f32 %v9624_v6, 0.0  ;;  %v9642_v29 = vmax.f32 %v9626_v7, 0.0 }
 0x595   : > { %v9629_v26 = vadd.f32 %v9603_v24, %v9591_v14  ;;  %v9631_v27 = vadd.f32 %v9611_v25, %v9593_v15  ;;  %v9641_v32 = vmax.f32 %v9625_v12, 0.0  ;;  %v9643_v33 = vmax.f32 %v9627_v13, 0.0 }
 0x596   : > { %v9644_v30 = vmax.f32 %v9628_v22, 0.0  ;;  %v9646_v31 = vmax.f32 %v9630_v23, 0.0 }
 0x597   : > { %v9645_v34 = vmax.f32 %v9629_v26, 0.0  ;;  %v9647_v16 = vmax.f32 %v9631_v27, 0.0 }
 0x598   : > { %v9652_v17 = vmax.f32 %v9640_v28, %v9644_v30  ;;  %v9654_v35 = vmax.f32 %v9642_v29, %v9646_v31 }
 0x599   : > { %v9653_v18 = vmax.f32 %v9641_v32, %v9645_v34  ;;  %v9655_v19 = vmax.f32 %v9643_v33, %v9647_v16 }
 0x59a   : > { %v9656_v20 = vmax.f32 %v9648_v58, %v9652_v17  ;;  %v9658_v21 = vmax.f32 %v9650_v59, %v9654_v35 }
 0x59b   : > { %v9657_v24 = vmax.f32 %v9649_v0, %v9653_v18  ;;  %v9659_v25 = vmax.f32 %v9651_v1, %v9655_v19 }
 0x59c   : > { %9660 = vst [vmem:[%s302_s21] sm:$0xff] %v9656_v20  ;;  %9662 = vst [vmem:[%s302_s21 + $0x10] sm:$0xff] %v9658_v21 }
 0x59d   : > { %9661 = vst [vmem:[%s302_s21 + $0x8] sm:$0xff] %v9657_v24  ;;  %9663 = vst [vmem:[%s302_s21 + $0x18] sm:$0xff] %v9659_v25 }
 0x59e PF: > { %s17_s20 = sadd.s32 1, %s13274_s20   ;;  %s14809_s15 = smov %s13258_s16 }
 0x59f   : > { %p14_p9 = scmp.ge.s32.totalorder %s17_s20, 6   ;;  %s14810_s16 = smov %s13262_s17 }
 0x5a0   : > { %s14811_s17 = smov %s13349_s26  ;;  %s14812_s18 = smov %s13270_s19 }
 0x5a1   : > { %s14813_s19 = smov %s14815_s22  ;;  %16 = sbr.rel (!%p14_p9) target bundleno = 4 (0x4), region = 85 }
 0x5a8   :  { %9694 = vsyncpa [#allocation3], 1 }
 0x5a9   :  { %9696 = vsyncpa [#allocation3 + $0x1], 1 }

</bundles_post_ra>
